<compile_context>
chip_gen: v6e
topology: v6e:2x2x1
jax: 0.10.0
libtpu: 0.0.40
codegen_flags: <defaults>
</compile_context>

<pallas_src>
import math

import jax
import jax.numpy as jnp
from jax.experimental import pallas as pl
from jax.experimental.pallas import tpu as pltpu

EPS = 1e-5
LANES = 128


def _round_up(x, m):
    return ((x + m - 1) // m) * m


def _row_tile(rows, cap=2048):
    """Largest multiple-of-8 row tile <= cap that divides `rows`."""
    if rows % 8 != 0:
        return rows
    t = min(rows, cap)
    t -= t % 8
    while t > 8 and rows % t != 0:
        t -= 8
    return t


# ----------------------------- Pallas kernels ------------------------------ #

def _conv3x3_acc(x_bf16, w_ref, xpad_ref):
    """3x3 conv, stride 1, zero padding 1, as 9 accumulating MXU matmuls.

    x_bf16:   (H, W, Cp) bf16 value (Cp = channels padded to 128 lanes).
    w_ref:    (9, Cp, Cp) bf16 ref, index k = kh*3 + kw, each (Cin, Cout).
    xpad_ref: (H+2, W+2, Cp) bf16 VMEM scratch (spatial halo lives only here).
    returns:  (H*W, Cp) f32 accumulator.
    """
    H, W, Cp = x_bf16.shape
    # Halo-only zeroing: interior is written exactly once, with the data.
    zero_row = jnp.zeros((1, W + 2, Cp), jnp.bfloat16)
    zero_col = jnp.zeros((H, 1, Cp), jnp.bfloat16)
    xpad_ref[0:1, :, :] = zero_row
    xpad_ref[H + 1:H + 2, :, :] = zero_row
    xpad_ref[1:H + 1, 0:1, :] = zero_col
    xpad_ref[1:H + 1, W + 1:W + 2, :] = zero_col
    xpad_ref[1:H + 1, 1:W + 1, :] = x_bf16

    # 9 accumulating tap matmuls: (H*W, Cp) x (Cp, Cp), f32 accumulation.
    acc = jnp.zeros((H * W, Cp), jnp.float32)
    for kh in range(3):
        for kw in range(3):
            tap = xpad_ref[kh:kh + H, kw:kw + W, :].reshape(H * W, Cp)
            acc = acc + jnp.dot(tap, w_ref[kh * 3 + kw],
                                preferred_element_type=jnp.float32)
    return acc


def _partial_stats(acc):
    """Per-channel (sum, sum of squares) over the rows of acc -> (2, Cp)."""
    s = jnp.sum(acc, axis=0, keepdims=True)
    ss = jnp.sum(acc * acc, axis=0, keepdims=True)
    return jnp.concatenate([s, ss], axis=0)


def _conv1_stats_kernel(x_ref, w_ref, y_ref, stats_ref, xpad_ref):
    """y = conv1(x); also emit per-image BN1 partial statistics."""
    H, W, Cp = x_ref.shape[1], x_ref.shape[2], x_ref.shape[3]
    acc = _conv3x3_acc(x_ref[0], w_ref, xpad_ref)
    y_ref[0] = acc.reshape(H, W, Cp).astype(y_ref.dtype)
    stats_ref[0] = _partial_stats(acc)


def _bn_relu_conv2_stats_kernel(y_ref, scale_ref, shift_ref, w_ref,
                                z_ref, stats_ref, xpad_ref):
    """z = conv2(relu(y * scale + shift)); also emit BN2 partial statistics."""
    H, W, Cp = y_ref.shape[1], y_ref.shape[2], y_ref.shape[3]
    a = jnp.maximum(
        y_ref[0].astype(jnp.float32) * scale_ref[0] + shift_ref[0], 0.0)
    acc = _conv3x3_acc(a.astype(jnp.bfloat16), w_ref, xpad_ref)
    z_ref[0] = acc.reshape(H, W, Cp).astype(z_ref.dtype)
    stats_ref[0] = _partial_stats(acc)


def _bn_add_relu_kernel(z_ref, res_ref, scale_ref, shift_ref, o_ref):
    """out = relu(z * scale + shift + residual); flattened (rows, Cp) tiles."""
    y = (z_ref[...].astype(jnp.float32) * scale_ref[0] + shift_ref[0]
         + res_ref[...].astype(jnp.float32))
    o_ref[...] = jnp.maximum(y, 0.0).astype(o_ref.dtype)


# ---------------------------- pallas_call wrappers -------------------------- #

def conv1_with_stats(x, w):
    N, H, W, Cp = x.shape
    act = pl.BlockSpec((1, H, W, Cp), lambda n: (n, 0, 0, 0))
    wgt = pl.BlockSpec((9, Cp, Cp), lambda n: (0, 0, 0))
    stats = pl.BlockSpec((1, 2, Cp), lambda n: (n, 0, 0))
    return pl.pallas_call(
        _conv1_stats_kernel,
        out_shape=(jax.ShapeDtypeStruct((N, H, W, Cp), jnp.bfloat16),
                   jax.ShapeDtypeStruct((N, 2, Cp), jnp.float32)),
        grid=(N,),
        in_specs=[act, wgt],
        out_specs=(act, stats),
        scratch_shapes=[pltpu.VMEM((H + 2, W + 2, Cp), jnp.bfloat16)],
        compiler_params=pltpu.CompilerParams(dimension_semantics=("parallel",)),
    )(x, w)


def bn_relu_conv2_with_stats(y, scale, shift, w):
    N, H, W, Cp = y.shape
    act = pl.BlockSpec((1, H, W, Cp), lambda n: (n, 0, 0, 0))
    wgt = pl.BlockSpec((9, Cp, Cp), lambda n: (0, 0, 0))
    stats = pl.BlockSpec((1, 2, Cp), lambda n: (n, 0, 0))
    vec = pl.BlockSpec((1, Cp), lambda n: (0, 0))
    return pl.pallas_call(
        _bn_relu_conv2_stats_kernel,
        out_shape=(jax.ShapeDtypeStruct((N, H, W, Cp), jnp.bfloat16),
                   jax.ShapeDtypeStruct((N, 2, Cp), jnp.float32)),
        grid=(N,),
        in_specs=[act, vec, vec, wgt],
        out_specs=(act, stats),
        scratch_shapes=[pltpu.VMEM((H + 2, W + 2, Cp), jnp.bfloat16)],
        compiler_params=pltpu.CompilerParams(dimension_semantics=("parallel",)),
    )(y, scale, shift, w)


def bn_add_relu(z2d, res2d, scale, shift):
    rows, Cp = z2d.shape
    tr = _row_tile(rows)
    row = pl.BlockSpec((tr, Cp), lambda i: (i, 0))
    vec = pl.BlockSpec((1, Cp), lambda i: (0, 0))
    return pl.pallas_call(
        _bn_add_relu_kernel,
        out_shape=jax.ShapeDtypeStruct((rows, Cp), jnp.bfloat16),
        grid=(rows // tr,),
        in_specs=[row, row, vec, vec],
        out_specs=row,
        compiler_params=pltpu.CompilerParams(dimension_semantics=("parallel",)),
    )(z2d, res2d, scale, shift)


def _fold_bn(stats, gamma, beta, count):
    """Reduce per-block partial stats; fold BN into per-channel scale/shift."""
    s = jnp.sum(stats[:, 0, :], axis=0)
    ss = jnp.sum(stats[:, 1, :], axis=0)
    mean = s / count
    var = jnp.maximum(ss / count - mean * mean, 0.0)   # biased (training-mode BN)
    scale = gamma * jax.lax.rsqrt(var + EPS)
    shift = beta - mean * scale
    return scale.reshape(1, -1), shift.reshape(1, -1)


# --------------------------------- module ----------------------------------- #

class BasicBlockPallas:
    """Pallas BasicBlock(inplanes, planes, stride=1, downsample=None)."""

    expansion = 1

    def __init__(self, key, inplanes, planes):
        assert inplanes == planes, "only the stride=1 / downsample=None path"
        k1, k2, k3, k4 = jax.random.split(key, 4)
        self.c = planes
        # NOTE: channel padding to 128 lanes costs 2x for 64-channel stages;
        # a sublane-packed 64-channel layout is a possible future improvement.
        self.cp = _round_up(planes, LANES)
        std1 = 1.0 / math.sqrt(9.0 * inplanes)
        std2 = 1.0 / math.sqrt(9.0 * planes)
        # Conv weights stored (kh, kw, Cin, Cout); f32 masters kept for reference.
        self.w1_f32 = jax.random.normal(k1, (3, 3, inplanes, planes), jnp.float32) * std1
        self.w2_f32 = jax.random.normal(k2, (3, 3, planes, planes), jnp.float32) * std2
        self.w1 = self._pack_weight(self.w1_f32)    # (9, Cp, Cp) bf16, per-tap matrices
        self.w2 = self._pack_weight(self.w2_f32)
        # BN affine params; padded channels get gamma=0 so they stay exactly zero.
        self.g1 = jnp.pad(1.0 + 0.1 * jax.random.normal(k3, (planes,), jnp.float32),
                          (0, self.cp - planes))
        self.g2 = jnp.pad(1.0 + 0.1 * jax.random.normal(k4, (planes,), jnp.float32),
                          (0, self.cp - planes))
        self.b1 = jnp.zeros((self.cp,), jnp.float32)
        self.b2 = jnp.zeros((self.cp,), jnp.float32)

    def _pack_weight(self, w):
        cp = self.cp
        wp = jnp.pad(w, ((0, 0), (0, 0),
                         (0, cp - w.shape[2]), (0, cp - w.shape[3])))
        return wp.reshape(9, cp, cp).astype(jnp.bfloat16)

    def __call__(self, x_nhwc):
        N, H, W, C = x_nhwc.shape
        # Lane-dense layout: pad channels to a multiple of 128 once at the block
        # boundary; activations live in HBM as bf16 (BN math stays f32 in-kernel).
        xp = jnp.pad(x_nhwc, ((0, 0), (0, 0), (0, 0),
                              (0, self.cp - C))).astype(jnp.bfloat16)
        count = N * H * W

        y1, st1 = conv1_with_stats(xp, self.w1)
        sc1, sh1 = _fold_bn(st1, self.g1, self.b1, count)
        z2, st2 = bn_relu_conv2_with_stats(y1, sc1, sh1, self.w2)
        sc2, sh2 = _fold_bn(st2, self.g2, self.b2, count)

        rows = N * H * W
        out2d = bn_add_relu(z2.reshape(rows, self.cp),
                            xp.reshape(rows, self.cp), sc2, sh2)
        out = out2d.reshape(N, H, W, self.cp)
        return out[..., :C]


# -------------------------------- reference --------------------------------- #

def _reference_forward(x_nhwc, block):
    def conv(v, w):
        return jax.lax.conv_general_dilated(
            v, w, window_strides=(1, 1), padding=((1, 1), (1, 1)),
            dimension_numbers=("NHWC", "HWIO", "NHWC"))

    def bn(v, g, b):
        m = jnp.mean(v, axis=(0, 1, 2))
        va = jnp.mean(jnp.square(v - m), axis=(0, 1, 2))
        return (v - m) * jax.lax.rsqrt(va + EPS) * g + b

    c = block.c
    y = jax.nn.relu(bn(conv(x_nhwc, block.w1_f32), block.g1[:c], block.b1[:c]))
    return jax.nn.relu(bn(conv(y, block.w2_f32), block.g2[:c], block.b2[:c]) + x_nhwc)


if __name__ == "__main__":
    key = jax.random.PRNGKey(0)
    k_in, k_params = jax.random.split(key)

    N, C, H, W = 2, 4, 16, 16                       # inplanes = planes = 4
    x_nchw = jax.random.normal(k_in, (N, C, H, W), jnp.float32)  # torch-style NCHW
    x_nhwc = jnp.transpose(x_nchw, (0, 2, 3, 1))    # kernel layout: NHWC

    block = BasicBlockPallas(k_params, inplanes=C, planes=C)
    out_nhwc = jax.jit(block.__call__)(x_nhwc)
    out_nchw = jnp.transpose(out_nhwc, (0, 3, 1, 2))  # back to NCHW for parity
    jax.block_until_ready(out_nchw)

    assert out_nchw.shape == (N, C, H, W)
    assert bool(jnp.all(jnp.isfinite(out_nchw.astype(jnp.float32))))

    # Loose check vs a pure-JAX f32 reference: the kernel uses bf16 MXU
    # operands AND bf16 activation storage between kernels, so allow ~bf16-
    # level absolute error on O(1-5) post-BN/residual values.
    ref_nhwc = _reference_forward(x_nhwc, block)
    max_err = float(jnp.max(jnp.abs(out_nhwc.astype(jnp.float32) - ref_nhwc)))
    assert max_err < 1.5e-1, f"max abs err {max_err}"

    print("KERNEL_OK")
</pallas_src>

<mosaic_0001>
module attributes {stable_mosaic.version = 11 : i64} {
  func.func @_conv1_stats_kernel(%arg0: i32, %arg1: memref<1x16x16x128xbf16, #tpu.memory_space<vmem>>, %arg2: memref<9x128x128xbf16, #tpu.memory_space<vmem>>, %arg3: memref<1x16x16x128xbf16, #tpu.memory_space<vmem>>, %arg4: memref<1x2x128xf32, #tpu.memory_space<vmem>>, %arg5: memref<18x18x128xbf16, #tpu.memory_space<vmem>>) attributes {dimension_semantics = [#tpu.dimension_semantics<parallel>], iteration_bounds = array<i64: 2>, scalar_prefetch = 0 : i64, scratch_operands = 1 : i64, tpu.core_type = #tpu.core_type<tc>, window_params = [{transform_indices = @transform_0, window_bounds = array<i64: 1, 16, 16, 128>}, {pipeline_mode = #tpu.pipeline_mode<synchronous>, transform_indices = @transform_1, window_bounds = array<i64: 9, 128, 128>}, {transform_indices = @transform_2, window_bounds = array<i64: 1, 16, 16, 128>}, {transform_indices = @transform_3, window_bounds = array<i64: 1, 2, 128>}]} {
    %c0 = arith.constant 0 : index
    %c0_0 = arith.constant 0 : index
    %c0_1 = arith.constant 0 : index
    %c0_2 = arith.constant 0 : index
    %0 = vector.load %arg1[%c0, %c0_0, %c0_1, %c0_2] : memref<1x16x16x128xbf16, #tpu.memory_space<vmem>>, vector<1x16x16x128xbf16>
    %1 = vector.shape_cast %0 : vector<1x16x16x128xbf16> to vector<16x16x128xbf16>
    %cst = arith.constant 0.000000e+00 : bf16
    %2 = vector.broadcast %cst : bf16 to vector<1x18x128xbf16>
    %cst_3 = arith.constant 0.000000e+00 : bf16
    %3 = vector.broadcast %cst_3 : bf16 to vector<16x1x128xbf16>
    %c0_4 = arith.constant 0 : index
    %c0_5 = arith.constant 0 : index
    %c0_6 = arith.constant 0 : index
    %4 = vector.load %arg5[%c0_4, %c0_5, %c0_6] : memref<18x18x128xbf16, #tpu.memory_space<vmem>>, vector<1x18x128xbf16>
    tpu.vector_store %arg5[%c0_4, %c0_5, %c0_6], %2 {strides = array<i32>} : memref<18x18x128xbf16, #tpu.memory_space<vmem>>, vector<1x18x128xbf16>,
    %c17 = arith.constant 17 : index
    %c0_7 = arith.constant 0 : index
    %c0_8 = arith.constant 0 : index
    %5 = vector.load %arg5[%c17, %c0_7, %c0_8] : memref<18x18x128xbf16, #tpu.memory_space<vmem>>, vector<1x18x128xbf16>
    tpu.vector_store %arg5[%c17, %c0_7, %c0_8], %2 {strides = array<i32>} : memref<18x18x128xbf16, #tpu.memory_space<vmem>>, vector<1x18x128xbf16>,
    %c1 = arith.constant 1 : index
    %c0_9 = arith.constant 0 : index
    %c0_10 = arith.constant 0 : index
    %6 = vector.load %arg5[%c1, %c0_9, %c0_10] : memref<18x18x128xbf16, #tpu.memory_space<vmem>>, vector<16x1x128xbf16>
    tpu.vector_store %arg5[%c1, %c0_9, %c0_10], %3 {strides = array<i32>} : memref<18x18x128xbf16, #tpu.memory_space<vmem>>, vector<16x1x128xbf16>,
    %c1_11 = arith.constant 1 : index
    %c17_12 = arith.constant 17 : index
    %c0_13 = arith.constant 0 : index
    %7 = vector.load %arg5[%c1_11, %c17_12, %c0_13] : memref<18x18x128xbf16, #tpu.memory_space<vmem>>, vector<16x1x128xbf16>
    tpu.vector_store %arg5[%c1_11, %c17_12, %c0_13], %3 {strides = array<i32>} : memref<18x18x128xbf16, #tpu.memory_space<vmem>>, vector<16x1x128xbf16>,
    %c1_14 = arith.constant 1 : index
    %c1_15 = arith.constant 1 : index
    %c0_16 = arith.constant 0 : index
    %8 = vector.load %arg5[%c1_14, %c1_15, %c0_16] : memref<18x18x128xbf16, #tpu.memory_space<vmem>>, vector<16x16x128xbf16>
    tpu.vector_store %arg5[%c1_14, %c1_15, %c0_16], %1 {strides = array<i32>} : memref<18x18x128xbf16, #tpu.memory_space<vmem>>, vector<16x16x128xbf16>,
    %cst_17 = arith.constant 0.000000e+00 : f32
    %9 = vector.broadcast %cst_17 : f32 to vector<256x128xf32>
    %c0_18 = arith.constant 0 : index
    %c0_19 = arith.constant 0 : index
    %c0_20 = arith.constant 0 : index
    %10 = vector.load %arg5[%c0_18, %c0_19, %c0_20] : memref<18x18x128xbf16, #tpu.memory_space<vmem>>, vector<16x16x128xbf16>
    %11 = vector.shape_cast %10 : vector<16x16x128xbf16> to vector<256x128xbf16>
    %c0_21 = arith.constant 0 : index
    %c0_22 = arith.constant 0 : index
    %c0_23 = arith.constant 0 : index
    %12 = vector.load %arg2[%c0_21, %c0_22, %c0_23] : memref<9x128x128xbf16, #tpu.memory_space<vmem>>, vector<1x128x128xbf16>
    %13 = vector.shape_cast %12 : vector<1x128x128xbf16> to vector<128x128xbf16>
    %cst_24 = arith.constant dense<0.000000e+00> : vector<256x128xf32>
    %14 = tpu.matmul %11, %13, %cst_24 {dimension_numbers = #tpu.dot_dimension_numbers<[1], [0], [0], [1], [0, 0, 1, 1], [], []>} : vector<256x128xbf16>, vector<128x128xbf16>, vector<256x128xf32> -> vector<256x128xf32>
    %15 = arith.addf %9, %14 : vector<256x128xf32>
    %c0_25 = arith.constant 0 : index
    %c1_26 = arith.constant 1 : index
    %c0_27 = arith.constant 0 : index
    %16 = vector.load %arg5[%c0_25, %c1_26, %c0_27] : memref<18x18x128xbf16, #tpu.memory_space<vmem>>, vector<16x16x128xbf16>
    %17 = vector.shape_cast %16 : vector<16x16x128xbf16> to vector<256x128xbf16>
    %c1_28 = arith.constant 1 : index
    %c0_29 = arith.constant 0 : index
    %c0_30 = arith.constant 0 : index
    %18 = vector.load %arg2[%c1_28, %c0_29, %c0_30] : memref<9x128x128xbf16, #tpu.memory_space<vmem>>, vector<1x128x128xbf16>
    %19 = vector.shape_cast %18 : vector<1x128x128xbf16> to vector<128x128xbf16>
    %cst_31 = arith.constant dense<0.000000e+00> : vector<256x128xf32>
    %20 = tpu.matmul %17, %19, %cst_31 {dimension_numbers = #tpu.dot_dimension_numbers<[1], [0], [0], [1], [0, 0, 1, 1], [], []>} : vector<256x128xbf16>, vector<128x128xbf16>, vector<256x128xf32> -> vector<256x128xf32>
    %21 = arith.addf %15, %20 : vector<256x128xf32>
    %c0_32 = arith.constant 0 : index
    %c2 = arith.constant 2 : index
    %c0_33 = arith.constant 0 : index
    %22 = vector.load %arg5[%c0_32, %c2, %c0_33] : memref<18x18x128xbf16, #tpu.memory_space<vmem>>, vector<16x16x128xbf16>
    %23 = vector.shape_cast %22 : vector<16x16x128xbf16> to vector<256x128xbf16>
    %c2_34 = arith.constant 2 : index
    %c0_35 = arith.constant 0 : index
    %c0_36 = arith.constant 0 : index
    %24 = vector.load %arg2[%c2_34, %c0_35, %c0_36] : memref<9x128x128xbf16, #tpu.memory_space<vmem>>, vector<1x128x128xbf16>
    %25 = vector.shape_cast %24 : vector<1x128x128xbf16> to vector<128x128xbf16>
    %cst_37 = arith.constant dense<0.000000e+00> : vector<256x128xf32>
    %26 = tpu.matmul %23, %25, %cst_37 {dimension_numbers = #tpu.dot_dimension_numbers<[1], [0], [0], [1], [0, 0, 1, 1], [], []>} : vector<256x128xbf16>, vector<128x128xbf16>, vector<256x128xf32> -> vector<256x128xf32>
    %27 = arith.addf %21, %26 : vector<256x128xf32>
    %c1_38 = arith.constant 1 : index
    %c0_39 = arith.constant 0 : index
    %c0_40 = arith.constant 0 : index
    %28 = vector.load %arg5[%c1_38, %c0_39, %c0_40] : memref<18x18x128xbf16, #tpu.memory_space<vmem>>, vector<16x16x128xbf16>
    %29 = vector.shape_cast %28 : vector<16x16x128xbf16> to vector<256x128xbf16>
    %c3 = arith.constant 3 : index
    %c0_41 = arith.constant 0 : index
    %c0_42 = arith.constant 0 : index
    %30 = vector.load %arg2[%c3, %c0_41, %c0_42] : memref<9x128x128xbf16, #tpu.memory_space<vmem>>, vector<1x128x128xbf16>
    %31 = vector.shape_cast %30 : vector<1x128x128xbf16> to vector<128x128xbf16>
    %cst_43 = arith.constant dense<0.000000e+00> : vector<256x128xf32>
    %32 = tpu.matmul %29, %31, %cst_43 {dimension_numbers = #tpu.dot_dimension_numbers<[1], [0], [0], [1], [0, 0, 1, 1], [], []>} : vector<256x128xbf16>, vector<128x128xbf16>, vector<256x128xf32> -> vector<256x128xf32>
    %33 = arith.addf %27, %32 : vector<256x128xf32>
    %c1_44 = arith.constant 1 : index
    %c1_45 = arith.constant 1 : index
    %c0_46 = arith.constant 0 : index
    %34 = vector.load %arg5[%c1_44, %c1_45, %c0_46] : memref<18x18x128xbf16, #tpu.memory_space<vmem>>, vector<16x16x128xbf16>
    %35 = vector.shape_cast %34 : vector<16x16x128xbf16> to vector<256x128xbf16>
    %c4 = arith.constant 4 : index
    %c0_47 = arith.constant 0 : index
    %c0_48 = arith.constant 0 : index
    %36 = vector.load %arg2[%c4, %c0_47, %c0_48] : memref<9x128x128xbf16, #tpu.memory_space<vmem>>, vector<1x128x128xbf16>
    %37 = vector.shape_cast %36 : vector<1x128x128xbf16> to vector<128x128xbf16>
    %cst_49 = arith.constant dense<0.000000e+00> : vector<256x128xf32>
    %38 = tpu.matmul %35, %37, %cst_49 {dimension_numbers = #tpu.dot_dimension_numbers<[1], [0], [0], [1], [0, 0, 1, 1], [], []>} : vector<256x128xbf16>, vector<128x128xbf16>, vector<256x128xf32> -> vector<256x128xf32>
    %39 = arith.addf %33, %38 : vector<256x128xf32>
    %c1_50 = arith.constant 1 : index
    %c2_51 = arith.constant 2 : index
    %c0_52 = arith.constant 0 : index
    %40 = vector.load %arg5[%c1_50, %c2_51, %c0_52] : memref<18x18x128xbf16, #tpu.memory_space<vmem>>, vector<16x16x128xbf16>
    %41 = vector.shape_cast %40 : vector<16x16x128xbf16> to vector<256x128xbf16>
    %c5 = arith.constant 5 : index
    %c0_53 = arith.constant 0 : index
    %c0_54 = arith.constant 0 : index
    %42 = vector.load %arg2[%c5, %c0_53, %c0_54] : memref<9x128x128xbf16, #tpu.memory_space<vmem>>, vector<1x128x128xbf16>
    %43 = vector.shape_cast %42 : vector<1x128x128xbf16> to vector<128x128xbf16>
    %cst_55 = arith.constant dense<0.000000e+00> : vector<256x128xf32>
    %44 = tpu.matmul %41, %43, %cst_55 {dimension_numbers = #tpu.dot_dimension_numbers<[1], [0], [0], [1], [0, 0, 1, 1], [], []>} : vector<256x128xbf16>, vector<128x128xbf16>, vector<256x128xf32> -> vector<256x128xf32>
    %45 = arith.addf %39, %44 : vector<256x128xf32>
    %c2_56 = arith.constant 2 : index
    %c0_57 = arith.constant 0 : index
    %c0_58 = arith.constant 0 : index
    %46 = vector.load %arg5[%c2_56, %c0_57, %c0_58] : memref<18x18x128xbf16, #tpu.memory_space<vmem>>, vector<16x16x128xbf16>
    %47 = vector.shape_cast %46 : vector<16x16x128xbf16> to vector<256x128xbf16>
    %c6 = arith.constant 6 : index
    %c0_59 = arith.constant 0 : index
    %c0_60 = arith.constant 0 : index
    %48 = vector.load %arg2[%c6, %c0_59, %c0_60] : memref<9x128x128xbf16, #tpu.memory_space<vmem>>, vector<1x128x128xbf16>
    %49 = vector.shape_cast %48 : vector<1x128x128xbf16> to vector<128x128xbf16>
    %cst_61 = arith.constant dense<0.000000e+00> : vector<256x128xf32>
    %50 = tpu.matmul %47, %49, %cst_61 {dimension_numbers = #tpu.dot_dimension_numbers<[1], [0], [0], [1], [0, 0, 1, 1], [], []>} : vector<256x128xbf16>, vector<128x128xbf16>, vector<256x128xf32> -> vector<256x128xf32>
    %51 = arith.addf %45, %50 : vector<256x128xf32>
    %c2_62 = arith.constant 2 : index
    %c1_63 = arith.constant 1 : index
    %c0_64 = arith.constant 0 : index
    %52 = vector.load %arg5[%c2_62, %c1_63, %c0_64] : memref<18x18x128xbf16, #tpu.memory_space<vmem>>, vector<16x16x128xbf16>
    %53 = vector.shape_cast %52 : vector<16x16x128xbf16> to vector<256x128xbf16>
    %c7 = arith.constant 7 : index
    %c0_65 = arith.constant 0 : index
    %c0_66 = arith.constant 0 : index
    %54 = vector.load %arg2[%c7, %c0_65, %c0_66] : memref<9x128x128xbf16, #tpu.memory_space<vmem>>, vector<1x128x128xbf16>
    %55 = vector.shape_cast %54 : vector<1x128x128xbf16> to vector<128x128xbf16>
    %cst_67 = arith.constant dense<0.000000e+00> : vector<256x128xf32>
    %56 = tpu.matmul %53, %55, %cst_67 {dimension_numbers = #tpu.dot_dimension_numbers<[1], [0], [0], [1], [0, 0, 1, 1], [], []>} : vector<256x128xbf16>, vector<128x128xbf16>, vector<256x128xf32> -> vector<256x128xf32>
    %57 = arith.addf %51, %56 : vector<256x128xf32>
    %c2_68 = arith.constant 2 : index
    %c2_69 = arith.constant 2 : index
    %c0_70 = arith.constant 0 : index
    %58 = vector.load %arg5[%c2_68, %c2_69, %c0_70] : memref<18x18x128xbf16, #tpu.memory_space<vmem>>, vector<16x16x128xbf16>
    %59 = vector.shape_cast %58 : vector<16x16x128xbf16> to vector<256x128xbf16>
    %c8 = arith.constant 8 : index
    %c0_71 = arith.constant 0 : index
    %c0_72 = arith.constant 0 : index
    %60 = vector.load %arg2[%c8, %c0_71, %c0_72] : memref<9x128x128xbf16, #tpu.memory_space<vmem>>, vector<1x128x128xbf16>
    %61 = vector.shape_cast %60 : vector<1x128x128xbf16> to vector<128x128xbf16>
    %cst_73 = arith.constant dense<0.000000e+00> : vector<256x128xf32>
    %62 = tpu.matmul %59, %61, %cst_73 {dimension_numbers = #tpu.dot_dimension_numbers<[1], [0], [0], [1], [0, 0, 1, 1], [], []>} : vector<256x128xbf16>, vector<128x128xbf16>, vector<256x128xf32> -> vector<256x128xf32>
    %63 = arith.addf %57, %62 : vector<256x128xf32>
    %64 = vector.shape_cast %63 : vector<256x128xf32> to vector<16x16x128xf32>
    %65 = arith.truncf %64 : vector<16x16x128xf32> to vector<16x16x128xbf16>
    %c0_74 = arith.constant 0 : index
    %c0_75 = arith.constant 0 : index
    %c0_76 = arith.constant 0 : index
    %c0_77 = arith.constant 0 : index
    %66 = vector.load %arg3[%c0_74, %c0_75, %c0_76, %c0_77] : memref<1x16x16x128xbf16, #tpu.memory_space<vmem>>, vector<1x16x16x128xbf16>
    %67 = vector.shape_cast %66 : vector<1x16x16x128xbf16> to vector<16x16x128xbf16>
    %68 = vector.shape_cast %65 : vector<16x16x128xbf16> to vector<1x16x16x128xbf16>
    tpu.vector_store %arg3[%c0_74, %c0_75, %c0_76, %c0_77], %68 {strides = array<i32>} : memref<1x16x16x128xbf16, #tpu.memory_space<vmem>>, vector<1x16x16x128xbf16>,
    %cst_78 = arith.constant dense<0.000000e+00> : vector<128xf32>
    %69 = vector.multi_reduction <add>, %63, %cst_78 [0] : vector<256x128xf32> to vector<128xf32>
    %70 = vector.shape_cast %69 : vector<128xf32> to vector<1x128xf32>
    %71 = arith.mulf %63, %63 : vector<256x128xf32>
    %cst_79 = arith.constant dense<0.000000e+00> : vector<128xf32>
    %72 = vector.multi_reduction <add>, %71, %cst_79 [0] : vector<256x128xf32> to vector<128xf32>
    %73 = vector.shape_cast %72 : vector<128xf32> to vector<1x128xf32>
    %74 = tpu.concatenate %70, %73 in 0 : vector<1x128xf32>, vector<1x128xf32> -> vector<2x128xf32>
    %c0_80 = arith.constant 0 : index
    %c0_81 = arith.constant 0 : index
    %c0_82 = arith.constant 0 : index
    %75 = vector.load %arg4[%c0_80, %c0_81, %c0_82] : memref<1x2x128xf32, #tpu.memory_space<vmem>>, vector<1x2x128xf32>
    %76 = vector.shape_cast %75 : vector<1x2x128xf32> to vector<2x128xf32>
    %77 = vector.shape_cast %74 : vector<2x128xf32> to vector<1x2x128xf32>
    tpu.vector_store %arg4[%c0_80, %c0_81, %c0_82], %77 {strides = array<i32>} : memref<1x2x128xf32, #tpu.memory_space<vmem>>, vector<1x2x128xf32>,
    return
  }
  func.func @transform_0(%arg0: i32) -> (i32, i32, i32, i32) {
    %c0_i32 = arith.constant 0 : i32
    %c0_i32_0 = arith.constant 0 : i32
    %c0_i32_1 = arith.constant 0 : i32
    %c0_i32_2 = arith.constant 0 : i32
    return %arg0, %c0_i32, %c0_i32_0, %c0_i32_1 : i32, i32, i32, i32
  }
  func.func @transform_1(%arg0: i32) -> (i32, i32, i32) {
    %c0_i32 = arith.constant 0 : i32
    %c0_i32_0 = arith.constant 0 : i32
    %c0_i32_1 = arith.constant 0 : i32
    %c0_i32_2 = arith.constant 0 : i32
    return %c0_i32, %c0_i32_0, %c0_i32_1 : i32, i32, i32
  }
  func.func @transform_2(%arg0: i32) -> (i32, i32, i32, i32) {
    %c0_i32 = arith.constant 0 : i32
    %c0_i32_0 = arith.constant 0 : i32
    %c0_i32_1 = arith.constant 0 : i32
    %c0_i32_2 = arith.constant 0 : i32
    return %arg0, %c0_i32, %c0_i32_0, %c0_i32_1 : i32, i32, i32, i32
  }
  func.func @transform_3(%arg0: i32) -> (i32, i32, i32) {
    %c0_i32 = arith.constant 0 : i32
    %c0_i32_0 = arith.constant 0 : i32
    %c0_i32_1 = arith.constant 0 : i32
    return %arg0, %c0_i32, %c0_i32_0 : i32, i32, i32
  }
}

module attributes {stable_mosaic.version = 11 : i64} {
  func.func @_bn_relu_conv2_stats_kernel(%arg0: i32, %arg1: memref<1x16x16x128xbf16, #tpu.memory_space<vmem>>, %arg2: memref<1x128xf32, #tpu.memory_space<vmem>>, %arg3: memref<1x128xf32, #tpu.memory_space<vmem>>, %arg4: memref<9x128x128xbf16, #tpu.memory_space<vmem>>, %arg5: memref<1x16x16x128xbf16, #tpu.memory_space<vmem>>, %arg6: memref<1x2x128xf32, #tpu.memory_space<vmem>>, %arg7: memref<18x18x128xbf16, #tpu.memory_space<vmem>>) attributes {dimension_semantics = [#tpu.dimension_semantics<parallel>], iteration_bounds = array<i64: 2>, scalar_prefetch = 0 : i64, scratch_operands = 1 : i64, tpu.core_type = #tpu.core_type<tc>, window_params = [{transform_indices = @transform_0, window_bounds = array<i64: 1, 16, 16, 128>}, {pipeline_mode = #tpu.pipeline_mode<synchronous>, transform_indices = @transform_1, window_bounds = array<i64: 1, 128>}, {pipeline_mode = #tpu.pipeline_mode<synchronous>, transform_indices = @transform_2, window_bounds = array<i64: 1, 128>}, {pipeline_mode = #tpu.pipeline_mode<synchronous>, transform_indices = @transform_3, window_bounds = array<i64: 9, 128, 128>}, {transform_indices = @transform_4, window_bounds = array<i64: 1, 16, 16, 128>}, {transform_indices = @transform_5, window_bounds = array<i64: 1, 2, 128>}]} {
    %c0 = arith.constant 0 : index
    %c0_0 = arith.constant 0 : index
    %c0_1 = arith.constant 0 : index
    %c0_2 = arith.constant 0 : index
    %0 = vector.load %arg1[%c0, %c0_0, %c0_1, %c0_2] : memref<1x16x16x128xbf16, #tpu.memory_space<vmem>>, vector<1x16x16x128xbf16>
    %1 = vector.shape_cast %0 : vector<1x16x16x128xbf16> to vector<16x16x128xbf16>
    %2 = arith.extf %1 : vector<16x16x128xbf16> to vector<16x16x128xf32>
    %c0_3 = arith.constant 0 : index
    %c0_4 = arith.constant 0 : index
    %3 = vector.load %arg2[%c0_3, %c0_4] : memref<1x128xf32, #tpu.memory_space<vmem>>, vector<1x128xf32>
    %4 = vector.shape_cast %3 : vector<1x128xf32> to vector<128xf32>
    %5 = vector.shape_cast %4 : vector<128xf32> to vector<1x1x128xf32>
    %6 = vector.broadcast %5 : vector<1x1x128xf32> to vector<16x16x128xf32>
    %7 = arith.mulf %2, %6 : vector<16x16x128xf32>
    %c0_5 = arith.constant 0 : index
    %c0_6 = arith.constant 0 : index
    %8 = vector.load %arg3[%c0_5, %c0_6] : memref<1x128xf32, #tpu.memory_space<vmem>>, vector<1x128xf32>
    %9 = vector.shape_cast %8 : vector<1x128xf32> to vector<128xf32>
    %10 = vector.shape_cast %9 : vector<128xf32> to vector<1x1x128xf32>
    %11 = vector.broadcast %10 : vector<1x1x128xf32> to vector<16x16x128xf32>
    %12 = arith.addf %7, %11 : vector<16x16x128xf32>
    %cst = arith.constant 0.000000e+00 : f32
    %13 = vector.broadcast %cst : f32 to vector<16x16x128xf32>
    %14 = arith.maximumf %12, %13 : vector<16x16x128xf32>
    %15 = arith.truncf %14 : vector<16x16x128xf32> to vector<16x16x128xbf16>
    %cst_7 = arith.constant 0.000000e+00 : bf16
    %16 = vector.broadcast %cst_7 : bf16 to vector<1x18x128xbf16>
    %cst_8 = arith.constant 0.000000e+00 : bf16
    %17 = vector.broadcast %cst_8 : bf16 to vector<16x1x128xbf16>
    %c0_9 = arith.constant 0 : index
    %c0_10 = arith.constant 0 : index
    %c0_11 = arith.constant 0 : index
    %18 = vector.load %arg7[%c0_9, %c0_10, %c0_11] : memref<18x18x128xbf16, #tpu.memory_space<vmem>>, vector<1x18x128xbf16>
    tpu.vector_store %arg7[%c0_9, %c0_10, %c0_11], %16 {strides = array<i32>} : memref<18x18x128xbf16, #tpu.memory_space<vmem>>, vector<1x18x128xbf16>,
    %c17 = arith.constant 17 : index
    %c0_12 = arith.constant 0 : index
    %c0_13 = arith.constant 0 : index
    %19 = vector.load %arg7[%c17, %c0_12, %c0_13] : memref<18x18x128xbf16, #tpu.memory_space<vmem>>, vector<1x18x128xbf16>
    tpu.vector_store %arg7[%c17, %c0_12, %c0_13], %16 {strides = array<i32>} : memref<18x18x128xbf16, #tpu.memory_space<vmem>>, vector<1x18x128xbf16>,
    %c1 = arith.constant 1 : index
    %c0_14 = arith.constant 0 : index
    %c0_15 = arith.constant 0 : index
    %20 = vector.load %arg7[%c1, %c0_14, %c0_15] : memref<18x18x128xbf16, #tpu.memory_space<vmem>>, vector<16x1x128xbf16>
    tpu.vector_store %arg7[%c1, %c0_14, %c0_15], %17 {strides = array<i32>} : memref<18x18x128xbf16, #tpu.memory_space<vmem>>, vector<16x1x128xbf16>,
    %c1_16 = arith.constant 1 : index
    %c17_17 = arith.constant 17 : index
    %c0_18 = arith.constant 0 : index
    %21 = vector.load %arg7[%c1_16, %c17_17, %c0_18] : memref<18x18x128xbf16, #tpu.memory_space<vmem>>, vector<16x1x128xbf16>
    tpu.vector_store %arg7[%c1_16, %c17_17, %c0_18], %17 {strides = array<i32>} : memref<18x18x128xbf16, #tpu.memory_space<vmem>>, vector<16x1x128xbf16>,
    %c1_19 = arith.constant 1 : index
    %c1_20 = arith.constant 1 : index
    %c0_21 = arith.constant 0 : index
    %22 = vector.load %arg7[%c1_19, %c1_20, %c0_21] : memref<18x18x128xbf16, #tpu.memory_space<vmem>>, vector<16x16x128xbf16>
    tpu.vector_store %arg7[%c1_19, %c1_20, %c0_21], %15 {strides = array<i32>} : memref<18x18x128xbf16, #tpu.memory_space<vmem>>, vector<16x16x128xbf16>,
    %cst_22 = arith.constant 0.000000e+00 : f32
    %23 = vector.broadcast %cst_22 : f32 to vector<256x128xf32>
    %c0_23 = arith.constant 0 : index
    %c0_24 = arith.constant 0 : index
    %c0_25 = arith.constant 0 : index
    %24 = vector.load %arg7[%c0_23, %c0_24, %c0_25] : memref<18x18x128xbf16, #tpu.memory_space<vmem>>, vector<16x16x128xbf16>
    %25 = vector.shape_cast %24 : vector<16x16x128xbf16> to vector<256x128xbf16>
    %c0_26 = arith.constant 0 : index
    %c0_27 = arith.constant 0 : index
    %c0_28 = arith.constant 0 : index
    %26 = vector.load %arg4[%c0_26, %c0_27, %c0_28] : memref<9x128x128xbf16, #tpu.memory_space<vmem>>, vector<1x128x128xbf16>
    %27 = vector.shape_cast %26 : vector<1x128x128xbf16> to vector<128x128xbf16>
    %cst_29 = arith.constant dense<0.000000e+00> : vector<256x128xf32>
    %28 = tpu.matmul %25, %27, %cst_29 {dimension_numbers = #tpu.dot_dimension_numbers<[1], [0], [0], [1], [0, 0, 1, 1], [], []>} : vector<256x128xbf16>, vector<128x128xbf16>, vector<256x128xf32> -> vector<256x128xf32>
    %29 = arith.addf %23, %28 : vector<256x128xf32>
    %c0_30 = arith.constant 0 : index
    %c1_31 = arith.constant 1 : index
    %c0_32 = arith.constant 0 : index
    %30 = vector.load %arg7[%c0_30, %c1_31, %c0_32] : memref<18x18x128xbf16, #tpu.memory_space<vmem>>, vector<16x16x128xbf16>
    %31 = vector.shape_cast %30 : vector<16x16x128xbf16> to vector<256x128xbf16>
    %c1_33 = arith.constant 1 : index
    %c0_34 = arith.constant 0 : index
    %c0_35 = arith.constant 0 : index
    %32 = vector.load %arg4[%c1_33, %c0_34, %c0_35] : memref<9x128x128xbf16, #tpu.memory_space<vmem>>, vector<1x128x128xbf16>
    %33 = vector.shape_cast %32 : vector<1x128x128xbf16> to vector<128x128xbf16>
    %cst_36 = arith.constant dense<0.000000e+00> : vector<256x128xf32>
    %34 = tpu.matmul %31, %33, %cst_36 {dimension_numbers = #tpu.dot_dimension_numbers<[1], [0], [0], [1], [0, 0, 1, 1], [], []>} : vector<256x128xbf16>, vector<128x128xbf16>, vector<256x128xf32> -> vector<256x128xf32>
    %35 = arith.addf %29, %34 : vector<256x128xf32>
    %c0_37 = arith.constant 0 : index
    %c2 = arith.constant 2 : index
    %c0_38 = arith.constant 0 : index
    %36 = vector.load %arg7[%c0_37, %c2, %c0_38] : memref<18x18x128xbf16, #tpu.memory_space<vmem>>, vector<16x16x128xbf16>
    %37 = vector.shape_cast %36 : vector<16x16x128xbf16> to vector<256x128xbf16>
    %c2_39 = arith.constant 2 : index
    %c0_40 = arith.constant 0 : index
    %c0_41 = arith.constant 0 : index
    %38 = vector.load %arg4[%c2_39, %c0_40, %c0_41] : memref<9x128x128xbf16, #tpu.memory_space<vmem>>, vector<1x128x128xbf16>
    %39 = vector.shape_cast %38 : vector<1x128x128xbf16> to vector<128x128xbf16>
    %cst_42 = arith.constant dense<0.000000e+00> : vector<256x128xf32>
    %40 = tpu.matmul %37, %39, %cst_42 {dimension_numbers = #tpu.dot_dimension_numbers<[1], [0], [0], [1], [0, 0, 1, 1], [], []>} : vector<256x128xbf16>, vector<128x128xbf16>, vector<256x128xf32> -> vector<256x128xf32>
    %41 = arith.addf %35, %40 : vector<256x128xf32>
    %c1_43 = arith.constant 1 : index
    %c0_44 = arith.constant 0 : index
    %c0_45 = arith.constant 0 : index
    %42 = vector.load %arg7[%c1_43, %c0_44, %c0_45] : memref<18x18x128xbf16, #tpu.memory_space<vmem>>, vector<16x16x128xbf16>
    %43 = vector.shape_cast %42 : vector<16x16x128xbf16> to vector<256x128xbf16>
    %c3 = arith.constant 3 : index
    %c0_46 = arith.constant 0 : index
    %c0_47 = arith.constant 0 : index
    %44 = vector.load %arg4[%c3, %c0_46, %c0_47] : memref<9x128x128xbf16, #tpu.memory_space<vmem>>, vector<1x128x128xbf16>
    %45 = vector.shape_cast %44 : vector<1x128x128xbf16> to vector<128x128xbf16>
    %cst_48 = arith.constant dense<0.000000e+00> : vector<256x128xf32>
    %46 = tpu.matmul %43, %45, %cst_48 {dimension_numbers = #tpu.dot_dimension_numbers<[1], [0], [0], [1], [0, 0, 1, 1], [], []>} : vector<256x128xbf16>, vector<128x128xbf16>, vector<256x128xf32> -> vector<256x128xf32>
    %47 = arith.addf %41, %46 : vector<256x128xf32>
    %c1_49 = arith.constant 1 : index
    %c1_50 = arith.constant 1 : index
    %c0_51 = arith.constant 0 : index
    %48 = vector.load %arg7[%c1_49, %c1_50, %c0_51] : memref<18x18x128xbf16, #tpu.memory_space<vmem>>, vector<16x16x128xbf16>
    %49 = vector.shape_cast %48 : vector<16x16x128xbf16> to vector<256x128xbf16>
    %c4 = arith.constant 4 : index
    %c0_52 = arith.constant 0 : index
    %c0_53 = arith.constant 0 : index
    %50 = vector.load %arg4[%c4, %c0_52, %c0_53] : memref<9x128x128xbf16, #tpu.memory_space<vmem>>, vector<1x128x128xbf16>
    %51 = vector.shape_cast %50 : vector<1x128x128xbf16> to vector<128x128xbf16>
    %cst_54 = arith.constant dense<0.000000e+00> : vector<256x128xf32>
    %52 = tpu.matmul %49, %51, %cst_54 {dimension_numbers = #tpu.dot_dimension_numbers<[1], [0], [0], [1], [0, 0, 1, 1], [], []>} : vector<256x128xbf16>, vector<128x128xbf16>, vector<256x128xf32> -> vector<256x128xf32>
    %53 = arith.addf %47, %52 : vector<256x128xf32>
    %c1_55 = arith.constant 1 : index
    %c2_56 = arith.constant 2 : index
    %c0_57 = arith.constant 0 : index
    %54 = vector.load %arg7[%c1_55, %c2_56, %c0_57] : memref<18x18x128xbf16, #tpu.memory_space<vmem>>, vector<16x16x128xbf16>
    %55 = vector.shape_cast %54 : vector<16x16x128xbf16> to vector<256x128xbf16>
    %c5 = arith.constant 5 : index
    %c0_58 = arith.constant 0 : index
    %c0_59 = arith.constant 0 : index
    %56 = vector.load %arg4[%c5, %c0_58, %c0_59] : memref<9x128x128xbf16, #tpu.memory_space<vmem>>, vector<1x128x128xbf16>
    %57 = vector.shape_cast %56 : vector<1x128x128xbf16> to vector<128x128xbf16>
    %cst_60 = arith.constant dense<0.000000e+00> : vector<256x128xf32>
    %58 = tpu.matmul %55, %57, %cst_60 {dimension_numbers = #tpu.dot_dimension_numbers<[1], [0], [0], [1], [0, 0, 1, 1], [], []>} : vector<256x128xbf16>, vector<128x128xbf16>, vector<256x128xf32> -> vector<256x128xf32>
    %59 = arith.addf %53, %58 : vector<256x128xf32>
    %c2_61 = arith.constant 2 : index
    %c0_62 = arith.constant 0 : index
    %c0_63 = arith.constant 0 : index
    %60 = vector.load %arg7[%c2_61, %c0_62, %c0_63] : memref<18x18x128xbf16, #tpu.memory_space<vmem>>, vector<16x16x128xbf16>
    %61 = vector.shape_cast %60 : vector<16x16x128xbf16> to vector<256x128xbf16>
    %c6 = arith.constant 6 : index
    %c0_64 = arith.constant 0 : index
    %c0_65 = arith.constant 0 : index
    %62 = vector.load %arg4[%c6, %c0_64, %c0_65] : memref<9x128x128xbf16, #tpu.memory_space<vmem>>, vector<1x128x128xbf16>
    %63 = vector.shape_cast %62 : vector<1x128x128xbf16> to vector<128x128xbf16>
    %cst_66 = arith.constant dense<0.000000e+00> : vector<256x128xf32>
    %64 = tpu.matmul %61, %63, %cst_66 {dimension_numbers = #tpu.dot_dimension_numbers<[1], [0], [0], [1], [0, 0, 1, 1], [], []>} : vector<256x128xbf16>, vector<128x128xbf16>, vector<256x128xf32> -> vector<256x128xf32>
    %65 = arith.addf %59, %64 : vector<256x128xf32>
    %c2_67 = arith.constant 2 : index
    %c1_68 = arith.constant 1 : index
    %c0_69 = arith.constant 0 : index
    %66 = vector.load %arg7[%c2_67, %c1_68, %c0_69] : memref<18x18x128xbf16, #tpu.memory_space<vmem>>, vector<16x16x128xbf16>
    %67 = vector.shape_cast %66 : vector<16x16x128xbf16> to vector<256x128xbf16>
    %c7 = arith.constant 7 : index
    %c0_70 = arith.constant 0 : index
    %c0_71 = arith.constant 0 : index
    %68 = vector.load %arg4[%c7, %c0_70, %c0_71] : memref<9x128x128xbf16, #tpu.memory_space<vmem>>, vector<1x128x128xbf16>
    %69 = vector.shape_cast %68 : vector<1x128x128xbf16> to vector<128x128xbf16>
    %cst_72 = arith.constant dense<0.000000e+00> : vector<256x128xf32>
    %70 = tpu.matmul %67, %69, %cst_72 {dimension_numbers = #tpu.dot_dimension_numbers<[1], [0], [0], [1], [0, 0, 1, 1], [], []>} : vector<256x128xbf16>, vector<128x128xbf16>, vector<256x128xf32> -> vector<256x128xf32>
    %71 = arith.addf %65, %70 : vector<256x128xf32>
    %c2_73 = arith.constant 2 : index
    %c2_74 = arith.constant 2 : index
    %c0_75 = arith.constant 0 : index
    %72 = vector.load %arg7[%c2_73, %c2_74, %c0_75] : memref<18x18x128xbf16, #tpu.memory_space<vmem>>, vector<16x16x128xbf16>
    %73 = vector.shape_cast %72 : vector<16x16x128xbf16> to vector<256x128xbf16>
    %c8 = arith.constant 8 : index
    %c0_76 = arith.constant 0 : index
    %c0_77 = arith.constant 0 : index
    %74 = vector.load %arg4[%c8, %c0_76, %c0_77] : memref<9x128x128xbf16, #tpu.memory_space<vmem>>, vector<1x128x128xbf16>
    %75 = vector.shape_cast %74 : vector<1x128x128xbf16> to vector<128x128xbf16>
    %cst_78 = arith.constant dense<0.000000e+00> : vector<256x128xf32>
    %76 = tpu.matmul %73, %75, %cst_78 {dimension_numbers = #tpu.dot_dimension_numbers<[1], [0], [0], [1], [0, 0, 1, 1], [], []>} : vector<256x128xbf16>, vector<128x128xbf16>, vector<256x128xf32> -> vector<256x128xf32>
    %77 = arith.addf %71, %76 : vector<256x128xf32>
    %78 = vector.shape_cast %77 : vector<256x128xf32> to vector<16x16x128xf32>
    %79 = arith.truncf %78 : vector<16x16x128xf32> to vector<16x16x128xbf16>
    %c0_79 = arith.constant 0 : index
    %c0_80 = arith.constant 0 : index
    %c0_81 = arith.constant 0 : index
    %c0_82 = arith.constant 0 : index
    %80 = vector.load %arg5[%c0_79, %c0_80, %c0_81, %c0_82] : memref<1x16x16x128xbf16, #tpu.memory_space<vmem>>, vector<1x16x16x128xbf16>
    %81 = vector.shape_cast %80 : vector<1x16x16x128xbf16> to vector<16x16x128xbf16>
    %82 = vector.shape_cast %79 : vector<16x16x128xbf16> to vector<1x16x16x128xbf16>
    tpu.vector_store %arg5[%c0_79, %c0_80, %c0_81, %c0_82], %82 {strides = array<i32>} : memref<1x16x16x128xbf16, #tpu.memory_space<vmem>>, vector<1x16x16x128xbf16>,
    %cst_83 = arith.constant dense<0.000000e+00> : vector<128xf32>
    %83 = vector.multi_reduction <add>, %77, %cst_83 [0] : vector<256x128xf32> to vector<128xf32>
    %84 = vector.shape_cast %83 : vector<128xf32> to vector<1x128xf32>
    %85 = arith.mulf %77, %77 : vector<256x128xf32>
    %cst_84 = arith.constant dense<0.000000e+00> : vector<128xf32>
    %86 = vector.multi_reduction <add>, %85, %cst_84 [0] : vector<256x128xf32> to vector<128xf32>
    %87 = vector.shape_cast %86 : vector<128xf32> to vector<1x128xf32>
    %88 = tpu.concatenate %84, %87 in 0 : vector<1x128xf32>, vector<1x128xf32> -> vector<2x128xf32>
    %c0_85 = arith.constant 0 : index
    %c0_86 = arith.constant 0 : index
    %c0_87 = arith.constant 0 : index
    %89 = vector.load %arg6[%c0_85, %c0_86, %c0_87] : memref<1x2x128xf32, #tpu.memory_space<vmem>>, vector<1x2x128xf32>
    %90 = vector.shape_cast %89 : vector<1x2x128xf32> to vector<2x128xf32>
    %91 = vector.shape_cast %88 : vector<2x128xf32> to vector<1x2x128xf32>
    tpu.vector_store %arg6[%c0_85, %c0_86, %c0_87], %91 {strides = array<i32>} : memref<1x2x128xf32, #tpu.memory_space<vmem>>, vector<1x2x128xf32>,
    return
  }
  func.func @transform_0(%arg0: i32) -> (i32, i32, i32, i32) {
    %c0_i32 = arith.constant 0 : i32
    %c0_i32_0 = arith.constant 0 : i32
    %c0_i32_1 = arith.constant 0 : i32
    %c0_i32_2 = arith.constant 0 : i32
    return %arg0, %c0_i32, %c0_i32_0, %c0_i32_1 : i32, i32, i32, i32
  }
  func.func @transform_1(%arg0: i32) -> (i32, i32) {
    %c0_i32 = arith.constant 0 : i32
    %c0_i32_0 = arith.constant 0 : i32
    %c0_i32_1 = arith.constant 0 : i32
    return %c0_i32, %c0_i32_0 : i32, i32
  }
  func.func @transform_2(%arg0: i32) -> (i32, i32) {
    %c0_i32 = arith.constant 0 : i32
    %c0_i32_0 = arith.constant 0 : i32
    %c0_i32_1 = arith.constant 0 : i32
    return %c0_i32, %c0_i32_0 : i32, i32
  }
  func.func @transform_3(%arg0: i32) -> (i32, i32, i32) {
    %c0_i32 = arith.constant 0 : i32
    %c0_i32_0 = arith.constant 0 : i32
    %c0_i32_1 = arith.constant 0 : i32
    %c0_i32_2 = arith.constant 0 : i32
    return %c0_i32, %c0_i32_0, %c0_i32_1 : i32, i32, i32
  }
  func.func @transform_4(%arg0: i32) -> (i32, i32, i32, i32) {
    %c0_i32 = arith.constant 0 : i32
    %c0_i32_0 = arith.constant 0 : i32
    %c0_i32_1 = arith.constant 0 : i32
    %c0_i32_2 = arith.constant 0 : i32
    return %arg0, %c0_i32, %c0_i32_0, %c0_i32_1 : i32, i32, i32, i32
  }
  func.func @transform_5(%arg0: i32) -> (i32, i32, i32) {
    %c0_i32 = arith.constant 0 : i32
    %c0_i32_0 = arith.constant 0 : i32
    %c0_i32_1 = arith.constant 0 : i32
    return %arg0, %c0_i32, %c0_i32_0 : i32, i32, i32
  }
}

module attributes {stable_mosaic.version = 11 : i64} {
  func.func @_bn_add_relu_kernel(%arg0: i32, %arg1: memref<512x128xbf16, #tpu.memory_space<vmem>>, %arg2: memref<512x128xbf16, #tpu.memory_space<vmem>>, %arg3: memref<1x128xf32, #tpu.memory_space<vmem>>, %arg4: memref<1x128xf32, #tpu.memory_space<vmem>>, %arg5: memref<512x128xbf16, #tpu.memory_space<vmem>>) attributes {dimension_semantics = [#tpu.dimension_semantics<parallel>], iteration_bounds = array<i64: 1>, scalar_prefetch = 0 : i64, scratch_operands = 0 : i64, tpu.core_type = #tpu.core_type<tc>, window_params = [{transform_indices = @transform_0, window_bounds = array<i64: 512, 128>}, {transform_indices = @transform_1, window_bounds = array<i64: 512, 128>}, {pipeline_mode = #tpu.pipeline_mode<synchronous>, transform_indices = @transform_2, window_bounds = array<i64: 1, 128>}, {pipeline_mode = #tpu.pipeline_mode<synchronous>, transform_indices = @transform_3, window_bounds = array<i64: 1, 128>}, {transform_indices = @transform_4, window_bounds = array<i64: 512, 128>}]} {
    %c0 = arith.constant 0 : index
    %c0_0 = arith.constant 0 : index
    %0 = vector.load %arg1[%c0, %c0_0] : memref<512x128xbf16, #tpu.memory_space<vmem>>, vector<512x128xbf16>
    %1 = arith.extf %0 : vector<512x128xbf16> to vector<512x128xf32>
    %c0_1 = arith.constant 0 : index
    %c0_2 = arith.constant 0 : index
    %2 = vector.load %arg3[%c0_1, %c0_2] : memref<1x128xf32, #tpu.memory_space<vmem>>, vector<1x128xf32>
    %3 = vector.shape_cast %2 : vector<1x128xf32> to vector<128xf32>
    %4 = vector.shape_cast %3 : vector<128xf32> to vector<1x128xf32>
    %5 = vector.broadcast %4 : vector<1x128xf32> to vector<512x128xf32>
    %6 = arith.mulf %1, %5 : vector<512x128xf32>
    %c0_3 = arith.constant 0 : index
    %c0_4 = arith.constant 0 : index
    %7 = vector.load %arg4[%c0_3, %c0_4] : memref<1x128xf32, #tpu.memory_space<vmem>>, vector<1x128xf32>
    %8 = vector.shape_cast %7 : vector<1x128xf32> to vector<128xf32>
    %9 = vector.shape_cast %8 : vector<128xf32> to vector<1x128xf32>
    %10 = vector.broadcast %9 : vector<1x128xf32> to vector<512x128xf32>
    %11 = arith.addf %6, %10 : vector<512x128xf32>
    %c0_5 = arith.constant 0 : index
    %c0_6 = arith.constant 0 : index
    %12 = vector.load %arg2[%c0_5, %c0_6] : memref<512x128xbf16, #tpu.memory_space<vmem>>, vector<512x128xbf16>
    %13 = arith.extf %12 : vector<512x128xbf16> to vector<512x128xf32>
    %14 = arith.addf %11, %13 : vector<512x128xf32>
    %cst = arith.constant 0.000000e+00 : f32
    %15 = vector.broadcast %cst : f32 to vector<512x128xf32>
    %16 = arith.maximumf %14, %15 : vector<512x128xf32>
    %17 = arith.truncf %16 : vector<512x128xf32> to vector<512x128xbf16>
    %c0_7 = arith.constant 0 : index
    %c0_8 = arith.constant 0 : index
    %18 = vector.load %arg5[%c0_7, %c0_8] : memref<512x128xbf16, #tpu.memory_space<vmem>>, vector<512x128xbf16>
    tpu.vector_store %arg5[%c0_7, %c0_8], %17 {strides = array<i32>} : memref<512x128xbf16, #tpu.memory_space<vmem>>, vector<512x128xbf16>,
    return
  }
  func.func @transform_0(%arg0: i32) -> (i32, i32) {
    %c0_i32 = arith.constant 0 : i32
    %c0_i32_0 = arith.constant 0 : i32
    return %arg0, %c0_i32 : i32, i32
  }
  func.func @transform_1(%arg0: i32) -> (i32, i32) {
    %c0_i32 = arith.constant 0 : i32
    %c0_i32_0 = arith.constant 0 : i32
    return %arg0, %c0_i32 : i32, i32
  }
  func.func @transform_2(%arg0: i32) -> (i32, i32) {
    %c0_i32 = arith.constant 0 : i32
    %c0_i32_0 = arith.constant 0 : i32
    %c0_i32_1 = arith.constant 0 : i32
    return %c0_i32, %c0_i32_0 : i32, i32
  }
  func.func @transform_3(%arg0: i32) -> (i32, i32) {
    %c0_i32 = arith.constant 0 : i32
    %c0_i32_0 = arith.constant 0 : i32
    %c0_i32_1 = arith.constant 0 : i32
    return %c0_i32, %c0_i32_0 : i32, i32
  }
  func.func @transform_4(%arg0: i32) -> (i32, i32) {
    %c0_i32 = arith.constant 0 : i32
    %c0_i32_0 = arith.constant 0 : i32
    return %arg0, %c0_i32 : i32, i32
  }
}

</mosaic_0001>

<bundles_post_ra>
// kernel: a_call__.5
= control target key start
LH: loop header
LB: loop body
LE: loop exit
PB: predicated region body
PF: predicated region fallthrough
CT: control target
= control target key end

     0   :  { %s1957_s0 = inlined_call_operand.vmem [shape: bf16[512,128], index: 0, kind: input, shape index: {}]   ;;  %s1958_s1 = inlined_call_operand.vmem [shape: bf16[512,128], index: 1, kind: input, shape index: {}]   ;;  %s1959_s2 = inlined_call_operand.vmem [shape: f32[1,128], index: 2, kind: input, shape index: {}]   ;;  %s1960_s3 = inlined_call_operand.vmem [shape: f32[1,128], index: 3, kind: input, shape index: {}]   ;;  %s1961_s4 = inlined_call_operand.vmem [shape: bf16[512,128], index: 4, kind: output, shape index: {}]  }
   0x1   :  { %v998_v0 = vld [vmem:[%s1957_s0] sm:$0xff]   ;;  %v1413_v5 = vld [vmem:[%s1957_s0 + $0x8] sm:$0xff]   ;;  %v1414_v12 = vld [vmem:[%s1957_s0 + $0x10] sm:$0xff]  }
   0x2   :  { %v1537_v1 = vld [vmem:[%s1959_s2] ss:$0 sm:$0xff]  ;;  %v999_v2 = vunpack.c.l.bf16 %v998_v0  ;;  %v1000_v3 = vunpack.c.h.bf16 %v998_v0  ;;  %v1444_v6 = vld [vmem:[%s1958_s1 + $0x8] sm:$0xff]   ;;  %v1003_v10 = vunpack.c.l.bf16 %v1413_v5  ;;  %v1004_v11 = vunpack.c.h.bf16 %v1413_v5  ;;  %v1445_v13 = vld [vmem:[%s1958_s1 + $0x10] sm:$0xff]  }
   0x3   :  { %v1126_v4 = vld [vmem:[%s1958_s1] sm:$0xff]   ;;  %v1131_v16 = vunpack.c.l.bf16 %v1444_v6  ;;  %v1132_v17 = vunpack.c.h.bf16 %v1444_v6  ;;  %v1007_v20 = vunpack.c.l.bf16 %v1414_v12  ;;  %v1008_v21 = vunpack.c.h.bf16 %v1414_v12  ;;  %v1415_v22 = vld [vmem:[%s1957_s0 + $0x18] sm:$0xff]   ;;  %v1417_v54 = vld [vmem:[%s1957_s0 + $0x28] sm:$0xff]  }
   0x4   :  { %v1551_v7 = vld [vmem:[%s1960_s3] ss:$0 sm:$0xff]  ;;  %v1127_v8 = vunpack.c.l.bf16 %v1126_v4  ;;  %v1128_v9 = vunpack.c.h.bf16 %v1126_v4  ;;  %v152_v14 = vmul.f32 %v999_v2, %v1537_v1  ;;  %v153_v15 = vmul.f32 %v1000_v3, %v1537_v1  ;;  %v1446_v39 = vld [vmem:[%s1958_s1 + $0x18] sm:$0xff]   ;;  %v1448_v63 = vld [vmem:[%s1958_s1 + $0x28] sm:$0xff]  }
   0x5   :  { %v154_v18 = vmul.f32 %v1003_v10, %v1537_v1  ;;  %v155_v19 = vmul.f32 %v1004_v11, %v1537_v1  ;;  %v1135_v25 = vunpack.c.l.bf16 %v1445_v13  ;;  %v1136_v26 = vunpack.c.h.bf16 %v1445_v13  ;;  %v1416_v48 = vld [vmem:[%s1957_s0 + $0x20] sm:$0xff]   ;;  %v1418_v5 = vld [vmem:[%s1957_s0 + $0x30] sm:$0xff]  }
   0x6   :  { %v223_v23 = vadd.f32 %v1551_v7, %v152_v14  ;;  %v224_v24 = vadd.f32 %v1551_v7, %v153_v15  ;;  %v156_v29 = vmul.f32 %v1007_v20, %v1537_v1  ;;  %v157_v30 = vmul.f32 %v1008_v21, %v1537_v1  ;;  %v1447_v49 = vld [vmem:[%s1958_s1 + $0x20] sm:$0xff]   ;;  %v1449_v11 = vld [vmem:[%s1958_s1 + $0x30] sm:$0xff]   ;;  %v1419_v20 = vld [vmem:[%s1957_s0 + $0x38] sm:$0xff]  }
   0x7   :  { %v225_v27 = vadd.f32 %v1551_v7, %v154_v18  ;;  %v226_v28 = vadd.f32 %v1551_v7, %v155_v19  ;;  %v1011_v33 = vunpack.c.l.bf16 %v1415_v22  ;;  %v1012_v34 = vunpack.c.h.bf16 %v1415_v22 }
   0x8   :  { %v415_v31 = vadd.f32 %v1127_v8, %v223_v23  ;;  %v416_v32 = vadd.f32 %v1128_v9, %v224_v24  ;;  %v227_v37 = vadd.f32 %v1551_v7, %v156_v29  ;;  %v228_v38 = vadd.f32 %v1551_v7, %v157_v30 }
   0x9   :  { %v417_v35 = vadd.f32 %v1131_v16, %v225_v27  ;;  %v418_v36 = vadd.f32 %v1132_v17, %v226_v28  ;;  %v158_v42 = vmul.f32 %v1011_v33, %v1537_v1  ;;  %v159_v43 = vmul.f32 %v1012_v34, %v1537_v1  ;;  %v1450_v33 = vld [vmem:[%s1958_s1 + $0x38] sm:$0xff]  }
   0xa   :  { %v479_v40 = vmax.f32 %v415_v31, 0.0  ;;  %v480_v41 = vmax.f32 %v416_v32, 0.0  ;;  %v419_v46 = vadd.f32 %v1135_v25, %v227_v37  ;;  %v420_v47 = vadd.f32 %v1136_v26, %v228_v38 }
   0xb   :  { %v481_v44 = vmax.f32 %v417_v35, 0.0  ;;  %v482_v45 = vmax.f32 %v418_v36, 0.0  ;;  %v229_v51 = vadd.f32 %v1551_v7, %v158_v42  ;;  %v230_v52 = vadd.f32 %v1551_v7, %v159_v43  ;;  %v1420_v42 = vld [vmem:[%s1957_s0 + $0x40] sm:$0xff]  }
   0xc   :  { %v1256_v50 = vpack.c.bf16 %v480_v41, %v479_v40  ;;  %v1139_v53 = vunpack.c.l.bf16 %v1446_v39  ;;  %v483_v56 = vmax.f32 %v419_v46, 0.0  ;;  %v484_v57 = vmax.f32 %v420_v47, 0.0  ;;  %v1451_v47 = vld [vmem:[%s1958_s1 + $0x40] sm:$0xff]  }
   0xd   :  { %v1261_v55 = vpack.c.bf16 %v482_v45, %v481_v44  ;;  %v1140_v58 = vunpack.c.h.bf16 %v1446_v39  ;;  %v1015_v60 = vunpack.c.l.bf16 %v1416_v48  ;;  %v1016_v61 = vunpack.c.h.bf16 %v1416_v48 }
   0xe   :  { %1257 = vst [vmem:[%s1961_s4] sm:$0xff] %v1256_v50   ;;  %v421_v59 = vadd.f32 %v1139_v53, %v229_v51  ;;  %v1143_v62 = vunpack.c.l.bf16 %v1447_v49  ;;  %v1266_v0 = vpack.c.bf16 %v484_v57, %v483_v56  ;;  %v1144_v3 = vunpack.c.h.bf16 %v1447_v49 }
   0xf   :  { %1475 = vst [vmem:[%s1961_s4 + $0x8] sm:$0xff] %v1261_v55   ;;  %v422_v2 = vadd.f32 %v1140_v58, %v230_v52  ;;  %v1019_v4 = vunpack.c.l.bf16 %v1417_v54  ;;  %v160_v8 = vmul.f32 %v1015_v60, %v1537_v1  ;;  %v161_v9 = vmul.f32 %v1016_v61, %v1537_v1  ;;  %v1421_v52 = vld [vmem:[%s1957_s0 + $0x48] sm:$0xff]  }
  0x10   :  { %v485_v6 = vmax.f32 %v421_v59, 0.0  ;;  %v1020_v10 = vunpack.c.h.bf16 %v1417_v54  ;;  %1476 = vst [vmem:[%s1961_s4 + $0x10] sm:$0xff] %v1266_v0   ;;  %v1147_v14 = vunpack.c.l.bf16 %v1448_v63  ;;  %v1148_v15 = vunpack.c.h.bf16 %v1448_v63  ;;  %v1452_v61 = vld [vmem:[%s1958_s1 + $0x48] sm:$0xff]  }
  0x11   :  { %v486_v12 = vmax.f32 %v422_v2, 0.0  ;;  %v162_v13 = vmul.f32 %v1019_v4, %v1537_v1  ;;  %v231_v16 = vadd.f32 %v1551_v7, %v160_v8  ;;  %v232_v17 = vadd.f32 %v1551_v7, %v161_v9 }
  0x12   :  { %v163_v18 = vmul.f32 %v1020_v10, %v1537_v1  ;;  %v1023_v19 = vunpack.c.l.bf16 %v1418_v5  ;;  %v1024_v23 = vunpack.c.h.bf16 %v1418_v5  ;;  %v1151_v24 = vunpack.c.l.bf16 %v1449_v11 }
  0x13   :  { %v1271_v21 = vpack.c.bf16 %v486_v12, %v485_v6  ;;  %v233_v22 = vadd.f32 %v1551_v7, %v162_v13  ;;  %v423_v25 = vadd.f32 %v1143_v62, %v231_v16  ;;  %v424_v26 = vadd.f32 %v1144_v3, %v232_v17  ;;  %v1422_v3 = vld [vmem:[%s1957_s0 + $0x50] sm:$0xff]  }
  0x14   :  { %v234_v27 = vadd.f32 %v1551_v7, %v163_v18  ;;  %v164_v28 = vmul.f32 %v1023_v19, %v1537_v1  ;;  %v165_v30 = vmul.f32 %v1024_v23, %v1537_v1  ;;  %v1152_v31 = vunpack.c.h.bf16 %v1449_v11  ;;  %v1453_v13 = vld [vmem:[%s1958_s1 + $0x50] sm:$0xff]  }
  0x15   :  { %1477 = vst [vmem:[%s1961_s4 + $0x18] sm:$0xff] %v1271_v21   ;;  %v425_v29 = vadd.f32 %v1147_v14, %v233_v22  ;;  %v1027_v32 = vunpack.c.l.bf16 %v1419_v20  ;;  %v487_v34 = vmax.f32 %v423_v25, 0.0  ;;  %v488_v35 = vmax.f32 %v424_v26, 0.0  ;;  %v1423_v22 = vld [vmem:[%s1957_s0 + $0x58] sm:$0xff]  }
  0x16   :  { %v426_v36 = vadd.f32 %v1148_v15, %v234_v27  ;;  %v235_v37 = vadd.f32 %v1551_v7, %v164_v28  ;;  %v236_v39 = vadd.f32 %v1551_v7, %v165_v30  ;;  %v1028_v40 = vunpack.c.h.bf16 %v1419_v20 }
  0x17   :  { %v489_v38 = vmax.f32 %v425_v29, 0.0  ;;  %v166_v41 = vmul.f32 %v1027_v32, %v1537_v1  ;;  %v1276_v43 = vpack.c.bf16 %v488_v35, %v487_v34  ;;  %v1155_v46 = vunpack.c.l.bf16 %v1450_v33 }
  0x18   :  { %v490_v44 = vmax.f32 %v426_v36, 0.0  ;;  %v427_v45 = vadd.f32 %v1151_v24, %v235_v37  ;;  %v428_v48 = vadd.f32 %v1152_v31, %v236_v39  ;;  %v167_v49 = vmul.f32 %v1028_v40, %v1537_v1  ;;  %v1454_v31 = vld [vmem:[%s1958_s1 + $0x58] sm:$0xff]   ;;  %v1424_v36 = vld [vmem:[%s1957_s0 + $0x60] sm:$0xff]  }
  0x19   :  { %v237_v50 = vadd.f32 %v1551_v7, %v166_v41  ;;  %v1156_v51 = vunpack.c.h.bf16 %v1450_v33  ;;  %1478 = vst [vmem:[%s1961_s4 + $0x20] sm:$0xff] %v1276_v43   ;;  %v1031_v55 = vunpack.c.l.bf16 %v1420_v42  ;;  %v1032_v56 = vunpack.c.h.bf16 %v1420_v42 }
  0x1a   :  { %v1281_v53 = vpack.c.bf16 %v490_v44, %v489_v38  ;;  %v491_v54 = vmax.f32 %v427_v45, 0.0  ;;  %v492_v57 = vmax.f32 %v428_v48, 0.0  ;;  %v238_v58 = vadd.f32 %v1551_v7, %v167_v49  ;;  %v1455_v45 = vld [vmem:[%s1958_s1 + $0x60] sm:$0xff]  }
  0x1b   :  { %v429_v59 = vadd.f32 %v1155_v46, %v237_v50  ;;  %v1159_v60 = vunpack.c.l.bf16 %v1451_v47  ;;  %v168_v62 = vmul.f32 %v1031_v55, %v1537_v1  ;;  %v169_v63 = vmul.f32 %v1032_v56, %v1537_v1  ;;  %v1425_v50 = vld [vmem:[%s1957_s0 + $0x68] sm:$0xff]  }
  0x1c   :  { %1479 = vst [vmem:[%s1961_s4 + $0x28] sm:$0xff] %v1281_v53   ;;  %v1160_v0 = vunpack.c.h.bf16 %v1451_v47  ;;  %v1035_v2 = vunpack.c.l.bf16 %v1421_v52  ;;  %v1286_v4 = vpack.c.bf16 %v492_v57, %v491_v54  ;;  %v430_v5 = vadd.f32 %v1156_v51, %v238_v58 }
  0x1d   :  { %v493_v6 = vmax.f32 %v429_v59, 0.0  ;;  %v1036_v8 = vunpack.c.h.bf16 %v1421_v52  ;;  %v239_v9 = vadd.f32 %v1551_v7, %v168_v62  ;;  %v240_v10 = vadd.f32 %v1551_v7, %v169_v63  ;;  %v1456_v59 = vld [vmem:[%s1958_s1 + $0x68] sm:$0xff]  }
  0x1e   :  { %v170_v11 = vmul.f32 %v1035_v2, %v1537_v1  ;;  %v1163_v12 = vunpack.c.l.bf16 %v1452_v61  ;;  %1480 = vst [vmem:[%s1961_s4 + $0x30] sm:$0xff] %v1286_v4   ;;  %v494_v14 = vmax.f32 %v430_v5, 0.0  ;;  %v1164_v16 = vunpack.c.h.bf16 %v1452_v61  ;;  %v1426_v5 = vld [vmem:[%s1957_s0 + $0x70] sm:$0xff]  }
  0x1f   :  { %v171_v15 = vmul.f32 %v1036_v8, %v1537_v1  ;;  %v1039_v17 = vunpack.c.l.bf16 %v1422_v3  ;;  %v431_v18 = vadd.f32 %v1159_v60, %v239_v9  ;;  %v432_v19 = vadd.f32 %v1160_v0, %v240_v10 }
  0x20   :  { %v241_v20 = vadd.f32 %v1551_v7, %v170_v11  ;;  %v1040_v21 = vunpack.c.h.bf16 %v1422_v3  ;;  %v1291_v23 = vpack.c.bf16 %v494_v14, %v493_v6  ;;  %v1167_v26 = vunpack.c.l.bf16 %v1453_v13  ;;  %v1457_v11 = vld [vmem:[%s1958_s1 + $0x70] sm:$0xff]  }
  0x21   :  { %v242_v24 = vadd.f32 %v1551_v7, %v171_v15  ;;  %v172_v25 = vmul.f32 %v1039_v17, %v1537_v1  ;;  %v495_v27 = vmax.f32 %v431_v18, 0.0  ;;  %v496_v28 = vmax.f32 %v432_v19, 0.0 }
  0x22   :  { %v433_v29 = vadd.f32 %v1163_v12, %v241_v20  ;;  %v173_v30 = vmul.f32 %v1040_v21, %v1537_v1  ;;  %1481 = vst [vmem:[%s1961_s4 + $0x38] sm:$0xff] %v1291_v23   ;;  %v1168_v34 = vunpack.c.h.bf16 %v1453_v13  ;;  %v1043_v35 = vunpack.c.l.bf16 %v1423_v22  ;;  %v1427_v20 = vld [vmem:[%s1957_s0 + $0x78] sm:$0xff]  }
  0x23   :  { %v434_v32 = vadd.f32 %v1164_v16, %v242_v24  ;;  %v243_v33 = vadd.f32 %v1551_v7, %v172_v25  ;;  %v1296_v37 = vpack.c.bf16 %v496_v28, %v495_v27  ;;  %v1044_v40 = vunpack.c.h.bf16 %v1423_v22 }
  0x24   :  { %v497_v38 = vmax.f32 %v433_v29, 0.0  ;;  %v244_v39 = vadd.f32 %v1551_v7, %v173_v30  ;;  %v174_v43 = vmul.f32 %v1043_v35, %v1537_v1  ;;  %v1171_v44 = vunpack.c.l.bf16 %v1454_v31  ;;  %v1458_v29 = vld [vmem:[%s1958_s1 + $0x78] sm:$0xff]  }
  0x25   :  { %v498_v41 = vmax.f32 %v434_v32, 0.0  ;;  %v435_v42 = vadd.f32 %v1167_v26, %v243_v33  ;;  %1482 = vst [vmem:[%s1961_s4 + $0x40] sm:$0xff] %v1296_v37   ;;  %v175_v47 = vmul.f32 %v1044_v40, %v1537_v1  ;;  %v1172_v48 = vunpack.c.h.bf16 %v1454_v31 }
  0x26   :  { %v436_v46 = vadd.f32 %v1168_v34, %v244_v39  ;;  %v1047_v49 = vunpack.c.l.bf16 %v1424_v36  ;;  %v245_v53 = vadd.f32 %v1551_v7, %v174_v43  ;;  %v1048_v54 = vunpack.c.h.bf16 %v1424_v36  ;;  %v1428_v34 = vld [vmem:[%s1957_s0 + $0x80] sm:$0xff]  }
  0x27   :  { %v1301_v51 = vpack.c.bf16 %v498_v41, %v497_v38  ;;  %v499_v52 = vmax.f32 %v435_v42, 0.0  ;;  %v246_v56 = vadd.f32 %v1551_v7, %v175_v47  ;;  %v1175_v58 = vunpack.c.l.bf16 %v1455_v45  ;;  %v1459_v43 = vld [vmem:[%s1958_s1 + $0x80] sm:$0xff]  }
  0x28   :  { %v500_v55 = vmax.f32 %v436_v46, 0.0  ;;  %v176_v57 = vmul.f32 %v1047_v49, %v1537_v1  ;;  %v437_v60 = vadd.f32 %v1171_v44, %v245_v53  ;;  %v177_v61 = vmul.f32 %v1048_v54, %v1537_v1 }
  0x29   :  { %1483 = vst [vmem:[%s1961_s4 + $0x48] sm:$0xff] %v1301_v51   ;;  %v1176_v62 = vunpack.c.h.bf16 %v1455_v45  ;;  %v1051_v63 = vunpack.c.l.bf16 %v1425_v50  ;;  %v438_v2 = vadd.f32 %v1172_v48, %v246_v56  ;;  %v1052_v4 = vunpack.c.h.bf16 %v1425_v50 }
  0x2a   :  { %v1306_v0 = vpack.c.bf16 %v500_v55, %v499_v52  ;;  %v247_v3 = vadd.f32 %v1551_v7, %v176_v57  ;;  %v501_v6 = vmax.f32 %v437_v60, 0.0  ;;  %v248_v8 = vadd.f32 %v1551_v7, %v177_v61  ;;  %v1429_v52 = vld [vmem:[%s1957_s0 + $0x88] sm:$0xff]  }
  0x2b   :  { %v178_v9 = vmul.f32 %v1051_v63, %v1537_v1  ;;  %v1179_v10 = vunpack.c.l.bf16 %v1456_v59  ;;  %v502_v12 = vmax.f32 %v438_v2, 0.0  ;;  %v179_v14 = vmul.f32 %v1052_v4, %v1537_v1  ;;  %v1460_v57 = vld [vmem:[%s1958_s1 + $0x88] sm:$0xff]  }
  0x2c   :  { %1484 = vst [vmem:[%s1961_s4 + $0x50] sm:$0xff] %v1306_v0   ;;  %v439_v13 = vadd.f32 %v1175_v58, %v247_v3  ;;  %v1180_v15 = vunpack.c.h.bf16 %v1456_v59  ;;  %v440_v16 = vadd.f32 %v1176_v62, %v248_v8  ;;  %v1055_v18 = vunpack.c.l.bf16 %v1426_v5  ;;  %v1430_v3 = vld [vmem:[%s1957_s0 + $0x90] sm:$0xff]  }
  0x2d   :  { %v249_v17 = vadd.f32 %v1551_v7, %v178_v9  ;;  %v1056_v19 = vunpack.c.h.bf16 %v1426_v5  ;;  %v1311_v21 = vpack.c.bf16 %v502_v12, %v501_v6  ;;  %v250_v23 = vadd.f32 %v1551_v7, %v179_v14  ;;  %v1461_v9 = vld [vmem:[%s1958_s1 + $0x90] sm:$0xff]  }
  0x2e   :  { %v503_v22 = vmax.f32 %v439_v13, 0.0  ;;  %v1183_v24 = vunpack.c.l.bf16 %v1457_v11  ;;  %v504_v25 = vmax.f32 %v440_v16, 0.0  ;;  %v180_v27 = vmul.f32 %v1055_v18, %v1537_v1  ;;  %v1431_v18 = vld [vmem:[%s1957_s0 + $0x98] sm:$0xff]  }
  0x2f   :  { %v441_v26 = vadd.f32 %v1179_v10, %v249_v17  ;;  %v181_v28 = vmul.f32 %v1056_v19, %v1537_v1  ;;  %1485 = vst [vmem:[%s1961_s4 + $0x58] sm:$0xff] %v1311_v21   ;;  %v442_v30 = vadd.f32 %v1180_v15, %v250_v23  ;;  %v1184_v31 = vunpack.c.h.bf16 %v1457_v11  ;;  %v1462_v23 = vld [vmem:[%s1958_s1 + $0x98] sm:$0xff]  }
  0x30   :  { %v1059_v32 = vunpack.c.l.bf16 %v1427_v20  ;;  %v1060_v33 = vunpack.c.h.bf16 %v1427_v20  ;;  %v1316_v35 = vpack.c.bf16 %v504_v25, %v503_v22  ;;  %v251_v37 = vadd.f32 %v1551_v7, %v180_v27 }
  0x31   :  { %v505_v36 = vmax.f32 %v441_v26, 0.0  ;;  %v252_v38 = vadd.f32 %v1551_v7, %v181_v28  ;;  %v506_v39 = vmax.f32 %v442_v30, 0.0  ;;  %v1187_v42 = vunpack.c.l.bf16 %v1458_v29 }
  0x32   :  { %v182_v40 = vmul.f32 %v1059_v32, %v1537_v1  ;;  %v183_v41 = vmul.f32 %v1060_v33, %v1537_v1  ;;  %1486 = vst [vmem:[%s1961_s4 + $0x60] sm:$0xff] %v1316_v35   ;;  %v443_v44 = vadd.f32 %v1183_v24, %v251_v37  ;;  %v1188_v46 = vunpack.c.h.bf16 %v1458_v29  ;;  %v1432_v32 = vld [vmem:[%s1957_s0 + $0xa0] sm:$0xff]  }
  0x33   :  { %v444_v45 = vadd.f32 %v1184_v31, %v252_v38  ;;  %v1063_v47 = vunpack.c.l.bf16 %v1428_v34  ;;  %v1321_v48 = vpack.c.bf16 %v506_v39, %v505_v36  ;;  %v1064_v51 = vunpack.c.h.bf16 %v1428_v34 }
  0x34   :  { %v253_v49 = vadd.f32 %v1551_v7, %v182_v40  ;;  %v254_v50 = vadd.f32 %v1551_v7, %v183_v41  ;;  %v507_v53 = vmax.f32 %v443_v44, 0.0  ;;  %v1191_v56 = vunpack.c.l.bf16 %v1459_v43  ;;  %v1463_v41 = vld [vmem:[%s1958_s1 + $0xa0] sm:$0xff]  }
  0x35   :  { %v508_v54 = vmax.f32 %v444_v45, 0.0  ;;  %v184_v55 = vmul.f32 %v1063_v47, %v1537_v1  ;;  %1487 = vst [vmem:[%s1961_s4 + $0x68] sm:$0xff] %v1321_v48   ;;  %v185_v60 = vmul.f32 %v1064_v51, %v1537_v1  ;;  %v1192_v61 = vunpack.c.h.bf16 %v1459_v43 }
  0x36   :  { %v445_v58 = vadd.f32 %v1187_v42, %v253_v49  ;;  %v446_v59 = vadd.f32 %v1188_v46, %v254_v50  ;;  %v1067_v0 = vunpack.c.l.bf16 %v1429_v52  ;;  %v1068_v2 = vunpack.c.h.bf16 %v1429_v52  ;;  %v1433_v50 = vld [vmem:[%s1957_s0 + $0xa8] sm:$0xff]  }
  0x37   :  { %v1326_v62 = vpack.c.bf16 %v508_v54, %v507_v53  ;;  %v255_v63 = vadd.f32 %v1551_v7, %v184_v55  ;;  %v256_v6 = vadd.f32 %v1551_v7, %v185_v60  ;;  %v1195_v8 = vunpack.c.l.bf16 %v1460_v57  ;;  %v1464_v55 = vld [vmem:[%s1958_s1 + $0xa8] sm:$0xff]  }
  0x38   :  { %v509_v4 = vmax.f32 %v445_v58, 0.0  ;;  %v510_v5 = vmax.f32 %v446_v59, 0.0  ;;  %v186_v11 = vmul.f32 %v1067_v0, %v1537_v1  ;;  %v187_v12 = vmul.f32 %v1068_v2, %v1537_v1  ;;  %v1434_v0 = vld [vmem:[%s1957_s0 + $0xb0] sm:$0xff]  }
  0x39   :  { %1488 = vst [vmem:[%s1961_s4 + $0x70] sm:$0xff] %v1326_v62   ;;  %v447_v10 = vadd.f32 %v1191_v56, %v255_v63  ;;  %v1196_v13 = vunpack.c.h.bf16 %v1460_v57  ;;  %v448_v15 = vadd.f32 %v1192_v61, %v256_v6  ;;  %v1071_v16 = vunpack.c.l.bf16 %v1430_v3  ;;  %v1465_v6 = vld [vmem:[%s1958_s1 + $0xb0] sm:$0xff]  }
  0x3a   :  { %v1331_v14 = vpack.c.bf16 %v510_v5, %v509_v4  ;;  %v1072_v17 = vunpack.c.h.bf16 %v1430_v3  ;;  %v257_v20 = vadd.f32 %v1551_v7, %v186_v11  ;;  %v258_v21 = vadd.f32 %v1551_v7, %v187_v12 }
  0x3b   :  { %v511_v19 = vmax.f32 %v447_v10, 0.0  ;;  %v1199_v22 = vunpack.c.l.bf16 %v1461_v9  ;;  %v512_v24 = vmax.f32 %v448_v15, 0.0  ;;  %v188_v25 = vmul.f32 %v1071_v16, %v1537_v1  ;;  %v1435_v16 = vld [vmem:[%s1957_s0 + $0xb8] sm:$0xff]  }
  0x3c   :  { %1489 = vst [vmem:[%s1961_s4 + $0x78] sm:$0xff] %v1331_v14   ;;  %v189_v26 = vmul.f32 %v1072_v17, %v1537_v1  ;;  %v1200_v27 = vunpack.c.h.bf16 %v1461_v9  ;;  %v449_v28 = vadd.f32 %v1195_v8, %v257_v20  ;;  %v450_v29 = vadd.f32 %v1196_v13, %v258_v21  ;;  %v1466_v21 = vld [vmem:[%s1958_s1 + $0xb8] sm:$0xff]  }
  0x3d   :  { %v1075_v30 = vunpack.c.l.bf16 %v1431_v18  ;;  %v1076_v31 = vunpack.c.h.bf16 %v1431_v18  ;;  %v1336_v33 = vpack.c.bf16 %v512_v24, %v511_v19  ;;  %v259_v34 = vadd.f32 %v1551_v7, %v188_v25 }
  0x3e   :  { %v260_v35 = vadd.f32 %v1551_v7, %v189_v26  ;;  %v1203_v36 = vunpack.c.l.bf16 %v1462_v23  ;;  %v513_v37 = vmax.f32 %v449_v28, 0.0  ;;  %v514_v38 = vmax.f32 %v450_v29, 0.0 }
  0x3f   :  { %v190_v39 = vmul.f32 %v1075_v30, %v1537_v1  ;;  %v191_v40 = vmul.f32 %v1076_v31, %v1537_v1  ;;  %1490 = vst [vmem:[%s1961_s4 + $0x80] sm:$0xff] %v1336_v33   ;;  %v451_v42 = vadd.f32 %v1199_v22, %v259_v34  ;;  %v1204_v44 = vunpack.c.h.bf16 %v1462_v23  ;;  %v1436_v30 = vld [vmem:[%s1957_s0 + $0xc0] sm:$0xff]  }
  0x40   :  { %v452_v43 = vadd.f32 %v1200_v27, %v260_v35  ;;  %v1079_v45 = vunpack.c.l.bf16 %v1432_v32  ;;  %v1341_v46 = vpack.c.bf16 %v514_v38, %v513_v37  ;;  %v1080_v49 = vunpack.c.h.bf16 %v1432_v32 }
  0x41   :  { %v261_v47 = vadd.f32 %v1551_v7, %v190_v39  ;;  %v262_v48 = vadd.f32 %v1551_v7, %v191_v40  ;;  %v515_v51 = vmax.f32 %v451_v42, 0.0  ;;  %v1207_v54 = vunpack.c.l.bf16 %v1463_v41  ;;  %v1467_v39 = vld [vmem:[%s1958_s1 + $0xc0] sm:$0xff]  }
  0x42   :  { %v516_v52 = vmax.f32 %v452_v43, 0.0  ;;  %v192_v53 = vmul.f32 %v1079_v45, %v1537_v1  ;;  %1491 = vst [vmem:[%s1961_s4 + $0x88] sm:$0xff] %v1341_v46   ;;  %v193_v58 = vmul.f32 %v1080_v49, %v1537_v1  ;;  %v1208_v59 = vunpack.c.h.bf16 %v1463_v41 }
  0x43   :  { %v453_v56 = vadd.f32 %v1203_v36, %v261_v47  ;;  %v454_v57 = vadd.f32 %v1204_v44, %v262_v48  ;;  %v1083_v62 = vunpack.c.l.bf16 %v1433_v50  ;;  %v1084_v63 = vunpack.c.h.bf16 %v1433_v50  ;;  %v1437_v48 = vld [vmem:[%s1957_s0 + $0xc8] sm:$0xff]  }
  0x44   :  { %v1346_v60 = vpack.c.bf16 %v516_v52, %v515_v51  ;;  %v263_v61 = vadd.f32 %v1551_v7, %v192_v53  ;;  %v264_v4 = vadd.f32 %v1551_v7, %v193_v58  ;;  %v1211_v5 = vunpack.c.l.bf16 %v1464_v55  ;;  %v1468_v53 = vld [vmem:[%s1958_s1 + $0xc8] sm:$0xff]  }
  0x45   :  { %v517_v2 = vmax.f32 %v453_v56, 0.0  ;;  %v518_v3 = vmax.f32 %v454_v57, 0.0  ;;  %v194_v9 = vmul.f32 %v1083_v62, %v1537_v1  ;;  %v195_v10 = vmul.f32 %v1084_v63, %v1537_v1  ;;  %v1438_v62 = vld [vmem:[%s1957_s0 + $0xd0] sm:$0xff]  }
  0x46   :  { %1492 = vst [vmem:[%s1961_s4 + $0x90] sm:$0xff] %v1346_v60   ;;  %v455_v8 = vadd.f32 %v1207_v54, %v263_v61  ;;  %v1212_v11 = vunpack.c.h.bf16 %v1464_v55  ;;  %v456_v13 = vadd.f32 %v1208_v59, %v264_v4  ;;  %v1087_v14 = vunpack.c.l.bf16 %v1434_v0  ;;  %v1469_v4 = vld [vmem:[%s1958_s1 + $0xd0] sm:$0xff]  }
  0x47   :  { %v1351_v12 = vpack.c.bf16 %v518_v3, %v517_v2  ;;  %v1088_v15 = vunpack.c.h.bf16 %v1434_v0  ;;  %v265_v18 = vadd.f32 %v1551_v7, %v194_v9  ;;  %v266_v19 = vadd.f32 %v1551_v7, %v195_v10 }
  0x48   :  { %v519_v17 = vmax.f32 %v455_v8, 0.0  ;;  %v1215_v20 = vunpack.c.l.bf16 %v1465_v6  ;;  %v520_v22 = vmax.f32 %v456_v13, 0.0  ;;  %v196_v23 = vmul.f32 %v1087_v14, %v1537_v1  ;;  %v1439_v14 = vld [vmem:[%s1957_s0 + $0xd8] sm:$0xff]  }
  0x49   :  { %1493 = vst [vmem:[%s1961_s4 + $0x98] sm:$0xff] %v1351_v12   ;;  %v197_v24 = vmul.f32 %v1088_v15, %v1537_v1  ;;  %v1216_v25 = vunpack.c.h.bf16 %v1465_v6  ;;  %v457_v26 = vadd.f32 %v1211_v5, %v265_v18  ;;  %v458_v27 = vadd.f32 %v1212_v11, %v266_v19  ;;  %v1470_v19 = vld [vmem:[%s1958_s1 + $0xd8] sm:$0xff]  }
  0x4a   :  { %v1091_v28 = vunpack.c.l.bf16 %v1435_v16  ;;  %v1092_v29 = vunpack.c.h.bf16 %v1435_v16  ;;  %v1356_v31 = vpack.c.bf16 %v520_v22, %v519_v17  ;;  %v267_v32 = vadd.f32 %v1551_v7, %v196_v23 }
  0x4b   :  { %v268_v33 = vadd.f32 %v1551_v7, %v197_v24  ;;  %v1219_v34 = vunpack.c.l.bf16 %v1466_v21  ;;  %v521_v35 = vmax.f32 %v457_v26, 0.0  ;;  %v522_v36 = vmax.f32 %v458_v27, 0.0 }
  0x4c   :  { %v198_v37 = vmul.f32 %v1091_v28, %v1537_v1  ;;  %v199_v38 = vmul.f32 %v1092_v29, %v1537_v1  ;;  %1494 = vst [vmem:[%s1961_s4 + $0xa0] sm:$0xff] %v1356_v31   ;;  %v459_v40 = vadd.f32 %v1215_v20, %v267_v32  ;;  %v1220_v42 = vunpack.c.h.bf16 %v1466_v21  ;;  %v1440_v28 = vld [vmem:[%s1957_s0 + $0xe0] sm:$0xff]  }
  0x4d   :  { %v460_v41 = vadd.f32 %v1216_v25, %v268_v33  ;;  %v1095_v43 = vunpack.c.l.bf16 %v1436_v30  ;;  %v1361_v44 = vpack.c.bf16 %v522_v36, %v521_v35  ;;  %v1096_v47 = vunpack.c.h.bf16 %v1436_v30 }
  0x4e   :  { %v269_v45 = vadd.f32 %v1551_v7, %v198_v37  ;;  %v270_v46 = vadd.f32 %v1551_v7, %v199_v38  ;;  %v523_v49 = vmax.f32 %v459_v40, 0.0  ;;  %v1223_v52 = vunpack.c.l.bf16 %v1467_v39  ;;  %v1471_v37 = vld [vmem:[%s1958_s1 + $0xe0] sm:$0xff]  }
  0x4f   :  { %v524_v50 = vmax.f32 %v460_v41, 0.0  ;;  %v200_v51 = vmul.f32 %v1095_v43, %v1537_v1  ;;  %1495 = vst [vmem:[%s1961_s4 + $0xa8] sm:$0xff] %v1361_v44   ;;  %v201_v56 = vmul.f32 %v1096_v47, %v1537_v1  ;;  %v1224_v57 = vunpack.c.h.bf16 %v1467_v39 }
  0x50   :  { %v461_v54 = vadd.f32 %v1219_v34, %v269_v45  ;;  %v462_v55 = vadd.f32 %v1220_v42, %v270_v46  ;;  %v1099_v60 = vunpack.c.l.bf16 %v1437_v48  ;;  %v1100_v61 = vunpack.c.h.bf16 %v1437_v48  ;;  %v1441_v46 = vld [vmem:[%s1957_s0 + $0xe8] sm:$0xff]  }
  0x51   :  { %v1366_v58 = vpack.c.bf16 %v524_v50, %v523_v49  ;;  %v271_v59 = vadd.f32 %v1551_v7, %v200_v51  ;;  %v272_v2 = vadd.f32 %v1551_v7, %v201_v56  ;;  %v1227_v3 = vunpack.c.l.bf16 %v1468_v53  ;;  %v1472_v51 = vld [vmem:[%s1958_s1 + $0xe8] sm:$0xff]  }
  0x52   :  { %v525_v63 = vmax.f32 %v461_v54, 0.0  ;;  %v526_v0 = vmax.f32 %v462_v55, 0.0  ;;  %v202_v6 = vmul.f32 %v1099_v60, %v1537_v1  ;;  %v203_v8 = vmul.f32 %v1100_v61, %v1537_v1  ;;  %v1442_v60 = vld [vmem:[%s1957_s0 + $0xf0] sm:$0xff]  }
  0x53   :  { %1496 = vst [vmem:[%s1961_s4 + $0xb0] sm:$0xff] %v1366_v58   ;;  %v463_v5 = vadd.f32 %v1223_v52, %v271_v59  ;;  %v1228_v9 = vunpack.c.h.bf16 %v1468_v53  ;;  %v464_v11 = vadd.f32 %v1224_v57, %v272_v2  ;;  %v1103_v12 = vunpack.c.l.bf16 %v1438_v62  ;;  %v1473_v2 = vld [vmem:[%s1958_s1 + $0xf0] sm:$0xff]  }
  0x54   :  { %v1371_v10 = vpack.c.bf16 %v526_v0, %v525_v63  ;;  %v1104_v13 = vunpack.c.h.bf16 %v1438_v62  ;;  %v273_v16 = vadd.f32 %v1551_v7, %v202_v6  ;;  %v274_v17 = vadd.f32 %v1551_v7, %v203_v8 }
  0x55   :  { %v527_v15 = vmax.f32 %v463_v5, 0.0  ;;  %v1231_v18 = vunpack.c.l.bf16 %v1469_v4  ;;  %v528_v20 = vmax.f32 %v464_v11, 0.0  ;;  %v204_v21 = vmul.f32 %v1103_v12, %v1537_v1  ;;  %v1443_v12 = vld [vmem:[%s1957_s0 + $0xf8] sm:$0xff]  }
  0x56   :  { %1497 = vst [vmem:[%s1961_s4 + $0xb8] sm:$0xff] %v1371_v10   ;;  %v205_v22 = vmul.f32 %v1104_v13, %v1537_v1  ;;  %v1232_v23 = vunpack.c.h.bf16 %v1469_v4  ;;  %v465_v24 = vadd.f32 %v1227_v3, %v273_v16  ;;  %v466_v25 = vadd.f32 %v1228_v9, %v274_v17  ;;  %v1474_v17 = vld [vmem:[%s1958_s1 + $0xf8] sm:$0xff]  }
  0x57   :  { %v1107_v26 = vunpack.c.l.bf16 %v1439_v14  ;;  %v1108_v27 = vunpack.c.h.bf16 %v1439_v14  ;;  %v1376_v29 = vpack.c.bf16 %v528_v20, %v527_v15  ;;  %v275_v30 = vadd.f32 %v1551_v7, %v204_v21 }
  0x58   :  { %v276_v31 = vadd.f32 %v1551_v7, %v205_v22  ;;  %v1235_v32 = vunpack.c.l.bf16 %v1470_v19  ;;  %v529_v33 = vmax.f32 %v465_v24, 0.0  ;;  %v530_v34 = vmax.f32 %v466_v25, 0.0 }
  0x59   :  { %v206_v35 = vmul.f32 %v1107_v26, %v1537_v1  ;;  %v207_v36 = vmul.f32 %v1108_v27, %v1537_v1  ;;  %1498 = vst [vmem:[%s1961_s4 + $0xc0] sm:$0xff] %v1376_v29   ;;  %v467_v38 = vadd.f32 %v1231_v18, %v275_v30  ;;  %v1236_v40 = vunpack.c.h.bf16 %v1470_v19 }
  0x5a   :  { %v468_v39 = vadd.f32 %v1232_v23, %v276_v31  ;;  %v1111_v41 = vunpack.c.l.bf16 %v1440_v28  ;;  %v1381_v42 = vpack.c.bf16 %v530_v34, %v529_v33  ;;  %v1112_v45 = vunpack.c.h.bf16 %v1440_v28 }
  0x5b   :  { %v277_v43 = vadd.f32 %v1551_v7, %v206_v35  ;;  %v278_v44 = vadd.f32 %v1551_v7, %v207_v36  ;;  %v531_v47 = vmax.f32 %v467_v38, 0.0  ;;  %v1239_v50 = vunpack.c.l.bf16 %v1471_v37 }
  0x5c   :  { %v532_v48 = vmax.f32 %v468_v39, 0.0  ;;  %v208_v49 = vmul.f32 %v1111_v41, %v1537_v1  ;;  %1499 = vst [vmem:[%s1961_s4 + $0xc8] sm:$0xff] %v1381_v42   ;;  %v209_v54 = vmul.f32 %v1112_v45, %v1537_v1  ;;  %v1240_v55 = vunpack.c.h.bf16 %v1471_v37 }
  0x5d   :  { %v469_v52 = vadd.f32 %v1235_v32, %v277_v43  ;;  %v470_v53 = vadd.f32 %v1236_v40, %v278_v44  ;;  %v1115_v58 = vunpack.c.l.bf16 %v1441_v46  ;;  %v1116_v59 = vunpack.c.h.bf16 %v1441_v46 }
  0x5e   :  { %v1386_v56 = vpack.c.bf16 %v532_v48, %v531_v47  ;;  %v279_v57 = vadd.f32 %v1551_v7, %v208_v49  ;;  %v280_v63 = vadd.f32 %v1551_v7, %v209_v54  ;;  %v1243_v0 = vunpack.c.l.bf16 %v1472_v51 }
  0x5f   :  { %v533_v61 = vmax.f32 %v469_v52, 0.0  ;;  %v534_v62 = vmax.f32 %v470_v53, 0.0  ;;  %v210_v4 = vmul.f32 %v1115_v58, %v1537_v1  ;;  %v211_v5 = vmul.f32 %v1116_v59, %v1537_v1 }
  0x60   :  { %1500 = vst [vmem:[%s1961_s4 + $0xd0] sm:$0xff] %v1386_v56   ;;  %v471_v3 = vadd.f32 %v1239_v50, %v279_v57  ;;  %v1244_v6 = vunpack.c.h.bf16 %v1472_v51  ;;  %v472_v9 = vadd.f32 %v1240_v55, %v280_v63  ;;  %v1119_v10 = vunpack.c.l.bf16 %v1442_v60 }
  0x61   :  { %v1391_v8 = vpack.c.bf16 %v534_v62, %v533_v61  ;;  %v1120_v11 = vunpack.c.h.bf16 %v1442_v60  ;;  %v281_v14 = vadd.f32 %v1551_v7, %v210_v4  ;;  %v282_v15 = vadd.f32 %v1551_v7, %v211_v5 }
  0x62   :  { %v535_v13 = vmax.f32 %v471_v3, 0.0  ;;  %v1247_v16 = vunpack.c.l.bf16 %v1473_v2  ;;  %v536_v18 = vmax.f32 %v472_v9, 0.0  ;;  %v212_v19 = vmul.f32 %v1119_v10, %v1537_v1 }
  0x63   :  { %1501 = vst [vmem:[%s1961_s4 + $0xd8] sm:$0xff] %v1391_v8   ;;  %v213_v20 = vmul.f32 %v1120_v11, %v1537_v1  ;;  %v1248_v21 = vunpack.c.h.bf16 %v1473_v2  ;;  %v473_v22 = vadd.f32 %v1243_v0, %v281_v14  ;;  %v474_v23 = vadd.f32 %v1244_v6, %v282_v15 }
  0x64   :  { %v1123_v24 = vunpack.c.l.bf16 %v1443_v12  ;;  %v1124_v25 = vunpack.c.h.bf16 %v1443_v12  ;;  %v1396_v26 = vpack.c.bf16 %v536_v18, %v535_v13  ;;  %v283_v27 = vadd.f32 %v1551_v7, %v212_v19 }
  0x65   :  { %v284_v28 = vadd.f32 %v1551_v7, %v213_v20  ;;  %v1251_v29 = vunpack.c.l.bf16 %v1474_v17  ;;  %v537_v30 = vmax.f32 %v473_v22, 0.0  ;;  %v538_v31 = vmax.f32 %v474_v23, 0.0 }
  0x66   :  { %v214_v32 = vmul.f32 %v1123_v24, %v1537_v1  ;;  %v215_v33 = vmul.f32 %v1124_v25, %v1537_v1  ;;  %1502 = vst [vmem:[%s1961_s4 + $0xe0] sm:$0xff] %v1396_v26   ;;  %v475_v34 = vadd.f32 %v1247_v16, %v283_v27  ;;  %v1252_v36 = vunpack.c.h.bf16 %v1474_v17 }
  0x67   :  { %v476_v35 = vadd.f32 %v1248_v21, %v284_v28  ;;  %v1401_v37 = vpack.c.bf16 %v538_v31, %v537_v30 }
  0x68   :  { %v285_v38 = vadd.f32 %v1551_v7, %v214_v32  ;;  %v286_v39 = vadd.f32 %v1551_v7, %v215_v33  ;;  %v539_v40 = vmax.f32 %v475_v34, 0.0 }
  0x69   :  { %v540_v41 = vmax.f32 %v476_v35, 0.0  ;;  %1503 = vst [vmem:[%s1961_s4 + $0xe8] sm:$0xff] %v1401_v37  }
  0x6a   :  { %v477_v42 = vadd.f32 %v1251_v29, %v285_v38  ;;  %v478_v1 = vadd.f32 %v1252_v36, %v286_v39 }
  0x6b   :  { %v1406_v43 = vpack.c.bf16 %v540_v41, %v539_v40 }
  0x6c   :  { %v541_v44 = vmax.f32 %v477_v42, 0.0  ;;  %v542_v45 = vmax.f32 %v478_v1, 0.0 }
  0x6d   :  { %1504 = vst [vmem:[%s1961_s4 + $0xf0] sm:$0xff] %v1406_v43  }
  0x6e   :  { %v1411_v46 = vpack.c.bf16 %v542_v45, %v541_v44 }
  0x70   :  { %1505 = vst [vmem:[%s1961_s4 + $0xf8] sm:$0xff] %v1411_v46  }

// kernel: a_call__.4
= control target key start
LH: loop header
LB: loop body
LE: loop exit
PB: predicated region body
PF: predicated region fallthrough
CT: control target
= control target key end

     0   :  { %s7789_s18 = smov 0   ;;  %s10494_s0 = inlined_call_operand.vmem [shape: bf16[2,16,16,128], index: 0, kind: input, shape index: {}]   ;;  %s10495_s1 = inlined_call_operand.vmem [shape: f32[1,128], index: 1, kind: input, shape index: {}]   ;;  %s10496_s2 = inlined_call_operand.vmem [shape: f32[1,128], index: 2, kind: input, shape index: {}]   ;;  %s10497_s3 = inlined_call_operand.vmem [shape: bf16[9,128,128], index: 3, kind: input, shape index: {}]   ;;  %s10498_s4 = inlined_call_operand.vmem [shape: bf16[2,16,16,128], index: 4, kind: output, shape index: {0}]   ;;  %s10499_s5 = inlined_call_operand.vmem [shape: f32[2,2,128], index: 5, kind: output, shape index: {1}]  }
   0x1 LB: > { %s6215_s19 = sadd.s32 4294967295, %s7756_s18   ;;  %p6219_p0 = scmp.ge.s32.totalorder %s7756_s18, 1  ;;  %s7756_s18 = sphi %s7789_s18, %s16_s18  }
   0x2   : > { %p190_p1 = scmp.lt.s32.totalorder %s7756_s18, 3 }
   0x4   : > { %p191_p2 = pnand %p6219_p0, %p190_p1 }
   0x6   : > { %194 = sbr.rel (%p191_p2) target bundleno = 682 (0x2aa), region = 36 }
   0xb   : > { %v7598_v0 = vld [vmem:[%s10497_s3 + $0x78] sm:$0xff]   ;;  %v7599_v1 = vld [vmem:[%s10497_s3 + $0x70] sm:$0xff]   ;;  %v7758_v2 = vmov 0   ;;  %p222_p3 = scmp.lt.s32.totalorder %s6215_s19, 1  ;;  %v7600_v3 = vld [vmem:[%s10497_s3 + $0x68] sm:$0xff]   ;;  %vm435_vm2 = vcmask 1040384  }
   0xc   : > { %427 = vst [vmem:[#allocation2] sm:$0xf] %v7758_v2  ;;  %428 = vst [vmem:[#allocation2 + $0x4] sm:$0xf] %v7758_v2  ;;  %7141 = vmatprep.subr.bf16.mxu0 %v7598_v0  ;;  %7573 = vmatprep.subr.bf16.mxu1 %v7598_v0  ;;  %v7601_v4 = vld [vmem:[%s10497_s3 + $0x60] sm:$0xff]   ;;  %v7602_v21 = vld [vmem:[%s10497_s3 + $0x58] sm:$0xff]  }
   0xd   : > { %429 = vst [vmem:[#allocation2 + $0x8] sm:$0x1] %v7758_v2  ;;  %431 = vst [vmem:[#allocation2 + $0xcc] sm:$0xf] %v7758_v2  ;;  %7142 = vmatpush3.bf16.msra.mxu0 %v7598_v0  ;;  %7581 = vmatpush3.bf16.msra.mxu1 %v7598_v0  ;;  %s10743_s19 = smov (!%p222_p3, %s6215_s19), 1  ;;  %v10519_v29 = vmov 0 }
   0xe   : > { %432 = vst [vmem:[#allocation2 + $0xd0] sm:$0xf] %v7758_v2  ;;  %433 = vst [vmem:[#allocation2 + $0xd4] sm:$0x1] %v7758_v2  ;;  %7143 = vmatprep.subr.bf16.mxu0 %v7599_v1  ;;  %7574 = vmatprep.subr.bf16.mxu1 %v7599_v1  ;;  %s6685_s26 = sshll.u32 %s10743_s19, 7  ;;  %vm938_vm7 = vcmask 1043456  }
   0xf   : > { %s7817_s6 = scalar_lea.vmem %s10494_s0, %s6685_s26  ;;  %vm1116_vm0 = vsmask.f32 3328  ;;  %vm1117_vm1 = vsmask.f32 7440  ;;  %v7824_v19 = vld [vmem:[%s10495_s1] ss:$0 sm:$0xff]  ;;  %s10357_s11 = scalar_lea.vmem %s10498_s4, %s6685_s26 }
  0x10   : > { %v6752_v13 = vld [vmem:[%s7817_s6] sm:$0xff]   ;;  %v6901_v14 = vld [vmem:[%s7817_s6 + $0x38] sm:$0xff]   ;;  %vm7836_vm3 = vmor %vm1116_vm0, %vm1117_vm1  ;;  %vm436_vm4 = vsmask.f32 256  ;;  %vm486_vm6 = vsmask.f32 7938 }
  0x11   : > { %7144 = vmatpush3.bf16.msra.mxu0 %v7599_v1  ;;  %7582 = vmatpush3.bf16.msra.mxu1 %v7599_v1  ;;  %v6753_v17 = vunpack.c.l.bf16 %v6752_v13  ;;  %v6754_v18 = vunpack.c.h.bf16 %v6752_v13  ;;  %v7829_v20 = vld [vmem:[%s10496_s2] ss:$0 sm:$0xff]  ;;  %vm7844_vm5 = vmand %vm435_vm2, %vm436_vm4  ;;  %v438_v30 = vld [vmem:[#allocation2 + $0xc] sm:$0x1]  ;;  %v10522_v35 = vmov 0  ;;  %v6781_v36 = vunpack.c.l.bf16 %v6901_v14  ;;  %s6224_s26 = sshll.u32 %s10743_s19, 1 }
  0x12   : > { %7145 = vmatprep.subr.bf16.mxu0 %v7600_v3  ;;  %7575 = vmatprep.subr.bf16.mxu1 %v7600_v3  ;;  %v10520_v29 = vsel %vm7844_vm5, 4294967295, %v10519_v29  ;;  %v488_v31 = vld [vmem:[#allocation2 + $0x14] sm:$0x1]  ;;  %v439_v34 = vsel %vm7844_vm5, 0, %v438_v30  ;;  %vm7855_vm8 = vmand %vm435_vm2, %vm486_vm6  ;;  %vm616_vm9 = vsmask.f32 4368  ;;  %v6782_v44 = vunpack.c.h.bf16 %v6901_v14  ;;  %s235_s14 = scalar_lea.vmem %s10499_s5, %s6224_s26 }
  0x13   : > { %v1052_v5 = vld [vmem:[#allocation2] sm:$0xf]  ;;  %v1053_v6 = vld [vmem:[#allocation2 + $0x4] sm:$0xf]  ;;  %v308_v27 = vmul.f32 %v6753_v17, %v7824_v19  ;;  %v309_v28 = vmul.f32 %v6754_v18, %v7824_v19  ;;  %10521 = vst [vmem:[#allocation3_spill] sm:$0xff] %v10520_v29  ;;  %v7603_v32 = vld [vmem:[%s10497_s3 + $0x50] sm:$0xff]   ;;  %v322_v45 = vmul.f32 %v6781_v36, %v7824_v19 }
  0x14   : > { %v1100_v7 = vld [vmem:[#allocation2 + $0x8] sm:$0x1]  ;;  %v1120_v8 = vshrl.u32 %v1052_v5, 16  ;;  %v1123_v9 = vshll.u32 %v1052_v5, 16  ;;  %v1129_v10 = vshll.u32 %v1053_v6, 16  ;;  %v1133_v11 = vshrl.u32 %v1053_v6, 16  ;;  %vm7892_vm10 = vmor %vm436_vm4, %vm616_vm9 }
  0x15   : > { %v1139_v12 = vshll.u32 %v1100_v7, 16  ;;  %7146 = vmatpush3.bf16.msra.mxu0 %v7600_v3  ;;  %7583 = vmatpush3.bf16.msra.mxu1 %v7600_v3  ;;  %v10523_v35 = vsel %vm7855_vm8, 4294967295, %v10522_v35  ;;  %v459_v37 = vld [vmem:[#allocation2 + $0x60] sm:$0x1]  ;;  %v347_v39 = vadd.f32 %v7829_v20, %v308_v27  ;;  %v348_v40 = vadd.f32 %v7829_v20, %v309_v28  ;;  %440 = vst [vmem:[#allocation2 + $0xc] sm:$0x1] %v439_v34  ;;  %vm7901_vm11 = vmand %vm938_vm7, %vm486_vm6 }
  0x16   : > { %v1122_v15 = vrot.slane %v1120_v8, 4  ;;  %v1125_v16 = vrot.slane %v1123_v9, 5  ;;  %7147 = vmatprep.subr.bf16.mxu0 %v7601_v4  ;;  %7576 = vmatprep.subr.bf16.mxu1 %v7601_v4  ;;  %v1131_v23 = vrot.slane %v1129_v10, 5  ;;  %v1135_v24 = vrot.slane %v1133_v11, 4  ;;  %10524 = vst [vmem:[#allocation4_spill] sm:$0xff] %v10523_v35  ;;  %v6902_v51 = vld [vmem:[%s7817_s6 + $0x40] sm:$0xff]  }
  0x17   : > { %v1141_v25 = vrot.slane %v1139_v12, 5  ;;  %v489_v41 = vsel %vm7855_vm8, 0, %v488_v31  ;;  %v509_v42 = vld [vmem:[#allocation2 + $0x68] sm:$0x1]  ;;  %v460_v46 = vsel %vm7844_vm5, 0, %v459_v37  ;;  %v379_v48 = vmax.f32 %v347_v39, 0.0 }
  0x18   : > { %v1126_v26 = vor.u32 %v1125_v16, %v1122_v15  ;;  %v1136_v33 = vor.u32 %v1135_v24, %v1131_v23  ;;  %490 = vst [vmem:[#allocation2 + $0x14] sm:$0x1] %v489_v41  ;;  %v380_v49 = vmax.f32 %v348_v40, 0.0  ;;  %461 = vst [vmem:[#allocation2 + $0x60] sm:$0x1] %v460_v46  ;;  %v510_v50 = vsel %vm7855_vm8, 0, %v509_v42 }
  0x19   : > { %7148 = vmatpush3.bf16.msra.mxu0 %v7601_v4  ;;  %7584 = vmatpush3.bf16.msra.mxu1 %v7601_v4  ;;  %v323_v53 = vmul.f32 %v6782_v44, %v7824_v19  ;;  %v361_v54 = vadd.f32 %v7829_v20, %v322_v45  ;;  %511 = vst [vmem:[#allocation2 + $0x68] sm:$0x1] %v510_v50  ;;  %v6785_v55 = vunpack.c.l.bf16 %v6902_v51  ;;  %v462_v56 = vld [vmem:[#allocation2 + $0x6c] sm:$0x1]  ;;  %v6786_v60 = vunpack.c.h.bf16 %v6902_v51  ;;  %v512_v61 = vld [vmem:[#allocation2 + $0x74] sm:$0x1] }
  0x1a   : > { %v1127_v38 = vrot.slane %v1126_v26, 4  ;;  %7149 = vmatprep.subr.bf16.mxu0 %v7602_v21  ;;  %7577 = vmatprep.subr.bf16.mxu1 %v7602_v21  ;;  %v1137_v43 = vrot.slane %v1136_v33, 4  ;;  %v6687_v58 = vpack.c.bf16 %v379_v48, %v379_v48  ;;  %v6688_v59 = vpack.c.bf16 %v380_v49, %v380_v49  ;;  %v7604_v62 = vld [vmem:[%s10497_s3 + $0x48] sm:$0xff]   ;;  %v7605_v12 = vld [vmem:[%s10497_s3 + $0x40] sm:$0xff]   ;;  %v7909_v37 = vld [vmem:[%s10497_s3 + $0x38] sm:$0xff]  }
  0x1b   : > { %v362_v63 = vadd.f32 %v7829_v20, %v323_v53  ;;  %v393_v0 = vmax.f32 %v361_v54, 0.0  ;;  %v324_v1 = vmul.f32 %v6785_v55, %v7824_v19  ;;  %v463_v2 = vsel %vm7844_vm5, 0, %v462_v56  ;;  %v7883_v3 = vld [vmem:[%s7817_s6 + $0x8] sm:$0xff]   ;;  %v441_v39 = vld [vmem:[#allocation2 + $0x18] sm:$0x1] }
  0x1c   : > { %v1132_v47 = vsel %vm7836_vm3, %v1127_v38, %v1131_v23  ;;  %v1142_v52 = vsel %vm7836_vm3, %v1137_v43, %v1141_v25  ;;  %v619_v4 = vshrl.u32 %v6687_v58, 16  ;;  %v622_v5 = vshll.u32 %v6687_v58, 16  ;;  %464 = vst [vmem:[#allocation2 + $0x6c] sm:$0x1] %v463_v2  ;;  %v7920_v44 = vld [vmem:[%s10497_s3 + $0xb8] sm:$0xff]  }
  0x1d   : > { %7150 = vmatpush3.bf16.msra.mxu0 %v7602_v21  ;;  %7585 = vmatpush3.bf16.msra.mxu1 %v7602_v21  ;;  %v6275_v57 = vcombine.low %v1132_v47, %v1142_v52  ;;  %v627_v6 = vshrl.u32 %v6688_v59, 16  ;;  %v630_v7 = vshll.u32 %v6688_v59, 16  ;;  %v394_v8 = vmax.f32 %v362_v63, 0.0  ;;  %v940_v21 = vld [vmem:[#allocation2 + $0xc] sm:$0xf] }
  0x1e   : > { %7151 = vmatprep.subr.bf16.mxu0 %v7603_v32  ;;  %7578 = vmatprep.subr.bf16.mxu1 %v7603_v32  ;;  %v6701_v9 = vpack.c.bf16 %v393_v0, %v393_v0  ;;  %v325_v10 = vmul.f32 %v6786_v60, %v7824_v19  ;;  %v363_v11 = vadd.f32 %v7829_v20, %v324_v1  ;;  %v10525_v13 = vmov 0  ;;  %v491_v59 = vld [vmem:[#allocation2 + $0x20] sm:$0x1]  ;;  %v7929_v60 = vld [vmem:[%s7817_s6 + $0x10] sm:$0xff]  }
  0x1f   : > { %7157 = vmatprep.mubr.bf16.mxu0 %v6275_v57  ;;  %v10526_v13 = vsel %vm7892_vm10, 4294967295, %v10525_v13  ;;  %v621_v14 = vrot.slane %v619_v4, 7  ;;  %v629_v15 = vrot.slane %v627_v6, 7  ;;  %v513_v16 = vsel %vm7855_vm8, 0, %v512_v61  ;;  %v944_v23 = vld [vmem:[#allocation2 + $0x14] sm:$0x1] }
  0x20   : > { %10527 = vst [vmem:[#allocation5_spill] sm:$0xff] %v10526_v13  ;;  %v6757_v17 = vunpack.c.l.bf16 %v7883_v3  ;;  %v10528_v18 = vmov 0  ;;  %v6702_v24 = vpack.c.bf16 %v394_v8, %v394_v8  ;;  %v738_v25 = vshrl.u32 %v6701_v9, 16  ;;  %514 = vst [vmem:[#allocation2 + $0x74] sm:$0x1] %v513_v16 }
  0x21   : > { %7152 = vmatpush3.bf16.msra.mxu0 %v7603_v32  ;;  %7586 = vmatpush3.bf16.msra.mxu1 %v7603_v32  ;;  %v10529_v18 = vsel %vm7901_vm11, 4294967295, %v10528_v18  ;;  %v741_v26 = vshll.u32 %v6701_v9, 16  ;;  %v364_v27 = vadd.f32 %v7829_v20, %v325_v10  ;;  %v624_v28 = vor.u32 %v622_v5, %v621_v14  ;;  %v989_v43 = vld [vmem:[#allocation2 + $0x60] sm:$0xf]  ;;  %v993_v49 = vld [vmem:[#allocation2 + $0x68] sm:$0x1] }
  0x22   : > { %7153 = vmatprep.subr.bf16.mxu0 %v7604_v62  ;;  %7579 = vmatprep.subr.bf16.mxu1 %v7604_v62  ;;  %10530 = vst [vmem:[#allocation6_spill] sm:$0xff] %v10529_v18  ;;  %v625_v30 = vrot.slane %v621_v14, 4  ;;  %v632_v31 = vor.u32 %v630_v7, %v629_v15  ;;  %v634_v32 = vrot.slane %v629_v15, 4  ;;  %v740_v33 = vrot.slane %v738_v25, 7 }
  0x23   : > { %v746_v34 = vshrl.u32 %v6702_v24, 16  ;;  %v749_v36 = vshll.u32 %v6702_v24, 16  ;;  %v395_v38 = vmax.f32 %v363_v11, 0.0  ;;  %v941_v41 = vsel %vm7901_vm11, %v624_v28, %v940_v21  ;;  %v7944_v11 = vld [vmem:[%s7817_s6 + $0x48] sm:$0xff]  }
  0x24   : > { %v633_v40 = vsel %vm7892_vm10, %v625_v30, %v632_v31  ;;  %v945_v42 = vsel %vm7844_vm5, %v634_v32, %v944_v23  ;;  %v396_v45 = vmax.f32 %v364_v27, 0.0  ;;  %942 = vst [vmem:[#allocation2 + $0xc] sm:$0xf] %v941_v41  ;;  %v743_v46 = vor.u32 %v741_v26, %v740_v33  ;;  %v996_v28 = vld [vmem:[#allocation2 + $0x6c] sm:$0xf] }
  0x25   : > { %7154 = vmatpush3.bf16.msra.mxu0 %v7604_v62  ;;  %7587 = vmatpush3.bf16.msra.mxu1 %v7604_v62  ;;  %943 = vst [vmem:[#allocation2 + $0x10] sm:$0xf] %v633_v40  ;;  %946 = vst [vmem:[#allocation2 + $0x14] sm:$0x1] %v945_v42  ;;  %v744_v47 = vrot.slane %v740_v33, 4  ;;  %v748_v48 = vrot.slane %v746_v34, 7  ;;  %v6703_v50 = vpack.c.bf16 %v395_v38, %v395_v38  ;;  %v6758_v52 = vunpack.c.h.bf16 %v7883_v3 }
  0x26   : > { %7155 = vmatprep.subr.bf16.mxu0 %v7605_v12  ;;  %7580 = vmatprep.subr.bf16.mxu1 %v7605_v12  ;;  %v6704_v51 = vpack.c.bf16 %v396_v45, %v396_v45  ;;  %v310_v53 = vmul.f32 %v6757_v17, %v7824_v19  ;;  %v442_v54 = vsel %vm7844_vm5, 0, %v441_v39  ;;  %v990_v57 = vsel %vm7901_vm11, %v743_v46, %v989_v43 }
  0x27   : > { %v751_v55 = vor.u32 %v749_v36, %v748_v48  ;;  %v753_v56 = vrot.slane %v748_v48, 4  ;;  %v755_v58 = vshrl.u32 %v6703_v50, 16  ;;  %443 = vst [vmem:[#allocation2 + $0x18] sm:$0x1] %v442_v54  ;;  %991 = vst [vmem:[#allocation2 + $0x60] sm:$0xf] %v990_v57  ;;  %v311_v0 = vmul.f32 %v6758_v52, %v7824_v19 }
  0x28   : > { %v758_v61 = vshll.u32 %v6703_v50, 16  ;;  %v763_v62 = vshrl.u32 %v6704_v51, 16  ;;  %v766_v63 = vshll.u32 %v6704_v51, 16  ;;  %v349_v4 = vadd.f32 %v7829_v20, %v310_v53  ;;  %v1000_v33 = vld [vmem:[#allocation2 + $0x74] sm:$0x1] }
  0x29   : > { %7156 = vmatpush3.bf16.msra.mxu0 %v7605_v12  ;;  %7588 = vmatpush3.bf16.msra.mxu1 %v7605_v12  ;;  %v752_v1 = vsel %vm7892_vm10, %v744_v47, %v751_v55  ;;  %v994_v2 = vsel %vm7844_vm5, %v753_v56, %v993_v49  ;;  %v757_v3 = vrot.slane %v755_v58, 7  ;;  %v492_v6 = vsel %vm7855_vm8, 0, %v491_v59 }
  0x2a   : > { %7189 = vmatprep.subr.bf16.mxu1 %v7909_v37  ;;  %7237 = vmatprep.subr.bf16.mxu0 %v7920_v44  ;;  %992 = vst [vmem:[#allocation2 + $0x64] sm:$0xf] %v752_v1  ;;  %995 = vst [vmem:[#allocation2 + $0x68] sm:$0x1] %v994_v2  ;;  %v765_v5 = vrot.slane %v763_v62, 7  ;;  %v6761_v7 = vunpack.c.l.bf16 %v7929_v60  ;;  %v350_v9 = vadd.f32 %v7829_v20, %v311_v0  ;;  %v381_v10 = vmax.f32 %v349_v4, 0.0 }
  0x2b   : > { %v761_v8 = vrot.slane %v757_v3, 4  ;;  %493 = vst [vmem:[#allocation2 + $0x20] sm:$0x1] %v492_v6  ;;  %v1054_v12 = vld [vmem:[#allocation2 + $0xc] sm:$0xf]  ;;  %v760_v16 = vor.u32 %v758_v61, %v757_v3  ;;  %v6762_v21 = vunpack.c.h.bf16 %v7929_v60  ;;  %v6789_v34 = vunpack.c.l.bf16 %v7944_v11 }
  0x2c   : > { %v1055_v14 = vld [vmem:[#allocation2 + $0x10] sm:$0xf]  ;;  %v1101_v15 = vld [vmem:[#allocation2 + $0x14] sm:$0x1]  ;;  %v768_v17 = vor.u32 %v766_v63, %v765_v5  ;;  %v7948_v23 = vmul.f32 %v6761_v7, %v7824_v19  ;;  %v1144_v24 = vshrl.u32 %v1054_v12, 16  ;;  %v1147_v25 = vshll.u32 %v1054_v12, 16 }
  0x2d   : > { %v1153_v26 = vshll.u32 %v1055_v14, 16  ;;  %v1157_v27 = vshrl.u32 %v1055_v14, 16  ;;  %v1163_v30 = vshll.u32 %v1101_v15, 16  ;;  %v770_v32 = vrot.slane %v765_v5, 4  ;;  %v7609_v5 = vld [vmem:[%s10497_s3 + $0xb0] sm:$0xff]  }
  0x2e   : > { %v769_v31 = vsel %vm7892_vm10, %v761_v8, %v768_v17  ;;  %v1146_v36 = vrot.slane %v1144_v24, 4  ;;  %v1149_v38 = vrot.slane %v1147_v25, 5  ;;  %v1068_v41 = vld [vmem:[#allocation2 + $0x60] sm:$0xf]  ;;  %v997_v46 = vsel %vm7901_vm11, %v760_v16, %v996_v28  ;;  %v947_v24 = vld [vmem:[#allocation2 + $0x18] sm:$0xf] }
  0x2f   : > { %v1155_v39 = vrot.slane %v1153_v26, 5  ;;  %v1159_v40 = vrot.slane %v1157_v27, 4  ;;  %999 = vst [vmem:[#allocation2 + $0x70] sm:$0xf] %v769_v31  ;;  %v1165_v42 = vrot.slane %v1163_v30, 5  ;;  %v1312_v43 = vshrl.u32 %v1068_v41, 16 }
  0x30   : > { %v1315_v45 = vshll.u32 %v1068_v41, 16  ;;  %v1150_v47 = vor.u32 %v1149_v38, %v1146_v36  ;;  %998 = vst [vmem:[#allocation2 + $0x6c] sm:$0xf] %v997_v46  ;;  %v1001_v51 = vsel %vm7844_vm5, %v770_v32, %v1000_v33  ;;  %v382_v52 = vmax.f32 %v350_v9, 0.0  ;;  %v444_v31 = vld [vmem:[#allocation2 + $0x24] sm:$0x1] }
  0x31   : > { %v1160_v48 = vor.u32 %v1159_v40, %v1155_v39  ;;  %v1069_v49 = vld [vmem:[#allocation2 + $0x64] sm:$0xf]  ;;  %v1108_v50 = vld [vmem:[#allocation2 + $0x68] sm:$0x1]  ;;  %v1314_v53 = vrot.slane %v1312_v43, 4  ;;  %v6790_v61 = vunpack.c.h.bf16 %v7944_v11  ;;  %v6689_v1 = vpack.c.bf16 %v381_v10, %v381_v10 }
  0x32   : > { %v1317_v54 = vrot.slane %v1315_v45, 5  ;;  %v1321_v55 = vshll.u32 %v1069_v49, 16  ;;  %v1325_v56 = vshrl.u32 %v1069_v49, 16  ;;  %1002 = vst [vmem:[#allocation2 + $0x74] sm:$0x1] %v1001_v51  ;;  %v1151_v57 = vrot.slane %v1150_v47, 4 }
  0x33   : > { %v1161_v58 = vrot.slane %v1160_v48, 4  ;;  %v1331_v59 = vshll.u32 %v1108_v50, 16  ;;  %v6690_v6 = vpack.c.bf16 %v382_v52, %v382_v52  ;;  %v636_v14 = vshrl.u32 %v6689_v1, 16  ;;  %v494_v45 = vld [vmem:[#allocation2 + $0x2c] sm:$0x1] }
  0x34   : > { %v1318_v62 = vor.u32 %v1317_v54, %v1314_v53  ;;  %v1323_v63 = vrot.slane %v1321_v55, 5  ;;  %v1327_v0 = vrot.slane %v1325_v56, 4  ;;  %v1156_v2 = vsel %vm7836_vm3, %v1151_v57, %v1155_v39  ;;  %v7611_v46 = vld [vmem:[%s10497_s3 + $0xa8] sm:$0xff]   ;;  %v951_v56 = vld [vmem:[#allocation2 + $0x20] sm:$0x1] }
  0x35   : > { %v1166_v3 = vsel %vm7836_vm3, %v1161_v58, %v1165_v42  ;;  %v1333_v4 = vrot.slane %v1331_v59, 5  ;;  %v639_v10 = vshll.u32 %v6689_v1, 16  ;;  %v644_v17 = vshrl.u32 %v6690_v6, 16  ;;  %v2969_v18 = vld [vmem:[#allocation2 + $0xc] sm:$0xf] }
  0x36   : > { %v6276_v7 = vcombine.low %v1156_v2, %v1166_v3  ;;  %v1319_v8 = vrot.slane %v1318_v62, 4  ;;  %v1328_v9 = vor.u32 %v1327_v0, %v1323_v63  ;;  %v1071_v12 = vld [vmem:[#allocation2 + $0x70] sm:$0xf]  ;;  %v638_v28 = vrot.slane %v636_v14, 7  ;;  %v7613_v0 = vld [vmem:[%s10497_s3 + $0xa0] sm:$0xff]  }
  0x37   : > { %v1345_v15 = vshll.u32 %v1071_v12, 16  ;;  %v1349_v16 = vshrl.u32 %v1071_v12, 16  ;;  %v1070_v27 = vld [vmem:[#allocation2 + $0x6c] sm:$0xf]  ;;  %v647_v30 = vshll.u32 %v6690_v6, 16  ;;  %v646_v52 = vrot.slane %v644_v17, 7 }
  0x38   : > { %7158 = vmatmul.mubr.bf16.vlgmr.msra.gmra.mxu0 %v6276_v7  ;;  %v1324_v25 = vsel %vm7836_vm3, %v1319_v8, %v1323_v63  ;;  %v1329_v26 = vrot.slane %v1328_v9, 4  ;;  %v1336_v33 = vshrl.u32 %v1070_v27, 16  ;;  %v1339_v36 = vshll.u32 %v1070_v27, 16  ;;  %v6904_v9 = vld [vmem:[%s7817_s6 + $0x50] sm:$0xff]  }
  0x39   : > { %v1109_v32 = vld [vmem:[#allocation2 + $0x74] sm:$0x1]  ;;  %v1347_v38 = vrot.slane %v1345_v15, 5  ;;  %v1351_v39 = vrot.slane %v1349_v16, 4  ;;  %7238 = vmatpush3.bf16.msra.mxu0 %v7920_v44  ;;  %v641_v42 = vor.u32 %v639_v10, %v638_v28  ;;  %v642_v43 = vrot.slane %v638_v28, 4 }
  0x3a   : > { %v1334_v40 = vsel %vm7836_vm3, %v1329_v26, %v1333_v4  ;;  %v1355_v41 = vshll.u32 %v1109_v32, 16  ;;  %7239 = vmatprep.subr.bf16.mxu0 %v7609_v5  ;;  %v1338_v48 = vrot.slane %v1336_v33, 4  ;;  %v1341_v49 = vrot.slane %v1339_v36, 5  ;;  %v515_v4 = vld [vmem:[#allocation2 + $0x80] sm:$0x1] }
  0x3b   : > { %v6283_v47 = vcombine.low %v1324_v25, %v1334_v40  ;;  %v1352_v50 = vor.u32 %v1351_v39, %v1347_v38  ;;  %v948_v44 = vsel %vm7901_vm11, %v641_v42, %v947_v24  ;;  %v313_v53 = vmul.f32 %v6762_v21, %v7824_v19  ;;  %v465_v21 = vld [vmem:[#allocation2 + $0x78] sm:$0x1]  ;;  %v7610_v42 = vld [vmem:[%s10497_s3 + $0x28] sm:$0xff]   ;;  %v2971_v35 = vld [vmem:[#allocation2 + $0x14] sm:$0x1] }
  0x3c   : > { %v1357_v51 = vrot.slane %v1355_v41, 5  ;;  %v1342_v54 = vor.u32 %v1341_v49, %v1338_v48  ;;  %949 = vst [vmem:[#allocation2 + $0x18] sm:$0xf] %v948_v44  ;;  %v351_v57 = vadd.f32 %v7829_v20, %v7948_v23  ;;  %v445_v58 = vsel %vm7844_vm5, 0, %v444_v31  ;;  %v7615_v24 = vld [vmem:[%s10497_s3 + $0x98] sm:$0xff]  }
  0x3d   : > { %7173 = vmatprep.mubr.bf16.mxu1 %v6283_v47  ;;  %v1353_v55 = vrot.slane %v1352_v50, 4  ;;  %7240 = vmatpush3.bf16.msra.mxu0 %v7609_v5  ;;  %v649_v59 = vor.u32 %v647_v30, %v646_v52  ;;  %v651_v62 = vrot.slane %v646_v52, 4  ;;  %v352_v63 = vadd.f32 %v7829_v20, %v313_v53  ;;  %446 = vst [vmem:[#allocation2 + $0x24] sm:$0x1] %v445_v58 }
  0x3e   : > { %v495_v60 = vsel %vm7855_vm8, 0, %v494_v45  ;;  %7241 = vmatprep.subr.bf16.mxu0 %v7611_v46  ;;  %v1343_v1 = vrot.slane %v1342_v54, 4  ;;  %v383_v2 = vmax.f32 %v351_v57, 0.0  ;;  %v326_v3 = vmul.f32 %v6789_v34, %v7824_v19  ;;  %v7608_v34 = vld [vmem:[%s10497_s3 + $0x30] sm:$0xff]  }
  0x3f   : > { %v1358_v23 = vsel %vm7836_vm3, %v1353_v55, %v1357_v51  ;;  %496 = vst [vmem:[#allocation2 + $0x2c] sm:$0x1] %v495_v60  ;;  %v650_v5 = vsel %vm7892_vm10, %v642_v43, %v649_v59  ;;  %v952_v6 = vsel %vm7844_vm5, %v651_v62, %v951_v56  ;;  %v384_v7 = vmax.f32 %v352_v63, 0.0 }
  0x40   : > { %v327_v8 = vmul.f32 %v6790_v61, %v7824_v19  ;;  %v1348_v12 = vsel %vm7836_vm3, %v1343_v1, %v1347_v38  ;;  %950 = vst [vmem:[#allocation2 + $0x1c] sm:$0xf] %v650_v5  ;;  %953 = vst [vmem:[#allocation2 + $0x20] sm:$0x1] %v952_v6  ;;  %v6691_v14 = vpack.c.bf16 %v383_v2, %v383_v2  ;;  %v466_v16 = vsel %vm7844_vm5, 0, %v465_v21  ;;  %v7612_v1 = vld [vmem:[%s10497_s3 + $0x20] sm:$0xff]  }
  0x41   : > { %v365_v15 = vadd.f32 %v7829_v20, %v326_v3  ;;  %7242 = vmatpush3.bf16.msra.mxu0 %v7611_v46  ;;  %v6284_v10 = vcombine.low %v1348_v12, %v1358_v23  ;;  %v6692_v11 = vpack.c.bf16 %v384_v7, %v384_v7  ;;  %467 = vst [vmem:[#allocation2 + $0x78] sm:$0x1] %v466_v16  ;;  %v516_v17 = vsel %vm7855_vm8, 0, %v515_v4  ;;  %v468_v21 = vld [vmem:[#allocation2 + $0x84] sm:$0x1]  ;;  %v8037_v5 = vld [vmem:[%s7817_s6 + $0x18] sm:$0xff]  }
  0x42   : > { %v366_v61 = vadd.f32 %v7829_v20, %v327_v8  ;;  %7243 = vmatprep.subr.bf16.mxu0 %v7613_v0  ;;  %v653_v25 = vshrl.u32 %v6691_v14, 16  ;;  %v656_v26 = vshll.u32 %v6691_v14, 16  ;;  %517 = vst [vmem:[#allocation2 + $0x80] sm:$0x1] %v516_v17  ;;  %v6793_v28 = vunpack.c.l.bf16 %v6904_v9  ;;  %v7619_v6 = vld [vmem:[%s10497_s3 + $0x88] sm:$0xff]  }
  0x43   : > { %v397_v27 = vmax.f32 %v365_v15, 0.0  ;;  %7174 = vmatmul.mubr.bf16.vlgmr.msra.gmra.mxu1 %v6284_v10  ;;  %v1056_v30 = vld [vmem:[#allocation2 + $0x18] sm:$0xf]  ;;  %v661_v31 = vshrl.u32 %v6692_v11, 16  ;;  %v664_v32 = vshll.u32 %v6692_v11, 16  ;;  %v6794_v36 = vunpack.c.h.bf16 %v6904_v9 }
  0x44   : > { %v398_v33 = vmax.f32 %v366_v61, 0.0  ;;  %7190 = vmatpush3.bf16.msra.mxu1 %v7909_v37  ;;  %v1168_v38 = vshrl.u32 %v1056_v30, 16  ;;  %v1171_v39 = vshll.u32 %v1056_v30, 16  ;;  %v655_v40 = vrot.slane %v653_v25, 7  ;;  %v954_v45 = vld [vmem:[#allocation2 + $0x24] sm:$0xf] }
  0x45   : > { %v6705_v41 = vpack.c.bf16 %v397_v27, %v397_v27  ;;  %7244 = vmatpush3.bf16.msra.mxu0 %v7613_v0  ;;  %7191 = vmatprep.subr.bf16.mxu1 %v7608_v34  ;;  %v663_v43 = vrot.slane %v661_v31, 7  ;;  %v328_v48 = vmul.f32 %v6793_v28, %v7824_v19  ;;  %v329_v49 = vmul.f32 %v6794_v36, %v7824_v19  ;;  %v7617_v37 = vld [vmem:[%s10497_s3 + $0x90] sm:$0xff]   ;;  %v518_v0 = vld [vmem:[#allocation2 + $0x8c] sm:$0x1] }
  0x46   : > { %v958_v46 = vld [vmem:[#allocation2 + $0x2c] sm:$0x1]  ;;  %v8019_v47 = vpack.c.bf16 %v398_v33, %v398_v33  ;;  %7245 = vmatprep.subr.bf16.mxu0 %v7615_v24  ;;  %v1170_v50 = vrot.slane %v1168_v38, 4  ;;  %v1173_v51 = vrot.slane %v1171_v39, 5  ;;  %v658_v52 = vor.u32 %v656_v26, %v655_v40  ;;  %v7614_v26 = vld [vmem:[%s10497_s3 + $0x18] sm:$0xff]  }
  0x47   : > { %v659_v44 = vrot.slane %v655_v40, 4  ;;  %v1057_v53 = vld [vmem:[#allocation2 + $0x1c] sm:$0xf]  ;;  %v1102_v54 = vld [vmem:[#allocation2 + $0x20] sm:$0x1]  ;;  %v666_v55 = vor.u32 %v664_v32, %v663_v43  ;;  %v668_v56 = vrot.slane %v663_v43, 4  ;;  %v367_v58 = vadd.f32 %v7829_v20, %v328_v48 }
  0x48   : > { %v772_v57 = vshrl.u32 %v6705_v41, 16  ;;  %7192 = vmatpush3.bf16.msra.mxu1 %v7608_v34  ;;  %v1174_v59 = vor.u32 %v1173_v51, %v1170_v50  ;;  %v1177_v62 = vshll.u32 %v1057_v53, 16  ;;  %v1181_v63 = vshrl.u32 %v1057_v53, 16  ;;  %v1003_v61 = vld [vmem:[#allocation2 + $0x78] sm:$0xf]  ;;  %v7621_v32 = vld [vmem:[%s10497_s3 + $0x80] sm:$0xff]  }
  0x49   : > { %v1187_v60 = vshll.u32 %v1102_v54, 16  ;;  %7246 = vmatpush3.bf16.msra.mxu0 %v7615_v24  ;;  %v667_v23 = vsel %vm7892_vm10, %v659_v44, %v666_v55  ;;  %v955_v2 = vsel %vm7901_vm11, %v658_v52, %v954_v45  ;;  %v959_v3 = vsel %vm7844_vm5, %v668_v56, %v958_v46  ;;  %7193 = vmatprep.subr.bf16.mxu1 %v7610_v42  ;;  %v1007_v17 = vld [vmem:[#allocation2 + $0x80] sm:$0x1]  ;;  %v7616_v45 = vld [vmem:[%s10497_s3 + $0x10] sm:$0xff]   ;;  %v7625_v46 = vld [vmem:[%s10497_s3 + $0x138] sm:$0xff]  }
  0x4a   : > { %v774_v4 = vrot.slane %v772_v57, 7  ;;  %7247 = vmatprep.subr.bf16.mxu0 %v7617_v37  ;;  %v1175_v7 = vrot.slane %v1174_v59, 4  ;;  %v1179_v8 = vrot.slane %v1177_v62, 5  ;;  %v1183_v9 = vrot.slane %v1181_v63, 4  ;;  %956 = vst [vmem:[#allocation2 + $0x24] sm:$0xf] %v955_v2 }
  0x4b   : > { %v1189_v12 = vrot.slane %v1187_v60, 5  ;;  %957 = vst [vmem:[#allocation2 + $0x28] sm:$0xf] %v667_v23  ;;  %960 = vst [vmem:[#allocation2 + $0x2c] sm:$0x1] %v959_v3  ;;  %v775_v34 = vshll.u32 %v6705_v41, 16  ;;  %v368_v24 = vadd.f32 %v7829_v20, %v329_v49  ;;  %v6765_v39 = vunpack.c.l.bf16 %v8037_v5 }
  0x4c   : > { %v778_v14 = vrot.slane %v774_v4, 4  ;;  %v780_v15 = vshrl.u32 %v8019_v47, 16  ;;  %v783_v16 = vshll.u32 %v8019_v47, 16  ;;  %v1180_v10 = vsel %vm7836_vm3, %v1175_v7, %v1179_v8  ;;  %7194 = vmatpush3.bf16.msra.mxu1 %v7610_v42 }
  0x4d   : > { %v1184_v11 = vor.u32 %v1183_v9, %v1179_v8  ;;  %v399_v25 = vmax.f32 %v367_v58, 0.0  ;;  %7248 = vmatpush3.bf16.msra.mxu0 %v7617_v37  ;;  %v777_v27 = vor.u32 %v775_v34, %v774_v4  ;;  %v469_v30 = vsel %vm7844_vm5, 0, %v468_v21  ;;  %7195 = vmatprep.subr.bf16.mxu1 %v7612_v1  ;;  %v7618_v9 = vld [vmem:[%s10497_s3 + $0x8] sm:$0xff]  }
  0x4e   : > { %v782_v28 = vrot.slane %v780_v15, 7  ;;  %v519_v31 = vsel %vm7855_vm8, 0, %v518_v0  ;;  %7249 = vmatprep.subr.bf16.mxu0 %v7619_v6  ;;  %v400_v36 = vmax.f32 %v368_v24, 0.0  ;;  %470 = vst [vmem:[#allocation2 + $0x84] sm:$0x1] %v469_v30  ;;  %v6766_v43 = vunpack.c.h.bf16 %v8037_v5 }
  0x4f   : > { %v1185_v33 = vrot.slane %v1184_v11, 4  ;;  %520 = vst [vmem:[#allocation2 + $0x8c] sm:$0x1] %v519_v31  ;;  %v6707_v38 = vpack.c.bf16 %v399_v25, %v399_v25  ;;  %v1004_v42 = vsel %vm7901_vm11, %v777_v27, %v1003_v61  ;;  %v314_v55 = vmul.f32 %v6765_v39, %v7824_v19  ;;  %v447_v0 = vld [vmem:[#allocation2 + $0x30] sm:$0x1]  ;;  %v6898_v31 = vld [vmem:[%s7817_s6 + $0x20] sm:$0xff]  }
  0x50   : > { %v785_v40 = vor.u32 %v783_v16, %v782_v28  ;;  %v787_v41 = vrot.slane %v782_v28, 4  ;;  %1005 = vst [vmem:[#allocation2 + $0x78] sm:$0xf] %v1004_v42  ;;  %v6708_v48 = vpack.c.bf16 %v400_v36, %v400_v36  ;;  %7196 = vmatpush3.bf16.msra.mxu1 %v7612_v1  ;;  %v315_v15 = vmul.f32 %v6766_v43, %v7824_v19  ;;  %v497_v25 = vld [vmem:[#allocation2 + $0x38] sm:$0x1] }
  0x51   : > { %v1190_v47 = vsel %vm7836_vm3, %v1185_v33, %v1189_v12  ;;  %v789_v49 = vshrl.u32 %v6707_v38, 16  ;;  %v792_v37 = vshll.u32 %v6707_v38, 16  ;;  %7250 = vmatpush3.bf16.msra.mxu0 %v7619_v6  ;;  %v1058_v51 = vld [vmem:[#allocation2 + $0x24] sm:$0xf]  ;;  %7197 = vmatprep.subr.bf16.mxu1 %v7614_v26  ;;  %v353_v16 = vadd.f32 %v7829_v20, %v314_v55 }
  0x52   : > { %v6277_v50 = vcombine.low %v1180_v10, %v1190_v47  ;;  %v1059_v52 = vld [vmem:[#allocation2 + $0x28] sm:$0xf]  ;;  %v1103_v44 = vld [vmem:[#allocation2 + $0x2c] sm:$0x1]  ;;  %v786_v53 = vsel %vm7892_vm10, %v778_v14, %v785_v40  ;;  %v1008_v54 = vsel %vm7844_vm5, %v787_v41, %v1007_v17  ;;  %v1192_v56 = vshrl.u32 %v1058_v51, 16  ;;  %7251 = vmatprep.subr.bf16.mxu0 %v7621_v32  ;;  %v7620_v40 = vld [vmem:[%s10497_s3] sm:$0xff]  }
  0x53   : > { %v1195_v57 = vshll.u32 %v1058_v51, 16  ;;  %v1201_v58 = vshll.u32 %v1059_v52, 16  ;;  %v1205_v59 = vshrl.u32 %v1059_v52, 16  ;;  %1006 = vst [vmem:[#allocation2 + $0x7c] sm:$0xf] %v786_v53  ;;  %v1211_v62 = vshll.u32 %v1103_v44, 16 }
  0x54   : > { %1009 = vst [vmem:[#allocation2 + $0x80] sm:$0x1] %v1008_v54  ;;  %7161 = vmatprep.mubr.bf16.mxu0 %v6277_v50  ;;  %v791_v63 = vrot.slane %v789_v49, 7  ;;  %v797_v60 = vshrl.u32 %v6708_v48, 16  ;;  %v800_v21 = vshll.u32 %v6708_v48, 16  ;;  %v1194_v1 = vrot.slane %v1192_v56, 4  ;;  %7198 = vmatpush3.bf16.msra.mxu1 %v7614_v26 }
  0x55   : > { %v1197_v23 = vrot.slane %v1195_v57, 5  ;;  %v1203_v2 = vrot.slane %v1201_v58, 5  ;;  %v1207_v3 = vrot.slane %v1205_v59, 4  ;;  %7252 = vmatpush3.bf16.msra.mxu0 %v7621_v32  ;;  %v1213_v4 = vrot.slane %v1211_v62, 5  ;;  %v1010_v8 = vld [vmem:[#allocation2 + $0x84] sm:$0xf]  ;;  %7199 = vmatprep.subr.bf16.mxu1 %v7616_v45 }
  0x56   : > { %v794_v5 = vor.u32 %v792_v37, %v791_v63  ;;  %v795_v6 = vrot.slane %v791_v63, 4  ;;  %v799_v7 = vrot.slane %v797_v60, 7  ;;  %7333 = vmatprep.subr.bf16.mxu0 %v7625_v46  ;;  %v1014_v14 = vld [vmem:[#allocation2 + $0x8c] sm:$0x1]  ;;  %v448_v24 = vsel %vm7844_vm5, 0, %v447_v0  ;;  %v7623_v56 = vld [vmem:[%s10497_s3 + $0xf8] sm:$0xff]  }
  0x57   : > { %v1198_v12 = vor.u32 %v1197_v23, %v1194_v1  ;;  %v1208_v34 = vor.u32 %v1207_v3, %v1203_v2  ;;  %v1072_v10 = vld [vmem:[#allocation2 + $0x78] sm:$0xf]  ;;  %449 = vst [vmem:[#allocation2 + $0x30] sm:$0x1] %v448_v24  ;;  %v354_v38 = vadd.f32 %v7829_v20, %v315_v15  ;;  %v385_v39 = vmax.f32 %v353_v16, 0.0 }
  0x58   : > { %v802_v11 = vor.u32 %v800_v21, %v799_v7  ;;  %v804_v61 = vrot.slane %v799_v7, 4  ;;  %v1011_v17 = vsel %vm7901_vm11, %v794_v5, %v1010_v8  ;;  %v1360_v28 = vshrl.u32 %v1072_v10, 16  ;;  %7200 = vmatpush3.bf16.msra.mxu1 %v7616_v45  ;;  %v450_v46 = vld [vmem:[#allocation2 + $0x3c] sm:$0x1]  ;;  %v8104_v0 = vld [vmem:[%s10495_s1] ss:$0 sm:$0xff] }
  0x59   : > { %v1199_v26 = vrot.slane %v1198_v12, 4  ;;  %v1209_v27 = vrot.slane %v1208_v34, 4  ;;  %v1363_v30 = vshll.u32 %v1072_v10, 16  ;;  %1012 = vst [vmem:[#allocation2 + $0x84] sm:$0xf] %v1011_v17  ;;  %7201 = vmatprep.subr.bf16.mxu1 %v7618_v9  ;;  %v386_v50 = vmax.f32 %v354_v38, 0.0 }
  0x5a   : > { %v1073_v19 = vld [vmem:[#allocation2 + $0x7c] sm:$0xf]  ;;  %v803_v33 = vsel %vm7892_vm10, %v795_v6, %v802_v11  ;;  %v1015_v36 = vsel %vm7844_vm5, %v804_v61, %v1014_v14  ;;  %v1362_v43 = vrot.slane %v1360_v28, 4  ;;  %v498_v51 = vsel %vm7855_vm8, 0, %v497_v25  ;;  %v8115_v14 = vld [vmem:[%s10496_s2] ss:$0 sm:$0xff] }
  0x5b   : > { %v1110_v32 = vld [vmem:[#allocation2 + $0x80] sm:$0x1]  ;;  %v1204_v41 = vsel %vm7836_vm3, %v1199_v26, %v1203_v2  ;;  %v1214_v42 = vsel %vm7836_vm3, %v1209_v27, %v1213_v4  ;;  %v1365_v45 = vrot.slane %v1363_v30, 5  ;;  %1013 = vst [vmem:[#allocation2 + $0x88] sm:$0xf] %v803_v33  ;;  %v1369_v48 = vshll.u32 %v1073_v19, 16 }
  0x5c   : > { %1016 = vst [vmem:[#allocation2 + $0x8c] sm:$0x1] %v1015_v36  ;;  %v6278_v47 = vcombine.low %v1204_v41, %v1214_v42  ;;  %v1373_v20 = vshrl.u32 %v1073_v19, 16  ;;  %v1379_v49 = vshll.u32 %v1110_v32, 16  ;;  %v6693_v52 = vpack.c.bf16 %v385_v39, %v385_v39  ;;  %7202 = vmatpush3.bf16.msra.mxu1 %v7618_v9  ;;  %499 = vst [vmem:[#allocation2 + $0x38] sm:$0x1] %v498_v51 }
  0x5d   : > { %v1366_v37 = vor.u32 %v1365_v45, %v1362_v43  ;;  %v1371_v44 = vrot.slane %v1369_v48, 5  ;;  %v6769_v55 = vunpack.c.l.bf16 %v6898_v31  ;;  %7203 = vmatprep.subr.bf16.mxu1 %v7620_v40  ;;  %v6694_v58 = vpack.c.bf16 %v386_v50, %v386_v50  ;;  %v6905_v17 = vld [vmem:[%s7817_s6 + $0x58] sm:$0xff]   ;;  %v500_v32 = vld [vmem:[#allocation2 + $0x44] sm:$0x1] }
  0x5e   : > { %7162 = vmatmul.mubr.bf16.gmra.mxu0 %v6278_v47  ;;  %v1375_v53 = vrot.slane %v1373_v20, 4  ;;  %v1381_v54 = vrot.slane %v1379_v49, 5  ;;  %v670_v59 = vshrl.u32 %v6693_v52, 16  ;;  %v673_v62 = vshll.u32 %v6693_v52, 16  ;;  %v961_v6 = vld [vmem:[#allocation2 + $0x30] sm:$0xf] }
  0x5f   : > { %v1367_v57 = vrot.slane %v1366_v37, 4  ;;  %v6770_v21 = vunpack.c.h.bf16 %v6898_v31  ;;  %v316_v1 = vmul.f32 %v8104_v0, %v6769_v55  ;;  %v451_v23 = vsel %vm7844_vm5, 0, %v450_v46  ;;  %v471_v46 = vld [vmem:[#allocation2 + $0x90] sm:$0x1]  ;;  %v521_v37 = vld [vmem:[#allocation2 + $0x98] sm:$0x1] }
  0x60   : > { %v1376_v63 = vor.u32 %v1375_v53, %v1371_v44  ;;  %v1074_v60 = vld [vmem:[#allocation2 + $0x84] sm:$0xf]  ;;  %v672_v5 = vrot.slane %v670_v59, 7  ;;  %452 = vst [vmem:[#allocation2 + $0x3c] sm:$0x1] %v451_v23  ;;  %7204 = vmatpush3.bf16.msra.mxu1 %v7620_v40  ;;  %v678_v12 = vshrl.u32 %v6694_v58, 16  ;;  %v6797_v49 = vunpack.c.l.bf16 %v6905_v17 }
  0x61   : > { %v1372_v2 = vsel %vm7836_vm3, %v1367_v57, %v1371_v44  ;;  %v1384_v3 = vshrl.u32 %v1074_v60, 16  ;;  %v1387_v4 = vshll.u32 %v1074_v60, 16  ;;  %v317_v34 = vmul.f32 %v8104_v0, %v6770_v21  ;;  %7285 = vmatprep.subr.bf16.mxu1 %v7623_v56  ;;  %v6906_v53 = vld [vmem:[%s7817_s6 + $0x60] sm:$0xff]  }
  0x62   : > { %v1377_v7 = vrot.slane %v1376_v63, 4  ;;  %v1075_v8 = vld [vmem:[#allocation2 + $0x88] sm:$0xf]  ;;  %v355_v15 = vadd.f32 %v8115_v14, %v316_v1  ;;  %v675_v26 = vor.u32 %v673_v62, %v672_v5  ;;  %v676_v27 = vrot.slane %v672_v5, 4 }
  0x63   : > { %v1111_v9 = vld [vmem:[#allocation2 + $0x8c] sm:$0x1]  ;;  %v1386_v16 = vrot.slane %v1384_v3, 4  ;;  %v1389_v10 = vrot.slane %v1387_v4, 5  ;;  %v1393_v11 = vshll.u32 %v1075_v8, 16  ;;  %v1397_v61 = vshrl.u32 %v1075_v8, 16 }
  0x64   : > { %v1382_v24 = vsel %vm7836_vm3, %v1377_v7, %v1381_v54  ;;  %v1403_v25 = vshll.u32 %v1111_v9, 16  ;;  %v680_v36 = vrot.slane %v678_v12, 7  ;;  %v681_v38 = vshll.u32 %v6694_v58, 16  ;;  %v965_v42 = vld [vmem:[#allocation2 + $0x38] sm:$0x1] }
  0x65   : > { %v6285_v28 = vcombine.low %v1372_v2, %v1382_v24  ;;  %v1390_v30 = vor.u32 %v1389_v10, %v1386_v16  ;;  %v1395_v31 = vrot.slane %v1393_v11, 5  ;;  %v1399_v19 = vrot.slane %v1397_v61, 4 }
  0x66   : > { %v1405_v33 = vrot.slane %v1403_v25, 5  ;;  %v962_v39 = vsel %vm7901_vm11, %v675_v26, %v961_v6  ;;  %v356_v43 = vadd.f32 %v8115_v14, %v317_v34  ;;  %v387_v45 = vmax.f32 %v355_v15, 0.0 }
  0x67   : > { %7177 = vmatprep.mubr.bf16.mxu1 %v6285_v28  ;;  %v1391_v40 = vrot.slane %v1390_v30, 4  ;;  %v1400_v41 = vor.u32 %v1399_v19, %v1395_v31  ;;  %963 = vst [vmem:[#allocation2 + $0x30] sm:$0xf] %v962_v39  ;;  %v683_v47 = vor.u32 %v681_v38, %v680_v36  ;;  %v685_v48 = vrot.slane %v680_v36, 4  ;;  %v968_v7 = vld [vmem:[#allocation2 + $0x3c] sm:$0xf] }
  0x68   : > { %v501_v20 = vsel %vm7855_vm8, 0, %v500_v32  ;;  %v388_v52 = vmax.f32 %v356_v43, 0.0  ;;  %v6695_v44 = vpack.c.bf16 %v387_v45, %v387_v45  ;;  %v6798_v56 = vunpack.c.h.bf16 %v6905_v17  ;;  %v474_v45 = vld [vmem:[#allocation2 + $0x9c] sm:$0x1] }
  0x69   : > { %v1396_v50 = vsel %vm7836_vm3, %v1391_v40, %v1395_v31  ;;  %v1401_v51 = vrot.slane %v1400_v41, 4  ;;  %502 = vst [vmem:[#allocation2 + $0x44] sm:$0x1] %v501_v20  ;;  %v684_v54 = vsel %vm7892_vm10, %v676_v27, %v683_v47  ;;  %v966_v55 = vsel %vm7844_vm5, %v685_v48, %v965_v42 }
  0x6a   : > { %v330_v57 = vmul.f32 %v8104_v0, %v6797_v49  ;;  %964 = vst [vmem:[#allocation2 + $0x34] sm:$0xf] %v684_v54  ;;  %967 = vst [vmem:[#allocation2 + $0x38] sm:$0x1] %v966_v55  ;;  %v6696_v59 = vpack.c.bf16 %v388_v52, %v388_v52  ;;  %v687_v62 = vshrl.u32 %v6695_v44, 16  ;;  %v690_v63 = vshll.u32 %v6695_v44, 16 }
  0x6b   : > { %v1406_v58 = vsel %vm7836_vm3, %v1401_v51, %v1405_v33  ;;  %v331_v21 = vmul.f32 %v8104_v0, %v6798_v56  ;;  %v472_v23 = vsel %vm7844_vm5, 0, %v471_v46  ;;  %v522_v5 = vsel %vm7855_vm8, 0, %v521_v37  ;;  %v524_v49 = vld [vmem:[#allocation2 + $0xa4] sm:$0x1] }
  0x6c   : > { %v6286_v60 = vcombine.low %v1396_v50, %v1406_v58  ;;  %v369_v1 = vadd.f32 %v8115_v14, %v330_v57  ;;  %v689_v2 = vrot.slane %v687_v62, 7  ;;  %v695_v3 = vshrl.u32 %v6696_v59, 16  ;;  %473 = vst [vmem:[#allocation2 + $0x90] sm:$0x1] %v472_v23  ;;  %523 = vst [vmem:[#allocation2 + $0x98] sm:$0x1] %v522_v5 }
  0x6d   : > { %v698_v4 = vshll.u32 %v6696_v59, 16  ;;  %v370_v8 = vadd.f32 %v8115_v14, %v331_v21  ;;  %v6801_v12 = vunpack.c.l.bf16 %v6906_v53  ;;  %v6802_v34 = vunpack.c.h.bf16 %v6906_v53  ;;  %v6899_v57 = vld [vmem:[%s7817_s6 + $0x28] sm:$0xff]  }
  0x6e   : > { %7178 = vmatmul.mubr.bf16.gmra.mxu1 %v6286_v60  ;;  %v1060_v6 = vld [vmem:[#allocation2 + $0x30] sm:$0xf]  ;;  %v401_v9 = vmax.f32 %v369_v1, 0.0  ;;  %v692_v10 = vor.u32 %v690_v63, %v689_v2  ;;  %v693_v11 = vrot.slane %v689_v2, 4  ;;  %v697_v61 = vrot.slane %v695_v3, 7 }
  0x6f   : > { %v1216_v15 = vshrl.u32 %v1060_v6, 16  ;;  %v1219_v16 = vshll.u32 %v1060_v6, 16  ;;  %v402_v24 = vmax.f32 %v370_v8, 0.0  ;;  %v332_v26 = vmul.f32 %v8104_v0, %v6801_v12 }
  0x70   : > { %v972_v17 = vld [vmem:[#allocation2 + $0x44] sm:$0x1]  ;;  %v6709_v25 = vpack.c.bf16 %v401_v9, %v401_v9  ;;  %v969_v30 = vsel %vm7901_vm11, %v692_v10, %v968_v7  ;;  %v333_v31 = vmul.f32 %v8104_v0, %v6802_v34  ;;  %v700_v33 = vor.u32 %v698_v4, %v697_v61 }
  0x71   : > { %v1218_v27 = vrot.slane %v1216_v15, 4  ;;  %v1221_v28 = vrot.slane %v1219_v16, 5  ;;  %v8147_v19 = vld [vmem:[#allocation2 + $0x34] sm:$0xf]  ;;  %v8149_v32 = vld [vmem:[#allocation2 + $0x38] sm:$0x1]  ;;  %v6710_v38 = vpack.c.bf16 %v402_v24, %v402_v24  ;;  %v371_v62 = vadd.f32 %v8115_v14, %v332_v26 }
  0x72   : > { %v702_v36 = vrot.slane %v697_v61, 4  ;;  %970 = vst [vmem:[#allocation2 + $0x3c] sm:$0xf] %v969_v30  ;;  %v806_v39 = vshrl.u32 %v6709_v25, 16  ;;  %v1225_v41 = vshll.u32 %v8147_v19, 16  ;;  %v1229_v42 = vshrl.u32 %v8147_v19, 16 }
  0x73   : > { %v1222_v40 = vor.u32 %v1221_v28, %v1218_v27  ;;  %v1235_v43 = vshll.u32 %v8149_v32, 16  ;;  %v701_v46 = vsel %vm7892_vm10, %v693_v11, %v700_v33  ;;  %v809_v20 = vshll.u32 %v6709_v25, 16  ;;  %v1017_v44 = vld [vmem:[#allocation2 + $0x90] sm:$0xf]  ;;  %v1021_v34 = vld [vmem:[#allocation2 + $0x98] sm:$0x1] }
  0x74   : > { %v973_v47 = vsel %vm7844_vm5, %v702_v36, %v972_v17  ;;  %v808_v48 = vrot.slane %v806_v39, 7  ;;  %v1227_v50 = vrot.slane %v1225_v41, 5  ;;  %v1231_v51 = vrot.slane %v1229_v42, 4  ;;  %971 = vst [vmem:[#allocation2 + $0x40] sm:$0xf] %v701_v46 }
  0x75   : > { %v1223_v37 = vrot.slane %v1222_v40, 4  ;;  %v1237_v52 = vrot.slane %v1235_v43, 5  ;;  %974 = vst [vmem:[#allocation2 + $0x44] sm:$0x1] %v973_v47  ;;  %v814_v55 = vshrl.u32 %v6710_v38, 16  ;;  %v817_v56 = vshll.u32 %v6710_v38, 16 }
  0x76   : > { %v811_v53 = vor.u32 %v809_v20, %v808_v48  ;;  %v812_v54 = vrot.slane %v808_v48, 4  ;;  %v1232_v59 = vor.u32 %v1231_v51, %v1227_v50  ;;  %v372_v63 = vadd.f32 %v8115_v14, %v333_v31 }
  0x77   : > { %v1228_v58 = vsel %vm7836_vm3, %v1223_v37, %v1227_v50  ;;  %v816_v60 = vrot.slane %v814_v55, 7  ;;  %v475_v1 = vsel %vm7844_vm5, 0, %v474_v45  ;;  %v525_v23 = vsel %vm7855_vm8, 0, %v524_v49 }
  0x78   : > { %v1018_v21 = vsel %vm7901_vm11, %v811_v53, %v1017_v44  ;;  %v1233_v2 = vrot.slane %v1232_v59, 4  ;;  %v403_v4 = vmax.f32 %v371_v62, 0.0  ;;  %v404_v5 = vmax.f32 %v372_v63, 0.0  ;;  %476 = vst [vmem:[#allocation2 + $0x9c] sm:$0x1] %v475_v1 }
  0x79   : > { %v8169_v3 = vld [vmem:[#allocation2 + $0x3c] sm:$0xf]  ;;  %1019 = vst [vmem:[#allocation2 + $0x90] sm:$0xf] %v1018_v21  ;;  %526 = vst [vmem:[#allocation2 + $0xa4] sm:$0x1] %v525_v23  ;;  %v6773_v6 = vunpack.c.l.bf16 %v6899_v57  ;;  %v819_v9 = vor.u32 %v817_v56, %v816_v60  ;;  %v6774_v11 = vunpack.c.h.bf16 %v6899_v57 }
  0x7a   : > { %v1240_v7 = vshrl.u32 %v8169_v3, 16  ;;  %v1243_v8 = vshll.u32 %v8169_v3, 16  ;;  %v821_v12 = vrot.slane %v816_v60, 4  ;;  %v1238_v15 = vsel %vm7836_vm3, %v1233_v2, %v1237_v52 }
  0x7b   : > { %v6711_v16 = vpack.c.bf16 %v403_v4, %v403_v4  ;;  %v6712_v10 = vpack.c.bf16 %v404_v5, %v404_v5  ;;  %v6279_v61 = vcombine.low %v1228_v58, %v1238_v15  ;;  %v8175_v17 = vld [vmem:[#allocation2 + $0x40] sm:$0xf]  ;;  %v820_v27 = vsel %vm7892_vm10, %v812_v54, %v819_v9  ;;  %v453_v4 = vld [vmem:[#allocation2 + $0x48] sm:$0x1] }
  0x7c   : > { %v8177_v24 = vld [vmem:[#allocation2 + $0x44] sm:$0x1]  ;;  %v1242_v25 = vrot.slane %v1240_v7, 4  ;;  %v1245_v26 = vrot.slane %v1243_v8, 5  ;;  %v1249_v28 = vshll.u32 %v8175_v17, 16  ;;  %v1253_v30 = vshrl.u32 %v8175_v17, 16 }
  0x7d   : > { %v1259_v31 = vshll.u32 %v8177_v24, 16  ;;  %1020 = vst [vmem:[#allocation2 + $0x94] sm:$0xf] %v820_v27  ;;  %v1022_v33 = vsel %vm7844_vm5, %v821_v12, %v1021_v34  ;;  %7165 = vmatprep.mubr.bf16.mxu0 %v6279_v61  ;;  %v823_v38 = vshrl.u32 %v6711_v16, 16  ;;  %v826_v39 = vshll.u32 %v6711_v16, 16 }
  0x7e   : > { %v1246_v36 = vor.u32 %v1245_v26, %v1242_v25  ;;  %1023 = vst [vmem:[#allocation2 + $0x98] sm:$0x1] %v1022_v33  ;;  %v831_v40 = vshrl.u32 %v6712_v10, 16  ;;  %v1251_v41 = vrot.slane %v1249_v28, 5  ;;  %v1255_v42 = vrot.slane %v1253_v30, 4 }
  0x7f   : > { %v1261_v43 = vrot.slane %v1259_v31, 5  ;;  %v834_v45 = vshll.u32 %v6712_v10, 16  ;;  %v825_v48 = vrot.slane %v823_v38, 7  ;;  %v318_v49 = vmul.f32 %v8104_v0, %v6773_v6  ;;  %v1024_v52 = vld [vmem:[#allocation2 + $0x9c] sm:$0xf] }
  0x80   : > { %v1247_v46 = vrot.slane %v1246_v36, 4  ;;  %v8186_v47 = vld [vmem:[#allocation2 + $0x90] sm:$0xf]  ;;  %v833_v20 = vrot.slane %v831_v40, 7  ;;  %v1256_v37 = vor.u32 %v1255_v42, %v1251_v41  ;;  %v319_v44 = vmul.f32 %v8104_v0, %v6774_v11  ;;  %v1028_v63 = vld [vmem:[#allocation2 + $0xa4] sm:$0x1] }
  0x81   : > { %v1408_v50 = vshrl.u32 %v8186_v47, 16  ;;  %v1411_v51 = vshll.u32 %v8186_v47, 16  ;;  %v828_v54 = vor.u32 %v826_v39, %v825_v48  ;;  %v829_v55 = vrot.slane %v825_v48, 4  ;;  %v503_v12 = vld [vmem:[#allocation2 + $0x50] sm:$0x1] }
  0x82   : > { %v1252_v53 = vsel %vm7836_vm3, %v1247_v46, %v1251_v41  ;;  %v836_v56 = vor.u32 %v834_v45, %v833_v20  ;;  %v1257_v57 = vrot.slane %v1256_v37, 4  ;;  %v838_v62 = vrot.slane %v833_v20, 4  ;;  %v6900_v11 = vld [vmem:[%s7817_s6 + $0x30] sm:$0xff]   ;;  %v506_v42 = vld [vmem:[#allocation2 + $0x5c] sm:$0x1] }
  0x83   : > { %v1410_v58 = vrot.slane %v1408_v50, 4  ;;  %v1413_v59 = vrot.slane %v1411_v51, 5  ;;  %v1025_v1 = vsel %vm7901_vm11, %v828_v54, %v1024_v52  ;;  %v357_v23 = vadd.f32 %v8115_v14, %v318_v49  ;;  %v456_v28 = vld [vmem:[#allocation2 + $0x54] sm:$0x1] }
  0x84   : > { %v8194_v60 = vld [vmem:[#allocation2 + $0x94] sm:$0xf]  ;;  %v837_v21 = vsel %vm7892_vm10, %v829_v55, %v836_v56  ;;  %v358_v2 = vadd.f32 %v8115_v14, %v319_v44  ;;  %v1262_v5 = vsel %vm7836_vm3, %v1257_v57, %v1261_v43  ;;  %1026 = vst [vmem:[#allocation2 + $0x9c] sm:$0xf] %v1025_v1  ;;  %v1029_v16 = vsel %vm7844_vm5, %v838_v62, %v1028_v63  ;;  %v6907_v43 = vld [vmem:[%s7817_s6 + $0x68] sm:$0xff]  }
  0x85   : > { %v8204_v6 = vld [vmem:[#allocation2 + $0x98] sm:$0x1]  ;;  %v1414_v7 = vor.u32 %v1413_v59, %v1410_v58  ;;  %v1417_v8 = vshll.u32 %v8194_v60, 16  ;;  %v1421_v9 = vshrl.u32 %v8194_v60, 16  ;;  %1027 = vst [vmem:[#allocation2 + $0xa0] sm:$0xf] %v837_v21  ;;  %v6280_v34 = vcombine.low %v1252_v53, %v1262_v5 }
  0x86   : > { %v1427_v15 = vshll.u32 %v8204_v6, 16  ;;  %v389_v10 = vmax.f32 %v357_v23, 0.0  ;;  %1030 = vst [vmem:[#allocation2 + $0xa4] sm:$0x1] %v1029_v16  ;;  %v390_v27 = vmax.f32 %v358_v2, 0.0  ;;  %v454_v31 = vsel %vm7844_vm5, 0, %v453_v4 }
  0x87   : > { %v1415_v61 = vrot.slane %v1414_v7, 4  ;;  %v1419_v25 = vrot.slane %v1417_v8, 5  ;;  %v1423_v26 = vrot.slane %v1421_v9, 4  ;;  %7166 = vmatmul.mubr.bf16.gmra.mxu0 %v6280_v34  ;;  %v504_v33 = vsel %vm7855_vm8, 0, %v503_v12  ;;  %455 = vst [vmem:[#allocation2 + $0x48] sm:$0x1] %v454_v31 }
  0x88   : > { %v1429_v30 = vrot.slane %v1427_v15, 5  ;;  %v6697_v36 = vpack.c.bf16 %v389_v10, %v389_v10  ;;  %505 = vst [vmem:[#allocation2 + $0x50] sm:$0x1] %v504_v33  ;;  %v6698_v40 = vpack.c.bf16 %v390_v27, %v390_v27  ;;  %v6777_v41 = vunpack.c.l.bf16 %v6900_v11 }
  0x89   : > { %v1420_v38 = vsel %vm7836_vm3, %v1415_v61, %v1419_v25  ;;  %v1424_v39 = vor.u32 %v1423_v26, %v1419_v25  ;;  %v6778_v48 = vunpack.c.h.bf16 %v6900_v11  ;;  %v457_v20 = vsel %vm7844_vm5, 0, %v456_v28 }
  0x8a   : > { %v704_v45 = vshrl.u32 %v6697_v36, 16  ;;  %v707_v46 = vshll.u32 %v6697_v36, 16  ;;  %v712_v37 = vshrl.u32 %v6698_v40, 16  ;;  %v715_v50 = vshll.u32 %v6698_v40, 16  ;;  %458 = vst [vmem:[#allocation2 + $0x54] sm:$0x1] %v457_v20 }
  0x8b   : > { %v1425_v49 = vrot.slane %v1424_v39, 4  ;;  %v320_v51 = vmul.f32 %v8104_v0, %v6777_v41  ;;  %v8222_v52 = vld [vmem:[#allocation2 + $0x9c] sm:$0xf]  ;;  %v321_v54 = vmul.f32 %v8104_v0, %v6778_v48  ;;  %v507_v55 = vsel %vm7855_vm8, 0, %v506_v42  ;;  %v477_v40 = vld [vmem:[#allocation2 + $0xa8] sm:$0x1] }
  0x8c   : > { %v8224_v44 = vld [vmem:[#allocation2 + $0xa0] sm:$0xf]  ;;  %v706_v53 = vrot.slane %v704_v45, 7  ;;  %v6805_v56 = vunpack.c.l.bf16 %v6907_v43  ;;  %v1432_v58 = vshrl.u32 %v8222_v52, 16  ;;  %v1435_v59 = vshll.u32 %v8222_v52, 16  ;;  %v8249_v48 = vld [vmem:[%s7817_s6 + $0x70] sm:$0xff]  }
  0x8d   : > { %v1430_v57 = vsel %vm7836_vm3, %v1425_v49, %v1429_v30  ;;  %v1441_v62 = vshll.u32 %v8224_v44, 16  ;;  %508 = vst [vmem:[#allocation2 + $0x5c] sm:$0x1] %v507_v55  ;;  %v8234_v21 = vld [vmem:[#allocation2 + $0xa4] sm:$0x1]  ;;  %v1445_v1 = vshrl.u32 %v8224_v44, 16  ;;  %v359_v15 = vadd.f32 %v8115_v14, %v320_v51 }
  0x8e   : > { %v6287_v63 = vcombine.low %v1420_v38, %v1430_v57  ;;  %v709_v23 = vor.u32 %v707_v46, %v706_v53  ;;  %v710_v2 = vrot.slane %v706_v53, 4  ;;  %v1434_v4 = vrot.slane %v1432_v58, 4  ;;  %v975_v34 = vld [vmem:[#allocation2 + $0x48] sm:$0xf]  ;;  %v527_v46 = vld [vmem:[#allocation2 + $0xb0] sm:$0x1] }
  0x8f   : > { %v1437_v5 = vrot.slane %v1435_v59, 5  ;;  %v1443_v7 = vrot.slane %v1441_v62, 5  ;;  %v1451_v8 = vshll.u32 %v8234_v21, 16  ;;  %v1447_v9 = vrot.slane %v1445_v1, 4  ;;  %v979_v25 = vld [vmem:[#allocation2 + $0x50] sm:$0x1] }
  0x90   : > { %7181 = vmatprep.mubr.bf16.mxu1 %v6287_v63  ;;  %v714_v12 = vrot.slane %v712_v37, 7  ;;  %v360_v16 = vadd.f32 %v8115_v14, %v321_v54  ;;  %v976_v61 = vsel %vm7901_vm11, %v709_v23, %v975_v34  ;;  %v6806_v26 = vunpack.c.h.bf16 %v6907_v43 }
  0x91   : > { %v1438_v10 = vor.u32 %v1437_v5, %v1434_v4  ;;  %v1453_v11 = vrot.slane %v1451_v8, 5  ;;  %v1448_v27 = vor.u32 %v1447_v9, %v1443_v7  ;;  %977 = vst [vmem:[#allocation2 + $0x48] sm:$0xf] %v976_v61  ;;  %v391_v31 = vmax.f32 %v359_v15, 0.0 }
  0x92   : > { %v717_v28 = vor.u32 %v715_v50, %v714_v12  ;;  %v719_v30 = vrot.slane %v714_v12, 4  ;;  %v392_v36 = vmax.f32 %v360_v16, 0.0  ;;  %v334_v38 = vmul.f32 %v8104_v0, %v6805_v56  ;;  %v480_v56 = vld [vmem:[#allocation2 + $0xb4] sm:$0x1] }
  0x93   : > { %v1439_v33 = vrot.slane %v1438_v10, 4  ;;  %v335_v39 = vmul.f32 %v8104_v0, %v6806_v26  ;;  %v1449_v41 = vrot.slane %v1448_v27, 4  ;;  %v6699_v45 = vpack.c.bf16 %v391_v31, %v391_v31 }
  0x94   : > { %v718_v42 = vsel %vm7892_vm10, %v710_v2, %v717_v28  ;;  %v980_v43 = vsel %vm7844_vm5, %v719_v30, %v979_v25  ;;  %v6700_v49 = vpack.c.bf16 %v392_v36, %v392_v36  ;;  %v373_v37 = vadd.f32 %v8115_v14, %v334_v38  ;;  %v986_v25 = vld [vmem:[#allocation2 + $0x5c] sm:$0x1] }
  0x95   : > { %v1444_v20 = vsel %vm7836_vm3, %v1439_v33, %v1443_v7  ;;  %978 = vst [vmem:[#allocation2 + $0x4c] sm:$0xf] %v718_v42  ;;  %981 = vst [vmem:[#allocation2 + $0x50] sm:$0x1] %v980_v43  ;;  %v374_v50 = vadd.f32 %v8115_v14, %v335_v39  ;;  %v1454_v51 = vsel %vm7836_vm3, %v1449_v41, %v1453_v11  ;;  %v721_v53 = vshrl.u32 %v6699_v45, 16 }
  0x96   : > { %v724_v54 = vshll.u32 %v6699_v45, 16  ;;  %v478_v55 = vsel %vm7844_vm5, 0, %v477_v40  ;;  %v6288_v57 = vcombine.low %v1444_v20, %v1454_v51  ;;  %v729_v58 = vshrl.u32 %v6700_v49, 16  ;;  %v982_v7 = vld [vmem:[#allocation2 + $0x54] sm:$0xf] }
  0x97   : > { %v732_v59 = vshll.u32 %v6700_v49, 16  ;;  %v405_v62 = vmax.f32 %v373_v37, 0.0  ;;  %479 = vst [vmem:[#allocation2 + $0xa8] sm:$0x1] %v478_v55  ;;  %v723_v63 = vrot.slane %v721_v53, 7  ;;  %v406_v1 = vmax.f32 %v374_v50, 0.0 }
  0x98   : > { %v528_v23 = vsel %vm7855_vm8, 0, %v527_v46  ;;  %v6809_v2 = vunpack.c.l.bf16 %v8249_v48  ;;  %7182 = vmatmul.mubr.bf16.gmra.mxu1 %v6288_v57  ;;  %v8262_v4 = vld [vmem:[#allocation2 + $0x48] sm:$0xf]  ;;  %v731_v5 = vrot.slane %v729_v58, 7  ;;  %v6810_v9 = vunpack.c.h.bf16 %v8249_v48  ;;  %v530_v49 = vld [vmem:[#allocation2 + $0xbc] sm:$0x1] }
  0x99   : > { %529 = vst [vmem:[#allocation2 + $0xb0] sm:$0x1] %v528_v23  ;;  %v6713_v8 = vpack.c.bf16 %v405_v62, %v405_v62  ;;  %v481_v12 = vsel %vm7844_vm5, 0, %v480_v56  ;;  %v1264_v34 = vshrl.u32 %v8262_v4, 16  ;;  %v1267_v15 = vshll.u32 %v8262_v4, 16 }
  0x9a   : > { %v726_v16 = vor.u32 %v724_v54, %v723_v63  ;;  %v727_v10 = vrot.slane %v723_v63, 4  ;;  %482 = vst [vmem:[#allocation2 + $0xb4] sm:$0x1] %v481_v12  ;;  %v734_v11 = vor.u32 %v732_v59, %v731_v5  ;;  %v736_v61 = vrot.slane %v731_v5, 4 }
  0x9b   : > { %v6714_v26 = vpack.c.bf16 %v406_v1, %v406_v1  ;;  %v840_v27 = vshrl.u32 %v6713_v8, 16  ;;  %v1266_v31 = vrot.slane %v1264_v34, 4  ;;  %v1269_v33 = vrot.slane %v1267_v15, 5  ;;  %v2098_v1 = vld [vmem:[#allocation2] sm:$0xe] }
  0x9c   : > { %v8269_v28 = vld [vmem:[#allocation2 + $0x4c] sm:$0xf]  ;;  %v8271_v30 = vld [vmem:[#allocation2 + $0x50] sm:$0x1]  ;;  %v983_v36 = vsel %vm7901_vm11, %v726_v16, %v982_v7  ;;  %v336_v38 = vmul.f32 %v8104_v0, %v6809_v2  ;;  %v735_v42 = vsel %vm7892_vm10, %v727_v10, %v734_v11  ;;  %v987_v45 = vsel %vm7844_vm5, %v736_v61, %v986_v25  ;;  %v8294_v10 = vld [vmem:[#allocation2 + $0x4] sm:$0xf] }
  0x9d   : > { %v1273_v39 = vshll.u32 %v8269_v28, 16  ;;  %v1277_v40 = vshrl.u32 %v8269_v28, 16  ;;  %v1283_v41 = vshll.u32 %v8271_v30, 16  ;;  %984 = vst [vmem:[#allocation2 + $0x54] sm:$0xf] %v983_v36  ;;  %v1270_v43 = vor.u32 %v1269_v33, %v1266_v31 }
  0x9e   : > { %985 = vst [vmem:[#allocation2 + $0x58] sm:$0xf] %v735_v42  ;;  %v842_v46 = vrot.slane %v840_v27, 7  ;;  %v843_v48 = vshll.u32 %v6713_v8, 16  ;;  %v1031_v20 = vld [vmem:[#allocation2 + $0xa8] sm:$0xf]  ;;  %v337_v62 = vmul.f32 %v8104_v0, %v6810_v9  ;;  %v375_v63 = vadd.f32 %v8115_v14, %v336_v38 }
  0x9f   : > { %v1275_v37 = vrot.slane %v1273_v39, 5  ;;  %v1279_v50 = vrot.slane %v1277_v40, 4  ;;  %v1285_v51 = vrot.slane %v1283_v41, 5  ;;  %988 = vst [vmem:[#allocation2 + $0x5c] sm:$0x1] %v987_v45  ;;  %v848_v53 = vshrl.u32 %v6714_v26, 16 }
  0xa0   : > { %v1271_v54 = vrot.slane %v1270_v43, 4  ;;  %v845_v55 = vor.u32 %v843_v48, %v842_v46  ;;  %v846_v56 = vrot.slane %v842_v46, 4  ;;  %v851_v57 = vshll.u32 %v6714_v26, 16  ;;  %v1035_v5 = vld [vmem:[#allocation2 + $0xb0] sm:$0x1] }
  0xa1   : > { %v1280_v58 = vor.u32 %v1279_v50, %v1275_v37  ;;  %v850_v59 = vrot.slane %v848_v53, 7  ;;  %v531_v7 = vsel %vm7855_vm8, 0, %v530_v49  ;;  %vm2146_vm12 = vcmask 1042432   ;;  %v7721_v46 = vld [vmem:[#allocation2 + $0x8] sm:$0x1] }
  0xa2   : > { %v1276_v23 = vsel %vm7836_vm3, %v1271_v54, %v1275_v37  ;;  %v1032_v2 = vsel %vm7901_vm11, %v845_v55, %v1031_v20  ;;  %v376_v0 = vadd.f32 %v8115_v14, %v337_v62  ;;  %532 = vst [vmem:[#allocation2 + $0xbc] sm:$0x1] %v531_v7  ;;  %v407_v15 = vmax.f32 %v375_v63, 0.0 }
  0xa3   : > { %v1281_v8 = vrot.slane %v1280_v58, 4  ;;  %v853_v12 = vor.u32 %v851_v57, %v850_v59  ;;  %v855_v34 = vrot.slane %v850_v59, 4  ;;  %1033 = vst [vmem:[#allocation2 + $0xa8] sm:$0xf] %v1032_v2  ;;  %vm2147_vm13 = vcmask 1046532  }
  0xa4   : > { %v8292_v9 = vld [vmem:[#allocation2 + $0x54] sm:$0xf]  ;;  %v6323_v16 = vrot.slane %v2098_v1, 9  ;;  %v2151_v11 = vrot.slane %v8294_v10, 5  ;;  %vm8313_vm14 = vmor %vm2146_vm12, %vm2147_vm13  ;;  %v408_v45 = vmax.f32 %v376_v0, 0.0  ;;  %v2154_v48 = vrot.slane %v7721_v46, 5 }
  0xa5   : > { %v1286_v61 = vsel %vm7836_vm3, %v1281_v8, %v1285_v51  ;;  %v8299_v25 = vld [vmem:[#allocation2 + $0x58] sm:$0xf]  ;;  %v1288_v26 = vshrl.u32 %v8292_v9, 16  ;;  %v1291_v27 = vshll.u32 %v8292_v9, 16  ;;  %v854_v14 = vsel %vm7892_vm10, %v846_v56, %v853_v12  ;;  %v1038_v8 = vld [vmem:[#allocation2 + $0xb4] sm:$0xf] }
  0xa6   : > { %v6281_v31 = vcombine.low %v1276_v23, %v1286_v61  ;;  %v8305_v33 = vld [vmem:[#allocation2 + $0x5c] sm:$0x1]  ;;  %v1297_v36 = vshll.u32 %v8299_v25, 16  ;;  %v1301_v38 = vshrl.u32 %v8299_v25, 16  ;;  %1034 = vst [vmem:[#allocation2 + $0xac] sm:$0xf] %v854_v14  ;;  %v1036_v39 = vsel %vm7844_vm5, %v855_v34, %v1035_v5 }
  0xa7   : > { %v1290_v41 = vrot.slane %v1288_v26, 4  ;;  %v1293_v42 = vrot.slane %v1291_v27, 5  ;;  %v1307_v43 = vshll.u32 %v8305_v33, 16  ;;  %1037 = vst [vmem:[#allocation2 + $0xb0] sm:$0x1] %v1036_v39  ;;  %v6715_v37 = vpack.c.bf16 %v407_v15, %v407_v15 }
  0xa8   : > { %7169 = vmatprep.mubr.bf16.mxu0 %v6281_v31  ;;  %v1299_v20 = vrot.slane %v1297_v36, 5  ;;  %v1303_v49 = vrot.slane %v1301_v38, 4  ;;  %v6716_v51 = vpack.c.bf16 %v408_v45, %v408_v45  ;;  %v2152_v53 = vsel %vm8313_vm14, %v6323_v16, %v2151_v11  ;;  %v2099_v61 = vld [vmem:[#allocation2 + $0xc] sm:$0xe] }
  0xa9   : > { %v1294_v50 = vor.u32 %v1293_v42, %v1290_v41  ;;  %v2153_v54 = vrot.slane %v2151_v11, 4  ;;  %v1309_v56 = vrot.slane %v1307_v43, 5  ;;  %v857_v58 = vshrl.u32 %v6715_v37, 16  ;;  %v1042_v43 = vld [vmem:[#allocation2 + $0xbc] sm:$0x1] }
  0xaa   : > { %v1304_v55 = vor.u32 %v1303_v49, %v1299_v20  ;;  %v8320_v57 = vld [vmem:[#allocation2 + $0xa8] sm:$0xf]  ;;  %v860_v59 = vshll.u32 %v6715_v37, 16  ;;  %v865_v23 = vshrl.u32 %v6716_v51, 16  ;;  %v868_v7 = vshll.u32 %v6716_v51, 16 }
  0xab   : > { %10533 = vst [vmem:[#allocation7_spill] sm:$0xff] %v8320_v57  ;;  %v1295_v62 = vrot.slane %v1294_v50, 4  ;;  %v1456_v63 = vshrl.u32 %v8320_v57, 16  ;;  %v1459_v1 = vshll.u32 %v8320_v57, 16  ;;  %v859_v5 = vrot.slane %v857_v58, 7 }
  0xac   : > { %v1305_v2 = vrot.slane %v1304_v55, 4  ;;  %v2155_v12 = vsel %vm8313_vm14, %v2153_v54, %v2154_v48  ;;  %v867_v11 = vrot.slane %v865_v23, 7  ;;  %v2100_v49 = vld [vmem:[#allocation2 + $0x18] sm:$0xe]  ;;  %v8343_v23 = vld [vmem:[#allocation2 + $0x10] sm:$0xf] }
  0xad   : > { %v1300_v34 = vsel %vm7836_vm3, %v1295_v62, %v1299_v20  ;;  %v8328_v0 = vld [vmem:[#allocation2 + $0xac] sm:$0xf]  ;;  %v1458_v15 = vrot.slane %v1456_v63, 4  ;;  %v1461_v16 = vrot.slane %v1459_v1, 5  ;;  %v862_v36 = vor.u32 %v860_v59, %v859_v5  ;;  %v2101_v62 = vld [vmem:[#allocation2 + $0x24] sm:$0xe] }
  0xae   : > { %10534 = vst [vmem:[#allocation8_spill] sm:$0xff] %v8328_v0  ;;  %v1310_v26 = vsel %vm7836_vm3, %v1305_v2, %v1309_v56  ;;  %v8332_v27 = vld [vmem:[#allocation2 + $0xb0] sm:$0x1]  ;;  %v1465_v14 = vshll.u32 %v8328_v0, 16  ;;  %v1469_v31 = vshrl.u32 %v8328_v0, 16  ;;  %v863_v42 = vrot.slane %v859_v5, 4 }
  0xaf   : > { %v6282_v38 = vcombine.low %v1300_v34, %v1310_v26  ;;  %v1462_v39 = vor.u32 %v1461_v16, %v1458_v15  ;;  %v1475_v41 = vshll.u32 %v8332_v27, 16  ;;  %v870_v48 = vor.u32 %v868_v7, %v867_v11  ;;  %v7722_v63 = vld [vmem:[#allocation2 + $0x14] sm:$0x1]  ;;  %v2102_v5 = vld [vmem:[#allocation2 + $0x30] sm:$0xe] }
  0xb0   : > { %v1467_v45 = vrot.slane %v1465_v14, 5  ;;  %v1471_v46 = vrot.slane %v1469_v31, 4  ;;  %v872_v20 = vrot.slane %v867_v11, 4  ;;  %v1039_v51 = vsel %vm7901_vm11, %v862_v36, %v1038_v8  ;;  %v7725_v15 = vld [vmem:[#allocation2 + $0x20] sm:$0x1] }
  0xb1   : > { %7170 = vmatmul.mubr.bf16.gmra.mxu0 %v6282_v38  ;;  %v1463_v37 = vrot.slane %v1462_v39, 4  ;;  %v1477_v50 = vrot.slane %v1475_v41, 5  ;;  %v6355_v54 = vcombine.low %v2152_v53, %v2155_v12  ;;  %v871_v56 = vsel %vm7892_vm10, %v863_v42, %v870_v48  ;;  %1040 = vst [vmem:[#allocation2 + $0xb4] sm:$0xf] %v1039_v51  ;;  %v8348_v12 = vld [vmem:[#allocation2 + $0x1c] sm:$0xf] }
  0xb2   : > { %v1472_v55 = vor.u32 %v1471_v46, %v1467_v45  ;;  %v1043_v58 = vsel %vm7844_vm5, %v872_v20, %v1042_v43  ;;  %v6324_v59 = vrot.slane %v2099_v61, 9  ;;  %v2161_v1 = vrot.slane %v7722_v63, 5  ;;  %1041 = vst [vmem:[#allocation2 + $0xb8] sm:$0xf] %v871_v56  ;;  %v8353_v14 = vld [vmem:[#allocation2 + $0x28] sm:$0xf] }
  0xb3   : > { %1044 = vst [vmem:[#allocation2 + $0xbc] sm:$0x1] %v1043_v58  ;;  %7253 = vmatprep.mubr.bf16.mxu0 %v6355_v54  ;;  %v2158_v2 = vrot.slane %v8343_v23, 5  ;;  %v6325_v53 = vrot.slane %v2100_v49, 9  ;;  %v1468_v7 = vsel %vm7836_vm3, %v1463_v37, %v1467_v45  ;;  %v2165_v34 = vrot.slane %v8348_v12, 5  ;;  %v7629_v49 = vld [vmem:[%s10497_s3 + $0x130] sm:$0xff]  }
  0xb4   : > { %v1473_v8 = vrot.slane %v1472_v55, 4  ;;  %v2168_v16 = vrot.slane %v7725_v15, 5  ;;  %v6326_v26 = vrot.slane %v2101_v62, 9  ;;  %v2172_v31 = vrot.slane %v8353_v14, 5  ;;  %v7727_v41 = vld [vmem:[#allocation2 + $0x2c] sm:$0x1] }
  0xb5   : > { %v2159_v11 = vsel %vm8313_vm14, %v6324_v59, %v2158_v2  ;;  %v2160_v61 = vrot.slane %v2158_v2, 4  ;;  %v2166_v38 = vsel %vm8313_vm14, %v6325_v53, %v2165_v34  ;;  %v2167_v39 = vrot.slane %v2165_v34, 4  ;;  %v2103_v56 = vld [vmem:[#allocation2 + $0x3c] sm:$0xe]  ;;  %v8381_v53 = vld [vmem:[#allocation2 + $0x68] sm:$0x1] }
  0xb6   : > { %v1478_v36 = vsel %vm7836_vm3, %v1473_v8, %v1477_v50  ;;  %v2175_v42 = vrot.slane %v7727_v41, 5  ;;  %v2174_v46 = vrot.slane %v2172_v31, 4  ;;  %v6327_v37 = vrot.slane %v2102_v5, 9  ;;  %v7729_v34 = vld [vmem:[%s10497_s3 + $0x138] sm:$0xff]   ;;  %v2104_v15 = vld [vmem:[#allocation2 + $0x48] sm:$0xe] }
  0xb7   : > { %v6289_v43 = vcombine.low %v1468_v7, %v1478_v36  ;;  %v2162_v45 = vsel %vm8313_vm14, %v2160_v61, %v2161_v1  ;;  %v2169_v20 = vsel %vm8313_vm14, %v2167_v39, %v2168_v16  ;;  %v2179_v54 = vrot.slane %v8147_v19, 5 }
  0xb8   : > { %v6356_v48 = vcombine.low %v2159_v11, %v2162_v45  ;;  %v8367_v50 = vld [vmem:[#allocation2 + $0xb4] sm:$0xf]  ;;  %v6357_v51 = vcombine.low %v2166_v38, %v2169_v20  ;;  %v2182_v55 = vrot.slane %v8149_v32, 5  ;;  %v2173_v1 = vsel %vm8313_vm14, %v6326_v26, %v2172_v31  ;;  %v7633_v31 = vld [vmem:[%s10497_s3 + $0x128] sm:$0xff]  }
  0xb9   : > { %7185 = vmatprep.mubr.bf16.mxu1 %v6289_v43  ;;  %10535 = vst [vmem:[#allocation9_spill] sm:$0xff] %v8367_v50  ;;  %v8371_v58 = vld [vmem:[#allocation2 + $0xb8] sm:$0xf]  ;;  %v1480_v62 = vshrl.u32 %v8367_v50, 16  ;;  %v1483_v63 = vshll.u32 %v8367_v50, 16  ;;  %v2176_v2 = vsel %vm8313_vm14, %v2174_v46, %v2175_v42  ;;  %v2210_v32 = vrot.slane %v8381_v53, 5 }
  0xba   : > { %10536 = vst [vmem:[#allocation10_spill] sm:$0xff] %v8371_v58  ;;  %v8373_v59 = vld [vmem:[#allocation2 + $0xbc] sm:$0x1]  ;;  %7254 = vmatmul.mubr.bf16.vlgmr.msra.gmra.mxu0 %v6356_v48  ;;  %v1489_v5 = vshll.u32 %v8371_v58, 16  ;;  %v1493_v7 = vshrl.u32 %v8371_v58, 16  ;;  %v2180_v61 = vsel %vm8313_vm14, %v6327_v37, %v2179_v54  ;;  %v2181_v26 = vrot.slane %v2179_v54, 4 }
  0xbb   : > { %v1499_v8 = vshll.u32 %v8373_v59, 16  ;;  %7334 = vmatpush3.bf16.msra.mxu0 %v7729_v34  ;;  %7257 = vmatprep.mubr.bf16.mxu0 %v6357_v51  ;;  %v1482_v16 = vrot.slane %v1480_v62, 4  ;;  %v1485_v11 = vrot.slane %v1483_v63, 5  ;;  %v6358_v39 = vcombine.low %v2173_v1, %v2176_v2  ;;  %v7637_v48 = vld [vmem:[%s10497_s3 + $0x120] sm:$0xff]   ;;  %v2105_v62 = vld [vmem:[#allocation2 + $0x54] sm:$0xe] }
  0xbc   : > { %7335 = vmatprep.subr.bf16.mxu0 %v7629_v49  ;;  %v1491_v36 = vrot.slane %v1489_v5, 5  ;;  %v1495_v38 = vrot.slane %v1493_v7, 4  ;;  %v2186_v41 = vrot.slane %v8175_v17, 5  ;;  %v2183_v43 = vsel %vm8313_vm14, %v2181_v26, %v2182_v55  ;;  %v2106_v63 = vld [vmem:[#allocation2 + $0x60] sm:$0xe] }
  0xbd   : > { %v1486_v42 = vor.u32 %v1485_v11, %v1482_v16  ;;  %v6328_v45 = vrot.slane %v2103_v56, 9  ;;  %v2189_v46 = vrot.slane %v8177_v24, 5  ;;  %v1501_v37 = vrot.slane %v1499_v8, 5  ;;  %v7730_v24 = vld [vmem:[#allocation2] sm:$0xf] }
  0xbe   : > { %v1496_v20 = vor.u32 %v1495_v38, %v1491_v36  ;;  %v6359_v51 = vcombine.low %v2180_v61, %v2183_v43  ;;  %v2188_v54 = vrot.slane %v2186_v41, 4  ;;  %v6329_v2 = vrot.slane %v2104_v15, 9  ;;  %v8405_v34 = vld [vmem:[#allocation2 + $0xc] sm:$0xf]  ;;  %v8424_v43 = vld [vmem:[#allocation2 + $0x64] sm:$0xf] }
  0xbf   : > { %7336 = vmatpush3.bf16.msra.mxu0 %v7629_v49  ;;  %v1487_v1 = vrot.slane %v1486_v42, 4  ;;  %v2193_v5 = vrot.slane %v8269_v28, 5  ;;  %v2196_v55 = vrot.slane %v8271_v30, 5  ;;  %v6299_v7 = vcombine.low %v7730_v24, %v8294_v10  ;;  %v8442_v24 = vld [vmem:[#allocation2 + $0x30] sm:$0xf] }
  0xc0   : > { %7337 = vmatprep.subr.bf16.mxu0 %v7633_v31  ;;  %v1497_v56 = vrot.slane %v1496_v20, 4  ;;  %v6300_v49 = vcombine.low %v8405_v34, %v8343_v23  ;;  %v2187_v15 = vsel %vm8313_vm14, %v6328_v45, %v2186_v41  ;;  %v2190_v30 = vsel %vm8313_vm14, %v2188_v54, %v2189_v46  ;;  %v8430_v46 = vld [vmem:[#allocation2 + $0x18] sm:$0xf]  ;;  %v2112_v20 = vld [vmem:[#allocation2 + $0xa8] sm:$0xe] }
  0xc1   : > { %v1492_v16 = vsel %vm7836_vm3, %v1487_v1, %v1491_v36  ;;  %v2195_v11 = vrot.slane %v2193_v5, 4  ;;  %v2194_v61 = vsel %vm8313_vm14, %v6329_v2, %v2193_v5  ;;  %v6330_v26 = vrot.slane %v2105_v62, 9  ;;  %v2107_v36 = vld [vmem:[#allocation2 + $0x6c] sm:$0xe]  ;;  %v8439_v5 = vld [vmem:[#allocation2 + $0x70] sm:$0xf] }
  0xc2   : > { %7258 = vmatmul.mubr.bf16.gmra.mxu0 %v6358_v39  ;;  %v1502_v10 = vsel %vm7836_vm3, %v1497_v56, %v1501_v37  ;;  %v2200_v38 = vrot.slane %v8299_v25, 5  ;;  %v6331_v42 = vrot.slane %v2106_v63, 9  ;;  %v2207_v45 = vrot.slane %v8424_v43, 5  ;;  %v8434_v37 = vld [vmem:[#allocation2 + $0x24] sm:$0xf]  ;;  %v7746_v23 = vld [vmem:[%s10497_s3 + $0xf8] sm:$0xff]  }
  0xc3   : > { %7261 = vmatprep.mubr.bf16.mxu0 %v6359_v51  ;;  %7338 = vmatpush3.bf16.msra.mxu0 %v7633_v31  ;;  %v6290_v39 = vcombine.low %v1492_v16, %v1502_v10  ;;  %v2197_v41 = vsel %vm8313_vm14, %v2195_v11, %v2196_v55  ;;  %v7641_v31 = vld [vmem:[%s10497_s3 + $0x118] sm:$0xff]   ;;  %v2203_v62 = vrot.slane %v8305_v33, 5  ;;  %v6360_v63 = vcombine.low %v2187_v15, %v2190_v30  ;;  %v7737_v33 = vld [vmem:[#allocation2 + $0x74] sm:$0x1]  ;;  %v2109_v30 = vld [vmem:[#allocation2 + $0x84] sm:$0xe] }
  0xc4   : > { %7339 = vmatprep.subr.bf16.mxu0 %v7637_v48  ;;  %v2202_v54 = vrot.slane %v2200_v38, 4  ;;  %v2209_v1 = vrot.slane %v2207_v45, 4  ;;  %v6332_v2 = vrot.slane %v2107_v36, 9  ;;  %v2214_v55 = vrot.slane %v8439_v5, 5  ;;  %v2108_v56 = vld [vmem:[#allocation2 + $0x78] sm:$0xe] }
  0xc5   : > { %7186 = vmatmul.mubr.bf16.gmra.mxu1 %v6290_v39  ;;  %v6361_v10 = vcombine.low %v2194_v61, %v2197_v41  ;;  %v2217_v15 = vrot.slane %v7737_v33, 5  ;;  %v8450_v36 = vsel %vm8313_vm14, %v6330_v26, %v2200_v38  ;;  %v8456_v39 = vsel %vm8313_vm14, %v6331_v42, %v2207_v45  ;;  %v8471_v41 = vld [vmem:[#allocation2 + $0x7c] sm:$0xf]  ;;  %v8482_v33 = vld [vmem:[#allocation2 + $0x88] sm:$0xf] }
  0xc6   : > { %7205 = vmatprep.mubr.bf16.mxu1 %v6299_v7  ;;  %v2216_v8 = vrot.slane %v2214_v55, 4  ;;  %v8463_v61 = vsel %vm8313_vm14, %v2202_v54, %v2203_v62  ;;  %v8469_v26 = vsel %vm8313_vm14, %v2209_v1, %v2210_v32  ;;  %v6333_v38 = vrot.slane %v2108_v56, 9  ;;  %v7739_v62 = vld [vmem:[#allocation2 + $0x80] sm:$0x1]  ;;  %v2110_v11 = vld [vmem:[#allocation2 + $0x90] sm:$0xe] }
  0xc7   : > { %7340 = vmatpush3.bf16.msra.mxu0 %v7637_v48  ;;  %v7645_v48 = vld [vmem:[%s10497_s3 + $0x110] sm:$0xff]   ;;  %v2221_v42 = vrot.slane %v8471_v41, 5  ;;  %v8476_v45 = vsel %vm8313_vm14, %v6332_v2, %v2214_v55  ;;  %v2224_v53 = vrot.slane %v7739_v62, 5  ;;  %v2228_v32 = vrot.slane %v8482_v33, 5  ;;  %v8485_v1 = vld [vmem:[#allocation2 + $0x60] sm:$0xf] }
  0xc8   : > { %7341 = vmatprep.subr.bf16.mxu0 %v7641_v31  ;;  %v8480_v54 = vsel %vm8313_vm14, %v2216_v8, %v2217_v15  ;;  %v6334_v2 = vrot.slane %v2109_v30, 9  ;;  %v7742_v55 = vld [vmem:[#allocation2 + $0x8c] sm:$0x1]  ;;  %v7627_v8 = vld [vmem:[%s10497_s3 + $0xf0] sm:$0xff]   ;;  %v6362_v15 = vcombine.low %v8450_v36, %v8463_v61  ;;  %v2111_v30 = vld [vmem:[#allocation2 + $0x9c] sm:$0xe]  ;;  %v10537_v34 = vcombine.low %v8430_v46, %v8348_v12 }
  0xc9   : > { %v2223_v56 = vrot.slane %v2221_v42, 4  ;;  %v2231_v7 = vrot.slane %v7742_v55, 5  ;;  %v8494_v62 = vld [vmem:[#allocation2 + $0x6c] sm:$0xf]  ;;  %v2230_v16 = vrot.slane %v2228_v32, 4  ;;  %v8508_v61 = vsel %vm8313_vm14, %v6333_v38, %v2221_v42 }
  0xca   : > { %7262 = vmatmul.mubr.bf16.gmra.mxu0 %v6360_v63  ;;  %v7649_v55 = vld [vmem:[%s10497_s3 + $0x108] sm:$0xff]   ;;  %v6363_v63 = vcombine.low %v8456_v39, %v8469_v26  ;;  %v8526_v38 = vld [vmem:[#allocation2 + $0x84] sm:$0xf]  ;;  %v6335_v51 = vrot.slane %v2110_v11, 9  ;;  %v2238_v36 = vrot.slane %v8204_v6, 5  ;;  %v2242_v6 = vrot.slane %v8224_v44, 5 }
  0xcb   : > { %7265 = vmatprep.mubr.bf16.mxu0 %v6361_v10  ;;  %7342 = vmatpush3.bf16.msra.mxu0 %v7641_v31  ;;  %v2235_v31 = vrot.slane %v8194_v60, 5  ;;  %v8510_v10 = vld [vmem:[#allocation2 + $0x78] sm:$0xf]  ;;  %v8520_v39 = vld [vmem:[%s10497_s3 + $0xe8] sm:$0xff]   ;;  %v8524_v26 = vsel %vm8313_vm14, %v2223_v56, %v2224_v53  ;;  %v8543_v53 = vsel %vm8313_vm14, %v2230_v16, %v2231_v7  ;;  %v8546_v56 = vld [vmem:[#allocation2 + $0xb4] sm:$0xe] }
  0xcc   : > { %7343 = vmatprep.subr.bf16.mxu0 %v7645_v48  ;;  %v6336_v12 = vrot.slane %v2111_v30, 9  ;;  %v6337_v46 = vrot.slane %v2112_v20, 9  ;;  %v8554_v16 = vld [vmem:[#allocation2 + $0x10] sm:$0xf]  ;;  %v2245_v42 = vrot.slane %v8234_v21, 5  ;;  %v2252_v13 = vrot.slane %v8332_v27, 5 }
  0xcd   : > { %7206 = vmatmul.mubr.bf16.vlgmr.msra.gmra.mxu1 %v6300_v49  ;;  %v8539_v49 = vsel %vm8313_vm14, %v6334_v2, %v2228_v32  ;;  %v2237_v11 = vrot.slane %v2235_v31, 4  ;;  %v7653_v32 = vld [vmem:[%s10497_s3 + $0x100] sm:$0xff]   ;;  %10538 = vst [vmem:[#allocation11_spill] sm:$0xff] %v8554_v16  ;;  %v2244_v2 = vrot.slane %v2242_v6, 4  ;;  %v8565_v30 = vsel %vm8313_vm14, %v6335_v51, %v2235_v31  ;;  %v2972_v7 = vld [vmem:[#allocation2 + $0x18] sm:$0xf] }
  0xce   : > { %7286 = vmatpush3.bf16.msra.mxu1 %v7746_v23  ;;  %7209 = vmatprep.mubr.bf16.mxu1 %v10537_v34  ;;  %v2249_v34 = vrot.slane %v8328_v0, 5  ;;  %v7635_v21 = vld [vmem:[%s10497_s3 + $0xe0] sm:$0xff]   ;;  %v3018_v31 = vshrl.u32 %v2969_v18, 16  ;;  %v8579_v27 = vld [vmem:[#allocation2 + $0x1c] sm:$0xf]  ;;  %v3021_v29 = vshll.u32 %v2969_v18, 16 }
  0xcf   : > { %7287 = vmatprep.subr.bf16.mxu1 %v7627_v8  ;;  %7344 = vmatpush3.bf16.msra.mxu0 %v7645_v48  ;;  %v8592_v48 = vld [vmem:[#allocation2 + $0x20] sm:$0x1]  ;;  %v8596_v51 = vsel %vm8313_vm14, %v2244_v2, %v2245_v42  ;;  %v2259_v18 = vrot.slane %v8373_v59, 5  ;;  %v2975_v2 = vld [vmem:[#allocation2 + $0x24] sm:$0xf] }
  0xd0   : > { %7345 = vmatprep.subr.bf16.mxu0 %v7649_v55  ;;  %v2251_v23 = vrot.slane %v2249_v34, 4  ;;  %v3020_v20 = vrot.slane %v3018_v31, 4  ;;  %v10540_v31 = vcombine.low %v8442_v24, %v8147_v19  ;;  %v8622_v50 = vld [vmem:[#allocation2 + $0x28] sm:$0xf]  ;;  %v3055_v19 = vshrl.u32 %v8579_v27, 16 }
  0xd1   : > { %v3061_v24 = vshll.u32 %v8592_v48, 16 }
  0xd2   : > { %7266 = vmatmul.mubr.bf16.gmra.mxu0 %v6362_v15  ;;  %7288 = vmatpush3.bf16.msra.mxu1 %v7627_v8  ;;  %v8573_v15 = vsel %vm8313_vm14, %v2237_v11, %v2238_v36  ;;  %v8584_v8 = vsel %vm8313_vm14, %v6336_v12, %v2242_v6  ;;  %v6338_v36 = vrot.slane %v8546_v56, 9  ;;  %v2256_v11 = vrot.slane %v8371_v58, 5  ;;  %v7639_v12 = vld [vmem:[%s10497_s3 + $0xd8] sm:$0xff]  }
  0xd3   : > { %7269 = vmatprep.mubr.bf16.mxu0 %v6363_v63  ;;  %7289 = vmatprep.subr.bf16.mxu1 %v8520_v39  ;;  %v8588_v63 = vsel %vm8313_vm14, %v6337_v46, %v2249_v34  ;;  %v3027_v6 = vshll.u32 %v8554_v16, 16  ;;  %v10539_v56 = vcombine.low %v8434_v37, %v8353_v14  ;;  %v8612_v42 = vsel %vm8313_vm14, %v2251_v23, %v2252_v13 }
  0xd4   : > { %7346 = vmatpush3.bf16.msra.mxu0 %v7649_v55  ;;  %v8602_v55 = vld [vmem:[%s10497_s3 + $0x1b8] sm:$0xff]   ;;  %v3031_v46 = vshrl.u32 %v8554_v16, 16  ;;  %v3042_v34 = vshrl.u32 %v2972_v7, 16  ;;  %v3023_v14 = vrot.slane %v3021_v29, 5  ;;  %v3045_v58 = vshll.u32 %v2972_v7, 16 }
  0xd5   : > { %7347 = vmatprep.subr.bf16.mxu0 %v7653_v32  ;;  %7210 = vmatmul.mubr.bf16.gmra.mxu1 %v10539_v56  ;;  %v8620_v37 = vrot.slane %v3027_v6, 5  ;;  %v3037_v56 = vshll.u32 %v2971_v35, 16  ;;  %v2258_v13 = vrot.slane %v2256_v11, 4  ;;  %v3051_v16 = vshll.u32 %v8579_v27, 16 }
  0xd6   : > { %7213 = vmatprep.mubr.bf16.mxu1 %v10540_v31  ;;  %7290 = vmatpush3.bf16.msra.mxu1 %v8520_v39  ;;  %v3033_v59 = vrot.slane %v3031_v46, 4  ;;  %v3044_v23 = vrot.slane %v3042_v34, 4  ;;  %v3024_v0 = vor.u32 %v3023_v14, %v3020_v20  ;;  %v3047_v57 = vrot.slane %v3045_v58, 5  ;;  %v7643_v20 = vld [vmem:[%s10497_s3 + $0xd0] sm:$0xff]  }
  0xd7   : > { %7291 = vmatprep.subr.bf16.mxu1 %v7635_v21  ;;  %v10541_v29 = vcombine.low %v8476_v45, %v8480_v54  ;;  %v8632_v39 = vrot.slane %v3051_v16, 5  ;;  %v3069_v7 = vshll.u32 %v2975_v2, 16  ;;  %v10542_v58 = vcombine.low %v8508_v61, %v8524_v26  ;;  %v2978_v54 = vld [vmem:[#allocation2 + $0x30] sm:$0xf]  ;;  %v8640_v16 = vld [vmem:[#allocation2 + $0x2c] sm:$0x1] }
  0xd8   : > { %7348 = vmatpush3.bf16.msra.mxu0 %v7653_v32  ;;  %v3034_v35 = vor.u32 %v3033_v59, %v8620_v37  ;;  %v3066_v32 = vshrl.u32 %v2975_v2, 16  ;;  %v3025_v6 = vrot.slane %v3024_v0, 4  ;;  %v3039_v46 = vrot.slane %v3037_v56, 5  ;;  %v8643_v59 = vld [vmem:[#allocation2 + $0x34] sm:$0xf] }
  0xd9   : > { %7429 = vmatprep.subr.bf16.mxu0 %v8602_v55  ;;  %v3048_v34 = vor.u32 %v3047_v57, %v3044_v23  ;;  %v3057_v45 = vrot.slane %v3055_v19, 4  ;;  %v3071_v2 = vrot.slane %v3069_v7, 5  ;;  %v6367_v61 = vcombine.low %v8565_v30, %v8573_v15 }
  0xda   : > { %7270 = vmatmul.mubr.bf16.gmra.mxu0 %v10541_v29  ;;  %7292 = vmatpush3.bf16.msra.mxu1 %v7635_v21  ;;  %v3035_v31 = vrot.slane %v3034_v35, 4  ;;  %v3068_v14 = vrot.slane %v3066_v32, 4  ;;  %v3075_v21 = vshll.u32 %v8622_v50, 16  ;;  %v6368_v0 = vcombine.low %v8584_v8, %v8596_v51  ;;  %v8666_v29 = vld [vmem:[#allocation2 + $0x38] sm:$0x1] }
  0xdb   : > { %7273 = vmatprep.mubr.bf16.mxu0 %v10542_v58  ;;  %7293 = vmatprep.subr.bf16.mxu1 %v7639_v12  ;;  %v3058_v57 = vor.u32 %v3057_v45, %v8632_v39  ;;  %v3079_v26 = vshrl.u32 %v8622_v50, 16  ;;  %v10543_v56 = vcombine.low %v8169_v3, %v8175_v17  ;;  %v6369_v23 = vcombine.low %v8588_v63, %v8612_v42  ;;  %v2990_v42 = vld [vmem:[#allocation2 + $0x60] sm:$0xf] }
  0xdc   : > { %v8658_v19 = vsel %vm8313_vm14, %v6338_v36, %v2256_v11  ;;  %v8662_v30 = vsel %vm8313_vm14, %v2258_v13, %v2259_v18  ;;  %v8664_v15 = vrot.slane %v3061_v24, 5  ;;  %v10544_v35 = vcombine.low %v8262_v4, %v8269_v28  ;;  %v2981_v18 = vld [vmem:[#allocation2 + $0x3c] sm:$0xf]  ;;  %v8678_v13 = vld [vmem:[#allocation2 + $0x40] sm:$0xf]  ;;  %v7647_v4 = vld [vmem:[%s10497_s3 + $0xc8] sm:$0xff]  }
  0xdd   : > { %7214 = vmatmul.mubr.bf16.gmra.mxu1 %v10543_v56  ;;  %v3030_v3 = vsel %vm7836_vm3, %v3025_v6, %v8620_v37  ;;  %v3040_v17 = vsel %vm7836_vm3, %v3035_v31, %v3039_v46  ;;  %v8676_v36 = vrot.slane %v3075_v21, 5  ;;  %v3081_v11 = vrot.slane %v3079_v26, 4  ;;  %v2984_v26 = vld [vmem:[#allocation2 + $0x48] sm:$0xf]  ;;  %v8700_v56 = vld [vmem:[#allocation2 + $0x44] sm:$0x1] }
  0xde   : > { %7217 = vmatprep.mubr.bf16.mxu1 %v10544_v35  ;;  %7294 = vmatpush3.bf16.msra.mxu1 %v7639_v12  ;;  %v3049_v28 = vrot.slane %v3048_v34, 4  ;;  %v3072_v12 = vor.u32 %v3071_v2, %v3068_v14  ;;  %v3090_v24 = vshrl.u32 %v2978_v54, 16  ;;  %v3093_v32 = vshll.u32 %v2978_v54, 16 }
  0xdf   : > { %7295 = vmatprep.subr.bf16.mxu1 %v7643_v20  ;;  %v3059_v7 = vrot.slane %v3058_v57, 4  ;;  %v3085_v37 = vshll.u32 %v8640_v16, 16  ;;  %v3099_v58 = vshll.u32 %v8643_v59, 16  ;;  %v3103_v6 = vshrl.u32 %v8643_v59, 16 }
  0xe0   : > { %v10545_v46 = vcombine.low %v8539_v49, %v8543_v53  ;;  %v8691_v31 = vcombine.low %v3030_v3, %v3040_v17  ;;  %v3092_v34 = vrot.slane %v3090_v24, 4  ;;  %v3095_v14 = vrot.slane %v3093_v32, 5  ;;  %v7651_v49 = vld [vmem:[%s10497_s3 + $0xc0] sm:$0xff]   ;;  %v8710_v32 = vld [vmem:[#allocation2 + $0x4c] sm:$0xf] }
  0xe1   : > { %v3082_v54 = vor.u32 %v3081_v11, %v8676_v36  ;;  %v8694_v2 = vrot.slane %v3099_v58, 5  ;;  %v3105_v21 = vrot.slane %v3103_v6, 4  ;;  %v3109_v57 = vshll.u32 %v8666_v29, 16 }
  0xe2   : > { %7274 = vmatmul.mubr.bf16.gmra.mxu0 %v10545_v46  ;;  %7296 = vmatpush3.bf16.msra.mxu1 %v7643_v20  ;;  %v3096_v53 = vor.u32 %v3095_v14, %v3092_v34  ;;  %v3114_v35 = vshrl.u32 %v2981_v18, 16  ;;  %v3117_v3 = vshll.u32 %v2981_v18, 16  ;;  %v3123_v20 = vshll.u32 %v8678_v13, 16  ;;  %v8723_v46 = vld [vmem:[#allocation2 + $0x50] sm:$0x1] }
  0xe3   : > { %7277 = vmatprep.mubr.bf16.mxu0 %v6367_v61  ;;  %7297 = vmatprep.subr.bf16.mxu1 %v7647_v4  ;;  %v3054_v61 = vsel %vm7836_vm3, %v3049_v28, %v8632_v39  ;;  %v8706_v17 = vrot.slane %v3072_v12, 4  ;;  %v3106_v11 = vor.u32 %v3105_v21, %v8694_v2  ;;  %v3127_v24 = vshrl.u32 %v8678_v13, 16  ;;  %v8721_v39 = vld [vmem:[%s10497_s3 + $0x178] sm:$0xff]  }
  0xe4   : > { %v10546_v58 = vcombine.low %v8292_v9, %v8299_v25  ;;  %v3064_v18 = vsel %vm7836_vm3, %v3059_v7, %v8664_v15  ;;  %v3087_v28 = vrot.slane %v3085_v37, 5  ;;  %v3116_v12 = vrot.slane %v3114_v35, 4  ;;  %v2987_v7 = vld [vmem:[#allocation2 + $0x54] sm:$0xf] }
  0xe5   : > { %v3119_v6 = vrot.slane %v3117_v3, 5  ;;  %v10547_v34 = vcombine.low %v8485_v1, %v8424_v43  ;;  %v3083_v9 = vrot.slane %v3082_v54, 4  ;;  %v3111_v25 = vrot.slane %v3109_v57, 5  ;;  %v8742_v3 = vld [vmem:[#allocation2 + $0x58] sm:$0xf] }
  0xe6   : > { %7218 = vmatmul.mubr.bf16.gmra.mxu1 %v10546_v58  ;;  %v8728_v14 = vrot.slane %v3123_v20, 5  ;;  %v3129_v15 = vrot.slane %v3127_v24, 4  ;;  %v3097_v21 = vrot.slane %v3096_v53, 4  ;;  %v3107_v58 = vrot.slane %v3106_v11, 4  ;;  %v8761_v24 = vld [vmem:[#allocation2 + $0x5c] sm:$0x1] }
  0xe7   : > { %7221 = vmatprep.mubr.bf16.mxu1 %v10547_v34  ;;  %7298 = vmatpush3.bf16.msra.mxu1 %v7647_v4  ;;  %v3138_v45 = vshrl.u32 %v2984_v26, 16  ;;  %v3141_v37 = vshll.u32 %v2984_v26, 16  ;;  %v8730_v35 = vcombine.low %v3054_v61, %v3064_v18  ;;  %v3078_v43 = vsel %vm7836_vm3, %v8706_v17, %v8676_v36 }
  0xe8   : > { %7299 = vmatprep.subr.bf16.mxu1 %v7651_v49  ;;  %v3133_v1 = vshll.u32 %v8700_v56, 16  ;;  %v3147_v4 = vshll.u32 %v8710_v32, 16  ;;  %v3120_v54 = vor.u32 %v3119_v6, %v3116_v12  ;;  %v3130_v57 = vor.u32 %v3129_v15, %v8728_v14 }
  0xe9   : > { %v3140_v53 = vrot.slane %v3138_v45, 4  ;;  %v3143_v26 = vrot.slane %v3141_v37, 5  ;;  %v3088_v36 = vsel %vm7836_vm3, %v3083_v9, %v3087_v28  ;;  %v3151_v51 = vshrl.u32 %v8710_v32, 16 }
  0xea   : > { %7278 = vmatmul.mubr.bf16.gmra.mxu0 %v6368_v0  ;;  %v8749_v20 = vrot.slane %v3147_v4, 5  ;;  %v3157_v8 = vshll.u32 %v8723_v46, 16  ;;  %v3102_v0 = vsel %vm7836_vm3, %v3097_v21, %v8694_v2  ;;  %v3162_v61 = vshrl.u32 %v2987_v7, 16  ;;  %v2993_v4 = vld [vmem:[#allocation2 + $0x6c] sm:$0xf] }
  0xeb   : > { %7281 = vmatprep.mubr.bf16.mxu0 %v6369_v23  ;;  %7300 = vmatpush3.bf16.msra.mxu1 %v7651_v49  ;;  %v3144_v45 = vor.u32 %v3143_v26, %v3140_v53  ;;  %v3165_v63 = vshll.u32 %v2987_v7, 16  ;;  %v8757_v23 = vld [vmem:[#allocation2 + $0x64] sm:$0xf]  ;;  %v3112_v49 = vsel %vm7836_vm3, %v3107_v58, %v3111_v25  ;;  %v3135_v17 = vrot.slane %v3133_v1, 5  ;;  %v8774_v58 = vld [vmem:[#allocation2 + $0x68] sm:$0x1] }
  0xec   : > { %7381 = vmatprep.subr.bf16.mxu1 %v8721_v39  ;;  %v3153_v11 = vrot.slane %v3151_v51, 4  ;;  %v3171_v18 = vshll.u32 %v8742_v3, 16  ;;  %v10548_v28 = vcombine.low %v8494_v62, %v8439_v5  ;;  %v3121_v2 = vrot.slane %v3120_v54, 4 }
  0xed   : > { %v3131_v12 = vrot.slane %v3130_v57, 4  ;;  %v3164_v6 = vrot.slane %v3162_v61, 4  ;;  %v3167_v34 = vrot.slane %v3165_v63, 5  ;;  %v10549_v9 = vcombine.low %v8510_v10, %v8471_v41  ;;  %v8787_v61 = vld [vmem:[#allocation2 + $0x70] sm:$0xf] }
  0xee   : > { %7222 = vmatmul.mubr.bf16.gmra.mxu1 %v10548_v28  ;;  %v3154_v25 = vor.u32 %v3153_v11, %v8749_v20  ;;  %v3159_v15 = vrot.slane %v3157_v8, 5  ;;  %v8771_v7 = vrot.slane %v3171_v18, 5  ;;  %v3175_v21 = vshrl.u32 %v8742_v3, 16 }
  0xef   : > { %7225 = vmatprep.mubr.bf16.mxu1 %v10549_v9  ;;  %v3145_v37 = vrot.slane %v3144_v45, 4  ;;  %v3168_v5 = vor.u32 %v3167_v34, %v3164_v6  ;;  %v3186_v62 = vshrl.u32 %v2990_v42, 16  ;;  %v3189_v1 = vshll.u32 %v2990_v42, 16 }
  0xf0   : > { %v6437_v54 = vcombine.low %v3078_v43, %v3088_v36  ;;  %v3155_v57 = vrot.slane %v3154_v25, 4  ;;  %v3177_v53 = vrot.slane %v3175_v21, 4  ;;  %v3195_v41 = vshll.u32 %v8757_v23, 16 }
  0xf1   : > { %v10550_v10 = vcombine.low %v8658_v19, %v8662_v30  ;;  %v8780_v26 = vcombine.low %v3102_v0, %v3112_v49  ;;  %v3126_v51 = vsel %vm7836_vm3, %v3121_v2, %v8728_v14  ;;  %v3181_v8 = vshll.u32 %v8761_v24, 16  ;;  %v8801_v49 = vld [vmem:[#allocation2 + $0x74] sm:$0x1]  ;;  %v8805_v2 = vld [vmem:[#allocation2 + $0x7c] sm:$0xf] }
  0xf2   : > { %v3199_v45 = vshrl.u32 %v8757_v23, 16  ;;  %v3136_v43 = vsel %vm7836_vm3, %v3131_v12, %v3135_v17  ;;  %v3178_v19 = vor.u32 %v3177_v53, %v8771_v7  ;;  %v3188_v30 = vrot.slane %v3186_v62, 4 }
  0xf3   : > { %7282 = vmatmul.mubr.bf16.gmra.mxu0 %v10550_v10  ;;  %v3191_v36 = vrot.slane %v3189_v1, 5  ;;  %v3150_v0 = vsel %vm7836_vm3, %v3145_v37, %v8749_v20  ;;  %v3160_v14 = vsel %vm7836_vm3, %v3155_v57, %v3159_v15  ;;  %v8798_v63 = vrot.slane %v3168_v5, 4  ;;  %v7661_v15 = vld [vmem:[%s10497_s3 + $0x1b0] sm:$0xff]   ;;  %v8824_v5 = vld [vmem:[#allocation2 + $0x80] sm:$0x1] }
  0xf4   : > { %7349 = vmatprep.mubr.bf16.mxu0 %v8691_v31  ;;  %v3205_v42 = vshll.u32 %v8774_v58, 16  ;;  %v2996_v31 = vld [vmem:[#allocation2 + $0x78] sm:$0xf]  ;;  %v8803_v11 = vrot.slane %v3195_v41, 5  ;;  %v3201_v17 = vrot.slane %v3199_v45, 4  ;;  %v3210_v18 = vshrl.u32 %v2993_v4, 16 }
  0xf5   : > { %v3213_v28 = vshll.u32 %v2993_v4, 16  ;;  %v10551_v20 = vcombine.low %v8526_v38, %v8482_v33  ;;  %v8810_v12 = vcombine.low %v3126_v51, %v3136_v43  ;;  %v8812_v6 = vrot.slane %v3181_v8, 5  ;;  %v2999_v4 = vld [vmem:[#allocation2 + $0x84] sm:$0xf]  ;;  %v7665_v51 = vld [vmem:[%s10497_s3 + $0x1a8] sm:$0xff]  }
  0xf6   : > { %v3219_v34 = vshll.u32 %v8787_v61, 16  ;;  %v3223_v9 = vshrl.u32 %v8787_v61, 16  ;;  %v10552_v25 = vcombine.low %v8186_v47, %v8194_v60  ;;  %v8822_v21 = vrot.slane %v3178_v19, 4 }
  0xf7   : > { %7226 = vmatmul.mubr.bf16.gmra.mxu1 %v10551_v20  ;;  %v3192_v33 = vor.u32 %v3191_v36, %v3188_v30  ;;  %v3212_v38 = vrot.slane %v3210_v18, 4  ;;  %v3215_v37 = vrot.slane %v3213_v28, 5  ;;  %v8826_v62 = vcombine.low %v3150_v0, %v3160_v14  ;;  %v8852_v0 = vld [vmem:[#allocation2 + $0x88] sm:$0xf] }
  0xf8   : > { %7229 = vmatprep.mubr.bf16.mxu1 %v10552_v25  ;;  %v3174_v1 = vsel %vm7836_vm3, %v8798_v63, %v8771_v7  ;;  %v8832_v47 = vrot.slane %v3205_v42, 5  ;;  %v8834_v60 = vrot.slane %v3219_v34, 5  ;;  %v3202_v57 = vor.u32 %v3201_v17, %v8803_v11  ;;  %v7669_v34 = vld [vmem:[%s10497_s3 + $0x1a0] sm:$0xff]  }
  0xf9   : > { %v3225_v53 = vrot.slane %v3223_v9, 4  ;;  %v3229_v41 = vshll.u32 %v8801_v49, 16  ;;  %v3234_v10 = vshrl.u32 %v2996_v31, 16  ;;  %v3216_v8 = vor.u32 %v3215_v37, %v3212_v38  ;;  %v10554_v38 = vld [vmem:[#allocation7_spill] sm:$0xff]  ;;  %v10555_v37 = vld [vmem:[#allocation8_spill] sm:$0xff] }
  0xfa   : > { %v3237_v45 = vshll.u32 %v2996_v31, 16  ;;  %v3243_v7 = vshll.u32 %v8805_v2, 16  ;;  %v3247_v43 = vshrl.u32 %v8805_v2, 16  ;;  %v3184_v19 = vsel %vm7836_vm3, %v8822_v21, %v8812_v6  ;;  %v3002_v31 = vld [vmem:[#allocation2 + $0x90] sm:$0xf] }
  0xfb   : > { %7350 = vmatmul.mubr.bf16.vlgmr.msra.gmra.mxu0 %v8730_v35  ;;  %v8849_v30 = vrot.slane %v3192_v33, 4  ;;  %v3226_v35 = vor.u32 %v3225_v53, %v8834_v60  ;;  %v3236_v36 = vrot.slane %v3234_v10, 4  ;;  %v8859_v17 = vrot.slane %v3202_v57, 4 }
  0xfc   : > { %7430 = vmatpush3.bf16.msra.mxu0 %v8602_v55  ;;  %7353 = vmatprep.mubr.bf16.mxu0 %v6437_v54  ;;  %v3239_v14 = vrot.slane %v3237_v45, 5  ;;  %v8854_v63 = vrot.slane %v3243_v7, 5  ;;  %v3249_v42 = vrot.slane %v3247_v43, 4  ;;  %v3253_v55 = vshll.u32 %v8824_v5, 16  ;;  %v8857_v54 = vld [vmem:[#allocation2 + $0x8c] sm:$0x1] }
  0xfd   : > { %7431 = vmatprep.subr.bf16.mxu0 %v7661_v15  ;;  %v8861_v18 = vrot.slane %v3229_v41, 5  ;;  %v3258_v28 = vshrl.u32 %v2999_v4, 16  ;;  %v3261_v20 = vshll.u32 %v2999_v4, 16  ;;  %v10553_v6 = vcombine.low %v8222_v52, %v8224_v44  ;;  %v8875_v44 = vld [vmem:[#allocation2 + $0x94] sm:$0xf] }
  0xfe   : > { %v3217_v9 = vrot.slane %v3216_v8, 4  ;;  %v3240_v25 = vor.u32 %v3239_v14, %v3236_v36  ;;  %v3250_v21 = vor.u32 %v3249_v42, %v8854_v63  ;;  %v3267_v33 = vshll.u32 %v8852_v0, 16  ;;  %v3005_v43 = vld [vmem:[#allocation2 + $0x9c] sm:$0xf] }
  0xff   : > { %7230 = vmatmul.mubr.bf16.gmra.mxu1 %v10553_v6  ;;  %v10556_v57 = vcombine.low %v10554_v38, %v10555_v37  ;;  %v3227_v4 = vrot.slane %v3226_v35, 4  ;;  %v3260_v53 = vrot.slane %v3258_v28, 4  ;;  %v3263_v41 = vrot.slane %v3261_v20, 5  ;;  %v8889_v28 = vld [vmem:[#allocation2 + $0x98] sm:$0x1]  ;;  %v10558_v38 = vld [vmem:[#allocation9_spill] sm:$0xff] }
 0x100   : > { %7432 = vmatpush3.bf16.msra.mxu0 %v7661_v15  ;;  %v3271_v52 = vshrl.u32 %v8852_v0, 16  ;;  %v3241_v10 = vrot.slane %v3240_v25, 4  ;;  %v3251_v8 = vrot.slane %v3250_v21, 4  ;;  %v3255_v45 = vrot.slane %v3253_v55, 5  ;;  %v7654_v25 = vld [vmem:[#allocation2 + $0xc] sm:$0xff]  }
 0x101   : > { %7233 = vmatprep.mubr.bf16.mxu1 %v10556_v57  ;;  %7433 = vmatprep.subr.bf16.mxu0 %v7665_v51  ;;  %v8877_v7 = vrot.slane %v3267_v33, 5  ;;  %v3264_v36 = vor.u32 %v3263_v41, %v3260_v53  ;;  %v3277_v42 = vshll.u32 %v8857_v54, 16  ;;  %v3282_v6 = vshrl.u32 %v3002_v31, 16  ;;  %v3008_v33 = vld [vmem:[#allocation2 + $0xa8] sm:$0xf]  ;;  %v10559_v37 = vld [vmem:[#allocation10_spill] sm:$0xff] }
 0x102   : > { %v3273_v14 = vrot.slane %v3271_v52, 4  ;;  %v6441_v15 = vcombine.low %v3174_v1, %v3184_v19  ;;  %v3198_v35 = vsel %vm7836_vm3, %v8849_v30, %v8803_v11  ;;  %v3208_v55 = vsel %vm7836_vm3, %v8859_v17, %v8832_v47  ;;  %v8900_v47 = vld [vmem:[#allocation2 + $0xa0] sm:$0xf]  ;;  %v7677_v53 = vld [vmem:[%s10497_s3 + $0x190] sm:$0xff]   ;;  %v8917_v41 = vld [vmem:[#allocation2 + $0xa4] sm:$0x1] }
 0x103   : > { %7354 = vmatmul.mubr.bf16.gmra.mxu0 %v8780_v26  ;;  %v3285_v20 = vshll.u32 %v3002_v31, 16  ;;  %v3222_v26 = vsel %vm7836_vm3, %v3217_v9, %v8834_v60  ;;  %v3232_v11 = vsel %vm7836_vm3, %v3227_v4, %v8861_v18  ;;  %v3291_v19 = vshll.u32 %v8875_v44, 16  ;;  %10557 = vst [vmem:[#allocation7_spill] sm:$0xff] %v8900_v47  ;;  %10561 = vst [vmem:[#allocation8_spill] sm:$0xff] %v8917_v41 }
 0x104   : > { %7357 = vmatprep.mubr.bf16.mxu0 %v8810_v12  ;;  %7434 = vmatpush3.bf16.msra.mxu0 %v7665_v51  ;;  %v3274_v1 = vor.u32 %v3273_v14, %v8877_v7  ;;  %v3246_v12 = vsel %vm7836_vm3, %v3241_v10, %v8854_v63  ;;  %v7673_v51 = vld [vmem:[%s10497_s3 + $0x198] sm:$0xff]   ;;  %v3284_v60 = vrot.slane %v3282_v6, 4  ;;  %v3295_v31 = vshrl.u32 %v8875_v44, 16 }
 0x105   : > { %7435 = vmatprep.subr.bf16.mxu0 %v7669_v34  ;;  %v3287_v30 = vrot.slane %v3285_v20, 5  ;;  %v3256_v17 = vsel %vm7836_vm3, %v3251_v8, %v3255_v45  ;;  %v3265_v18 = vrot.slane %v3264_v36, 4  ;;  %v3279_v9 = vrot.slane %v3277_v42, 5  ;;  %v8920_v8 = vld [vmem:[#allocation2 + $0xac] sm:$0xf] }
 0x106   : > { %v3306_v21 = vshrl.u32 %v3005_v43, 16  ;;  %v10560_v57 = vcombine.low %v10558_v38, %v10559_v37  ;;  %v3275_v63 = vrot.slane %v3274_v1, 4  ;;  %v3309_v52 = vshll.u32 %v3005_v43, 16  ;;  %10562 = vst [vmem:[#allocation9_spill] sm:$0xff] %v8920_v8 }
 0x107   : > { %v3288_v4 = vor.u32 %v3287_v30, %v3284_v60  ;;  %v3315_v10 = vshll.u32 %v8900_v47, 16  ;;  %v8922_v45 = vrot.slane %v3291_v19, 5  ;;  %v3297_v36 = vrot.slane %v3295_v31, 4  ;;  %v7656_v19 = vld [vmem:[#allocation2 + $0x18] sm:$0xff]  }
 0x108   : > { %7234 = vmatmul.mubr.bf16.gmra.mxu1 %v10560_v57  ;;  %7436 = vmatpush3.bf16.msra.mxu0 %v7669_v34  ;;  %v3301_v14 = vshll.u32 %v8889_v28, 16  ;;  %v3319_v42 = vshrl.u32 %v8900_v47, 16  ;;  %v8926_v6 = vcombine.low %v3198_v35, %v3208_v55  ;;  %v8928_v20 = vcombine.low %v3222_v26, %v3232_v11  ;;  %v8942_v26 = vld [vmem:[#allocation2 + $0xb0] sm:$0x1] }
 0x109   : > { %7301 = vmatprep.mubr.bf16.mxu1 %v7654_v25  ;;  %7437 = vmatprep.subr.bf16.mxu0 %v7673_v51  ;;  %v3308_v1 = vrot.slane %v3306_v21, 4  ;;  %v3311_v43 = vrot.slane %v3309_v52, 5  ;;  %v8930_v60 = vrot.slane %v3288_v4, 4  ;;  %v8932_v30 = vrot.slane %v3315_v10, 5  ;;  %10563 = vst [vmem:[#allocation10_spill] sm:$0xff] %v8942_v26  ;;  %v7658_v21 = vld [vmem:[#allocation2 + $0x24] sm:$0xff]  }
 0x10a   : > { %v3321_v25 = vrot.slane %v3319_v42, 4  ;;  %v3330_v34 = vshrl.u32 %v3008_v33, 16  ;;  %v8935_v31 = vcombine.low %v3246_v12, %v3256_v17  ;;  %v3270_v35 = vsel %vm7836_vm3, %v3265_v18, %v8877_v7  ;;  %v3011_v17 = vld [vmem:[#allocation2 + $0xb4] sm:$0xf]  ;;  %v7681_v10 = vld [vmem:[%s10497_s3 + $0x188] sm:$0xff]  }
 0x10b   : > { %7358 = vmatmul.mubr.bf16.gmra.mxu0 %v8826_v62  ;;  %v3280_v55 = vsel %vm7836_vm3, %v3275_v63, %v3279_v9  ;;  %v3333_v11 = vshll.u32 %v3008_v33, 16  ;;  %v3298_v38 = vor.u32 %v3297_v36, %v8922_v45  ;;  %v3325_v37 = vshll.u32 %v8917_v41, 16  ;;  %v7659_v7 = vld [vmem:[%s10497_s3 + $0x170] sm:$0xff]   ;;  %v8970_v36 = vld [vmem:[%s10497_s3 + $0x168] sm:$0xff]   ;;  %v483_v63 = vld [vmem:[#allocation2 + $0xc0] sm:$0x1] }
 0x10c   : > { %7361 = vmatprep.mubr.bf16.mxu0 %v6441_v15  ;;  %7438 = vmatpush3.bf16.msra.mxu0 %v7673_v51  ;;  %v3332_v62 = vrot.slane %v3330_v34, 4  ;;  %v3339_v12 = vshll.u32 %v8920_v8, 16  ;;  %v3312_v18 = vor.u32 %v3311_v43, %v3308_v1  ;;  %v3322_v9 = vor.u32 %v3321_v25, %v8932_v30  ;;  %v8952_v51 = vld [vmem:[#allocation2 + $0xb8] sm:$0xf] }
 0x10d   : > { %7439 = vmatprep.subr.bf16.mxu0 %v7677_v53  ;;  %v3335_v33 = vrot.slane %v3333_v11, 5  ;;  %v3343_v15 = vshrl.u32 %v8920_v8, 16  ;;  %v8954_v57 = vcombine.low %v3270_v35, %v3280_v55  ;;  %v8960_v4 = vrot.slane %v3301_v14, 5  ;;  %v6909_v34 = vld [vmem:[%s7817_s6 + $0x78] sm:$0xff]   ;;  %v7660_v8 = vld [vmem:[#allocation2 + $0x30] sm:$0xff]  }
 0x10e   : > { %v8962_v52 = vrot.slane %v3339_v12, 5  ;;  %v3349_v43 = vshll.u32 %v8942_v26, 16  ;;  %v3354_v25 = vshrl.u32 %v3011_v17, 16  ;;  %v8975_v14 = vrot.slane %v3298_v38, 4  ;;  %v8979_v55 = vld [vmem:[#allocation2 + $0xbc] sm:$0x1] }
 0x10f   : > { %v3336_v42 = vor.u32 %v3335_v33, %v3332_v62  ;;  %v3345_v1 = vrot.slane %v3343_v15, 4  ;;  %v8977_v35 = vrot.slane %v3325_v37, 5  ;;  %v3363_v11 = vshll.u32 %v8952_v51, 16  ;;  %v533_v26 = vld [vmem:[#allocation2 + $0xc8] sm:$0x1] }
 0x110   : > { %7302 = vmatmul.mubr.bf16.vlgmr.msra.gmra.mxu1 %v7656_v19  ;;  %v3357_v19 = vshll.u32 %v3011_v17, 16  ;;  %7440 = vmatpush3.bf16.msra.mxu0 %v7677_v53  ;;  %v3313_v62 = vrot.slane %v3312_v18, 4  ;;  %v3323_v12 = vrot.slane %v3322_v9, 4  ;;  %v3356_v15 = vrot.slane %v3354_v25, 4  ;;  %v7662_v25 = vld [vmem:[#allocation2 + $0x3c] sm:$0xff]  }
 0x111   : > { %7382 = vmatpush3.bf16.msra.mxu1 %v8721_v39  ;;  %7305 = vmatprep.mubr.bf16.mxu1 %v7658_v21  ;;  %v3346_v33 = vor.u32 %v3345_v1, %v8962_v52  ;;  %v7685_v39 = vld [vmem:[%s10497_s3 + $0x180] sm:$0xff]   ;;  %v3337_v21 = vrot.slane %v3336_v42, 4  ;;  %v8986_v37 = vrot.slane %v3363_v11, 5  ;;  %v3367_v17 = vshrl.u32 %v8952_v51, 16 }
 0x112   : > { %7383 = vmatprep.subr.bf16.mxu1 %v7659_v7  ;;  %7441 = vmatprep.subr.bf16.mxu0 %v7681_v10  ;;  %v3359_v38 = vrot.slane %v3357_v19, 5  ;;  %v3351_v18 = vrot.slane %v3349_v43, 5  ;;  %v6813_v9 = vunpack.c.l.bf16 %v6909_v34  ;;  %v6814_v1 = vunpack.c.h.bf16 %v6909_v34  ;;  %v7683_v11 = vld [vmem:[%s10497_s3 + $0x140] sm:$0xff]  }
 0x113   : > { %7362 = vmatmul.mubr.bf16.gmra.mxu0 %v8926_v6  ;;  %v3347_v53 = vrot.slane %v3346_v33, 4  ;;  %v3369_v42 = vrot.slane %v3367_v17, 4  ;;  %v3373_v19 = vshll.u32 %v8979_v55, 16  ;;  %v484_v47 = vsel %vm7844_vm5, 0, %v483_v63  ;;  %v7667_v6 = vld [vmem:[%s10497_s3 + $0x160] sm:$0xff]   ;;  %v7666_v63 = vld [vmem:[#allocation2 + $0x54] sm:$0xff]  }
 0x114   : > { %7365 = vmatprep.mubr.bf16.mxu0 %v8928_v20  ;;  %v3360_v41 = vor.u32 %v3359_v38, %v3356_v15  ;;  %7442 = vmatpush3.bf16.msra.mxu0 %v7681_v10  ;;  %v7747_v20 = vld [vmem:[%s10495_s1] ss:$0 sm:$0xff]  ;;  %485 = vst [vmem:[#allocation2 + $0xc0] sm:$0x1] %v484_v47  ;;  %v534_v33 = vsel %vm7855_vm8, 0, %v533_v26  ;;  %v3318_v38 = vsel %vm7836_vm3, %v3313_v62, %v8932_v30  ;;  %v9020_v47 = vld [vmem:[%s10497_s3 + $0x238] sm:$0xff]  }
 0x115   : > { %7384 = vmatpush3.bf16.msra.mxu1 %v7659_v7  ;;  %v3304_v7 = vsel %vm7836_vm3, %v8975_v14, %v8960_v4  ;;  %v338_v43 = vmul.f32 %v7747_v20, %v6813_v9  ;;  %v339_v34 = vmul.f32 %v7747_v20, %v6814_v1  ;;  %v3724_v15 = vld [vmem:[#allocation2 + $0x18] sm:$0xe]  ;;  %v3328_v4 = vsel %vm7836_vm3, %v3323_v12, %v8977_v35  ;;  %v7748_v35 = vld [vmem:[%s10496_s2] ss:$0 sm:$0xff] }
 0x116   : > { %7385 = vmatprep.subr.bf16.mxu1 %v8970_v36  ;;  %v3342_v10 = vsel %vm7836_vm3, %v3337_v21, %v8962_v52  ;;  %v3370_v14 = vor.u32 %v3369_v42, %v8986_v37  ;;  %535 = vst [vmem:[#allocation2 + $0xc8] sm:$0x1] %v534_v33  ;;  %7443 = vmatprep.subr.bf16.mxu0 %v7685_v39  ;;  %v9024_v26 = vrot.slane %v3360_v41, 4  ;;  %v9032_v21 = vrot.slane %v3373_v19, 5  ;;  %v7671_v41 = vld [vmem:[%s10497_s3 + $0x158] sm:$0xff]  }
 0x117   : > { %v3352_v30 = vsel %vm7836_vm3, %v3347_v53, %v3351_v18  ;;  %v377_v52 = vadd.f32 %v7748_v35, %v338_v43  ;;  %v378_v62 = vadd.f32 %v7748_v35, %v339_v34  ;;  %v6460_v17 = vrot.slane %v3724_v15, 9  ;;  %v7664_v34 = vld [vmem:[#allocation2 + $0x48] sm:$0xff]  }
 0x118   : > { %7306 = vmatmul.mubr.bf16.gmra.mxu1 %v7660_v8  ;;  %v9030_v12 = vrot.slane %v3370_v14, 4  ;;  %v3796_v8 = vrot.slane %v8579_v27, 5  ;;  %v10566_v53 = vsel %vm7836_vm3, %v8930_v60, %v8922_v45  ;;  %v9043_v9 = vcombine.low %v3318_v38, %v3328_v4  ;;  %7444 = vmatpush3.bf16.msra.mxu0 %v7685_v39  ;;  %v10567_v27 = vld [vmem:[#allocation11_spill] sm:$0xff]  ;;  %v3726_v4 = vld [vmem:[#allocation2 + $0x30] sm:$0xe] }
 0x119   : > { %7309 = vmatprep.mubr.bf16.mxu1 %v7662_v25  ;;  %7386 = vmatpush3.bf16.msra.mxu1 %v8970_v36  ;;  %v6446_v18 = vcombine.low %v10566_v53, %v3304_v7  ;;  %v409_v36 = vmax.f32 %v377_v52, 0.0  ;;  %v410_v1 = vmax.f32 %v378_v62, 0.0  ;;  %v3725_v25 = vld [vmem:[#allocation2 + $0x24] sm:$0xe]  ;;  %v9045_v42 = vcombine.low %v3342_v10, %v3352_v30  ;;  %v3727_v30 = vld [vmem:[#allocation2 + $0x3c] sm:$0xe] }
 0x11a   : > { %7387 = vmatprep.subr.bf16.mxu1 %v7667_v6  ;;  %v3789_v19 = vrot.slane %v10567_v27, 5  ;;  %v3798_v20 = vrot.slane %v3796_v8, 4  ;;  %v3799_v43 = vrot.slane %v8592_v48, 5  ;;  %7525 = vmatprep.subr.bf16.mxu0 %v9020_v47  ;;  %v3366_v45 = vsel %vm7836_vm3, %v9024_v26, %v8986_v37  ;;  %v7675_v48 = vld [vmem:[%s10497_s3 + $0x150] sm:$0xff]   ;;  %v7701_v27 = vld [vmem:[%s10497_s3 + $0x220] sm:$0xff]  }
 0x11b   : > { %7366 = vmatmul.mubr.bf16.gmra.mxu0 %v8935_v31  ;;  %v6717_v60 = vpack.c.bf16 %v409_v36, %v409_v36  ;;  %v6718_v39 = vpack.c.bf16 %v410_v1, %v410_v1  ;;  %v9057_v7 = vsel %vm8313_vm14, %v6460_v17, %v3796_v8  ;;  %v3376_v31 = vsel %vm7836_vm3, %v9030_v12, %v9032_v21  ;;  %v1045_v53 = vld [vmem:[#allocation2 + $0xc0] sm:$0xf]  ;;  %v9337_v12 = vld [vmem:[#allocation2 + $0x34] sm:$0xf] }
 0x11c   : > { %7369 = vmatprep.mubr.bf16.mxu0 %v8954_v57  ;;  %v9069_v33 = vsel %vm8313_vm14, %v3798_v20, %v3799_v43  ;;  %v6461_v15 = vrot.slane %v3725_v25, 9  ;;  %v3803_v38 = vrot.slane %v8622_v50, 5  ;;  %v3806_v17 = vrot.slane %v8640_v16, 5  ;;  %v7679_v16 = vld [vmem:[%s10497_s3 + $0x148] sm:$0xff]  }
 0x11d   : > { %7388 = vmatpush3.bf16.msra.mxu1 %v7667_v6  ;;  %v874_v6 = vshrl.u32 %v6717_v60, 16  ;;  %v877_v57 = vshll.u32 %v6717_v60, 16  ;;  %v882_v10 = vshrl.u32 %v6718_v39, 16  ;;  %v885_v14 = vshll.u32 %v6718_v39, 16  ;;  %v1049_v25 = vld [vmem:[#allocation2 + $0xc8] sm:$0x1] }
 0x11e   : > { %7389 = vmatprep.subr.bf16.mxu1 %v7671_v41  ;;  %v6492_v35 = vcombine.low %v9057_v7, %v9069_v33  ;;  %v9076_v52 = vsel %vm8313_vm14, %v6461_v15, %v3803_v38  ;;  %v3805_v62 = vrot.slane %v3803_v38, 4  ;;  %v6462_v36 = vrot.slane %v3726_v4, 9  ;;  %v7696_v7 = vld [vmem:[%s10497_s3 + $0x1e8] sm:$0xff]  }
 0x11f   : > { %v876_v8 = vrot.slane %v874_v6, 7  ;;  %v884_v50 = vrot.slane %v882_v10, 7  ;;  %v3810_v1 = vrot.slane %v8643_v59, 5  ;;  %v3813_v43 = vrot.slane %v8666_v29, 5  ;;  %v3729_v6 = vld [vmem:[#allocation2 + $0x54] sm:$0xe] }
 0x120   : > { %7310 = vmatmul.mubr.bf16.gmra.mxu1 %v7664_v34  ;;  %v9082_v20 = vsel %vm8313_vm14, %v3805_v62, %v3806_v17  ;;  %v6463_v60 = vrot.slane %v3727_v30, 9  ;;  %v3817_v39 = vrot.slane %v8678_v13, 5  ;;  %v7668_v10 = vld [vmem:[#allocation2 + $0x60] sm:$0xff]   ;;  %v3841_v26 = vrot.slane %v8774_v58, 5 }
 0x121   : > { %7313 = vmatprep.mubr.bf16.mxu1 %v7666_v63  ;;  %7390 = vmatpush3.bf16.msra.mxu1 %v7671_v41  ;;  %v879_v34 = vor.u32 %v877_v57, %v876_v8  ;;  %v880_v15 = vrot.slane %v876_v8, 4  ;;  %v887_v59 = vor.u32 %v885_v14, %v884_v50  ;;  %v889_v63 = vrot.slane %v884_v50, 4  ;;  %v3728_v41 = vld [vmem:[#allocation2 + $0x48] sm:$0xe]  ;;  %v7670_v50 = vld [vmem:[#allocation2 + $0x6c] sm:$0xff]  }
 0x122   : > { %7391 = vmatprep.subr.bf16.mxu1 %v7675_v48  ;;  %v6493_v38 = vcombine.low %v9076_v52, %v9082_v20  ;;  %v9093_v4 = vsel %vm8313_vm14, %v6462_v36, %v3810_v1  ;;  %v3812_v29 = vrot.slane %v3810_v1, 4  ;;  %v9097_v13 = vsel %vm8313_vm14, %v6463_v60, %v3817_v39  ;;  %v3730_v60 = vld [vmem:[#allocation2 + $0x60] sm:$0xe]  ;;  %v4614_v20 = vld [vmem:[#allocation2 + $0x30] sm:$0xf] }
 0x123   : > { %7370 = vmatmul.mubr.bf16.gmra.mxu0 %v6446_v18  ;;  %v888_v14 = vsel %vm7892_vm10, %v880_v15, %v887_v59  ;;  %v1046_v62 = vsel %vm7901_vm11, %v879_v34, %v1045_v53  ;;  %v1050_v17 = vsel %vm7844_vm5, %v889_v63, %v1049_v25  ;;  %v3819_v8 = vrot.slane %v3817_v39, 4  ;;  %v3731_v39 = vld [vmem:[#allocation2 + $0x6c] sm:$0xe] }
 0x124   : > { %7373 = vmatprep.mubr.bf16.mxu0 %v9043_v9  ;;  %1047 = vst [vmem:[#allocation2 + $0xc0] sm:$0xf] %v1046_v62  ;;  %1048 = vst [vmem:[#allocation2 + $0xc4] sm:$0xf] %v888_v14  ;;  %v9108_v18 = vsel %vm8313_vm14, %v3812_v29, %v3813_v43  ;;  %v3820_v36 = vrot.slane %v8700_v56, 5  ;;  %v6464_v1 = vrot.slane %v3728_v41, 9 }
 0x125   : > { %7392 = vmatpush3.bf16.msra.mxu1 %v7675_v48  ;;  %1051 = vst [vmem:[#allocation2 + $0xc8] sm:$0x1] %v1050_v17  ;;  %v3824_v53 = vrot.slane %v8710_v32, 5  ;;  %v3827_v48 = vrot.slane %v8723_v46, 5  ;;  %v6465_v25 = vrot.slane %v3729_v6, 9  ;;  %v3831_v43 = vrot.slane %v8742_v3, 5 }
 0x126   : > { %7393 = vmatprep.subr.bf16.mxu1 %v7679_v16  ;;  %v9121_v56 = vsel %vm8313_vm14, %v3819_v8, %v3820_v36  ;;  %v3834_v15 = vrot.slane %v8761_v24, 5  ;;  %v6466_v63 = vrot.slane %v3730_v60, 9  ;;  %v3732_v41 = vld [vmem:[#allocation2 + $0x78] sm:$0xe]  ;;  %v6449_v24 = vcombine.low %v3366_v45, %v3376_v31 }
 0x127   : > { %v9125_v32 = vsel %vm8313_vm14, %v6464_v1, %v3824_v53  ;;  %v3826_v34 = vrot.slane %v3824_v53, 4  ;;  %v9132_v46 = vsel %vm8313_vm14, %v6465_v25, %v3831_v43  ;;  %v3833_v3 = vrot.slane %v3831_v43, 4  ;;  %v7672_v45 = vld [vmem:[#allocation2 + $0x78] sm:$0xff]   ;;  %v3733_v1 = vld [vmem:[#allocation2 + $0x84] sm:$0xe] }
 0x128   : > { %7314 = vmatmul.mubr.bf16.gmra.mxu1 %v7668_v10  ;;  %v3838_v6 = vrot.slane %v8757_v23, 5  ;;  %v6467_v10 = vrot.slane %v3731_v39, 9  ;;  %v3845_v21 = vrot.slane %v8787_v61, 5  ;;  %v7674_v23 = vld [vmem:[#allocation2 + $0x84] sm:$0xff]   ;;  %v3848_v14 = vrot.slane %v8801_v49, 5 }
 0x129   : > { %7317 = vmatprep.mubr.bf16.mxu1 %v7670_v50  ;;  %7394 = vmatpush3.bf16.msra.mxu1 %v7679_v16  ;;  %v9146_v29 = vsel %vm8313_vm14, %v3826_v34, %v3827_v48  ;;  %v9152_v16 = vld [vmem:[%s10497_s3 + $0x1f8] sm:$0xff]   ;;  %v9158_v37 = vsel %vm8313_vm14, %v3833_v3, %v3834_v15  ;;  %v6468_v30 = vrot.slane %v3732_v41, 9  ;;  %v3852_v25 = vrot.slane %v8805_v2, 5 }
 0x12a   : > { %7395 = vmatprep.subr.bf16.mxu1 %v7683_v11  ;;  %v3840_v57 = vrot.slane %v3838_v6, 4  ;;  %v9172_v58 = vsel %vm8313_vm14, %v6466_v63, %v3838_v6  ;;  %v9176_v61 = vsel %vm8313_vm14, %v6467_v10, %v3845_v21  ;;  %v3847_v48 = vrot.slane %v3845_v21, 4  ;;  %v4611_v10 = vld [vmem:[#allocation2 + $0x24] sm:$0xf] }
 0x12b   : > { %7374 = vmatmul.mubr.bf16.gmra.mxu0 %v9045_v42  ;;  %v3014_v62 = vld [vmem:[#allocation2 + $0xc0] sm:$0xf]  ;;  %v9166_v17 = vld [vmem:[#allocation2 + $0xc4] sm:$0xf]  ;;  %v9195_v41 = vsel %vm8313_vm14, %v6468_v30, %v3852_v25  ;;  %v3855_v21 = vrot.slane %v8824_v5, 5  ;;  %v3866_v30 = vrot.slane %v8875_v44, 5 }
 0x12c   : > { %v9168_v8 = vld [vmem:[#allocation2 + $0xc8] sm:$0x1]  ;;  %7377 = vmatprep.mubr.bf16.mxu0 %v6449_v24  ;;  %v3378_v50 = vshrl.u32 %v3014_v62, 16  ;;  %v3381_v36 = vshll.u32 %v3014_v62, 16  ;;  %v3387_v49 = vshll.u32 %v9166_v17, 16  ;;  %v3391_v42 = vshrl.u32 %v9166_v17, 16 }
 0x12d   : > { %7396 = vmatpush3.bf16.msra.mxu1 %v7683_v11  ;;  %v3397_v53 = vshll.u32 %v9168_v8, 16  ;;  %v9184_v60 = vsel %vm8313_vm14, %v3840_v57, %v3841_v26  ;;  %v9191_v63 = vsel %vm8313_vm14, %v3847_v48, %v3848_v14  ;;  %v3734_v24 = vld [vmem:[#allocation2 + $0x90] sm:$0xe]  ;;  %v3854_v26 = vrot.slane %v3852_v25, 4  ;;  %v7686_v25 = vld [vmem:[#allocation2 + $0x18] sm:$0xff]  }
 0x12e   : > { %7477 = vmatprep.subr.bf16.mxu1 %v9152_v16  ;;  %v3380_v43 = vrot.slane %v3378_v50, 4  ;;  %v3383_v39 = vrot.slane %v3381_v36, 5  ;;  %v3389_v34 = vrot.slane %v3387_v49, 5  ;;  %v3393_v15 = vrot.slane %v3391_v42, 4  ;;  %v3735_v49 = vld [vmem:[#allocation2 + $0x9c] sm:$0xe] }
 0x12f   : > { %v3399_v3 = vrot.slane %v3397_v53, 5  ;;  %v3859_v57 = vrot.slane %v8852_v0, 5  ;;  %v3862_v14 = vrot.slane %v8857_v54, 5  ;;  %v6470_v36 = vrot.slane %v3734_v24, 9  ;;  %v7678_v54 = vld [vmem:[#allocation2 + $0x9c] sm:$0xff]  }
 0x130   : > { %7318 = vmatmul.mubr.bf16.gmra.mxu1 %v7672_v45  ;;  %v3384_v2 = vor.u32 %v3383_v39, %v3380_v43  ;;  %v3394_v6 = vor.u32 %v3393_v15, %v3389_v34  ;;  %v6469_v45 = vrot.slane %v3733_v1, 9  ;;  %v9205_v42 = vsel %vm8313_vm14, %v3854_v26, %v3855_v21  ;;  %v3736_v1 = vld [vmem:[#allocation2 + $0xa8] sm:$0xe]  ;;  %v3737_v15 = vld [vmem:[#allocation2 + $0xb4] sm:$0xe]  ;;  %v10571_v21 = vld [vmem:[#allocation8_spill] sm:$0xff] }
 0x131   : > { %7321 = vmatprep.mubr.bf16.mxu1 %v7674_v23  ;;  %v7676_v23 = vld [vmem:[#allocation2 + $0x90] sm:$0xff]   ;;  %v3861_v5 = vrot.slane %v3859_v57, 4  ;;  %v3869_v0 = vrot.slane %v8889_v28, 5  ;;  %v9220_v39 = vsel %vm8313_vm14, %v6470_v36, %v3866_v30  ;;  %v10572_v36 = vld [vmem:[#allocation9_spill] sm:$0xff]  ;;  %v5363_v43 = vld [vmem:[#allocation2 + $0x24] sm:$0xe] }
 0x132   : > { %v3385_v62 = vrot.slane %v3384_v2, 4  ;;  %v3395_v50 = vrot.slane %v3394_v6, 4  ;;  %v9209_v53 = vsel %vm8313_vm14, %v6469_v45, %v3859_v57  ;;  %v3868_v2 = vrot.slane %v3866_v30, 4 }
 0x133   : > { %v9224_v28 = vsel %vm8313_vm14, %v3861_v5, %v3862_v14  ;;  %v6471_v6 = vrot.slane %v3735_v49, 9  ;;  %v3876_v45 = vrot.slane %v10571_v21, 5  ;;  %v6472_v57 = vrot.slane %v3736_v1, 9  ;;  %v10573_v5 = vld [vmem:[#allocation10_spill] sm:$0xff]  ;;  %v7687_v21 = vld [vmem:[#allocation2 + $0x24] sm:$0xff]  }
 0x134   : > { %v3390_v48 = vsel %vm7836_vm3, %v3385_v62, %v3389_v34  ;;  %v3400_v44 = vsel %vm7836_vm3, %v3395_v50, %v3399_v3  ;;  %v10570_v3 = vld [vmem:[#allocation7_spill] sm:$0xff]  ;;  %v3738_v62 = vld [vmem:[#allocation2 + $0xc0] sm:$0xe]  ;;  %v9232_v50 = vsel %vm8313_vm14, %v3868_v2, %v3869_v0  ;;  %v3880_v14 = vrot.slane %v10572_v36, 5 }
 0x135   : > { %v6450_v24 = vcombine.low %v3390_v48, %v3400_v44  ;;  %v3873_v26 = vrot.slane %v10570_v3, 5  ;;  %v3883_v30 = vrot.slane %v10573_v5, 5  ;;  %v6473_v49 = vrot.slane %v3737_v15, 9  ;;  %v5362_v36 = vld [vmem:[#allocation2 + $0x18] sm:$0xe] }
 0x136   : > { %v3887_v44 = vrot.slane %v8952_v51, 5  ;;  %v9245_v0 = vsel %vm8313_vm14, %v6472_v57, %v3880_v14  ;;  %v3890_v2 = vrot.slane %v8979_v55, 5  ;;  %v6474_v15 = vrot.slane %v3738_v62, 9  ;;  %v9317_v57 = vld [vmem:[#allocation2 + $0x28] sm:$0xf] }
 0x137   : > { %7378 = vmatmul.mubr.bf16.gmra.mxu0 %v6450_v24  ;;  %v9240_v1 = vsel %vm8313_vm14, %v6471_v6, %v3873_v26  ;;  %v3882_v24 = vrot.slane %v3880_v14, 4  ;;  %v3894_v51 = vrot.slane %v9166_v17, 5  ;;  %v3897_v62 = vrot.slane %v9168_v8, 5  ;;  %v7690_v8 = vld [vmem:[#allocation2 + $0x30] sm:$0xff]  }
 0x138   : > { %7322 = vmatmul.mubr.bf16.gmra.mxu1 %v7676_v23  ;;  %7445 = vmatprep.mubr.bf16.mxu0 %v7686_v25  ;;  %v3875_v23 = vrot.slane %v3873_v26, 4  ;;  %v9254_v6 = vsel %vm8313_vm14, %v6473_v49, %v3887_v44  ;;  %v3889_v3 = vrot.slane %v3887_v44, 4  ;;  %v7680_v26 = vld [vmem:[#allocation2 + $0xa8] sm:$0xff]   ;;  %v6595_v33 = vrot.slane %v5362_v36, 9 }
 0x139   : > { %7325 = vmatprep.mubr.bf16.mxu1 %v7678_v54  ;;  %v3723_v54 = vld [vmem:[#allocation2 + $0xc] sm:$0xe]  ;;  %v9261_v55 = vsel %vm8313_vm14, %v3882_v24, %v3883_v30  ;;  %v9272_v17 = vsel %vm8313_vm14, %v6474_v15, %v3894_v51  ;;  %v3896_v5 = vrot.slane %v3894_v51, 4  ;;  %v3791_v30 = vrot.slane %v3789_v19, 4  ;;  %v7693_v24 = vld [vmem:[%s10497_s3 + $0x230] sm:$0xff]  }
 0x13a   : > { %v9250_v25 = vsel %vm8313_vm14, %v3875_v23, %v3876_v45  ;;  %v7682_v45 = vld [vmem:[#allocation2 + $0xb4] sm:$0xff]   ;;  %v9268_v14 = vsel %vm8313_vm14, %v3889_v3, %v3890_v2  ;;  %10574 = vst [vmem:[#allocation3_spill] sm:$0xff] %v9272_v17  ;;  %v6459_v49 = vrot.slane %v3723_v54, 9  ;;  %v4610_v2 = vld [vmem:[#allocation2 + $0x20] sm:$0x1]  ;;  %v6596_v52 = vrot.slane %v5363_v43, 9 }
 0x13b   : > { %v7749_v23 = vld [vmem:[#allocation2 + $0x14] sm:$0x1]  ;;  %v9283_v3 = vsel %vm8313_vm14, %v3896_v5, %v3897_v62  ;;  %v7684_v62 = vld [vmem:[#allocation2 + $0xc0] sm:$0xff]   ;;  %v4681_v11 = vshrl.u32 %v4611_v10, 16  ;;  %v4684_v31 = vshll.u32 %v4611_v10, 16  ;;  %v4694_v59 = vshrl.u32 %v9317_v57, 16 }
 0x13c   : > { %v3792_v44 = vrot.slane %v7749_v23, 5  ;;  %10575 = vst [vmem:[#allocation4_spill] sm:$0xff] %v9283_v3  ;;  %v3790_v54 = vsel %vm8313_vm14, %v6459_v49, %v3789_v19  ;;  %v4609_v49 = vld [vmem:[#allocation2 + $0x1c] sm:$0xf]  ;;  %v7700_v43 = vld [vmem:[%s10497_s3 + $0x1e0] sm:$0xff]  }
 0x13d   : > { %v7705_v23 = vld [vmem:[%s10497_s3 + $0x218] sm:$0xff]   ;;  %v4670_v15 = vshrl.u32 %v4609_v49, 16 }
 0x13e   : > { %v3793_v51 = vsel %vm8313_vm14, %v3791_v30, %v3792_v44  ;;  %v4608_v30 = vld [vmem:[#allocation2 + $0x18] sm:$0xf] }
 0x13f   : > { %7446 = vmatmul.mubr.bf16.vlgmr.msra.gmra.mxu0 %v7687_v21  ;;  %v9297_v21 = vpop.f32.mrf.mxu0  ;;  %v6491_v5 = vcombine.low %v3790_v54, %v3793_v51  ;;  %v4660_v54 = vshll.u32 %v4608_v30, 16  ;;  %v4666_v51 = vshll.u32 %v4609_v49, 16  ;;  %v4672_v34 = vrot.slane %v4670_v15, 4  ;;  %v9332_v15 = vld [vmem:[#allocation2 + $0x2c] sm:$0x1] }
 0x140   : > { %7326 = vmatmul.mubr.bf16.gmra.mxu1 %v7680_v26  ;;  %7526 = vmatpush3.bf16.msra.mxu0 %v9020_v47  ;;  %v7697_v26 = vld [vmem:[%s10497_s3 + $0x228] sm:$0xff]   ;;  %10576 = vst [vmem:[#allocation11_spill] sm:$0xff] %v9297_v21  ;;  %v10588_v21 = vcombine.low %v9125_v32, %v9146_v29 }
 0x141   : > { %7329 = vmatprep.mubr.bf16.mxu1 %v7682_v45  ;;  %7449 = vmatprep.mubr.bf16.mxu0 %v7690_v8  ;;  %v7691_v45 = vld [vmem:[#allocation2 + $0x3c] sm:$0xff]   ;;  %v7694_v47 = vld [vmem:[#allocation2 + $0x48] sm:$0xff]   ;;  %v9302_v19 = vpop.f32.mrf.mxu0  ;;  %v7695_v8 = vld [vmem:[#allocation2 + $0x54] sm:$0xff]   ;;  %v4662_v48 = vrot.slane %v4660_v54, 5 }
 0x142   : > { %7527 = vmatprep.subr.bf16.mxu0 %v7693_v24  ;;  %10577 = vst [vmem:[#allocation5_spill] sm:$0xff] %v9302_v19 }
 0x143   : > { %v9307_v44 = vpop.f32.mrf.mxu0 }
 0x144   : > { %7528 = vmatpush3.bf16.msra.mxu0 %v7693_v24  ;;  %10578 = vst [vmem:[#allocation6_spill] sm:$0xff] %v9307_v44  ;;  %v4657_v24 = vshrl.u32 %v4608_v30, 16 }
 0x145   : > { %7529 = vmatprep.subr.bf16.mxu0 %v7697_v26 }
 0x146   : > { %v4659_v30 = vrot.slane %v4657_v24, 4  ;;  %v4676_v24 = vshll.u32 %v4610_v2, 16 }
 0x147   : > { %7450 = vmatmul.mubr.bf16.gmra.mxu0 %v7691_v45  ;;  %v7698_v45 = vld [vmem:[#allocation2 + $0x60] sm:$0xff]  }
 0x148   : > { %7330 = vmatmul.mubr.bf16.gmra.mxu1 %v7684_v62  ;;  %7453 = vmatprep.mubr.bf16.mxu0 %v7694_v47  ;;  %v7692_v62 = vld [vmem:[%s10497_s3 + $0x1f0] sm:$0xff]   ;;  %v9315_v47 = vpop.f32.mrf.mxu0  ;;  %v4663_v54 = vor.u32 %v4662_v48, %v4659_v30  ;;  %v7702_v48 = vld [vmem:[#allocation2 + $0x78] sm:$0xff]   ;;  %v9358_v9 = vrot.slane %v4676_v24, 5  ;;  %v4683_v24 = vrot.slane %v4681_v11, 4 }
 0x149   : > { %7397 = vmatprep.mubr.bf16.mxu1 %v6491_v5  ;;  %7530 = vmatpush3.bf16.msra.mxu0 %v7697_v26  ;;  %v7709_v26 = vld [vmem:[%s10497_s3 + $0x210] sm:$0xff]   ;;  %v5428_v5 = vrot.slane %v4609_v49, 5  ;;  %10579 = vst [vmem:[#allocation7_spill] sm:$0xff] %v9315_v47  ;;  %v5435_v49 = vrot.slane %v9317_v57, 5  ;;  %v4617_v47 = vld [vmem:[#allocation2 + $0x3c] sm:$0xf] }
 0x14a   : > { %7531 = vmatprep.subr.bf16.mxu0 %v7701_v27  ;;  %v4616_v11 = vld [vmem:[#allocation2 + $0x38] sm:$0x1] }
 0x14b   : > { %v5437_v36 = vrot.slane %v5435_v49, 4 }
 0x14d   : > { %7532 = vmatpush3.bf16.msra.mxu0 %v7701_v27  ;;  %v9322_v27 = vrot.slane %v4666_v51, 5 }
 0x14e   : > { %7533 = vmatprep.subr.bf16.mxu0 %v7705_v23 }
 0x14f   : > { %7454 = vmatmul.mubr.bf16.gmra.mxu0 %v7695_v8  ;;  %v5431_v8 = vrot.slane %v4610_v2, 5  ;;  %v4673_v51 = vor.u32 %v4672_v34, %v9322_v27  ;;  %v9347_v34 = vsel %vm8313_vm14, %v6595_v33, %v5428_v5  ;;  %v4705_v2 = vshrl.u32 %v4614_v20, 16 }
 0x150   : > { %7398 = vmatmul.mubr.bf16.vlgmr.msra.gmra.mxu1 %v6492_v35  ;;  %7457 = vmatprep.mubr.bf16.mxu0 %v7698_v45  ;;  %v5430_v35 = vrot.slane %v5428_v5, 4  ;;  %v5438_v45 = vrot.slane %v9332_v15, 5  ;;  %v4714_v5 = vshll.u32 %v9337_v12, 16  ;;  %v4718_v33 = vshrl.u32 %v9337_v12, 16 }
 0x151   : > { %7478 = vmatpush3.bf16.msra.mxu1 %v9152_v16  ;;  %7401 = vmatprep.mubr.bf16.mxu1 %v6493_v38  ;;  %v9334_v16 = vpop.f32.mrf.mxu0  ;;  %v7699_v38 = vld [vmem:[#allocation2 + $0x6c] sm:$0xff]  }
 0x152   : > { %7479 = vmatprep.subr.bf16.mxu1 %v7692_v62  ;;  %7534 = vmatpush3.bf16.msra.mxu0 %v7705_v23  ;;  %10580 = vst [vmem:[#allocation8_spill] sm:$0xff] %v9334_v16  ;;  %v4690_v23 = vshll.u32 %v9317_v57, 16  ;;  %v9351_v10 = vsel %vm8313_vm14, %v5430_v35, %v5431_v8  ;;  %v7713_v57 = vld [vmem:[%s10497_s3 + $0x208] sm:$0xff]   ;;  %v9362_v16 = vsel %vm8313_vm14, %v6596_v52, %v5435_v49  ;;  %v9371_v8 = vrot.slane %v4663_v54, 4  ;;  %v5364_v54 = vld [vmem:[#allocation2 + $0x30] sm:$0xe] }
 0x153   : > { %7535 = vmatprep.subr.bf16.mxu0 %v7709_v26  ;;  %v9353_v30 = vpop.f32.mrf.mxu0  ;;  %v10582_v35 = vcombine.low %v9093_v4, %v9108_v18  ;;  %v10584_v49 = vcombine.low %v9097_v13, %v9121_v56  ;;  %v9381_v4 = vld [vmem:[%s10497_s3 + $0x200] sm:$0xff]   ;;  %v9385_v18 = vsel %vm8313_vm14, %v5437_v36, %v5438_v45  ;;  %v7704_v13 = vld [vmem:[%s10497_s3 + $0x1d8] sm:$0xff]  }
 0x154   : > { %10581 = vst [vmem:[#allocation9_spill] sm:$0xff] %v9353_v30  ;;  %v4686_v30 = vrot.slane %v4684_v31, 5  ;;  %v9387_v52 = vrot.slane %v4690_v23, 5  ;;  %v5442_v31 = vrot.slane %v9337_v12, 5  ;;  %v4720_v12 = vrot.slane %v4718_v33, 4 }
 0x155   : > { %7480 = vmatpush3.bf16.msra.mxu1 %v7692_v62  ;;  %v4708_v62 = vshll.u32 %v4614_v20, 16  ;;  %v9373_v20 = vrot.slane %v4673_v51, 4  ;;  %v4707_v51 = vrot.slane %v4705_v2, 4  ;;  %v9396_v45 = vpop.f32.mrf.mxu0  ;;  %v9400_v23 = vld [vmem:[#allocation2 + $0x40] sm:$0xf]  ;;  %v6597_v33 = vrot.slane %v5364_v54, 9 }
 0x156   : > { %7481 = vmatprep.subr.bf16.mxu1 %v7696_v7  ;;  %7536 = vmatpush3.bf16.msra.mxu0 %v7709_v26  ;;  %v9369_v26 = vpop.f32.mrf.mxu1  ;;  %10585 = vst [vmem:[#allocation12_spill] sm:$0xff] %v9396_v45  ;;  %v5444_v56 = vrot.slane %v5442_v31, 4  ;;  %v4620_v45 = vld [vmem:[#allocation2 + $0x48] sm:$0xf]  ;;  %v9424_v54 = vld [vmem:[#allocation2 + $0x44] sm:$0x1] }
 0x157   : > { %7458 = vmatmul.mubr.bf16.gmra.mxu0 %v7699_v38  ;;  %10583 = vst [vmem:[#allocation10_spill] sm:$0xff] %v9369_v26  ;;  %v4696_v38 = vrot.slane %v4694_v59, 4  ;;  %v4710_v36 = vrot.slane %v4708_v62, 5  ;;  %7537 = vmatprep.subr.bf16.mxu0 %v7713_v57  ;;  %v9398_v59 = vrot.slane %v4714_v5, 5  ;;  %v4679_v2 = vsel %vm7836_vm3, %v9373_v20, %v9358_v9  ;;  %v5365_v20 = vld [vmem:[#allocation2 + $0x3c] sm:$0xe] }
 0x158   : > { %7402 = vmatmul.mubr.bf16.gmra.mxu1 %v10582_v35  ;;  %7461 = vmatprep.mubr.bf16.mxu0 %v7702_v48  ;;  %v4729_v48 = vshrl.u32 %v4617_v47, 16  ;;  %v4732_v35 = vshll.u32 %v4617_v47, 16  ;;  %v9402_v26 = vpop.f32.mrf.mxu1  ;;  %v4687_v5 = vor.u32 %v4686_v30, %v4683_v24  ;;  %v7706_v47 = vld [vmem:[#allocation2 + $0x90] sm:$0xff]   ;;  %v4738_v30 = vshll.u32 %v9400_v23, 16  ;;  %v9421_v24 = vpop.f32.mrf.mxu0 }
 0x159   : > { %7405 = vmatprep.mubr.bf16.mxu1 %v10584_v49  ;;  %7482 = vmatpush3.bf16.msra.mxu1 %v7696_v7  ;;  %v4700_v7 = vshll.u32 %v9332_v15, 16  ;;  %v7703_v49 = vld [vmem:[#allocation2 + $0x84] sm:$0xff]   ;;  %10586 = vst [vmem:[#allocation13_spill] sm:$0xff] %v9402_v26  ;;  %v4669_v15 = vsel %vm7836_vm3, %v9371_v8, %v9322_v27  ;;  %v5445_v26 = vrot.slane %v4616_v11, 5  ;;  %v7708_v27 = vld [vmem:[%s10497_s3 + $0x1d0] sm:$0xff]   ;;  %v4711_v9 = vor.u32 %v4710_v36, %v4707_v51 }
 0x15a   : > { %7483 = vmatprep.subr.bf16.mxu1 %v7700_v43  ;;  %7538 = vmatpush3.bf16.msra.mxu0 %v7713_v57  ;;  %v4697_v57 = vor.u32 %v4696_v38, %v9387_v52  ;;  %v4724_v8 = vshll.u32 %v4616_v11, 16  ;;  %10587 = vst [vmem:[#allocation14_spill] sm:$0xff] %v9421_v24  ;;  %v4721_v38 = vor.u32 %v4720_v12, %v9398_v59  ;;  %v5449_v62 = vrot.slane %v9400_v23, 5  ;;  %v9430_v11 = vpop.f32.mrf.mxu1 }
 0x15b   : > { %7539 = vmatprep.subr.bf16.mxu0 %v9381_v4  ;;  %v4731_v44 = vrot.slane %v4729_v48, 4  ;;  %v4734_v19 = vrot.slane %v4732_v35, 5  ;;  %10589 = vst [vmem:[#allocation15_spill] sm:$0xff] %v9430_v11  ;;  %v4688_v51 = vrot.slane %v4687_v5, 4  ;;  %v4702_v36 = vrot.slane %v4700_v7, 5  ;;  %v9451_v48 = vpop.f32.mrf.mxu0 }
 0x15c   : > { %v4753_v3 = vshrl.u32 %v4620_v45, 16  ;;  %v4756_v17 = vshll.u32 %v4620_v45, 16  ;;  %v10590_v12 = vcombine.low %v9132_v46, %v9158_v37  ;;  %v4698_v24 = vrot.slane %v4697_v57, 4  ;;  %v7712_v46 = vld [vmem:[%s10497_s3 + $0x1c8] sm:$0xff]   ;;  %v7707_v45 = vld [vmem:[#allocation2 + $0x9c] sm:$0xff]   ;;  %v9454_v5 = vpop.f32.mrf.mxu1 }
 0x15d   : > { %7484 = vmatpush3.bf16.msra.mxu1 %v7700_v43  ;;  %v4742_v43 = vshrl.u32 %v9400_v23, 16  ;;  %v9437_v23 = vsel %vm8313_vm14, %v6597_v33, %v5442_v31  ;;  %v9441_v32 = vsel %vm8313_vm14, %v5444_v56, %v5445_v26  ;;  %v6598_v29 = vrot.slane %v5365_v20, 9  ;;  %10591 = vst [vmem:[#allocation16_spill] sm:$0xff] %v9454_v5 }
 0x15e   : > { %7485 = vmatprep.subr.bf16.mxu1 %v7704_v13  ;;  %v4726_v37 = vrot.slane %v4724_v8, 5  ;;  %v9449_v7 = vrot.slane %v4738_v30, 5  ;;  %7540 = vmatpush3.bf16.msra.mxu0 %v9381_v4  ;;  %v4712_v26 = vrot.slane %v4711_v9, 4  ;;  %v4722_v56 = vrot.slane %v4721_v38, 4  ;;  %v7710_v30 = vld [vmem:[#allocation2 + $0xa8] sm:$0xff]   ;;  %v9474_v9 = vpop.f32.mrf.mxu0 }
 0x15f   : > { %7462 = vmatmul.mubr.bf16.gmra.mxu0 %v7703_v49  ;;  %v4744_v31 = vrot.slane %v4742_v43, 4  ;;  %v5451_v35 = vrot.slane %v5449_v62, 4  ;;  %v4735_v49 = vor.u32 %v4734_v19, %v4731_v44  ;;  %v4755_v57 = vrot.slane %v4753_v3, 4 }
 0x160   : > { %7406 = vmatmul.mubr.bf16.gmra.mxu1 %v10588_v21  ;;  %v9443_v21 = vld [vmem:[#allocation2 + $0x4c] sm:$0xf]  ;;  %7465 = vmatprep.mubr.bf16.mxu0 %v7706_v47  ;;  %v5366_v47 = vld [vmem:[#allocation2 + $0x48] sm:$0xe]  ;;  %v4758_v33 = vrot.slane %v4756_v17, 5  ;;  %v9458_v43 = vcombine.low %v4669_v15, %v4679_v2  ;;  %v4693_v4 = vsel %vm7836_vm3, %v4688_v51, %v9387_v52  ;;  %v4703_v19 = vsel %vm7836_vm3, %v4698_v24, %v4702_v36  ;;  %v7716_v52 = vld [vmem:[%s10497_s3 + $0x1c0] sm:$0xff]  }
 0x161   : > { %7409 = vmatprep.mubr.bf16.mxu1 %v10590_v12  ;;  %7486 = vmatpush3.bf16.msra.mxu1 %v7704_v13  ;;  %v5452_v13 = vrot.slane %v9424_v54, 5  ;;  %v4762_v8 = vshll.u32 %v9443_v21, 16  ;;  %v4766_v20 = vshrl.u32 %v9443_v21, 16  ;;  %v4748_v44 = vshll.u32 %v9424_v54, 16  ;;  %v4622_v54 = vld [vmem:[#allocation2 + $0x50] sm:$0x1]  ;;  %v9491_v12 = vpop.f32.mrf.mxu1 }
 0x162   : > { %7487 = vmatprep.subr.bf16.mxu1 %v7708_v27  ;;  %v9470_v3 = vsel %vm8313_vm14, %v6598_v29, %v5449_v62  ;;  %v4745_v15 = vor.u32 %v4744_v31, %v9449_v7  ;;  %v5456_v2 = vrot.slane %v9443_v21, 5  ;;  %v4717_v24 = vsel %vm7836_vm3, %v4712_v26, %v9398_v59  ;;  %10593 = vst [vmem:[#allocation17_spill] sm:$0xff] %v9491_v12 }
 0x163   : > { %v4727_v38 = vsel %vm7836_vm3, %v4722_v56, %v4726_v37  ;;  %v9486_v62 = vsel %vm8313_vm14, %v5451_v35, %v5452_v13  ;;  %v6599_v51 = vrot.slane %v5366_v47, 9  ;;  %v10592_v36 = vcombine.low %v9172_v58, %v9184_v60  ;;  %v5367_v37 = vld [vmem:[#allocation2 + $0x54] sm:$0xe] }
 0x164   : > { %v9493_v29 = vrot.slane %v4735_v49, 4  ;;  %v4759_v21 = vor.u32 %v4758_v33, %v4755_v57  ;;  %v9495_v59 = vrot.slane %v4762_v8, 5  ;;  %v4768_v31 = vrot.slane %v4766_v20, 4  ;;  %v4624_v57 = vld [vmem:[#allocation2 + $0x58] sm:$0xf]  ;;  %v9506_v33 = vpop.f32.mrf.mxu0 }
 0x165   : > { %7488 = vmatpush3.bf16.msra.mxu1 %v7708_v27  ;;  %v4623_v27 = vld [vmem:[#allocation2 + $0x54] sm:$0xf]  ;;  %v10594_v13 = vcombine.low %v9176_v61, %v9191_v63  ;;  %v9500_v26 = vcombine.low %v4693_v4, %v4703_v19  ;;  %v9502_v56 = vrot.slane %v4748_v44, 5  ;;  %v5458_v35 = vrot.slane %v5456_v2, 4  ;;  %10595 = vst [vmem:[#allocation18_spill] sm:$0xff] %v9506_v33  ;;  %v9514_v4 = vpop.f32.mrf.mxu1 }
 0x166   : > { %7489 = vmatprep.subr.bf16.mxu1 %v7712_v46  ;;  %v4777_v58 = vshrl.u32 %v4623_v27, 16  ;;  %v4780_v60 = vshll.u32 %v4623_v27, 16  ;;  %v5459_v49 = vrot.slane %v4622_v54, 5  ;;  %v4772_v47 = vshll.u32 %v4622_v54, 16  ;;  %v9512_v63 = vld [vmem:[#allocation2 + $0x5c] sm:$0x1]  ;;  %v9540_v19 = vpop.f32.mrf.mxu0 }
 0x167   : > { %7466 = vmatmul.mubr.bf16.gmra.mxu0 %v7707_v45  ;;  %v9504_v45 = vrot.slane %v4745_v15, 4  ;;  %v9508_v8 = vcombine.low %v4717_v24, %v4727_v38  ;;  %v6600_v20 = vrot.slane %v5367_v37, 9  ;;  %10596 = vst [vmem:[#allocation19_spill] sm:$0xff] %v9514_v4  ;;  %v9522_v44 = vsel %vm8313_vm14, %v6599_v51, %v5456_v2  ;;  %v9527_v24 = vld [vmem:[#allocation2 + $0x64] sm:$0xf]  ;;  %10597 = vst [vmem:[#allocation20_spill] sm:$0xff] %v9540_v19 }
 0x168   : > { %7410 = vmatmul.mubr.bf16.gmra.mxu1 %v10592_v36  ;;  %7469 = vmatprep.mubr.bf16.mxu0 %v7710_v30  ;;  %v5463_v30 = vrot.slane %v4624_v57, 5  ;;  %v9524_v15 = vrot.slane %v4759_v21, 4  ;;  %v4769_v27 = vor.u32 %v4768_v31, %v9495_v59  ;;  %v4626_v38 = vld [vmem:[#allocation2 + $0x60] sm:$0xf]  ;;  %v4779_v36 = vrot.slane %v4777_v58, 4 }
 0x169   : > { %7413 = vmatprep.mubr.bf16.mxu1 %v10594_v13  ;;  %7490 = vmatpush3.bf16.msra.mxu1 %v7712_v46  ;;  %v7711_v46 = vld [vmem:[#allocation2 + $0xb4] sm:$0xff]   ;;  %v7714_v54 = vld [vmem:[#allocation2 + $0xc0] sm:$0xff]   ;;  %v4782_v37 = vrot.slane %v4780_v60, 5  ;;  %v4786_v13 = vshll.u32 %v4624_v57, 16  ;;  %v4790_v61 = vshrl.u32 %v4624_v57, 16  ;;  %v4751_v17 = vsel %vm7836_vm3, %v9504_v45, %v9502_v56  ;;  %v9549_v45 = vpop.f32.mrf.mxu1 }
 0x16a   : > { %7491 = vmatprep.subr.bf16.mxu1 %v7716_v52  ;;  %v9535_v2 = vsel %vm8313_vm14, %v5458_v35, %v5459_v49  ;;  %v4774_v51 = vrot.slane %v4772_v47, 5  ;;  %v5466_v21 = vrot.slane %v9512_v63, 5  ;;  %v9538_v31 = vld [vmem:[#allocation2 + $0x70] sm:$0xf]  ;;  %v9544_v58 = vsel %vm8313_vm14, %v6600_v20, %v5463_v30  ;;  %v4629_v4 = vld [vmem:[#allocation2 + $0x6c] sm:$0xf] }
 0x16b   : > { %v4801_v60 = vshrl.u32 %v4626_v38, 16  ;;  %v4804_v57 = vshll.u32 %v4626_v38, 16  ;;  %v10598_v56 = vcombine.low %v9195_v41, %v9205_v42  ;;  %10599 = vst [vmem:[#allocation21_spill] sm:$0xff] %v9549_v45  ;;  %v4765_v35 = vsel %vm7836_vm3, %v9524_v15, %v9495_v59  ;;  %v4628_v45 = vld [vmem:[#allocation2 + $0x68] sm:$0x1] }
 0x16c   : > { %v4770_v49 = vrot.slane %v4769_v27, 4  ;;  %v4810_v47 = vshll.u32 %v9527_v24, 16  ;;  %v4814_v20 = vshrl.u32 %v9527_v24, 16  ;;  %v4783_v41 = vor.u32 %v4782_v37, %v4779_v36  ;;  %v9572_v36 = vpop.f32.mrf.mxu1 }
 0x16d   : > { %7492 = vmatpush3.bf16.msra.mxu1 %v7716_v52  ;;  %v5465_v52 = vrot.slane %v5463_v30, 4  ;;  %v10600_v30 = vcombine.low %v9209_v53, %v9224_v28  ;;  %v9560_v42 = vrot.slane %v4786_v13, 5  ;;  %v4792_v38 = vrot.slane %v4790_v61, 4  ;;  %10602 = vst [vmem:[#allocation23_spill] sm:$0xff] %v9572_v36 }
 0x16e   : > { %v4825_v12 = vshrl.u32 %v4629_v4, 16  ;;  %v4828_v59 = vshll.u32 %v4629_v4, 16  ;;  %v4834_v15 = vshll.u32 %v9538_v31, 16  ;;  %v4838_v27 = vshrl.u32 %v9538_v31, 16 }
 0x16f   : > { %7470 = vmatmul.mubr.bf16.gmra.mxu0 %v7711_v46  ;;  %v5368_v46 = vld [vmem:[#allocation2 + $0x60] sm:$0xe]  ;;  %v9569_v53 = vsel %vm8313_vm14, %v5465_v52, %v5466_v21  ;;  %v4796_v28 = vshll.u32 %v9512_v63, 16  ;;  %v4806_v61 = vrot.slane %v4804_v57, 5  ;;  %v4775_v4 = vsel %vm7836_vm3, %v4770_v49, %v4774_v51 }
 0x170   : > { %7414 = vmatmul.mubr.bf16.gmra.mxu1 %v10598_v56  ;;  %7473 = vmatprep.mubr.bf16.mxu0 %v7714_v54  ;;  %v5470_v56 = vrot.slane %v9527_v24, 5  ;;  %v4803_v54 = vrot.slane %v4801_v60, 4  ;;  %v7715_v24 = vld [vmem:[#allocation2 + $0xcc] sm:$0xff]   ;;  %v6601_v37 = vrot.slane %v5368_v46, 9  ;;  %v9576_v13 = vrot.slane %v4810_v47, 5  ;;  %v9601_v46 = vpop.f32.mrf.mxu1 }
 0x171   : > { %7417 = vmatprep.mubr.bf16.mxu1 %v10600_v30  ;;  %v9565_v5 = vpop.f32.mrf.mxu0  ;;  %v4816_v30 = vrot.slane %v4814_v20, 4  ;;  %v4793_v21 = vor.u32 %v4792_v38, %v9560_v42  ;;  %v5473_v63 = vrot.slane %v4628_v45, 5  ;;  %v4827_v60 = vrot.slane %v4825_v12, 4  ;;  %10607 = vst [vmem:[#allocation26_spill] sm:$0xff] %v9601_v46 }
 0x172   : > { %10601 = vst [vmem:[#allocation22_spill] sm:$0xff] %v9565_v5  ;;  %v9580_v5 = vrot.slane %v4783_v41, 4  ;;  %v5472_v52 = vrot.slane %v5470_v56, 4  ;;  %v4830_v57 = vrot.slane %v4828_v59, 5  ;;  %v9583_v19 = vrot.slane %v4834_v15, 5 }
 0x173   : > { %v9578_v11 = vpop.f32.mrf.mxu0  ;;  %v4840_v36 = vrot.slane %v4838_v27, 4  ;;  %v10605_v51 = vsel %vm7836_vm3, %v9493_v29, %v9449_v7  ;;  %v4807_v12 = vor.u32 %v4806_v61, %v4803_v54  ;;  %v4631_v41 = vld [vmem:[#allocation2 + $0x74] sm:$0x1]  ;;  %v10606_v38 = vcombine.low %v9220_v39, %v9232_v50  ;;  %v5369_v29 = vld [vmem:[#allocation2 + $0x6c] sm:$0xe] }
 0x174   : > { %10603 = vst [vmem:[#allocation24_spill] sm:$0xff] %v9578_v11  ;;  %v9592_v49 = vcombine.low %v10605_v51, %v4751_v17  ;;  %v9603_v59 = vcombine.low %v4765_v35, %v4775_v4  ;;  %v4817_v7 = vor.u32 %v4816_v30, %v9576_v13  ;;  %v4820_v17 = vshll.u32 %v4628_v45, 16  ;;  %v4632_v27 = vld [vmem:[#allocation2 + $0x78] sm:$0xf] }
 0x175   : > { %v9585_v33 = vpop.f32.mrf.mxu0  ;;  %v5477_v15 = vrot.slane %v9538_v31, 5  ;;  %v10608_v54 = vcombine.low %v9240_v1, %v9250_v25  ;;  %v10610_v39 = vcombine.low %v9347_v34, %v9351_v10  ;;  %v9619_v45 = vrot.slane %v4793_v21, 4  ;;  %v9630_v21 = vpop.f32.mrf.mxu1 }
 0x176   : > { %10604 = vst [vmem:[#allocation25_spill] sm:$0xff] %v9585_v33  ;;  %v4798_v35 = vrot.slane %v4796_v28, 5  ;;  %v9623_v31 = vsel %vm8313_vm14, %v6601_v37, %v5470_v56  ;;  %v9627_v1 = vsel %vm8313_vm14, %v5472_v52, %v5473_v63  ;;  %v4831_v25 = vor.u32 %v4830_v57, %v4827_v60  ;;  %10611 = vst [vmem:[#allocation28_spill] sm:$0xff] %v9630_v21  ;;  %v4634_v63 = vld [vmem:[#allocation2 + $0x80] sm:$0x1] }
 0x177   : > { %7474 = vmatmul.mubr.bf16.gmra.mxu0 %v7715_v24  ;;  %v9610_v61 = vpop.f32.mrf.mxu0  ;;  %v4841_v34 = vor.u32 %v4840_v36, %v9583_v19  ;;  %v4844_v10 = vshll.u32 %v4631_v41, 16  ;;  %v4633_v24 = vld [vmem:[#allocation2 + $0x7c] sm:$0xf]  ;;  %v4808_v4 = vrot.slane %v4807_v12, 4  ;;  %v6602_v30 = vrot.slane %v5369_v29, 9  ;;  %v9651_v21 = vpop.f32.mrf.mxu1 }
 0x178   : > { %7418 = vmatmul.mubr.bf16.gmra.mxu1 %v10606_v38  ;;  %10609 = vst [vmem:[#allocation27_spill] sm:$0xff] %v9610_v61  ;;  %7541 = vmatprep.mubr.bf16.mxu0 %v10610_v39  ;;  %v4849_v51 = vshrl.u32 %v4632_v27, 16  ;;  %v4852_v38 = vshll.u32 %v4632_v27, 16  ;;  %v4822_v56 = vrot.slane %v4820_v17, 5  ;;  %v5479_v37 = vrot.slane %v5477_v15, 4  ;;  %10613 = vst [vmem:[#allocation29_spill] sm:$0xff] %v9651_v21 }
 0x179   : > { %7421 = vmatprep.mubr.bf16.mxu1 %v10608_v54  ;;  %v4818_v54 = vrot.slane %v4817_v7, 4  ;;  %v5480_v39 = vrot.slane %v4631_v41, 5  ;;  %v4799_v52 = vsel %vm7836_vm3, %v9619_v45, %v4798_v35  ;;  %v5370_v60 = vld [vmem:[#allocation2 + $0x78] sm:$0xe]  ;;  %v4858_v57 = vshll.u32 %v4633_v24, 16 }
 0x17a   : > { %v9632_v28 = vpop.f32.mrf.mxu0  ;;  %v4862_v12 = vshrl.u32 %v4633_v24, 16  ;;  %v4832_v27 = vrot.slane %v4831_v25, 4  ;;  %v4842_v20 = vrot.slane %v4841_v34, 4  ;;  %v4846_v47 = vrot.slane %v4844_v10, 5  ;;  %v4635_v17 = vld [vmem:[#allocation2 + $0x84] sm:$0xf] }
 0x17b   : > { %v5484_v7 = vrot.slane %v4633_v24, 5  ;;  %v4813_v41 = vsel %vm7836_vm3, %v4808_v4, %v9576_v13  ;;  %v9646_v45 = vsel %vm8313_vm14, %v6602_v30, %v5477_v15  ;;  %v4851_v35 = vrot.slane %v4849_v51, 4  ;;  %v4636_v4 = vld [vmem:[#allocation2 + $0x88] sm:$0xf] }
 0x17c   : > { %v9639_v29 = vpop.f32.mrf.mxu0  ;;  %v4854_v36 = vrot.slane %v4852_v38, 5  ;;  %v10612_v50 = vcombine.low %v9245_v0, %v9261_v55  ;;  %v10614_v25 = vcombine.low %v9362_v16, %v9385_v18  ;;  %v4823_v13 = vsel %vm7836_vm3, %v4818_v54, %v4822_v56  ;;  %v5371_v56 = vld [vmem:[#allocation2 + $0x84] sm:$0xe] }
 0x17d   : > { %v9662_v15 = vsel %vm8313_vm14, %v5479_v37, %v5480_v39  ;;  %v6603_v10 = vrot.slane %v5370_v60, 9  ;;  %v5487_v24 = vrot.slane %v4634_v63, 5  ;;  %v10615_v0 = vcombine.low %v9254_v6, %v9268_v14 }
 0x17e   : > { %v9656_v34 = vpop.f32.mrf.mxu0  ;;  %v10616_v55 = vcombine.low %v9437_v23, %v9441_v32  ;;  %v9670_v16 = vrot.slane %v4858_v57, 5  ;;  %v4864_v18 = vrot.slane %v4862_v12, 4  ;;  %v4876_v30 = vshll.u32 %v4635_v17, 16  ;;  %v4637_v23 = vld [vmem:[#allocation2 + $0x8c] sm:$0x1]  ;;  %v9679_v57 = vpop.f32.mrf.mxu1 }
 0x17f   : > { %7542 = vmatmul.mubr.bf16.vlgmr.msra.gmra.mxu0 %v10614_v25  ;;  %v4837_v38 = vsel %vm7836_vm3, %v4832_v27, %v9583_v19  ;;  %v4847_v54 = vsel %vm7836_vm3, %v4842_v20, %v4846_v47  ;;  %v5486_v6 = vrot.slane %v5484_v7, 4  ;;  %v4868_v14 = vshll.u32 %v4634_v63, 16  ;;  %10617 = vst [vmem:[#allocation30_spill] sm:$0xff] %v9679_v57  ;;  %v9698_v63 = vld [vmem:[#allocation2 + $0x94] sm:$0xf] }
 0x180   : > { %7422 = vmatmul.mubr.bf16.gmra.mxu1 %v10612_v50  ;;  %7545 = vmatprep.mubr.bf16.mxu0 %v10616_v55  ;;  %v4873_v50 = vshrl.u32 %v4635_v17, 16  ;;  %v9672_v51 = vpop.f32.mrf.mxu0  ;;  %v4855_v37 = vor.u32 %v4854_v36, %v4851_v35  ;;  %v5491_v32 = vrot.slane %v4636_v4, 5  ;;  %v4882_v39 = vshll.u32 %v4636_v4, 16 }
 0x181   : > { %7425 = vmatprep.mubr.bf16.mxu1 %v10615_v0  ;;  %v4886_v60 = vshrl.u32 %v4636_v4, 16  ;;  %v10618_v19 = vsel %vm7836_vm3, %v9580_v5, %v9560_v42  ;;  %v9690_v47 = vcombine.low %v4813_v41, %v4823_v13  ;;  %v9696_v36 = vsel %vm8313_vm14, %v6603_v10, %v5484_v7  ;;  %v4638_v0 = vld [vmem:[#allocation2 + $0x90] sm:$0xf]  ;;  %v9711_v13 = vld [vmem:[#allocation2 + $0xa0] sm:$0xf] }
 0x182   : > { %v9681_v12 = vpop.f32.mrf.mxu0  ;;  %v9688_v27 = vcombine.low %v10618_v19, %v4799_v52  ;;  %v4865_v17 = vor.u32 %v4864_v18, %v9670_v16  ;;  %v6604_v35 = vrot.slane %v5371_v56, 9  ;;  %v4875_v25 = vrot.slane %v4873_v50, 4 }
 0x183   : > { %v4878_v4 = vrot.slane %v4876_v30, 5  ;;  %v9703_v42 = vcombine.low %v4837_v38, %v4847_v54  ;;  %v9707_v52 = vsel %vm8313_vm14, %v5486_v6, %v5487_v24  ;;  %v9709_v41 = vrot.slane %v4868_v14, 5  ;;  %v4641_v30 = vld [vmem:[#allocation2 + $0x9c] sm:$0xf]  ;;  %v10622_v54 = vld [vmem:[#allocation4_spill] sm:$0xff] }
 0x184   : > { %v9701_v5 = vpop.f32.mrf.mxu0  ;;  %v5494_v7 = vrot.slane %v4637_v23, 5  ;;  %v9713_v10 = vrot.slane %v4855_v37, 4  ;;  %v5493_v55 = vrot.slane %v5491_v32, 4  ;;  %v9715_v18 = vrot.slane %v4882_v39, 5  ;;  %v10621_v38 = vld [vmem:[#allocation3_spill] sm:$0xff] }
 0x185   : > { %10619 = vst [vmem:[#allocation31_spill] sm:$0xff] %v9703_v42  ;;  %v4888_v50 = vrot.slane %v4886_v60, 4  ;;  %v9717_v56 = vpop.f32.mrf.mxu1  ;;  %v10623_v19 = vcombine.low %v10621_v38, %v10622_v54  ;;  %v10624_v24 = vcombine.low %v9470_v3, %v9486_v62  ;;  %v4897_v14 = vshrl.u32 %v4638_v0, 16 }
 0x186   : > { %10620 = vst [vmem:[#allocation32_spill] sm:$0xff] %v9717_v56  ;;  %v9725_v6 = vpop.f32.mrf.mxu0  ;;  %v4900_v37 = vshll.u32 %v4638_v0, 16  ;;  %v4906_v20 = vshll.u32 %v9698_v63, 16  ;;  %v4910_v39 = vshrl.u32 %v9698_v63, 16  ;;  %v10625_v60 = vcombine.low %v9522_v44, %v9535_v2 }
 0x187   : > { %7546 = vmatmul.mubr.bf16.gmra.mxu0 %v10624_v24  ;;  %v4866_v38 = vrot.slane %v4865_v17, 4  ;;  %v9735_v54 = vsel %vm8313_vm14, %v6604_v35, %v5491_v32  ;;  %v4879_v3 = vor.u32 %v4878_v4, %v4875_v25  ;;  %v4892_v62 = vshll.u32 %v4637_v23, 16  ;;  %v5372_v24 = vld [vmem:[#allocation2 + $0x90] sm:$0xe]  ;;  %v4640_v25 = vld [vmem:[#allocation2 + $0x98] sm:$0x1] }
 0x188   : > { %7426 = vmatmul.mubr.bf16.gmra.mxu1 %v10623_v19  ;;  %7549 = vmatprep.mubr.bf16.mxu0 %v10625_v60  ;;  %v9737_v19 = vpop.f32.mrf.mxu1  ;;  %v9739_v0 = vpop.f32.mrf.mxu0  ;;  %v4921_v56 = vshrl.u32 %v4641_v30, 16  ;;  %v4924_v57 = vshll.u32 %v4641_v30, 16  ;;  %v4934_v21 = vshrl.u32 %v9711_v13, 16  ;;  %v4861_v44 = vsel %vm7836_vm3, %v9713_v10, %v9670_v16 }
 0x189   : > { %7493 = vmatprep.mubr.bf16.mxu1 %v9458_v43  ;;  %10626 = vst [vmem:[#allocation3_spill] sm:$0xff] %v9737_v19  ;;  %v4930_v43 = vshll.u32 %v9711_v13, 16  ;;  %v9749_v2 = vsel %vm8313_vm14, %v5493_v55, %v5494_v7  ;;  %v4889_v23 = vor.u32 %v4888_v50, %v9715_v18  ;;  %v5498_v32 = vrot.slane %v9698_v63, 5 }
 0x18a   : > { %v9753_v17 = vpop.f32.mrf.mxu1  ;;  %v9755_v35 = vpop.f32.mrf.mxu0  ;;  %v4899_v4 = vrot.slane %v4897_v14, 4  ;;  %v4902_v30 = vrot.slane %v4900_v37, 5  ;;  %v9757_v60 = vrot.slane %v4906_v20, 5  ;;  %v4912_v19 = vrot.slane %v4910_v39, 4 }
 0x18b   : > { %10627 = vst [vmem:[#allocation4_spill] sm:$0xff] %v9753_v17  ;;  %v4871_v16 = vsel %vm7836_vm3, %v4866_v38, %v9709_v41  ;;  %v4880_v7 = vrot.slane %v4879_v3, 4  ;;  %v4894_v10 = vrot.slane %v4892_v62, 5  ;;  %v6605_v55 = vrot.slane %v5372_v24, 9  ;;  %v9766_v17 = vld [vmem:[#allocation2 + $0xa4] sm:$0x1] }
 0x18c   : > { %v9762_v50 = vpop.f32.mrf.mxu1  ;;  %v9764_v63 = vpop.f32.mrf.mxu0  ;;  %v4923_v46 = vrot.slane %v4921_v56, 4  ;;  %v4926_v61 = vrot.slane %v4924_v57, 5  ;;  %v9768_v14 = vrot.slane %v4930_v43, 5  ;;  %v4936_v20 = vrot.slane %v4934_v21, 4  ;;  %v5373_v21 = vld [vmem:[#allocation2 + $0x9c] sm:$0xe] }
 0x18d   : > { %10628 = vst [vmem:[#allocation33_spill] sm:$0xff] %v9762_v50  ;;  %v4890_v37 = vrot.slane %v4889_v23, 4  ;;  %v5500_v39 = vrot.slane %v5498_v32, 4  ;;  %v5501_v33 = vrot.slane %v4640_v25, 5  ;;  %v4916_v11 = vshll.u32 %v4640_v25, 16 }
 0x18e   : > { %v7207_v42 = vpop.f32.mrf.mxu1  ;;  %v10629_v41 = vcombine.low %v9544_v58, %v9569_v53  ;;  %v9774_v38 = vpop.f32.mrf.mxu0  ;;  %v6635_v56 = vcombine.low %v9696_v36, %v9707_v52  ;;  %v4903_v57 = vor.u32 %v4902_v30, %v4899_v4  ;;  %v4913_v3 = vor.u32 %v4912_v19, %v9757_v60  ;;  %v4645_v52 = vld [vmem:[#allocation2 + $0xac] sm:$0xf]  ;;  %v5374_v43 = vld [vmem:[#allocation2 + $0xa8] sm:$0xe] }
 0x18f   : > { %v5505_v62 = vrot.slane %v9711_v13, 5  ;;  %v9784_v24 = vcombine.low %v4861_v44, %v4871_v16  ;;  %v9790_v53 = vsel %vm8313_vm14, %v6605_v55, %v5498_v32  ;;  %v4940_v36 = vshll.u32 %v9766_v17, 16  ;;  %v4644_v23 = vld [vmem:[#allocation2 + $0xa8] sm:$0xf]  ;;  %v9805_v16 = vld [vmem:[#allocation2 + $0xb0] sm:$0x1] }
 0x190   : > { %7494 = vmatmul.mubr.bf16.vlgmr.msra.gmra.mxu1 %v9500_v26  ;;  %7550 = vmatmul.mubr.bf16.gmra.mxu0 %v10629_v41  ;;  %v10630_v26 = vcombine.low %v9623_v31, %v9627_v1  ;;  %v1971_v19 = vpop.f32.mrf.mxu1  ;;  %v9793_v13 = vpop.f32.mrf.mxu0  ;;  %v4927_v31 = vor.u32 %v4926_v61, %v4923_v46  ;;  %v4937_v1 = vor.u32 %v4936_v20, %v9768_v14  ;;  %v5512_v44 = vrot.slane %v4645_v52, 5 }
 0x191   : > { %7497 = vmatprep.mubr.bf16.mxu1 %v9508_v8  ;;  %10631 = vst [vmem:[#allocation34_spill] sm:$0xff] %v9793_v13  ;;  %v4885_v8 = vsel %vm7836_vm3, %v4880_v7, %v9715_v18  ;;  %v4895_v32 = vsel %vm7836_vm3, %v4890_v37, %v4894_v10  ;;  %v9803_v25 = vsel %vm8313_vm14, %v5500_v39, %v5501_v33  ;;  %v4918_v4 = vrot.slane %v4916_v11, 5 }
 0x192   : > { %7553 = vmatprep.mubr.bf16.mxu0 %v10630_v26  ;;  %v6606_v30 = vrot.slane %v5373_v21, 9  ;;  %v7208_v55 = vpop.f32.mrf.mxu1  ;;  %v9807_v41 = vpop.f32.mrf.mxu0  ;;  %v4904_v46 = vrot.slane %v4903_v57, 4  ;;  %v4914_v61 = vrot.slane %v4913_v3, 4  ;;  %v5507_v18 = vrot.slane %v5505_v62, 4 }
 0x193   : > { %10632 = vst [vmem:[#allocation35_spill] sm:$0xff] %v9807_v41  ;;  %v5508_v7 = vrot.slane %v9766_v17, 5  ;;  %v4942_v20 = vrot.slane %v4940_v36, 5  ;;  %v6607_v26 = vrot.slane %v5374_v43, 9  ;;  %v4945_v58 = vshrl.u32 %v4644_v23, 16 }
 0x194   : > { %v4948_v10 = vshll.u32 %v4644_v23, 16  ;;  %v1974_v37 = vpop.f32.mrf.mxu1  ;;  %v9810_v50 = vpop.f32.mrf.mxu0  ;;  %v4928_v33 = vrot.slane %v4927_v31, 4  ;;  %v4938_v11 = vrot.slane %v4937_v1, 4  ;;  %v5514_v39 = vrot.slane %v5512_v44, 4 }
 0x195   : > { %v5515_v21 = vrot.slane %v9805_v16, 5  ;;  %v9813_v13 = vcombine.low %v4885_v8, %v4895_v32  ;;  %v6637_v57 = vcombine.low %v9790_v53, %v9803_v25  ;;  %v4954_v3 = vshll.u32 %v4645_v52, 16 }
 0x196   : > { %v4958_v41 = vshrl.u32 %v4645_v52, 16  ;;  %v7211_v17 = vpop.f32.mrf.mxu1  ;;  %v10633_v36 = vcombine.low %v9646_v45, %v9662_v15  ;;  %v9821_v43 = vpop.f32.mrf.mxu0  ;;  %v4909_v31 = vsel %vm7836_vm3, %v4904_v46, %v9757_v60  ;;  %v9828_v8 = vsel %vm8313_vm14, %v6606_v30, %v5505_v62  ;;  %v10634_v52 = vld [vmem:[#allocation11_spill] sm:$0xff]  ;;  %v5375_v46 = vld [vmem:[#allocation2 + $0xb4] sm:$0xe] }
 0x197   : > { %v9832_v53 = vsel %vm8313_vm14, %v5507_v18, %v5508_v7  ;;  %v9839_v45 = vsel %vm8313_vm14, %v6607_v26, %v5512_v44  ;;  %v4947_v15 = vrot.slane %v4945_v58, 4  ;;  %v4950_v60 = vrot.slane %v4948_v10, 5  ;;  %v10635_v44 = vld [vmem:[#allocation5_spill] sm:$0xff]  ;;  %v10636_v58 = vld [vmem:[#allocation6_spill] sm:$0xff]  ;;  %v10638_v7 = vld [vmem:[#allocation8_spill] sm:$0xff] }
 0x198   : > { %7498 = vmatmul.mubr.bf16.gmra.mxu1 %v9592_v49  ;;  %7554 = vmatmul.mubr.bf16.gmra.mxu0 %v10633_v36  ;;  %v4919_v49 = vsel %vm7836_vm3, %v4914_v61, %v4918_v4  ;;  %v1980_v1 = vadd.f32 %v7207_v42, %v10634_v52  ;;  %v1987_v62 = vpop.f32.mrf.mxu1  ;;  %v9842_v23 = vpop.f32.mrf.mxu0  ;;  %v4933_v32 = vsel %vm7836_vm3, %v4928_v33, %v9768_v14  ;;  %v9855_v30 = vrot.slane %v4954_v3, 5  ;;  %v10637_v61 = vld [vmem:[#allocation7_spill] sm:$0xff]  ;;  %v4647_v52 = vld [vmem:[#allocation2 + $0xb4] sm:$0xf] }
 0x199   : > { %7501 = vmatprep.mubr.bf16.mxu1 %v9603_v59  ;;  %7557 = vmatprep.mubr.bf16.mxu0 %v6635_v56  ;;  %v4943_v59 = vsel %vm7836_vm3, %v4938_v11, %v4942_v20  ;;  %v9851_v56 = vsel %vm8313_vm14, %v5514_v39, %v5515_v21  ;;  %v1972_v25 = vadd.f32 %v1971_v19, %v10635_v44  ;;  %v4960_v42 = vrot.slane %v4958_v41, 4  ;;  %v10639_v11 = vld [vmem:[#allocation9_spill] sm:$0xff]  ;;  %v9870_v21 = vld [vmem:[#allocation2 + $0xbc] sm:$0x1] }
 0x19a   : > { %v1983_v4 = vadd.f32 %v7208_v55, %v10636_v58  ;;  %v1975_v18 = vadd.f32 %v1974_v37, %v10637_v61  ;;  %v1996_v26 = vadd.f32 %v7211_v17, %v10638_v7  ;;  %v7212_v14 = vpop.f32.mrf.mxu1  ;;  %v9859_v10 = vpop.f32.mrf.mxu0  ;;  %v9861_v20 = vcombine.low %v4909_v31, %v4919_v49  ;;  %v10640_v37 = vld [vmem:[#allocation12_spill] sm:$0xff]  ;;  %v9881_v58 = vld [vmem:[#allocation2 + $0xb8] sm:$0xf] }
 0x19b   : > { %v6638_v33 = vcombine.low %v9828_v8, %v9832_v53  ;;  %v1988_v19 = vadd.f32 %v1987_v62, %v10639_v11  ;;  %v9866_v39 = vcombine.low %v4933_v32, %v4943_v59  ;;  %v6639_v55 = vcombine.low %v9839_v45, %v9851_v56  ;;  %v10641_v62 = vld [vmem:[#allocation14_spill] sm:$0xff]  ;;  %v4650_v11 = vld [vmem:[#allocation2 + $0xc0] sm:$0xf]  ;;  %v5377_v53 = vld [vmem:[#allocation2 + $0xcc] sm:$0xe] }
 0x19c   : > { %v4951_v41 = vor.u32 %v4950_v60, %v4947_v15  ;;  %v1999_v3 = vadd.f32 %v7212_v14, %v10640_v37  ;;  %v1990_v17 = vpop.f32.mrf.mxu1  ;;  %v9873_v36 = vpop.f32.mrf.mxu0  ;;  %v4964_v31 = vshll.u32 %v9805_v16, 16  ;;  %v6608_v49 = vrot.slane %v5375_v46, 9  ;;  %v9897_v46 = vld [vmem:[#allocation2 + $0xc4] sm:$0xf] }
 0x19d   : > { %v9877_v44 = vadd.f32 %v9632_v28, %v1980_v1  ;;  %v1991_v32 = vadd.f32 %v1990_v17, %v10641_v62  ;;  %v4961_v59 = vor.u32 %v4960_v42, %v9855_v30  ;;  %v9884_v15 = vadd.f32 %v9639_v29, %v1972_v25  ;;  %v10649_v45 = vld [vmem:[#allocation24_spill] sm:$0xff] }
 0x19e   : > { %v9887_v60 = vadd.f32 %v9656_v34, %v1983_v4  ;;  %v7215_v61 = vpop.f32.mrf.mxu1  ;;  %v10642_v16 = vcombine.low %v9735_v54, %v9749_v2  ;;  %v9893_v28 = vpop.f32.mrf.mxu0  ;;  %v5519_v1 = vrot.slane %v9881_v58, 5  ;;  %v5522_v42 = vrot.slane %v9870_v21, 5  ;;  %v5376_v2 = vld [vmem:[#allocation2 + $0xc0] sm:$0xe] }
 0x19f   : > { %v9900_v29 = vadd.f32 %v9672_v51, %v1975_v18  ;;  %v9903_v34 = vadd.f32 %v9681_v12, %v1996_v26  ;;  %v4969_v54 = vshrl.u32 %v4647_v52, 16  ;;  %v5526_v25 = vrot.slane %v9897_v46, 5  ;;  %v9917_v12 = vld [vmem:[#allocation2 + $0xc8] sm:$0x1] }
 0x1a0   : > { %7502 = vmatmul.mubr.bf16.gmra.mxu1 %v9688_v27  ;;  %7558 = vmatmul.mubr.bf16.gmra.mxu0 %v10642_v16  ;;  %v2012_v27 = vadd.f32 %v7215_v61, %v9451_v48  ;;  %v9909_v4 = vadd.f32 %v9701_v5, %v1988_v19  ;;  %v2003_v7 = vpop.f32.mrf.mxu1  ;;  %v9911_v14 = vpop.f32.mrf.mxu0  ;;  %v9913_v51 = vrot.slane %v4951_v41, 4  ;;  %v9915_v18 = vrot.slane %v4964_v31, 5  ;;  %v10643_v31 = vld [vmem:[#allocation18_spill] sm:$0xff] }
 0x1a1   : > { %7505 = vmatprep.mubr.bf16.mxu1 %v9690_v47  ;;  %7561 = vmatprep.mubr.bf16.mxu0 %v6637_v57  ;;  %v9920_v48 = vadd.f32 %v9725_v6, %v1999_v3  ;;  %v9923_v47 = vadd.f32 %v9739_v0, %v1991_v32  ;;  %v2004_v57 = vadd.f32 %v2003_v7, %v9474_v9  ;;  %v4972_v26 = vshll.u32 %v4647_v52, 16  ;;  %v10644_v7 = vld [vmem:[#allocation20_spill] sm:$0xff] }
 0x1a2   : > { %v4978_v5 = vshll.u32 %v9881_v58, 16  ;;  %v9928_v19 = vadd.f32 %v9755_v35, %v2012_v27  ;;  %v7216_v41 = vpop.f32.mrf.mxu1  ;;  %v9930_v37 = vpop.f32.mrf.mxu0  ;;  %v9932_v17 = vrot.slane %v4961_v59, 4  ;;  %v9936_v6 = vsel %vm8313_vm14, %v6608_v49, %v5519_v1 }
 0x1a3   : > { %v5521_v0 = vrot.slane %v5519_v1, 4  ;;  %v6609_v3 = vrot.slane %v5376_v2, 9  ;;  %v2015_v9 = vadd.f32 %v7216_v41, %v10643_v31  ;;  %v5528_v52 = vrot.slane %v5526_v25, 4 }
 0x1a4   : > { %v5529_v62 = vrot.slane %v9917_v12, 5  ;;  %v9941_v32 = vadd.f32 %v9764_v63, %v2004_v57  ;;  %v2006_v35 = vpop.f32.mrf.mxu1  ;;  %v9943_v61 = vpop.f32.mrf.mxu0  ;;  %v9945_v16 = vrot.slane %v4969_v54, 4  ;;  %v4982_v59 = vshrl.u32 %v9881_v58, 16  ;;  %v10645_v57 = vld [vmem:[#allocation31_spill] sm:$0xff] }
 0x1a5   : > { %v4993_v27 = vshrl.u32 %v4650_v11, 16  ;;  %v4996_v49 = vshll.u32 %v4650_v11, 16  ;;  %v2007_v1 = vadd.f32 %v2006_v35, %v10644_v7  ;;  %v5002_v2 = vshll.u32 %v9897_v46, 16  ;;  %v10646_v35 = vld [vmem:[#allocation22_spill] sm:$0xff] }
 0x1a6   : > { %v5006_v41 = vshrl.u32 %v9897_v46, 16  ;;  %v9952_v31 = vadd.f32 %v9774_v38, %v2015_v9  ;;  %v7219_v63 = vpop.f32.mrf.mxu1  ;;  %v9958_v54 = vpop.f32.mrf.mxu0  ;;  %v4957_v58 = vsel %vm7836_vm3, %v9913_v51, %v9855_v30  ;;  %v5523_v46 = vsel %vm8313_vm14, %v5521_v0, %v5522_v42  ;;  %v9968_v9 = vld [vmem:[#allocation2 + $0xd0] sm:$0xf] }
 0x1a7   : > { %v4974_v11 = vrot.slane %v4972_v26, 5  ;;  %v5527_v38 = vsel %vm8313_vm14, %v6609_v3, %v5526_v25  ;;  %v2028_v7 = vadd.f32 %v7219_v63, %v10646_v35  ;;  %v5530_v8 = vsel %vm8313_vm14, %v5528_v52, %v5529_v62  ;;  %v9985_v63 = vld [vmem:[#allocation2 + $0xd4] sm:$0x1]  ;;  %v10650_v62 = vld [vmem:[#allocation35_spill] sm:$0xff] }
 0x1a8   : > { %7506 = vmatmul.mubr.bf16.gmra.mxu1 %v10645_v57  ;;  %7562 = vmatmul.mubr.bf16.gmra.mxu0 %v6638_v33  ;;  %v5533_v30 = vrot.slane %v9968_v9, 5  ;;  %v10647_v33 = vld [vmem:[#allocation34_spill] sm:$0xff]  ;;  %v2019_v25 = vpop.f32.mrf.mxu1  ;;  %v9981_v51 = vpop.f32.mrf.mxu0  ;;  %v9983_v26 = vrot.slane %v4978_v5, 5  ;;  %v4984_v0 = vrot.slane %v4982_v59, 4  ;;  %v4998_v3 = vrot.slane %v4996_v49, 5 }
 0x1a9   : > { %7509 = vmatprep.mubr.bf16.mxu1 %v9784_v24  ;;  %7565 = vmatprep.mubr.bf16.mxu0 %v6639_v55  ;;  %v9979_v42 = vadd.f32 %v10647_v33, %v2007_v1  ;;  %v4995_v24 = vrot.slane %v4993_v27, 4  ;;  %v2020_v56 = vadd.f32 %v2019_v25, %v10649_v45  ;;  %v9988_v55 = vrot.slane %v5002_v2, 5  ;;  %v10652_v33 = vld [vmem:[#allocation25_spill] sm:$0xff] }
 0x1aa   : > { %v5008_v52 = vrot.slane %v5006_v41, 4  ;;  %v9991_v57 = vadd.f32 %v10650_v62, %v2028_v7  ;;  %v7220_v1 = vpop.f32.mrf.mxu1  ;;  %v9993_v35 = vpop.f32.mrf.mxu0  ;;  %v4967_v5 = vsel %vm7836_vm3, %v9932_v17, %v9915_v18  ;;  %v6640_v59 = vcombine.low %v9936_v6, %v5523_v46  ;;  %v4653_v45 = vld [vmem:[#allocation2 + $0xcc] sm:$0xf]  ;;  %v10653_v46 = vld [vmem:[#allocation27_spill] sm:$0xff] }
 0x1ab   : > { %10648 = vst [vmem:[#allocation11_spill] sm:$0xff] %v9979_v42  ;;  %v6641_v27 = vcombine.low %v5527_v38, %v5530_v8  ;;  %v6610_v49 = vrot.slane %v5377_v53, 9  ;;  %v2031_v25 = vadd.f32 %v7220_v1, %v10652_v33  ;;  %v5535_v2 = vrot.slane %v5533_v30, 4 }
 0x1ac   : > { %10651 = vst [vmem:[#allocation5_spill] sm:$0xff] %v9991_v57  ;;  %v5536_v41 = vrot.slane %v9985_v63, 5  ;;  %v10003_v7 = vadd.f32 %v9810_v50, %v2020_v56  ;;  %v2022_v62 = vpop.f32.mrf.mxu1  ;;  %v4975_v57 = vor.u32 %v4974_v11, %v9945_v16  ;;  %v4985_v42 = vor.u32 %v4984_v0, %v9983_v26  ;;  %v10008_v17 = vpop.f32.mrf.mxu0 }
 0x1ad   : > { %v4988_v18 = vshll.u32 %v9870_v21, 16  ;;  %v4999_v6 = vor.u32 %v4998_v3, %v4995_v24  ;;  %v2023_v38 = vadd.f32 %v2022_v62, %v10653_v46  ;;  %v5009_v8 = vor.u32 %v5008_v52, %v9988_v55  ;;  %v10654_v3 = vld [vmem:[#allocation10_spill] sm:$0xff] }
 0x1ae   : > { %v5012_v53 = vshll.u32 %v9917_v12, 16  ;;  %v10014_v1 = vadd.f32 %v9821_v43, %v2031_v25  ;;  %v7223_v50 = vpop.f32.mrf.mxu1  ;;  %v10017_v16 = vpop.f32.mrf.mxu0  ;;  %v5534_v21 = vsel %vm8313_vm14, %v6610_v49, %v5533_v30  ;;  %v5017_v11 = vshrl.u32 %v4653_v45, 16 }
 0x1af   : > { %v5020_v0 = vshll.u32 %v4653_v45, 16  ;;  %v5026_v24 = vshll.u32 %v9968_v9, 16  ;;  %v2044_v56 = vadd.f32 %v7223_v50, %v10654_v3  ;;  %v5537_v43 = vsel %vm8313_vm14, %v5535_v2, %v5536_v41  ;;  %v10655_v45 = vld [vmem:[#allocation13_spill] sm:$0xff] }
 0x1b0   : > { %7510 = vmatmul.mubr.bf16.gmra.mxu1 %v9813_v13  ;;  %7566 = vmatmul.mubr.bf16.gmra.mxu0 %v6640_v59  ;;  %v5030_v13 = vshrl.u32 %v9968_v9, 16  ;;  %v10028_v12 = vadd.f32 %v9842_v23, %v2023_v38  ;;  %v2035_v52 = vpop.f32.mrf.mxu1  ;;  %v6583_v59 = vcombine.low %v4957_v58, %v4967_v5  ;;  %v4976_v30 = vrot.slane %v4975_v57, 4  ;;  %v10030_v25 = vpop.f32.mrf.mxu0  ;;  %v10656_v58 = vld [vmem:[#allocation15_spill] sm:$0xff] }
 0x1b1   : > { %7513 = vmatprep.mubr.bf16.mxu1 %v9861_v20  ;;  %7569 = vmatprep.mubr.bf16.mxu0 %v6641_v27  ;;  %v4986_v49 = vrot.slane %v4985_v42, 4  ;;  %v4990_v33 = vrot.slane %v4988_v18, 5  ;;  %v2036_v62 = vadd.f32 %v2035_v52, %v10655_v45  ;;  %v5000_v46 = vrot.slane %v4999_v6, 4 }
 0x1b2   : > { %v5014_v20 = vrot.slane %v5012_v53, 5  ;;  %v10034_v27 = vadd.f32 %v9859_v10, %v2044_v56  ;;  %v7224_v40 = vpop.f32.mrf.mxu1  ;;  %v5010_v9 = vrot.slane %v5009_v8, 4  ;;  %v6642_v23 = vcombine.low %v5534_v21, %v5537_v43  ;;  %v10657_v53 = vld [vmem:[#allocation16_spill] sm:$0xff]  ;;  %v10658_v56 = vld [vmem:[#allocation17_spill] sm:$0xff] }
 0x1b3   : > { %v10036_v2 = vpop.f32.mrf.mxu0  ;;  %v5019_v41 = vrot.slane %v5017_v11, 4  ;;  %v5022_v38 = vrot.slane %v5020_v0, 5  ;;  %v2047_v57 = vadd.f32 %v7224_v40, %v10656_v58  ;;  %v5028_v42 = vrot.slane %v5026_v24, 5  ;;  %v10660_v40 = vld [vmem:[#allocation21_spill] sm:$0xff]  ;;  %v10661_v58 = vld [vmem:[#allocation23_spill] sm:$0xff] }
 0x1b4   : > { %v5032_v5 = vrot.slane %v5030_v13, 4  ;;  %v10040_v18 = vadd.f32 %v9873_v36, %v2036_v62  ;;  %v2038_v50 = vpop.f32.mrf.mxu1  ;;  %v4981_v3 = vsel %vm7836_vm3, %v4976_v30, %v9983_v26  ;;  %v4991_v11 = vsel %vm7836_vm3, %v4986_v49, %v4990_v33  ;;  %v10659_v49 = vld [vmem:[#allocation19_spill] sm:$0xff] }
 0x1b5   : > { %v10042_v6 = vpop.f32.mrf.mxu0  ;;  %v2039_v10 = vadd.f32 %v2038_v50, %v10657_v53  ;;  %v10049_v8 = vadd.f32 %v9893_v28, %v2047_v57  ;;  %v5005_v36 = vsel %vm7836_vm3, %v5000_v46, %v9988_v55  ;;  %v5015_v0 = vsel %vm7836_vm3, %v5010_v9, %v5014_v20  ;;  %v10662_v53 = vld [vmem:[#allocation26_spill] sm:$0xff] }
 0x1b6   : > { %v5036_v24 = vshll.u32 %v9985_v63, 16  ;;  %v5023_v43 = vor.u32 %v5022_v38, %v5019_v41  ;;  %v5033_v13 = vor.u32 %v5032_v5, %v5028_v42  ;;  %v6584_v62 = vcombine.low %v4981_v3, %v4991_v11 }
 0x1b7   : > { %v7227_v21 = vpop.f32.mrf.mxu1  ;;  %v7284_v26 = vpop.f32.mrf.mxu0  ;;  %v6585_v46 = vcombine.low %v5005_v36, %v5015_v0  ;;  %v10663_v0 = vld [vmem:[#allocation28_spill] sm:$0xff] }
 0x1b8   : > { %7514 = vmatmul.mubr.bf16.gmra.mxu1 %v9866_v39  ;;  %7570 = vmatmul.mubr.bf16.gmra.mxu0 %v6642_v23  ;;  %v2060_v28 = vadd.f32 %v7227_v21, %v10658_v56  ;;  %v10062_v39 = vadd.f32 %v9911_v14, %v2039_v10  ;;  %v5038_v63 = vrot.slane %v5036_v24, 5  ;;  %v5034_v23 = vrot.slane %v5033_v13, 4  ;;  %v10664_v13 = vld [vmem:[#allocation29_spill] sm:$0xff] }
 0x1b9   : > { %7517 = vmatprep.mubr.bf16.mxu1 %v6583_v59  ;;  %v2051_v52 = vpop.f32.mrf.mxu1  ;;  %v2539_v30 = vpop.f32.mrf.mxu0  ;;  %v5024_v59 = vrot.slane %v5023_v43, 4 }
 0x1ba   : > { %v2052_v33 = vadd.f32 %v2051_v52, %v10659_v49  ;;  %v10066_v55 = vadd.f32 %v9930_v37, %v2060_v28 }
 0x1bb   : > { %v7228_v45 = vpop.f32.mrf.mxu1  ;;  %v7351_v20 = vpop.f32.mrf.mxu0  ;;  %v5029_v3 = vsel %vm7836_vm3, %v5024_v59, %v5028_v42 }
 0x1bc   : > { %v2063_v9 = vadd.f32 %v7228_v45, %v10660_v40  ;;  %v10070_v41 = vadd.f32 %v9943_v61, %v2052_v33  ;;  %v5039_v61 = vsel %vm7836_vm3, %v5034_v23, %v5038_v63  ;;  %v10665_v33 = vld [vmem:[#allocation30_spill] sm:$0xff]  ;;  %v10667_v23 = vld [vmem:[#allocation3_spill] sm:$0xff] }
 0x1bd   : > { %v2054_v14 = vpop.f32.mrf.mxu1  ;;  %v3564_v38 = vpop.f32.mrf.mxu0  ;;  %v6586_v28 = vcombine.low %v5029_v3, %v5039_v61  ;;  %v10669_v61 = vld [vmem:[#allocation33_spill] sm:$0xff] }
 0x1be   : > { %v2055_v57 = vadd.f32 %v2054_v14, %v10661_v58  ;;  %v10074_v5 = vadd.f32 %v9958_v54, %v2063_v9 }
 0x1bf   : > { %v7231_v37 = vpop.f32.mrf.mxu1  ;;  %v7352_v50 = vpop.f32.mrf.mxu0 }
 0x1c0   : > { %7518 = vmatmul.mubr.bf16.gmra.mxu1 %v6584_v62  ;;  %v2076_v10 = vadd.f32 %v7231_v37, %v10662_v53  ;;  %v10082_v21 = vadd.f32 %v9981_v51, %v2055_v57  ;;  %v10668_v37 = vld [vmem:[#allocation4_spill] sm:$0xff] }
 0x1c1   : > { %7521 = vmatprep.mubr.bf16.mxu1 %v6585_v46  ;;  %v2067_v11 = vpop.f32.mrf.mxu1  ;;  %v3567_v36 = vpop.f32.mrf.mxu0 }
 0x1c2   : > { %v2068_v54 = vadd.f32 %v2067_v11, %v10663_v0  ;;  %v10086_v24 = vadd.f32 %v9993_v35, %v2076_v10  ;;  %v10666_v35 = vld [vmem:[#allocation32_spill] sm:$0xff] }
 0x1c3   : > { %v7232_v56 = vpop.f32.mrf.mxu1  ;;  %v7355_v43 = vpop.f32.mrf.mxu0 }
 0x1c4   : > { %v2079_v52 = vadd.f32 %v7232_v56, %v10664_v13  ;;  %v10090_v42 = vadd.f32 %v10008_v17, %v2068_v54 }
 0x1c5   : > { %v2070_v22 = vpop.f32.mrf.mxu1  ;;  %v3580_v49 = vpop.f32.mrf.mxu0 }
 0x1c6   : > { %v2071_v51 = vadd.f32 %v2070_v22, %v10665_v33  ;;  %v10094_v45 = vadd.f32 %v10017_v16, %v2079_v52 }
 0x1c7   : > { %v7356_v46 = vpop.f32.mrf.mxu0 }
 0x1c8   : > { %v7235_v62 = vpop.f32.mrf.mxu1  ;;  %7522 = vmatmul.mubr.bf16.gmra.mxu1 %v6586_v28  ;;  %v10098_v40 = vadd.f32 %v10030_v25, %v2071_v51 }
 0x1c9   : > { %v2092_v63 = vadd.f32 %v7235_v62, %v10666_v35  ;;  %v3583_v59 = vpop.f32.mrf.mxu0 }
 0x1ca   : > { %v2083_v9 = vpop.f32.mrf.mxu1 }
 0x1cb   : > { %v2084_v17 = vadd.f32 %v2083_v9, %v10667_v23  ;;  %v10102_v14 = vadd.f32 %v10036_v2, %v2092_v63  ;;  %v7359_v57 = vpop.f32.mrf.mxu0 }
 0x1cc   : > { %v7236_v58 = vpop.f32.mrf.mxu1 }
 0x1cd   : > { %v2095_v16 = vadd.f32 %v7236_v58, %v10668_v37  ;;  %v10106_v53 = vadd.f32 %v10042_v6, %v2084_v17  ;;  %v3596_v3 = vpop.f32.mrf.mxu0 }
 0x1ce   : > { %v2086_v10 = vpop.f32.mrf.mxu1 }
 0x1cf   : > { %v2087_v11 = vadd.f32 %v2086_v10, %v10669_v61  ;;  %v10109_v25 = vadd.f32 %v7284_v26, %v2095_v16  ;;  %v7360_v54 = vpop.f32.mrf.mxu0 }
 0x1d0   : > { %v7303_v0 = vpop.f32.mrf.mxu1 }
 0x1d1   : > { %v2939_v56 = vadd.f32 %v7303_v0, %v9877_v44  ;;  %v10112_v28 = vadd.f32 %v2539_v30, %v2087_v11  ;;  %v3599_v13 = vpop.f32.mrf.mxu0 }
 0x1d2   : > { %v2810_v2 = vpop.f32.mrf.mxu1 }
 0x1d3   : > { %v2937_v52 = vadd.f32 %v2810_v2, %v9884_v15  ;;  %v10115_v22 = vadd.f32 %v7351_v20, %v2939_v56  ;;  %v7363_v33 = vpop.f32.mrf.mxu0 }
 0x1d4   : > { %v7304_v6 = vpop.f32.mrf.mxu1 }
 0x1d5   : > { %v2940_v51 = vadd.f32 %v7304_v6, %v9887_v60  ;;  %v10118_v62 = vadd.f32 %v3564_v38, %v2937_v52  ;;  %v3612_v35 = vpop.f32.mrf.mxu0 }
 0x1d6   : > { %v2813_v26 = vpop.f32.mrf.mxu1 }
 0x1d7   : > { %v2938_v63 = vadd.f32 %v2813_v26, %v9900_v29  ;;  %v10121_v9 = vadd.f32 %v7352_v50, %v2940_v51  ;;  %v7364_v30 = vpop.f32.mrf.mxu0  ;;  %v10670_v26 = vld [vmem:[#allocation11_spill] sm:$0xff] }
 0x1d8   : > { %v7307_v44 = vpop.f32.mrf.mxu1 }
 0x1d9   : > { %v2943_v23 = vadd.f32 %v7307_v44, %v9903_v34  ;;  %v10124_v17 = vadd.f32 %v3567_v36, %v2938_v63  ;;  %v3615_v20 = vpop.f32.mrf.mxu0 }
 0x1da   : > { %v2826_v15 = vpop.f32.mrf.mxu1 }
 0x1db   : > { %v2941_v58 = vadd.f32 %v2826_v15, %v9909_v4  ;;  %v10127_v37 = vadd.f32 %v7355_v43, %v2943_v23  ;;  %v7367_v38 = vpop.f32.mrf.mxu0  ;;  %v10671_v23 = vld [vmem:[#allocation5_spill] sm:$0xff] }
 0x1dc   : > { %v7308_v60 = vpop.f32.mrf.mxu1 }
 0x1dd   : > { %v2944_v16 = vadd.f32 %v7308_v60, %v9920_v48  ;;  %v10130_v10 = vadd.f32 %v3580_v49, %v2941_v58  ;;  %v3628_v50 = vpop.f32.mrf.mxu0 }
 0x1de   : > { %v2829_v29 = vpop.f32.mrf.mxu1 }
 0x1df   : > { %v2942_v61 = vadd.f32 %v2829_v29, %v9923_v47  ;;  %v10133_v11 = vadd.f32 %v7356_v46, %v2944_v16  ;;  %v7368_v36 = vpop.f32.mrf.mxu0 }
 0x1e0   : > { %v7311_v34 = vpop.f32.mrf.mxu1 }
 0x1e1   : > { %v2947_v0 = vadd.f32 %v7311_v34, %v9928_v19  ;;  %v10136_v56 = vadd.f32 %v3583_v59, %v2942_v61  ;;  %v3631_v43 = vpop.f32.mrf.mxu0 }
 0x1e2   : > { %v2842_v4 = vpop.f32.mrf.mxu1 }
 0x1e3   : > { %v2945_v2 = vadd.f32 %v2842_v4, %v9941_v32  ;;  %v10139_v52 = vadd.f32 %v7359_v57, %v2947_v0  ;;  %v7371_v49 = vpop.f32.mrf.mxu0 }
 0x1e4   : > { %v7312_v48 = vpop.f32.mrf.mxu1 }
 0x1e5   : > { %v2948_v6 = vadd.f32 %v7312_v48, %v9952_v31  ;;  %v10142_v51 = vadd.f32 %v3596_v3, %v2945_v2  ;;  %v3644_v46 = vpop.f32.mrf.mxu0 }
 0x1e6   : > { %v2845_v47 = vpop.f32.mrf.mxu1 }
 0x1e7   : > { %v2946_v63 = vadd.f32 %v2845_v47, %v10670_v26  ;;  %v10145_v44 = vadd.f32 %v7360_v54, %v2948_v6  ;;  %v7372_v59 = vpop.f32.mrf.mxu0 }
 0x1e8   : > { %v7315_v19 = vpop.f32.mrf.mxu1 }
 0x1e9   : > { %v2951_v15 = vadd.f32 %v7315_v19, %v10671_v23  ;;  %v10148_v58 = vadd.f32 %v3599_v13, %v2946_v63  ;;  %v3647_v57 = vpop.f32.mrf.mxu0 }
 0x1ea   : > { %v2858_v32 = vpop.f32.mrf.mxu1 }
 0x1eb   : > { %v2949_v60 = vadd.f32 %v2858_v32, %v10003_v7  ;;  %v10151_v16 = vadd.f32 %v7363_v33, %v2951_v15  ;;  %v7375_v3 = vpop.f32.mrf.mxu0 }
 0x1ec   : > { %v7316_v31 = vpop.f32.mrf.mxu1 }
 0x1ed   : > { %v2952_v29 = vadd.f32 %v7316_v31, %v10014_v1  ;;  %v10154_v61 = vadd.f32 %v3612_v35, %v2949_v60  ;;  %v3660_v34 = vpop.f32.mrf.mxu0 }
 0x1ee   : > { %v2861_v54 = vpop.f32.mrf.mxu1 }
 0x1ef   : > { %v2950_v0 = vadd.f32 %v2861_v54, %v10028_v12  ;;  %v10157_v4 = vadd.f32 %v7364_v30, %v2952_v29  ;;  %v7376_v2 = vpop.f32.mrf.mxu0 }
 0x1f0   : > { %v7319_v13 = vpop.f32.mrf.mxu1 }
 0x1f1   : > { %v2955_v48 = vadd.f32 %v7319_v13, %v10034_v27  ;;  %v10160_v6 = vadd.f32 %v3615_v20, %v2950_v0  ;;  %v3663_v35 = vpop.f32.mrf.mxu0 }
 0x1f2   : > { %v2874_v7 = vpop.f32.mrf.mxu1 }
 0x1f3   : > { %v2953_v33 = vadd.f32 %v2874_v7, %v10040_v18  ;;  %v10163_v47 = vadd.f32 %v7367_v38, %v2955_v48 }
 0x1f4   : > { %v7320_v1 = vpop.f32.mrf.mxu1 }
 0x1f5   : > { %v2956_v26 = vadd.f32 %v7320_v1, %v10049_v8  ;;  %v10166_v63 = vadd.f32 %v3628_v50, %v2953_v33 }
 0x1f6   : > { %v2877_v12 = vpop.f32.mrf.mxu1 }
 0x1f7   : > { %v2954_v30 = vadd.f32 %v2877_v12, %v10062_v39  ;;  %v10169_v19 = vadd.f32 %v7368_v36, %v2956_v26  ;;  %v7379_v27 = vpop.f32.mrf.mxu0 }
 0x1f8   : > { %v7323_v23 = vpop.f32.mrf.mxu1 }
 0x1f9   : > { %v2959_v20 = vadd.f32 %v7323_v23, %v10066_v55  ;;  %v10172_v15 = vadd.f32 %v3631_v43, %v2954_v30  ;;  %v3676_v38 = vpop.f32.mrf.mxu0 }
 0x1fa   : > { %v2890_v18 = vpop.f32.mrf.mxu1 }
 0x1fb   : > { %v2957_v32 = vadd.f32 %v2890_v18, %v10070_v41  ;;  %v10175_v60 = vadd.f32 %v7371_v49, %v2959_v20  ;;  %v7380_v50 = vpop.f32.mrf.mxu0 }
 0x1fc   : > { %v7324_v8 = vpop.f32.mrf.mxu1 }
 0x1fd   : > { %v2960_v31 = vadd.f32 %v7324_v8, %v10074_v5  ;;  %v10178_v29 = vadd.f32 %v3644_v46, %v2957_v32  ;;  %v3679_v36 = vpop.f32.mrf.mxu0 }
 0x1fe   : > { %v2893_v39 = vpop.f32.mrf.mxu1 }
 0x1ff   : > { %10672 = vst [vmem:[#allocation6_spill] sm:$0xff] %v10178_v29  ;;  %v2958_v54 = vadd.f32 %v2893_v39, %v10082_v21  ;;  %v10181_v0 = vadd.f32 %v7372_v59, %v2960_v31  ;;  %v7447_v43 = vpop.f32.mrf.mxu0 }
 0x200   : > { %v7327_v55 = vpop.f32.mrf.mxu1 }
 0x201   : > { %10673 = vst [vmem:[#allocation7_spill] sm:$0xff] %v10181_v0  ;;  %v2963_v13 = vadd.f32 %v7327_v55, %v10086_v24  ;;  %v10184_v48 = vadd.f32 %v3647_v57, %v2958_v54  ;;  %v4449_v49 = vpop.f32.mrf.mxu0 }
 0x202   : > { %v2906_v41 = vpop.f32.mrf.mxu1 }
 0x203   : > { %10674 = vst [vmem:[#allocation8_spill] sm:$0xff] %v10184_v48  ;;  %v2961_v7 = vadd.f32 %v2906_v41, %v10090_v42  ;;  %v10187_v33 = vadd.f32 %v7375_v3, %v2963_v13  ;;  %v10189_v46 = vpop.f32.mrf.mxu0 }
 0x204   : > { %v7328_v5 = vpop.f32.mrf.mxu1 }
 0x205   : > { %v2964_v1 = vadd.f32 %v7328_v5, %v10094_v45  ;;  %v10192_v21 = vadd.f32 %v3660_v34, %v2961_v7  ;;  %v10194_v26 = vpop.f32.mrf.mxu0 }
 0x206   : > { %v2909_v59 = vpop.f32.mrf.mxu1 }
 0x207   : > { %10675 = vst [vmem:[#allocation9_spill] sm:$0xff] %v10192_v21  ;;  %v2962_v24 = vadd.f32 %v2909_v59, %v10098_v40  ;;  %v10197_v57 = vadd.f32 %v7376_v2, %v2964_v1  ;;  %v7451_v30 = vpop.f32.mrf.mxu0 }
 0x208   : > { %v7331_v12 = vpop.f32.mrf.mxu1 }
 0x209   : > { %10676 = vst [vmem:[#allocation12_spill] sm:$0xff] %v10197_v57  ;;  %v2967_v42 = vadd.f32 %v7331_v12, %v10102_v14  ;;  %v10200_v3 = vadd.f32 %v3663_v35, %v2962_v24  ;;  %v10202_v20 = vpop.f32.mrf.mxu0 }
 0x20a   : > { %v2922_v23 = vpop.f32.mrf.mxu1 }
 0x20b   : > { %10677 = vst [vmem:[#allocation14_spill] sm:$0xff] %v10200_v3  ;;  %v2965_v45 = vadd.f32 %v2922_v23, %v10106_v53  ;;  %v10205_v34 = vadd.f32 %v7379_v27, %v2967_v42  ;;  %v10207_v32 = vpop.f32.mrf.mxu0 }
 0x20c   : > { %v7332_v18 = vpop.f32.mrf.mxu1 }
 0x20d   : > { %v2968_v40 = vadd.f32 %v7332_v18, %v10109_v25  ;;  %v10210_v2 = vadd.f32 %v3676_v38, %v2965_v45  ;;  %v10212_v31 = vpop.f32.mrf.mxu0 }
 0x20e   : > { %v2925_v8 = vpop.f32.mrf.mxu1 }
 0x20f   : > { %10678 = vst [vmem:[#allocation18_spill] sm:$0xff] %v10210_v2  ;;  %v2966_v14 = vadd.f32 %v2925_v8, %v10112_v28  ;;  %v10215_v35 = vadd.f32 %v7380_v50, %v2968_v40  ;;  %v7455_v54 = vpop.f32.mrf.mxu0 }
 0x210   : > { %v7399_v39 = vpop.f32.mrf.mxu1 }
 0x211   : > { %10679 = vst [vmem:[#allocation20_spill] sm:$0xff] %v10215_v35  ;;  %v4191_v53 = vadd.f32 %v7399_v39, %v10115_v22  ;;  %v10218_v27 = vadd.f32 %v3679_v36, %v2966_v14  ;;  %v10220_v13 = vpop.f32.mrf.mxu0 }
 0x212   : > { %v4062_v55 = vpop.f32.mrf.mxu1 }
 0x213   : > { %10680 = vst [vmem:[#allocation31_spill] sm:$0xff] %v10218_v27  ;;  %v4189_v25 = vadd.f32 %v4062_v55, %v10118_v62  ;;  %v10223_v38 = vadd.f32 %v7447_v43, %v4191_v53  ;;  %v10227_v7 = vpop.f32.mrf.mxu0 }
 0x214   : > { %v10225_v41 = vpop.f32.mrf.mxu1 }
 0x215   : > { %v10229_v28 = vadd.f32 %v4449_v49, %v4189_v25  ;;  %v10233_v5 = vpop.f32.mrf.mxu0 }
 0x216   : > { %v10231_v50 = vpop.f32.mrf.mxu1 }
 0x217   : > { %v7459_v36 = vpop.f32.mrf.mxu0 }
 0x218   : > { %v7403_v22 = vpop.f32.mrf.mxu1 }
 0x219   : > { %v4195_v1 = vadd.f32 %v7403_v22, %v10127_v37  ;;  %v10238_v24 = vpop.f32.mrf.mxu0 }
 0x21a   : > { %v10236_v59 = vpop.f32.mrf.mxu1 }
 0x21b   : > { %v10240_v62 = vadd.f32 %v7451_v30, %v4195_v1  ;;  %v10244_v12 = vpop.f32.mrf.mxu0 }
 0x21c   : > { %v10242_v43 = vpop.f32.mrf.mxu1 }
 0x21d   : > { %v10248_v42 = vpop.f32.mrf.mxu0 }
 0x21e   : > { %v10246_v49 = vpop.f32.mrf.mxu1 }
 0x21f   : > { %v7463_v45 = vpop.f32.mrf.mxu0 }
 0x220   : > { %v7407_v23 = vpop.f32.mrf.mxu1 }
 0x221   : > { %v4199_v18 = vadd.f32 %v7407_v23, %v10139_v52  ;;  %v10253_v37 = vpop.f32.mrf.mxu0 }
 0x222   : > { %v10251_v40 = vpop.f32.mrf.mxu1  ;;  %10681 = vst [vmem:[#allocation22_spill] sm:$0xff] %v10253_v37 }
 0x223   : > { %v10255_v8 = vadd.f32 %v7455_v54, %v4199_v18  ;;  %v10259_v14 = vpop.f32.mrf.mxu0 }
 0x224   : > { %v10257_v30 = vpop.f32.mrf.mxu1  ;;  %10682 = vst [vmem:[#allocation34_spill] sm:$0xff] %v10259_v14 }
 0x225   : > { %v10263_v53 = vpop.f32.mrf.mxu0 }
 0x226   : > { %v10261_v39 = vpop.f32.mrf.mxu1  ;;  %10683 = vst [vmem:[#allocation24_spill] sm:$0xff] %v10263_v53 }
 0x227   : > { %v7467_v25 = vpop.f32.mrf.mxu0 }
 0x228   : > { %v7411_v55 = vpop.f32.mrf.mxu1 }
 0x229   : > { %v4203_v22 = vadd.f32 %v7411_v55, %v10151_v16  ;;  %v10268_v52 = vpop.f32.mrf.mxu0 }
 0x22a   : > { %v10266_v1 = vpop.f32.mrf.mxu1  ;;  %10684 = vst [vmem:[#allocation35_spill] sm:$0xff] %v10268_v52 }
 0x22b   : > { %v10270_v23 = vadd.f32 %v7459_v36, %v4203_v22  ;;  %v10274_v18 = vpop.f32.mrf.mxu0 }
 0x22c   : > { %v10272_v54 = vpop.f32.mrf.mxu1  ;;  %10685 = vst [vmem:[#allocation25_spill] sm:$0xff] %v10274_v18 }
 0x22d   : > { %v10278_v35 = vpop.f32.mrf.mxu0 }
 0x22e   : > { %v10276_v27 = vpop.f32.mrf.mxu1  ;;  %10686 = vst [vmem:[#allocation27_spill] sm:$0xff] %v10278_v35 }
 0x22f   : > { %v7471_v3 = vpop.f32.mrf.mxu0 }
 0x230   : > { %v7415_v2 = vpop.f32.mrf.mxu1 }
 0x231   : > { %v4207_v57 = vadd.f32 %v7415_v2, %v10163_v47  ;;  %v10283_v16 = vpop.f32.mrf.mxu0 }
 0x232   : > { %v10281_v21 = vpop.f32.mrf.mxu1  ;;  %10687 = vst [vmem:[#allocation10_spill] sm:$0xff] %v10283_v16 }
 0x233   : > { %v10285_v55 = vadd.f32 %v7463_v45, %v4207_v57  ;;  %v10289_v22 = vpop.f32.mrf.mxu0 }
 0x234   : > { %v10287_v36 = vpop.f32.mrf.mxu1  ;;  %10689 = vst [vmem:[#allocation15_spill] sm:$0xff] %v10289_v22 }
 0x235   : > { %10688 = vst [vmem:[#allocation13_spill] sm:$0xff] %v10285_v55  ;;  %v10293_v18 = vpop.f32.mrf.mxu0 }
 0x236   : > { %v10291_v52 = vpop.f32.mrf.mxu1  ;;  %10691 = vst [vmem:[#allocation17_spill] sm:$0xff] %v10293_v18 }
 0x237   : > { %10690 = vst [vmem:[#allocation16_spill] sm:$0xff] %v10291_v52  ;;  %v7475_v35 = vpop.f32.mrf.mxu0 }
 0x238   : > { %v7419_v48 = vpop.f32.mrf.mxu1 }
 0x239   : > { %v4211_v53 = vadd.f32 %v7419_v48, %v10175_v60  ;;  %v10298_v47 = vpop.f32.mrf.mxu0 }
 0x23a   : > { %v10296_v0 = vpop.f32.mrf.mxu1  ;;  %10693 = vst [vmem:[#allocation21_spill] sm:$0xff] %v10298_v47 }
 0x23b   : > { %10692 = vst [vmem:[#allocation19_spill] sm:$0xff] %v10296_v0  ;;  %v10300_v2 = vadd.f32 %v7467_v25, %v4211_v53  ;;  %v10304_v45 = vpop.f32.mrf.mxu0 }
 0x23c   : > { %v10302_v57 = vpop.f32.mrf.mxu1  ;;  %10696 = vst [vmem:[#allocation28_spill] sm:$0xff] %v10304_v45 }
 0x23d   : > { %10694 = vst [vmem:[#allocation23_spill] sm:$0xff] %v10300_v2  ;;  %10695 = vst [vmem:[#allocation26_spill] sm:$0xff] %v10302_v57  ;;  %v10308_v22 = vpop.f32.mrf.mxu0 }
 0x23e   : > { %v10306_v16 = vpop.f32.mrf.mxu1  ;;  %10698 = vst [vmem:[#allocation30_spill] sm:$0xff] %v10308_v22 }
 0x23f   : > { %10697 = vst [vmem:[#allocation29_spill] sm:$0xff] %v10306_v16  ;;  %v7543_v18 = vpop.f32.mrf.mxu0 }
 0x240   : > { %v7423_v29 = vpop.f32.mrf.mxu1 }
 0x241   : > { %v4215_v55 = vadd.f32 %v7423_v29, %v10187_v33  ;;  %v5701_v60 = vpop.f32.mrf.mxu0 }
 0x242   : > { %v10311_v14 = vpop.f32.mrf.mxu1 }
 0x243   : > { %10699 = vst [vmem:[#allocation32_spill] sm:$0xff] %v10311_v14  ;;  %v10313_v48 = vadd.f32 %v7471_v3, %v4215_v55  ;;  %v7544_v53 = vpop.f32.mrf.mxu0  ;;  %v4193_v14 = vadd.f32 %v10236_v59, %v10130_v10 }
 0x244   : > { %v10315_v47 = vpop.f32.mrf.mxu1 }
 0x245   : > { %10700 = vst [vmem:[#allocation3_spill] sm:$0xff] %v10313_v48  ;;  %10701 = vst [vmem:[#allocation4_spill] sm:$0xff] %v10315_v47  ;;  %v5704_v2 = vpop.f32.mrf.mxu0  ;;  %v4192_v48 = vadd.f32 %v10225_v41, %v10121_v9 }
 0x246   : > { %v10317_v25 = vpop.f32.mrf.mxu1 }
 0x247   : > { %10702 = vst [vmem:[#allocation33_spill] sm:$0xff] %v10317_v25  ;;  %v7547_v57 = vpop.f32.mrf.mxu0 }
 0x248   : > { %v7427_v45 = vpop.f32.mrf.mxu1 }
 0x249   : > { %v4219_v16 = vadd.f32 %v7427_v45, %v10205_v34  ;;  %v5717_v0 = vpop.f32.mrf.mxu0  ;;  %v4190_v34 = vadd.f32 %v10231_v50, %v10124_v17  ;;  %v4196_v17 = vadd.f32 %v10242_v43, %v10133_v11 }
 0x24a   : > { %v10320_v22 = vpop.f32.mrf.mxu1 }
 0x24b   : > { %10703 = vst [vmem:[#allocation11_spill] sm:$0xff] %v10320_v22  ;;  %v10322_v37 = vadd.f32 %v7475_v35, %v4219_v16  ;;  %v7548_v33 = vpop.f32.mrf.mxu0  ;;  %v4577_v41 = vadd.f32 %v10194_v26, %v4190_v34  ;;  %v4197_v34 = vadd.f32 %v10251_v40, %v10142_v51 }
 0x24c   : > { %v10324_v29 = vpop.f32.mrf.mxu1 }
 0x24d   : > { %10704 = vst [vmem:[#allocation5_spill] sm:$0xff] %v10322_v37  ;;  %10705 = vst [vmem:[#allocation36_spill] sm:$0xff] %v10324_v29  ;;  %v10328_v55 = vpop.f32.mrf.mxu0  ;;  %v4579_v37 = vadd.f32 %v10189_v46, %v4192_v48  ;;  %v4194_v46 = vadd.f32 %v10246_v49, %v10136_v56  ;;  %v4583_v56 = vadd.f32 %v10207_v32, %v4196_v17 }
 0x24e   : > { %v10326_v3 = vpop.f32.mrf.mxu1 }
 0x24f   : > { %10706 = vst [vmem:[#allocation37_spill] sm:$0xff] %v10326_v3 }
 0x250   : > { %v7495_v25 = vpop.f32.mrf.mxu1  ;;  %v10332_v47 = vpop.f32.mrf.mxu0 }
 0x251   : > { %v5332_v35 = vadd.f32 %v7495_v25, %v10223_v38 }
 0x252   : > { %v5203_v45 = vpop.f32.mrf.mxu1  ;;  %v10336_v22 = vpop.f32.mrf.mxu0 }
 0x253   : > { %v5330_v16 = vadd.f32 %v5203_v45, %v10229_v28  ;;  %v5830_v38 = vadd.f32 %v7543_v18, %v5332_v35 }
 0x254   : > { %v7496_v3 = vpop.f32.mrf.mxu1  ;;  %v10341_v29 = vpop.f32.mrf.mxu0 }
 0x255   : > { %v5333_v9 = vadd.f32 %v7496_v3, %v4579_v37  ;;  %v5828_v25 = vadd.f32 %v5701_v60, %v5330_v16  ;;  %v4580_v37 = vadd.f32 %v10202_v20, %v4193_v14  ;;  %v6059_v20 = vmul.f32 %v5830_v38, %v5830_v38 }
 0x256   : > { %v5206_v50 = vpop.f32.mrf.mxu1  ;;  %v10348_v52 = vpop.f32.mrf.mxu0 }
 0x257   : > { %v5831_v28 = vadd.f32 %v7544_v53, %v5333_v9  ;;  %v5331_v45 = vadd.f32 %v5206_v50, %v4577_v41  ;;  %v6057_v60 = vmul.f32 %v5828_v25, %v5828_v25  ;;  %v4200_v41 = vadd.f32 %v10257_v30, %v10145_v44 }
 0x258   : > { %v7499_v10 = vpop.f32.mrf.mxu1  ;;  %v10359_v26 = vpop.f32.mrf.mxu0 }
 0x259   : > { %v6823_v11 = vpack.c.bf16 %v5831_v28, %v5830_v38  ;;  %v5829_v59 = vadd.f32 %v5704_v2, %v5331_v45  ;;  %v5336_v43 = vadd.f32 %v7499_v10, %v10240_v62  ;;  %v4581_v62 = vadd.f32 %v10212_v31, %v4194_v46 }
 0x25a   : > { %v5219_v18 = vpop.f32.mrf.mxu1  ;;  %v10364_v49 = vpop.f32.mrf.mxu0  ;;  %v6060_v17 = vmul.f32 %v5831_v28, %v5831_v28 }
 0x25b   : > { %6910 = vst [vmem:[%s10357_s11 + $0x8] sm:$0xff] %v6823_v11   ;;  %v6818_v48 = vpack.c.bf16 %v5829_v59, %v5828_v25  ;;  %v6020_v53 = vadd.f32 %v5829_v59, %v5828_v25  ;;  %v6058_v3 = vmul.f32 %v5829_v59, %v5829_v59  ;;  %v5334_v35 = vadd.f32 %v5219_v18, %v4580_v37 }
 0x25c   : > { %v7500_v2 = vpop.f32.mrf.mxu1  ;;  %v10370_v16 = vpop.f32.mrf.mxu0  ;;  %v5834_v50 = vadd.f32 %v7547_v57, %v5336_v43  ;;  %v4198_v11 = vadd.f32 %v10261_v39, %v10148_v58  ;;  %v4584_v59 = vadd.f32 %v10220_v13, %v4197_v34  ;;  %v4587_v39 = vadd.f32 %v10227_v7, %v4200_v41 }
 0x25d   : > { %6819 = vst [vmem:[%s10357_s11] sm:$0xff] %v6818_v48   ;;  %v6021_v14 = vadd.f32 %v6020_v53, %v5830_v38  ;;  %v6089_v32 = vadd.f32 %v6058_v3, %v6057_v60  ;;  %v5337_v9 = vadd.f32 %v7500_v2, %v4583_v56  ;;  %v5832_v25 = vadd.f32 %v5717_v0, %v5334_v35 }
 0x25e   : > { %v5222_v45 = vpop.f32.mrf.mxu1  ;;  %v10375_v10 = vpop.f32.mrf.mxu0  ;;  %v4204_v34 = vadd.f32 %v10272_v54, %v10157_v4  ;;  %v4585_v2 = vadd.f32 %v10233_v5, %v4198_v11 }
 0x25f   : > { %v6090_v51 = vadd.f32 %v6089_v32, %v6059_v20  ;;  %v6022_v40 = vadd.f32 %v6021_v14, %v5831_v28  ;;  %v5835_v31 = vadd.f32 %v7548_v33, %v5337_v9  ;;  %v5335_v46 = vadd.f32 %v5222_v45, %v4581_v62 }
 0x260   : > { %v7503_v38 = vpop.f32.mrf.mxu1  ;;  %v10380_v37 = vpop.f32.mrf.mxu0  ;;  %v6061_v30 = vmul.f32 %v5832_v25, %v5832_v25  ;;  %v6063_v62 = vmul.f32 %v5834_v50, %v5834_v50 }
 0x261   : > { %v6023_v44 = vadd.f32 %v6022_v40, %v5832_v25  ;;  %v6091_v57 = vadd.f32 %v6090_v51, %v6060_v17  ;;  %v6833_v0 = vpack.c.bf16 %v5835_v31, %v5834_v50  ;;  %v5833_v43 = vadd.f32 %v10328_v55, %v5335_v46 }
 0x262   : > { %v5235_v18 = vpop.f32.mrf.mxu1  ;;  %v10383_v56 = vpop.f32.mrf.mxu0  ;;  %v5340_v28 = vadd.f32 %v7503_v38, %v10255_v8  ;;  %v4201_v55 = vadd.f32 %v10266_v1, %v10154_v61  ;;  %v6064_v1 = vmul.f32 %v5835_v31, %v5835_v31  ;;  %v4591_v46 = vadd.f32 %v10244_v12, %v4204_v34 }
 0x263   : > { %v6092_v33 = vadd.f32 %v6091_v57, %v6061_v30  ;;  %6912 = vst [vmem:[%s10357_s11 + $0x18] sm:$0xff] %v6833_v0   ;;  %v5338_v58 = vadd.f32 %v5235_v18, %v4584_v59  ;;  %v6828_v13 = vpack.c.bf16 %v5833_v43, %v5832_v25  ;;  %v6024_v60 = vadd.f32 %v6023_v44, %v5833_v43 }
 0x264   : > { %v6062_v48 = vmul.f32 %v5833_v43, %v5833_v43  ;;  %v7504_v53 = vpop.f32.mrf.mxu1  ;;  %v10388_v3 = vpop.f32.mrf.mxu0  ;;  %v5838_v9 = vadd.f32 %v10332_v47, %v5340_v28  ;;  %v4588_v45 = vadd.f32 %v10238_v24, %v4201_v55  ;;  %v4205_v24 = vadd.f32 %v10281_v21, %v10166_v63 }
 0x265   : > { %v5341_v35 = vadd.f32 %v7504_v53, %v4587_v39  ;;  %6911 = vst [vmem:[%s10357_s11 + $0x10] sm:$0xff] %v6828_v13   ;;  %v6025_v8 = vadd.f32 %v6024_v60, %v5834_v50  ;;  %v5836_v7 = vadd.f32 %v10336_v22, %v5338_v58  ;;  %v4202_v50 = vadd.f32 %v10276_v27, %v10160_v6 }
 0x266   : > { %v6093_v20 = vadd.f32 %v6092_v33, %v6062_v48  ;;  %v5238_v14 = vpop.f32.mrf.mxu1  ;;  %v10397_v32 = vpop.f32.mrf.mxu0  ;;  %v4208_v57 = vadd.f32 %v10287_v36, %v10169_v19  ;;  %v6067_v43 = vmul.f32 %v5838_v9, %v5838_v9 }
 0x267   : > { %v5839_v41 = vadd.f32 %v10341_v29, %v5341_v35  ;;  %v5339_v61 = vadd.f32 %v5238_v14, %v4585_v2  ;;  %v6026_v54 = vadd.f32 %v6025_v8, %v5835_v31  ;;  %v6065_v47 = vmul.f32 %v5836_v7, %v5836_v7  ;;  %v10710_v14 = vld [vmem:[#allocation13_spill] sm:$0xff] }
 0x268   : > { %v6094_v4 = vadd.f32 %v6093_v20, %v6063_v62  ;;  %v7507_v17 = vpop.f32.mrf.mxu1  ;;  %v10401_v5 = vpop.f32.mrf.mxu0  ;;  %v4589_v0 = vadd.f32 %v10248_v42, %v4202_v50  ;;  %v10707_v42 = vld [vmem:[#allocation16_spill] sm:$0xff]  ;;  %v10709_v62 = vld [vmem:[#allocation34_spill] sm:$0xff]  ;;  %v10713_v50 = vld [vmem:[#allocation7_spill] sm:$0xff] }
 0x269   : > { %v6843_v25 = vpack.c.bf16 %v5839_v41, %v5838_v9  ;;  %v5837_v22 = vadd.f32 %v10348_v52, %v5339_v61  ;;  %v6027_v51 = vadd.f32 %v6026_v54, %v5836_v7  ;;  %v5344_v59 = vadd.f32 %v7507_v17, %v10270_v23  ;;  %v10712_v54 = vld [vmem:[#allocation19_spill] sm:$0xff] }
 0x26a   : > { %v6095_v29 = vadd.f32 %v6094_v4, %v6064_v1  ;;  %v5251_v40 = vpop.f32.mrf.mxu1  ;;  %v10408_v11 = vpop.f32.mrf.mxu0  ;;  %v6068_v63 = vmul.f32 %v5839_v41, %v5839_v41  ;;  %v4206_v48 = vadd.f32 %v10707_v42, %v10172_v15  ;;  %v4595_v8 = vadd.f32 %v10709_v62, %v4208_v57 }
 0x26b   : > { %6914 = vst [vmem:[%s10357_s11 + $0x28] sm:$0xff] %v6843_v25   ;;  %v6838_v31 = vpack.c.bf16 %v5837_v22, %v5836_v7  ;;  %v6066_v38 = vmul.f32 %v5837_v22, %v5837_v22  ;;  %v5342_v6 = vadd.f32 %v5251_v40, %v4588_v45  ;;  %v6028_v44 = vadd.f32 %v6027_v51, %v5837_v22  ;;  %v10714_v25 = vld [vmem:[#allocation26_spill] sm:$0xff]  ;;  %v10715_v51 = vld [vmem:[#allocation24_spill] sm:$0xff] }
 0x26c   : > { %v6096_v27 = vadd.f32 %v6095_v29, %v6065_v47  ;;  %v7508_v52 = vpop.f32.mrf.mxu1  ;;  %v10412_v30 = vpop.f32.mrf.mxu0  ;;  %v5842_v58 = vadd.f32 %v10359_v26, %v5344_v59  ;;  %v4212_v22 = vadd.f32 %v10714_v25, %v10713_v50  ;;  %v4593_v47 = vadd.f32 %v10715_v51, %v4206_v48  ;;  %v10726_v51 = vld [vmem:[#allocation14_spill] sm:$0xff] }
 0x26d   : > { %6913 = vst [vmem:[%s10357_s11 + $0x20] sm:$0xff] %v6838_v31   ;;  %v5345_v12 = vadd.f32 %v7508_v52, %v4591_v46  ;;  %v6029_v18 = vadd.f32 %v6028_v44, %v5838_v9  ;;  %v5840_v23 = vadd.f32 %v10364_v49, %v5342_v6  ;;  %v10708_v49 = vld [vmem:[#allocation22_spill] sm:$0xff] }
 0x26e   : > { %v6097_v33 = vadd.f32 %v6096_v27, %v6066_v38  ;;  %v5254_v28 = vpop.f32.mrf.mxu1  ;;  %v10423_v36 = vpop.f32.mrf.mxu0  ;;  %v4592_v34 = vadd.f32 %v10708_v49, %v4205_v24  ;;  %v6071_v29 = vmul.f32 %v5842_v58, %v5842_v58 }
 0x26f   : > { %v5843_v39 = vadd.f32 %v10370_v16, %v5345_v12  ;;  %v5343_v13 = vadd.f32 %v5254_v28, %v4589_v0  ;;  %v6030_v60 = vadd.f32 %v6029_v18, %v5839_v41  ;;  %v6069_v26 = vmul.f32 %v5840_v23, %v5840_v23  ;;  %v10716_v0 = vld [vmem:[#allocation8_spill] sm:$0xff] }
 0x270   : > { %v6098_v21 = vadd.f32 %v6097_v33, %v6067_v43  ;;  %v7511_v19 = vpop.f32.mrf.mxu1  ;;  %v10432_v4 = vpop.f32.mrf.mxu0  ;;  %v10717_v43 = vld [vmem:[#allocation29_spill] sm:$0xff] }
 0x271   : > { %v6853_v53 = vpack.c.bf16 %v5843_v39, %v5842_v58  ;;  %v5841_v55 = vadd.f32 %v10375_v10, %v5343_v13  ;;  %v6031_v35 = vadd.f32 %v6030_v60, %v5840_v23  ;;  %v5348_v9 = vadd.f32 %v7511_v19, %v10710_v14  ;;  %v10711_v10 = vld [vmem:[#allocation6_spill] sm:$0xff]  ;;  %v10720_v19 = vld [vmem:[#allocation23_spill] sm:$0xff] }
 0x272   : > { %v6099_v16 = vadd.f32 %v6098_v21, %v6068_v63  ;;  %v5267_v2 = vpop.f32.mrf.mxu1  ;;  %v4209_v17 = vadd.f32 %v10712_v54, %v10711_v10  ;;  %v6072_v44 = vmul.f32 %v5843_v39, %v5843_v39  ;;  %v10443_v12 = vpop.f32.mrf.mxu0  ;;  %v4210_v18 = vadd.f32 %v10717_v43, %v10716_v0  ;;  %v10719_v63 = vld [vmem:[#allocation25_spill] sm:$0xff] }
 0x273   : > { %6916 = vst [vmem:[%s10357_s11 + $0x38] sm:$0xff] %v6853_v53   ;;  %v6848_v20 = vpack.c.bf16 %v5841_v55, %v5840_v23  ;;  %v6070_v7 = vmul.f32 %v5841_v55, %v5841_v55  ;;  %v5346_v41 = vadd.f32 %v5267_v2, %v4592_v34  ;;  %v6032_v15 = vadd.f32 %v6031_v35, %v5841_v55  ;;  %v10722_v35 = vld [vmem:[#allocation32_spill] sm:$0xff] }
 0x274   : > { %v6100_v61 = vadd.f32 %v6099_v16, %v6069_v26  ;;  %v7512_v1 = vpop.f32.mrf.mxu1  ;;  %v5846_v59 = vadd.f32 %v10380_v37, %v5348_v9  ;;  %v4599_v21 = vadd.f32 %v10719_v63, %v4212_v22  ;;  %v7568_v34 = vpop.f32.mrf.mxu0  ;;  %v10723_v16 = vld [vmem:[#allocation12_spill] sm:$0xff]  ;;  %v10735_v63 = vld [vmem:[#allocation17_spill] sm:$0xff] }
 0x275   : > { %6915 = vst [vmem:[%s10357_s11 + $0x30] sm:$0xff] %v6848_v20   ;;  %v5349_v45 = vadd.f32 %v7512_v1, %v4595_v8  ;;  %v6033_v40 = vadd.f32 %v6032_v15, %v5842_v58  ;;  %v5844_v31 = vadd.f32 %v10383_v56, %v5346_v41  ;;  %v10718_v56 = vld [vmem:[#allocation35_spill] sm:$0xff]  ;;  %v10724_v2 = vld [vmem:[#allocation4_spill] sm:$0xff] }
 0x276   : > { %v6101_v46 = vadd.f32 %v6100_v61, %v6070_v7  ;;  %v5270_v38 = vpop.f32.mrf.mxu1  ;;  %v4596_v28 = vadd.f32 %v10718_v56, %v4209_v17  ;;  %v4216_v62 = vadd.f32 %v10724_v2, %v10723_v16  ;;  %v10725_v20 = vld [vmem:[#allocation27_spill] sm:$0xff]  ;;  %v6075_v14 = vmul.f32 %v5846_v59, %v5846_v59 }
 0x277   : > { %v5847_v6 = vadd.f32 %v10388_v3, %v5349_v45  ;;  %v5347_v27 = vadd.f32 %v5270_v38, %v4593_v47  ;;  %v6034_v24 = vadd.f32 %v6033_v40, %v5843_v39  ;;  %v6073_v37 = vmul.f32 %v5844_v31, %v5844_v31  ;;  %v5800_v45 = vpop.f32.mrf.mxu0  ;;  %v10727_v47 = vld [vmem:[#allocation33_spill] sm:$0xff]  ;;  %v10732_v56 = vld [vmem:[#allocation11_spill] sm:$0xff] }
 0x278   : > { %v6102_v52 = vadd.f32 %v6101_v46, %v6071_v29  ;;  %v7515_v57 = vpop.f32.mrf.mxu1  ;;  %v4597_v7 = vadd.f32 %v10725_v20, %v4210_v18  ;;  %v4214_v29 = vadd.f32 %v10727_v47, %v10726_v51 }
 0x279   : > { %v6863_v33 = vpack.c.bf16 %v5847_v6, %v5846_v59  ;;  %v5845_v23 = vadd.f32 %v10397_v32, %v5347_v27  ;;  %v6035_v58 = vadd.f32 %v6034_v24, %v5844_v31  ;;  %v5352_v42 = vadd.f32 %v7515_v57, %v10720_v19  ;;  %v10721_v32 = vld [vmem:[#allocation9_spill] sm:$0xff]  ;;  %v10729_v27 = vld [vmem:[#allocation15_spill] sm:$0xff] }
 0x27a   : > { %v6103_v3 = vadd.f32 %v6102_v52, %v6072_v44  ;;  %v5283_v13 = vpop.f32.mrf.mxu1  ;;  %v4213_v26 = vadd.f32 %v10722_v35, %v10721_v32  ;;  %v6076_v17 = vmul.f32 %v5847_v6, %v5847_v6  ;;  %v4603_v44 = vadd.f32 %v10729_v27, %v4216_v62  ;;  %v10730_v24 = vld [vmem:[#allocation3_spill] sm:$0xff] }
 0x27b   : > { %6918 = vst [vmem:[%s10357_s11 + $0x48] sm:$0xff] %v6863_v33   ;;  %v6858_v39 = vpack.c.bf16 %v5845_v23, %v5844_v31  ;;  %v6074_v60 = vmul.f32 %v5845_v23, %v5845_v23  ;;  %v5350_v48 = vadd.f32 %v5283_v13, %v4596_v28  ;;  %v6036_v55 = vadd.f32 %v6035_v58, %v5845_v23  ;;  %v10728_v31 = vld [vmem:[#allocation10_spill] sm:$0xff]  ;;  %v7571_v23 = vpop.f32.mrf.mxu0  ;;  %v10733_v58 = vld [vmem:[#allocation20_spill] sm:$0xff]  ;;  %v10736_v62 = vld [vmem:[#allocation31_spill] sm:$0xff] }
 0x27c   : > { %v6104_v53 = vadd.f32 %v6103_v3, %v6073_v37  ;;  %v7516_v49 = vpop.f32.mrf.mxu1  ;;  %v5850_v1 = vadd.f32 %v10401_v5, %v5352_v42  ;;  %v10734_v37 = vld [vmem:[#allocation36_spill] sm:$0xff] }
 0x27d   : > { %6917 = vst [vmem:[%s10357_s11 + $0x40] sm:$0xff] %v6858_v39   ;;  %v5353_v8 = vadd.f32 %v7516_v49, %v4599_v21  ;;  %v6037_v9 = vadd.f32 %v6036_v55, %v5846_v59  ;;  %v5848_v61 = vadd.f32 %v10408_v11, %v5350_v48  ;;  %v4600_v11 = vadd.f32 %v10728_v31, %v4213_v26  ;;  %v5813_v2 = vpop.f32.mrf.mxu0 }
 0x27e   : > { %v6105_v41 = vadd.f32 %v6104_v53, %v6074_v60  ;;  %v5286_v15 = vpop.f32.mrf.mxu1  ;;  %v4220_v3 = vadd.f32 %v10734_v37, %v10733_v58  ;;  %v4601_v21 = vadd.f32 %v10735_v63, %v4214_v29  ;;  %v6079_v39 = vmul.f32 %v5850_v1, %v5850_v1 }
 0x27f   : > { %v5851_v10 = vadd.f32 %v10412_v30, %v5353_v8  ;;  %v5351_v54 = vadd.f32 %v5286_v15, %v4597_v7  ;;  %v6038_v25 = vadd.f32 %v6037_v9, %v5847_v6  ;;  %v6077_v5 = vmul.f32 %v5848_v61, %v5848_v61  ;;  %v10737_v8 = vld [vmem:[#allocation37_spill] sm:$0xff]  ;;  %v7572_v47 = vpop.f32.mrf.mxu0 }
 0x280   : > { %v6106_v50 = vadd.f32 %v6105_v41, %v6075_v14  ;;  %v7519_v22 = vpop.f32.mrf.mxu1  ;;  %v4218_v20 = vadd.f32 %v10737_v8, %v10736_v62  ;;  %v10738_v9 = vld [vmem:[#allocation21_spill] sm:$0xff] }
 0x281   : > { %v6873_v40 = vpack.c.bf16 %v5851_v10, %v5850_v1  ;;  %v5849_v46 = vadd.f32 %v10423_v36, %v5351_v54  ;;  %v6039_v38 = vadd.f32 %v6038_v25, %v5848_v61  ;;  %v5356_v57 = vadd.f32 %v7519_v22, %v10730_v24  ;;  %v10731_v36 = vld [vmem:[#allocation18_spill] sm:$0xff] }
 0x282   : > { %v6107_v59 = vadd.f32 %v6106_v50, %v6076_v17  ;;  %v5299_v30 = vpop.f32.mrf.mxu1  ;;  %v4217_v28 = vadd.f32 %v10732_v56, %v10731_v36  ;;  %v6080_v32 = vmul.f32 %v5851_v10, %v5851_v10 }
 0x283   : > { %6920 = vst [vmem:[%s10357_s11 + $0x58] sm:$0xff] %v6873_v40   ;;  %v6868_v52 = vpack.c.bf16 %v5849_v46, %v5848_v61  ;;  %v6078_v6 = vmul.f32 %v5849_v46, %v5849_v46  ;;  %v5354_v0 = vadd.f32 %v5299_v30, %v4600_v11  ;;  %v6040_v18 = vadd.f32 %v6039_v38, %v5849_v46  ;;  %v10741_v40 = vld [vmem:[#allocation30_spill] sm:$0xff] }
 0x284   : > { %v6108_v43 = vadd.f32 %v6107_v59, %v6077_v5  ;;  %v7520_v33 = vpop.f32.mrf.mxu1  ;;  %v5854_v53 = vadd.f32 %v10432_v4, %v5356_v57  ;;  %v4604_v41 = vadd.f32 %v10738_v9, %v4217_v28  ;;  %v4605_v46 = vadd.f32 %v10741_v40, %v4218_v20  ;;  %v5816_v57 = vpop.f32.mrf.mxu0 }
 0x285   : > { %6919 = vst [vmem:[%s10357_s11 + $0x50] sm:$0xff] %v6868_v52   ;;  %v5357_v13 = vadd.f32 %v7520_v33, %v4603_v44  ;;  %v6041_v60 = vadd.f32 %v6040_v18, %v5850_v1  ;;  %v5852_v42 = vadd.f32 %v10443_v12, %v5354_v0 }
 0x286   : > { %v6109_v19 = vadd.f32 %v6108_v43, %v6078_v6  ;;  %v5302_v48 = vpop.f32.mrf.mxu1  ;;  %v6083_v31 = vmul.f32 %v5854_v53, %v5854_v53 }
 0x287   : > { %v5855_v55 = vadd.f32 %v7568_v34, %v5357_v13  ;;  %v5355_v49 = vadd.f32 %v5302_v48, %v4601_v21  ;;  %v6042_v26 = vadd.f32 %v6041_v60, %v5851_v10  ;;  %v6081_v61 = vmul.f32 %v5852_v42, %v5852_v42  ;;  %v10739_v34 = vld [vmem:[#allocation28_spill] sm:$0xff]  ;;  %v10740_v10 = vld [vmem:[#allocation5_spill] sm:$0xff] }
 0x288   : > { %v6110_v35 = vadd.f32 %v6109_v19, %v6079_v39  ;;  %v7523_v16 = vpop.f32.mrf.mxu1  ;;  %v4607_v1 = vadd.f32 %v10739_v34, %v4220_v3 }
 0x289   : > { %v6883_v7 = vpack.c.bf16 %v5855_v55, %v5854_v53  ;;  %v5853_v14 = vadd.f32 %v5800_v45, %v5355_v49  ;;  %v6043_v12 = vadd.f32 %v6042_v26, %v5852_v42  ;;  %v5360_v50 = vadd.f32 %v7523_v16, %v10740_v10 }
 0x28a   : > { %v6111_v15 = vadd.f32 %v6110_v35, %v6080_v32  ;;  %v5315_v4 = vpop.f32.mrf.mxu1  ;;  %v6084_v52 = vmul.f32 %v5855_v55, %v5855_v55 }
 0x28b   : > { %6922 = vst [vmem:[%s10357_s11 + $0x68] sm:$0xff] %v6883_v7   ;;  %v6878_v54 = vpack.c.bf16 %v5853_v14, %v5852_v42  ;;  %v6082_v17 = vmul.f32 %v5853_v14, %v5853_v14  ;;  %v5358_v25 = vadd.f32 %v5315_v4, %v4604_v41  ;;  %v6044_v51 = vadd.f32 %v6043_v12, %v5853_v14 }
 0x28c   : > { %v6112_v22 = vadd.f32 %v6111_v15, %v6081_v61  ;;  %v7524_v29 = vpop.f32.mrf.mxu1  ;;  %v5858_v30 = vadd.f32 %v7571_v23, %v5360_v50 }
 0x28d   : > { %6921 = vst [vmem:[%s10357_s11 + $0x60] sm:$0xff] %v6878_v54   ;;  %v5361_v45 = vadd.f32 %v7524_v29, %v4607_v1  ;;  %v6045_v11 = vadd.f32 %v6044_v51, %v5854_v53  ;;  %v5856_v5 = vadd.f32 %v5813_v2, %v5358_v25 }
 0x28e   : > { %v6113_v38 = vadd.f32 %v6112_v22, %v6082_v17  ;;  %v5318_v59 = vpop.f32.mrf.mxu1  ;;  %v6087_v3 = vmul.f32 %v5858_v30, %v5858_v30 }
 0x28f   : > { %v5859_v27 = vadd.f32 %v7572_v47, %v5361_v45  ;;  %v5359_v44 = vadd.f32 %v5318_v59, %v4605_v46  ;;  %v6046_v24 = vadd.f32 %v6045_v11, %v5855_v55  ;;  %v6085_v33 = vmul.f32 %v5856_v5, %v5856_v5 }
 0x290   : > { %v6114_v6 = vadd.f32 %v6113_v38, %v6083_v31 }
 0x291   : > { %v6893_v0 = vpack.c.bf16 %v5859_v27, %v5858_v30  ;;  %v5857_v43 = vadd.f32 %v5816_v57, %v5359_v44  ;;  %v6047_v18 = vadd.f32 %v6046_v24, %v5856_v5  ;;  %v6088_v63 = vmul.f32 %v5859_v27, %v5859_v27 }
 0x292   : > { %v6115_v36 = vadd.f32 %v6114_v6, %v6084_v52 }
 0x293   : > { %6924 = vst [vmem:[%s10357_s11 + $0x78] sm:$0xff] %v6893_v0   ;;  %v6888_v56 = vpack.c.bf16 %v5857_v43, %v5856_v5  ;;  %v6086_v28 = vmul.f32 %v5857_v43, %v5857_v43  ;;  %v6048_v37 = vadd.f32 %v6047_v18, %v5857_v43 }
 0x294   : > { %v6116_v58 = vadd.f32 %v6115_v36, %v6085_v33 }
 0x295   : > { %6923 = vst [vmem:[%s10357_s11 + $0x70] sm:$0xff] %v6888_v56   ;;  %v6049_v23 = vadd.f32 %v6048_v37, %v5858_v30 }
 0x296   : > { %v6117_v13 = vadd.f32 %v6116_v58, %v6086_v28 }
 0x297   : > { %v6050_v21 = vadd.f32 %v6049_v23, %v5859_v27 }
 0x298   : > { %v6118_v39 = vadd.f32 %v6117_v13, %v6087_v3 }
 0x299   : > { %v6051_v60 = vrot.slane %v6050_v21, 4 }
 0x29a   : > { %v6119_v19 = vadd.f32 %v6118_v39, %v6088_v63 }
 0x29b   : > { %v6052_v42 = vadd.f32 %v6051_v60, %v6050_v21 }
 0x29c   : > { %v6120_v48 = vrot.slane %v6119_v19, 4 }
 0x29d   : > { %v6053_v53 = vrot.slane %v6052_v42, 2 }
 0x29e   : > { %v6121_v55 = vadd.f32 %v6120_v48, %v6119_v19 }
 0x29f   : > { %v6054_v49 = vadd.f32 %v6053_v53, %v6052_v42 }
 0x2a0   : > { %v6122_v32 = vrot.slane %v6121_v55, 2 }
 0x2a1   : > { %v6055_v35 = vrot.slane %v6054_v49, 1 }
 0x2a2   : > { %v6123_v26 = vadd.f32 %v6122_v32, %v6121_v55 }
 0x2a3   : > { %v6056_v2 = vadd.f32 %v6055_v35, %v6054_v49 }
 0x2a4   : > { %v6124_v16 = vrot.slane %v6123_v26, 1 }
 0x2a6   : > { %v6125_v62 = vadd.f32 %v6124_v16, %v6123_v26 }
 0x2a8   : > { %v6127_v8 = vsel %vm435_vm2, %v6056_v2, %v6125_v62 }
 0x2a9   : > { %6128 = vst [vmem:[%s235_s14] sm:$0x3] %v6127_v8 }
 0x2aa PF: > { %s16_s18 = sadd.s32 1, %s7756_s18  }
 0x2ab   : > { %p13_p4 = scmp.ge.s32.totalorder %s16_s18, 4  }
 0x2ad   :  { %15 = sbr.rel (!%p13_p4) target bundleno = 1 (0x1), region = 89 }

// kernel: a_call__.3
= control target key start
LH: loop header
LB: loop body
LE: loop exit
PB: predicated region body
PF: predicated region fallthrough
CT: control target
= control target key end

     0   :  { %s7334_s12 = smov 0   ;;  %s10136_s0 = inlined_call_operand.vmem [shape: bf16[2,16,16,128], index: 0, kind: input, shape index: {}]   ;;  %s10137_s1 = inlined_call_operand.vmem [shape: bf16[9,128,128], index: 1, kind: input, shape index: {}]   ;;  %s10138_s2 = inlined_call_operand.vmem [shape: bf16[2,16,16,128], index: 2, kind: output, shape index: {0}]   ;;  %s10139_s3 = inlined_call_operand.vmem [shape: f32[2,2,128], index: 3, kind: output, shape index: {1}]  }
   0x1 LB: > { %s5923_s13 = sadd.s32 4294967295, %s7311_s12   ;;  %p5927_p0 = scmp.ge.s32.totalorder %s7311_s12, 1  ;;  %s7311_s12 = sphi %s7334_s12, %s14_s12  }
   0x2   : > { %p140_p1 = scmp.lt.s32.totalorder %s7311_s12, 3 }
   0x4   : > { %p141_p2 = pnand %p5927_p0, %p140_p1 }
   0x6   : > { %144 = sbr.rel (%p141_p2) target bundleno = 656 (0x290), region = 28 }
   0xb   : > { %v7161_v0 = vld [vmem:[%s10137_s1 + $0x78] sm:$0xff]   ;;  %v7162_v1 = vld [vmem:[%s10137_s1 + $0x70] sm:$0xff]   ;;  %v7313_v2 = vmov 0   ;;  %p168_p3 = scmp.lt.s32.totalorder %s5923_s13, 1  ;;  %v7163_v3 = vld [vmem:[%s10137_s1 + $0x68] sm:$0xff]   ;;  %vm223_vm0 = vcmask 1040384  }
   0xc   : > { %215 = vst [vmem:[#allocation2] sm:$0xf] %v7313_v2  ;;  %216 = vst [vmem:[#allocation2 + $0x4] sm:$0xf] %v7313_v2  ;;  %6704 = vmatprep.subr.bf16.mxu0 %v7161_v0  ;;  %7136 = vmatprep.subr.bf16.mxu1 %v7161_v0  ;;  %v7164_v4 = vld [vmem:[%s10137_s1 + $0x60] sm:$0xff]   ;;  %v7165_v10 = vld [vmem:[%s10137_s1 + $0x58] sm:$0xff]  }
   0xd   : > { %217 = vst [vmem:[#allocation2 + $0x8] sm:$0x1] %v7313_v2  ;;  %219 = vst [vmem:[#allocation2 + $0xcc] sm:$0xf] %v7313_v2  ;;  %6705 = vmatpush3.bf16.msra.mxu0 %v7161_v0  ;;  %7144 = vmatpush3.bf16.msra.mxu1 %v7161_v0  ;;  %s10410_s13 = smov (!%p168_p3, %s5923_s13), 1  ;;  %vm646_vm3 = vcmask 1043456  }
   0xe   : > { %220 = vst [vmem:[#allocation2 + $0xd0] sm:$0xf] %v7313_v2  ;;  %221 = vst [vmem:[#allocation2 + $0xd4] sm:$0x1] %v7313_v2  ;;  %6706 = vmatprep.subr.bf16.mxu0 %v7162_v1  ;;  %7137 = vmatprep.subr.bf16.mxu1 %v7162_v1  ;;  %s6359_s20 = sshll.u32 %s10410_s13, 7  ;;  %v10169_v21 = vmov 0 }
   0xf   : > { %s7362_s25 = scalar_lea.vmem %s10136_s0, %s6359_s20  ;;  %vm824_vm1 = vsmask.f32 3328  ;;  %vm825_vm2 = vsmask.f32 7440  ;;  %vm224_vm4 = vsmask.f32 256  ;;  %s10033_s26 = scalar_lea.vmem %s10138_s2, %s6359_s20 }
  0x10   : > { %v197_v14 = vld [vmem:[%s7362_s25 + $0x38] sm:$0xf]  ;;  %v198_v17 = vld [vmem:[%s7362_s25 + $0x3c] sm:$0xf]  ;;  %vm7374_vm5 = vmand %vm223_vm0, %vm224_vm4  ;;  %vm274_vm7 = vsmask.f32 7938 }
  0x11   : > { %6707 = vmatpush3.bf16.msra.mxu0 %v7162_v1  ;;  %7145 = vmatpush3.bf16.msra.mxu1 %v7162_v1  ;;  %v10170_v21 = vsel %vm7374_vm5, 4294967295, %v10169_v21  ;;  %v247_v22 = vld [vmem:[#allocation2 + $0x60] sm:$0x1]  ;;  %v446_v23 = vshrl.u32 %v197_v14, 16  ;;  %vm7380_vm6 = vmor %vm824_vm1, %vm825_vm2  ;;  %v297_v27 = vld [vmem:[#allocation2 + $0x68] sm:$0x1] }
  0x12   : > { %6708 = vmatprep.subr.bf16.mxu0 %v7163_v3  ;;  %7138 = vmatprep.subr.bf16.mxu1 %v7163_v3  ;;  %10171 = vst [vmem:[#allocation3_spill] sm:$0xff] %v10170_v21  ;;  %v248_v26 = vsel %vm7374_vm5, 0, %v247_v22  ;;  %v449_v28 = vshll.u32 %v197_v14, 16  ;;  %vm7388_vm8 = vmand %vm223_vm0, %vm274_vm7  ;;  %v10174_v30 = vmov 0  ;;  %vm324_vm9 = vsmask.f32 4368 }
  0x13   : > { %v760_v5 = vld [vmem:[#allocation2] sm:$0xf]  ;;  %v761_v6 = vld [vmem:[#allocation2 + $0x4] sm:$0xf]  ;;  %249 = vst [vmem:[#allocation2 + $0x60] sm:$0x1] %v248_v26  ;;  %vm7403_vm10 = vmor %vm224_vm4, %vm324_vm9 }
  0x14   : > { %v7364_v7 = vld [vmem:[#allocation2 + $0x8] sm:$0x1]  ;;  %v828_v8 = vshrl.u32 %v760_v5, 16  ;;  %v831_v9 = vshll.u32 %v760_v5, 16  ;;  %v837_v11 = vshll.u32 %v761_v6, 16  ;;  %v841_v12 = vshrl.u32 %v761_v6, 16  ;;  %vm7417_vm11 = vmand %vm646_vm3, %vm274_vm7 }
  0x15   : > { %v847_v13 = vshll.u32 %v7364_v7, 16  ;;  %6709 = vmatpush3.bf16.msra.mxu0 %v7163_v3  ;;  %7146 = vmatpush3.bf16.msra.mxu1 %v7163_v3  ;;  %v10175_v30 = vsel %vm7388_vm8, 4294967295, %v10174_v30  ;;  %v448_v31 = vrot.slane %v446_v23, 7  ;;  %v454_v32 = vshrl.u32 %v198_v17, 16  ;;  %v183_v33 = vld [vmem:[%s7362_s25] sm:$0xf] }
  0x16   : > { %v830_v15 = vrot.slane %v828_v8, 4  ;;  %v833_v16 = vrot.slane %v831_v9, 5  ;;  %6710 = vmatprep.subr.bf16.mxu0 %v7164_v4  ;;  %7139 = vmatprep.subr.bf16.mxu1 %v7164_v4  ;;  %v839_v18 = vrot.slane %v837_v11, 5  ;;  %v843_v19 = vrot.slane %v841_v12, 4  ;;  %10176 = vst [vmem:[#allocation4_spill] sm:$0xff] %v10175_v30  ;;  %v7166_v39 = vld [vmem:[%s10137_s1 + $0x50] sm:$0xff]  }
  0x17   : > { %v849_v20 = vrot.slane %v847_v13, 5  ;;  %v298_v35 = vsel %vm7388_vm8, 0, %v297_v27  ;;  %v457_v36 = vshll.u32 %v198_v17, 16  ;;  %v184_v37 = vld [vmem:[%s7362_s25 + $0x4] sm:$0xf]  ;;  %v327_v38 = vshrl.u32 %v183_v33, 16 }
  0x18   : > { %v834_v25 = vor.u32 %v833_v16, %v830_v15  ;;  %v844_v29 = vor.u32 %v843_v19, %v839_v18  ;;  %299 = vst [vmem:[#allocation2 + $0x68] sm:$0x1] %v298_v35  ;;  %v451_v41 = vor.u32 %v449_v28, %v448_v31  ;;  %v452_v42 = vrot.slane %v448_v31, 4  ;;  %v226_v44 = vld [vmem:[#allocation2 + $0xc] sm:$0x1]  ;;  %v7168_v13 = vld [vmem:[%s10137_s1 + $0x40] sm:$0xff]  }
  0x19   : > { %6711 = vmatpush3.bf16.msra.mxu0 %v7164_v4  ;;  %7147 = vmatpush3.bf16.msra.mxu1 %v7164_v4  ;;  %v456_v43 = vrot.slane %v454_v32, 7  ;;  %v10177_v46 = vmov 0  ;;  %v227_v47 = vsel %vm7374_vm5, 0, %v226_v44  ;;  %v276_v48 = vld [vmem:[#allocation2 + $0x14] sm:$0x1]  ;;  %v329_v49 = vrot.slane %v327_v38, 7 }
  0x1a   : > { %v835_v34 = vrot.slane %v834_v25, 4  ;;  %6712 = vmatprep.subr.bf16.mxu0 %v7165_v10  ;;  %7140 = vmatprep.subr.bf16.mxu1 %v7165_v10  ;;  %v845_v40 = vrot.slane %v844_v29, 4  ;;  %v10178_v46 = vsel %vm7403_vm10, 4294967295, %v10177_v46  ;;  %v330_v50 = vshll.u32 %v183_v33, 16  ;;  %228 = vst [vmem:[#allocation2 + $0xc] sm:$0x1] %v227_v47 }
  0x1b   : > { %10179 = vst [vmem:[#allocation5_spill] sm:$0xff] %v10178_v46  ;;  %v459_v52 = vor.u32 %v457_v36, %v456_v43  ;;  %v461_v53 = vrot.slane %v456_v43, 4  ;;  %v277_v54 = vsel %vm7388_vm8, 0, %v276_v48  ;;  %v199_v55 = vld [vmem:[%s7362_s25 + $0x40] sm:$0xf]  ;;  %v10180_v58 = vmov 0 }
  0x1c   : > { %v840_v45 = vsel %vm7380_vm6, %v835_v34, %v839_v18  ;;  %v850_v51 = vsel %vm7380_vm6, %v845_v40, %v849_v20  ;;  %v200_v56 = vld [vmem:[%s7362_s25 + $0x44] sm:$0xf]  ;;  %v10181_v58 = vsel %vm7417_vm11, 4294967295, %v10180_v58  ;;  %278 = vst [vmem:[#allocation2 + $0x14] sm:$0x1] %v277_v54  ;;  %v333_v59 = vrot.slane %v329_v49, 4 }
  0x1d   : > { %6713 = vmatpush3.bf16.msra.mxu0 %v7165_v10  ;;  %7148 = vmatpush3.bf16.msra.mxu1 %v7165_v10  ;;  %v5949_v57 = vcombine.low %v840_v45, %v850_v51  ;;  %10182 = vst [vmem:[#allocation6_spill] sm:$0xff] %v10181_v58  ;;  %v335_v60 = vshrl.u32 %v184_v37, 16  ;;  %v250_v61 = vld [vmem:[#allocation2 + $0x6c] sm:$0x1]  ;;  %v300_v62 = vld [vmem:[#allocation2 + $0x74] sm:$0x1]  ;;  %v460_v0 = vsel %vm7403_vm10, %v452_v42, %v459_v52 }
  0x1e   : > { %6714 = vmatprep.subr.bf16.mxu0 %v7166_v39  ;;  %7141 = vmatprep.subr.bf16.mxu1 %v7166_v39  ;;  %v7167_v63 = vld [vmem:[%s10137_s1 + $0x48] sm:$0xff]   ;;  %v338_v1 = vshll.u32 %v184_v37, 16  ;;  %v251_v2 = vsel %vm7374_vm5, 0, %v250_v61  ;;  %v301_v3 = vsel %vm7388_vm8, 0, %v300_v62  ;;  %v697_v4 = vld [vmem:[#allocation2 + $0x60] sm:$0xf]  ;;  %v332_v11 = vor.u32 %v330_v50, %v329_v49 }
  0x1f   : > { %6720 = vmatprep.mubr.bf16.mxu0 %v5949_v57  ;;  %700 = vst [vmem:[#allocation2 + $0x64] sm:$0xf] %v460_v0  ;;  %v337_v5 = vrot.slane %v335_v60, 7  ;;  %252 = vst [vmem:[#allocation2 + $0x6c] sm:$0x1] %v251_v2  ;;  %v463_v6 = vshrl.u32 %v199_v55, 16  ;;  %v698_v10 = vsel %vm7417_vm11, %v451_v41, %v697_v4 }
  0x20   : > { %302 = vst [vmem:[#allocation2 + $0x74] sm:$0x1] %v301_v3  ;;  %v466_v8 = vshll.u32 %v199_v55, 16  ;;  %v471_v9 = vshrl.u32 %v200_v56, 16  ;;  %v474_v12 = vshll.u32 %v200_v56, 16  ;;  %v7444_v31 = vld [vmem:[%s10137_s1 + $0x38] sm:$0xff]  }
  0x21   : > { %6715 = vmatpush3.bf16.msra.mxu0 %v7166_v39  ;;  %7149 = vmatpush3.bf16.msra.mxu1 %v7166_v39  ;;  %699 = vst [vmem:[#allocation2 + $0x60] sm:$0xf] %v698_v10  ;;  %v701_v14 = vld [vmem:[#allocation2 + $0x68] sm:$0x1]  ;;  %v340_v15 = vor.u32 %v338_v1, %v337_v5  ;;  %v342_v16 = vrot.slane %v337_v5, 4  ;;  %v465_v17 = vrot.slane %v463_v6, 7 }
  0x22   : > { %v473_v18 = vrot.slane %v471_v9, 7  ;;  %6716 = vmatprep.subr.bf16.mxu0 %v7167_v63  ;;  %7142 = vmatprep.subr.bf16.mxu1 %v7167_v63  ;;  %v702_v19 = vsel %vm7374_vm5, %v461_v53, %v701_v14  ;;  %v648_v22 = vld [vmem:[#allocation2 + $0xc] sm:$0xf]  ;;  %v7453_v34 = vld [vmem:[%s10137_s1 + $0xb8] sm:$0xff]   ;;  %v185_v35 = vld [vmem:[%s7362_s25 + $0x8] sm:$0xf] }
  0x23   : > { %703 = vst [vmem:[#allocation2 + $0x68] sm:$0x1] %v702_v19  ;;  %v341_v20 = vsel %vm7403_vm10, %v333_v59, %v340_v15  ;;  %v468_v23 = vor.u32 %v466_v8, %v465_v17  ;;  %v469_v25 = vrot.slane %v465_v17, 4  ;;  %v649_v27 = vsel %vm7417_vm11, %v332_v11, %v648_v22  ;;  %v652_v28 = vld [vmem:[#allocation2 + $0x14] sm:$0x1]  ;;  %s5932_s20 = sshll.u32 %s10410_s13, 1 }
  0x24   : > { %v476_v26 = vor.u32 %v474_v12, %v473_v18  ;;  %651 = vst [vmem:[#allocation2 + $0x10] sm:$0xf] %v341_v20  ;;  %v478_v29 = vrot.slane %v473_v18, 4  ;;  %650 = vst [vmem:[#allocation2 + $0xc] sm:$0xf] %v649_v27  ;;  %v653_v32 = vsel %vm7374_vm5, %v342_v16, %v652_v28  ;;  %v344_v50 = vshrl.u32 %v185_v35, 16  ;;  %s181_s28 = scalar_lea.vmem %s10139_s3, %s5932_s20 }
  0x25   : > { %6717 = vmatpush3.bf16.msra.mxu0 %v7167_v63  ;;  %7150 = vmatpush3.bf16.msra.mxu1 %v7167_v63  ;;  %v229_v36 = vld [vmem:[#allocation2 + $0x18] sm:$0x1]  ;;  %654 = vst [vmem:[#allocation2 + $0x14] sm:$0x1] %v653_v32  ;;  %v7461_v44 = vld [vmem:[%s7362_s25 + $0xc] sm:$0xf] }
  0x26   : > { %v477_v33 = vsel %vm7403_vm10, %v469_v25, %v476_v26  ;;  %6718 = vmatprep.subr.bf16.mxu0 %v7168_v13  ;;  %7143 = vmatprep.subr.bf16.mxu1 %v7168_v13  ;;  %v777_v37 = vld [vmem:[#allocation2 + $0x64] sm:$0xf]  ;;  %v704_v38 = vld [vmem:[#allocation2 + $0x6c] sm:$0xf]  ;;  %v279_v45 = vld [vmem:[#allocation2 + $0x20] sm:$0x1] }
  0x27   : > { %707 = vst [vmem:[#allocation2 + $0x70] sm:$0xf] %v477_v33  ;;  %v708_v39 = vld [vmem:[#allocation2 + $0x74] sm:$0x1]  ;;  %v1029_v40 = vshll.u32 %v777_v37, 16  ;;  %v1033_v41 = vshrl.u32 %v777_v37, 16  ;;  %v705_v42 = vsel %vm7417_vm11, %v468_v23, %v704_v38 }
  0x28   : > { %v709_v43 = vsel %vm7374_vm5, %v478_v29, %v708_v39  ;;  %v776_v47 = vld [vmem:[#allocation2 + $0x60] sm:$0xf]  ;;  %706 = vst [vmem:[#allocation2 + $0x6c] sm:$0xf] %v705_v42  ;;  %v230_v48 = vsel %vm7374_vm5, 0, %v229_v36  ;;  %v280_v49 = vsel %vm7388_vm8, 0, %v279_v45 }
  0x29   : > { %710 = vst [vmem:[#allocation2 + $0x74] sm:$0x1] %v709_v43  ;;  %6719 = vmatpush3.bf16.msra.mxu0 %v7168_v13  ;;  %7151 = vmatpush3.bf16.msra.mxu1 %v7168_v13  ;;  %v1020_v51 = vshrl.u32 %v776_v47, 16  ;;  %v1023_v52 = vshll.u32 %v776_v47, 16  ;;  %v1031_v53 = vrot.slane %v1029_v40, 5  ;;  %v1035_v54 = vrot.slane %v1033_v41, 4 }
  0x2a   : > { %231 = vst [vmem:[#allocation2 + $0x18] sm:$0x1] %v230_v48  ;;  %281 = vst [vmem:[#allocation2 + $0x20] sm:$0x1] %v280_v49  ;;  %v7468_v55 = vld [vmem:[%s7362_s25 + $0x48] sm:$0xf]  ;;  %6752 = vmatprep.subr.bf16.mxu1 %v7444_v31  ;;  %6800 = vmatprep.subr.bf16.mxu0 %v7453_v34 }
  0x2b   : > { %v1862_v56 = vrot.slane %v7364_v7, 5  ;;  %v816_v57 = vld [vmem:[#allocation2 + $0x68] sm:$0x1]  ;;  %v7473_v59 = vrot.slane %v344_v50, 7  ;;  %v347_v60 = vshll.u32 %v185_v35, 16  ;;  %v352_v61 = vshrl.u32 %v7461_v44, 16 }
  0x2c   : > { %v1022_v62 = vrot.slane %v1020_v51, 4  ;;  %v1025_v63 = vrot.slane %v1023_v52, 5  ;;  %v1036_v0 = vor.u32 %v1035_v54, %v1031_v53  ;;  %v1039_v1 = vshll.u32 %v816_v57, 16  ;;  %v763_v2 = vld [vmem:[#allocation2 + $0x10] sm:$0xf] }
  0x2d   : > { %v762_v3 = vld [vmem:[#allocation2 + $0xc] sm:$0xf]  ;;  %v861_v4 = vshll.u32 %v763_v2, 16  ;;  %v865_v5 = vshrl.u32 %v763_v2, 16  ;;  %v355_v6 = vshll.u32 %v7461_v44, 16  ;;  %v480_v8 = vshrl.u32 %v7468_v55, 16 }
  0x2e   : > { %v1026_v9 = vor.u32 %v1025_v63, %v1022_v62  ;;  %v1037_v10 = vrot.slane %v1036_v0, 4  ;;  %v1041_v11 = vrot.slane %v1039_v1, 5  ;;  %v809_v12 = vld [vmem:[#allocation2 + $0x14] sm:$0x1]  ;;  %v852_v13 = vshrl.u32 %v762_v3, 16 }
  0x2f   : > { %v855_v14 = vshll.u32 %v762_v3, 16  ;;  %v863_v15 = vrot.slane %v861_v4, 5  ;;  %v867_v16 = vrot.slane %v865_v5, 4  ;;  %v871_v17 = vshll.u32 %v809_v12, 16  ;;  %v779_v18 = vld [vmem:[#allocation2 + $0x70] sm:$0xf] }
  0x30   : > { %v1027_v19 = vrot.slane %v1026_v9, 4  ;;  %v1042_v20 = vsel %vm7380_vm6, %v1037_v10, %v1041_v11  ;;  %v854_v22 = vrot.slane %v852_v13, 4  ;;  %v778_v23 = vld [vmem:[#allocation2 + $0x6c] sm:$0xf]  ;;  %v349_v25 = vor.u32 %v347_v60, %v7473_v59  ;;  %v817_v29 = vld [vmem:[#allocation2 + $0x74] sm:$0x1] }
  0x31   : > { %v857_v26 = vrot.slane %v855_v14, 5  ;;  %v868_v27 = vor.u32 %v867_v16, %v863_v15  ;;  %v873_v28 = vrot.slane %v871_v17, 5  ;;  %v1044_v32 = vshrl.u32 %v778_v23, 16  ;;  %v655_v42 = vld [vmem:[#allocation2 + $0x18] sm:$0xf]  ;;  %v7172_v11 = vld [vmem:[%s10137_s1 + $0xb0] sm:$0xff]  }
  0x32   : > { %v1032_v33 = vsel %vm7380_vm6, %v1027_v19, %v1031_v53  ;;  %v1047_v35 = vshll.u32 %v778_v23, 16  ;;  %v1053_v36 = vshll.u32 %v779_v18, 16  ;;  %v1057_v37 = vshrl.u32 %v779_v18, 16  ;;  %v253_v48 = vld [vmem:[#allocation2 + $0x78] sm:$0x1]  ;;  %v7507_v14 = vld [vmem:[%s10137_s1 + $0x30] sm:$0xff]  }
  0x33   : > { %v5957_v38 = vcombine.low %v1032_v33, %v1042_v20  ;;  %v858_v39 = vor.u32 %v857_v26, %v854_v22  ;;  %v869_v40 = vrot.slane %v868_v27, 4  ;;  %v1046_v41 = vrot.slane %v1044_v32, 4  ;;  %v303_v53 = vld [vmem:[#allocation2 + $0x80] sm:$0x1]  ;;  %v202_v0 = vld [vmem:[%s7362_s25 + $0x4c] sm:$0xf] }
  0x34   : > { %v1049_v43 = vrot.slane %v1047_v35, 5  ;;  %v1055_v44 = vrot.slane %v1053_v36, 5  ;;  %v1059_v45 = vrot.slane %v1057_v37, 4  ;;  %v1063_v47 = vshll.u32 %v817_v29, 16  ;;  %v659_v63 = vld [vmem:[#allocation2 + $0x20] sm:$0x1] }
  0x35   : > { %6736 = vmatprep.mubr.bf16.mxu1 %v5957_v38  ;;  %v859_v49 = vrot.slane %v858_v39, 4  ;;  %v874_v50 = vsel %vm7380_vm6, %v869_v40, %v873_v28  ;;  %v350_v51 = vrot.slane %v7473_v59, 4  ;;  %v354_v52 = vrot.slane %v352_v61, 7  ;;  %v7494_v61 = vld [vmem:[%s7362_s25 + $0x10] sm:$0xf] }
  0x36   : > { %v1050_v54 = vor.u32 %v1049_v43, %v1046_v41  ;;  %v1060_v57 = vor.u32 %v1059_v45, %v1055_v44  ;;  %v1065_v60 = vrot.slane %v1063_v47, 5  ;;  %v656_v62 = vsel %vm7417_vm11, %v349_v25, %v655_v42  ;;  %v232_v4 = vld [vmem:[#allocation2 + $0x24] sm:$0x1]  ;;  %v7502_v12 = vld [vmem:[%s7362_s25 + $0x14] sm:$0xf] }
  0x37   : > { %v864_v1 = vsel %vm7380_vm6, %v859_v49, %v863_v15  ;;  %v357_v2 = vor.u32 %v355_v6, %v354_v52  ;;  %v359_v3 = vrot.slane %v354_v52, 4  ;;  %657 = vst [vmem:[#allocation2 + $0x18] sm:$0xf] %v656_v62  ;;  %v254_v59 = vsel %vm7374_vm5, 0, %v253_v48  ;;  %v282_v13 = vld [vmem:[#allocation2 + $0x2c] sm:$0x1] }
  0x38   : > { %v5950_v5 = vcombine.low %v864_v1, %v874_v50  ;;  %v1051_v9 = vrot.slane %v1050_v54, 4  ;;  %v1061_v10 = vrot.slane %v1060_v57, 4  ;;  %255 = vst [vmem:[#allocation2 + $0x78] sm:$0x1] %v254_v59  ;;  %v304_v6 = vsel %vm7388_vm8, 0, %v303_v53  ;;  %v7173_v48 = vld [vmem:[%s10137_s1 + $0x28] sm:$0xff]  }
  0x39   : > { %v358_v15 = vsel %vm7403_vm10, %v350_v51, %v357_v2  ;;  %v660_v16 = vsel %vm7374_vm5, %v359_v3, %v659_v63  ;;  %305 = vst [vmem:[#allocation2 + $0x80] sm:$0x1] %v304_v6  ;;  %v482_v17 = vrot.slane %v480_v8, 7  ;;  %v483_v18 = vshll.u32 %v7468_v55, 16  ;;  %v7517_v19 = vld [vmem:[%s7362_s25 + $0x50] sm:$0xf] }
  0x3a   : > { %v256_v20 = vld [vmem:[#allocation2 + $0x84] sm:$0x1]  ;;  %v306_v22 = vld [vmem:[#allocation2 + $0x8c] sm:$0x1]  ;;  %6721 = vmatmul.mubr.bf16.vlgmr.msra.gmra.mxu0 %v5950_v5  ;;  %v1056_v23 = vsel %vm7380_vm6, %v1051_v9, %v1055_v44  ;;  %v1066_v25 = vsel %vm7380_vm6, %v1061_v10, %v1065_v60  ;;  %658 = vst [vmem:[#allocation2 + $0x1c] sm:$0xf] %v358_v15 }
  0x3b   : > { %661 = vst [vmem:[#allocation2 + $0x20] sm:$0x1] %v660_v16  ;;  %v488_v26 = vshrl.u32 %v202_v0, 16  ;;  %v491_v27 = vshll.u32 %v202_v0, 16  ;;  %v7174_v8 = vld [vmem:[%s10137_s1 + $0xa8] sm:$0xff]   ;;  %v5958_v55 = vcombine.low %v1056_v23, %v1066_v25  ;;  %6801 = vmatpush3.bf16.msra.mxu0 %v7453_v34  ;;  %v485_v28 = vor.u32 %v483_v18, %v482_v17  ;;  %v7176_v63 = vld [vmem:[%s10137_s1 + $0xa0] sm:$0xff]  }
  0x3c   : > { %v486_v29 = vrot.slane %v482_v17, 4  ;;  %v233_v32 = vsel %vm7374_vm5, 0, %v232_v4  ;;  %6802 = vmatprep.subr.bf16.mxu0 %v7172_v11  ;;  %v283_v35 = vsel %vm7388_vm8, 0, %v282_v13  ;;  %v361_v36 = vshrl.u32 %v7494_v61, 16  ;;  %v7541_v45 = vld [vmem:[%s7362_s25 + $0x54] sm:$0xf] }
  0x3d   : > { %v490_v33 = vrot.slane %v488_v26, 7  ;;  %234 = vst [vmem:[#allocation2 + $0x24] sm:$0x1] %v233_v32  ;;  %v364_v37 = vshll.u32 %v7494_v61, 16  ;;  %6737 = vmatmul.mubr.bf16.vlgmr.msra.gmra.mxu1 %v5958_v55  ;;  %284 = vst [vmem:[#allocation2 + $0x2c] sm:$0x1] %v283_v35 }
  0x3e   : > { %v369_v34 = vshrl.u32 %v7502_v12, 16  ;;  %v372_v38 = vshll.u32 %v7502_v12, 16  ;;  %v257_v39 = vsel %vm7374_vm5, 0, %v256_v20  ;;  %v307_v40 = vsel %vm7388_vm8, 0, %v306_v22  ;;  %6753 = vmatpush3.bf16.msra.mxu1 %v7444_v31  ;;  %v764_v41 = vld [vmem:[#allocation2 + $0x18] sm:$0xf] }
  0x3f   : > { %v493_v42 = vor.u32 %v491_v27, %v490_v33  ;;  %v495_v43 = vrot.slane %v490_v33, 4  ;;  %v363_v44 = vrot.slane %v361_v36, 7  ;;  %258 = vst [vmem:[#allocation2 + $0x84] sm:$0x1] %v257_v39  ;;  %308 = vst [vmem:[#allocation2 + $0x8c] sm:$0x1] %v307_v40  ;;  %6754 = vmatprep.subr.bf16.mxu1 %v7507_v14  ;;  %6803 = vmatpush3.bf16.msra.mxu0 %v7172_v11 }
  0x40   : > { %v497_v47 = vshrl.u32 %v7517_v19, 16  ;;  %v876_v49 = vshrl.u32 %v764_v41, 16  ;;  %v879_v50 = vshll.u32 %v764_v41, 16  ;;  %v711_v31 = vld [vmem:[#allocation2 + $0x78] sm:$0xf]  ;;  %v371_v51 = vrot.slane %v369_v34, 7  ;;  %6804 = vmatprep.subr.bf16.mxu0 %v7174_v8 }
  0x41   : > { %v500_v52 = vshll.u32 %v7517_v19, 16  ;;  %v494_v53 = vsel %vm7403_vm10, %v486_v29, %v493_v42  ;;  %v712_v54 = vsel %vm7417_vm11, %v485_v28, %v711_v31  ;;  %v715_v57 = vld [vmem:[#allocation2 + $0x80] sm:$0x1]  ;;  %v366_v60 = vor.u32 %v364_v37, %v363_v44  ;;  %v765_v0 = vld [vmem:[#allocation2 + $0x1c] sm:$0xf]  ;;  %v7180_v39 = vld [vmem:[%s10137_s1 + $0x90] sm:$0xff]  }
  0x42   : > { %v367_v62 = vrot.slane %v363_v44, 4  ;;  %v810_v1 = vld [vmem:[#allocation2 + $0x20] sm:$0x1]  ;;  %v878_v2 = vrot.slane %v876_v49, 4  ;;  %v881_v3 = vrot.slane %v879_v50, 5  ;;  %v716_v59 = vsel %vm7374_vm5, %v495_v43, %v715_v57  ;;  %6755 = vmatpush3.bf16.msra.mxu1 %v7507_v14  ;;  %v7178_v16 = vld [vmem:[%s10137_s1 + $0x98] sm:$0xff]  }
  0x43   : > { %713 = vst [vmem:[#allocation2 + $0x78] sm:$0xf] %v712_v54  ;;  %714 = vst [vmem:[#allocation2 + $0x7c] sm:$0xf] %v494_v53  ;;  %v374_v61 = vor.u32 %v372_v38, %v371_v51  ;;  %v885_v4 = vshll.u32 %v765_v0, 16  ;;  %v889_v5 = vshrl.u32 %v765_v0, 16  ;;  %6756 = vmatprep.subr.bf16.mxu1 %v7173_v48  ;;  %6805 = vmatpush3.bf16.msra.mxu0 %v7174_v8 }
  0x44   : > { %v895_v9 = vshll.u32 %v810_v1, 16  ;;  %717 = vst [vmem:[#allocation2 + $0x80] sm:$0x1] %v716_v59  ;;  %v376_v10 = vrot.slane %v371_v51, 4  ;;  %v882_v11 = vor.u32 %v881_v3, %v878_v2  ;;  %v662_v12 = vld [vmem:[#allocation2 + $0x24] sm:$0xf]  ;;  %6806 = vmatprep.subr.bf16.mxu0 %v7176_v63 }
  0x45   : > { %v375_v6 = vsel %vm7403_vm10, %v367_v62, %v374_v61  ;;  %v499_v13 = vrot.slane %v497_v47, 7  ;;  %v505_v15 = vshrl.u32 %v7541_v45, 16  ;;  %v7175_v14 = vld [vmem:[%s10137_s1 + $0x20] sm:$0xff]   ;;  %v887_v17 = vrot.slane %v885_v4, 5  ;;  %v666_v20 = vld [vmem:[#allocation2 + $0x2c] sm:$0x1] }
  0x46   : > { %v891_v18 = vrot.slane %v889_v5, 4  ;;  %v663_v19 = vsel %vm7417_vm11, %v366_v60, %v662_v12  ;;  %665 = vst [vmem:[#allocation2 + $0x28] sm:$0xf] %v375_v6  ;;  %v7571_v22 = vld [vmem:[%s7362_s25 + $0x18] sm:$0xf]  ;;  %v883_v23 = vrot.slane %v882_v11, 4  ;;  %v667_v26 = vsel %vm7374_vm5, %v376_v10, %v666_v20  ;;  %6757 = vmatpush3.bf16.msra.mxu1 %v7173_v48 }
  0x47   : > { %v897_v25 = vrot.slane %v895_v9, 5  ;;  %664 = vst [vmem:[#allocation2 + $0x24] sm:$0xf] %v663_v19  ;;  %v502_v27 = vor.u32 %v500_v52, %v499_v13  ;;  %v718_v8 = vld [vmem:[#allocation2 + $0x84] sm:$0xf]  ;;  %v503_v28 = vrot.slane %v499_v13, 4  ;;  %6758 = vmatprep.subr.bf16.mxu1 %v7175_v14  ;;  %6807 = vmatpush3.bf16.msra.mxu0 %v7176_v63 }
  0x48   : > { %v892_v55 = vor.u32 %v891_v18, %v887_v17  ;;  %668 = vst [vmem:[#allocation2 + $0x2c] sm:$0x1] %v667_v26  ;;  %v507_v29 = vrot.slane %v505_v15, 7  ;;  %v508_v32 = vshll.u32 %v7541_v45, 16  ;;  %v235_v33 = vld [vmem:[#allocation2 + $0x30] sm:$0x1]  ;;  %v888_v40 = vsel %vm7380_vm6, %v883_v23, %v887_v17  ;;  %6808 = vmatprep.subr.bf16.mxu0 %v7178_v16 }
  0x49   : > { %v719_v35 = vsel %vm7417_vm11, %v502_v27, %v718_v8  ;;  %v722_v36 = vld [vmem:[#allocation2 + $0x8c] sm:$0x1]  ;;  %v236_v37 = vsel %vm7374_vm5, 0, %v235_v33  ;;  %v378_v34 = vshrl.u32 %v7571_v22, 16  ;;  %v7177_v38 = vld [vmem:[%s10137_s1 + $0x18] sm:$0xff]   ;;  %v7179_v60 = vld [vmem:[%s10137_s1 + $0x10] sm:$0xff]  }
  0x4a   : > { %v893_v41 = vrot.slane %v892_v55, 4  ;;  %v780_v42 = vld [vmem:[#allocation2 + $0x78] sm:$0xf]  ;;  %v781_v43 = vld [vmem:[#allocation2 + $0x7c] sm:$0xf]  ;;  %v510_v44 = vor.u32 %v508_v32, %v507_v29  ;;  %v512_v45 = vrot.slane %v507_v29, 4  ;;  %6759 = vmatpush3.bf16.msra.mxu1 %v7175_v14 }
  0x4b   : > { %720 = vst [vmem:[#allocation2 + $0x84] sm:$0xf] %v719_v35  ;;  %237 = vst [vmem:[#allocation2 + $0x30] sm:$0x1] %v236_v37  ;;  %v818_v47 = vld [vmem:[#allocation2 + $0x80] sm:$0x1]  ;;  %6760 = vmatprep.subr.bf16.mxu1 %v7177_v38  ;;  %6809 = vmatpush3.bf16.msra.mxu0 %v7178_v16 }
  0x4c   : > { %v1068_v48 = vshrl.u32 %v780_v42, 16  ;;  %v1071_v49 = vshll.u32 %v780_v42, 16  ;;  %v1077_v50 = vshll.u32 %v781_v43, 16  ;;  %v1081_v31 = vshrl.u32 %v781_v43, 16  ;;  %v285_v57 = vld [vmem:[#allocation2 + $0x38] sm:$0x1]  ;;  %6810 = vmatprep.subr.bf16.mxu0 %v7180_v39 }
  0x4d   : > { %v898_v51 = vsel %vm7380_vm6, %v893_v41, %v897_v25  ;;  %v1087_v52 = vshll.u32 %v818_v47, 16  ;;  %v511_v53 = vsel %vm7403_vm10, %v503_v28, %v510_v44  ;;  %v723_v54 = vsel %vm7374_vm5, %v512_v45, %v722_v36  ;;  %v7598_v2 = vld [vmem:[#allocation2 + $0x28] sm:$0xf]  ;;  %v7184_v29 = vld [vmem:[%s10137_s1 + $0x80] sm:$0xff]   ;;  %v7621_v36 = vld [vmem:[%s7362_s25 + $0x1c] sm:$0xf] }
  0x4e   : > { %v5951_v62 = vcombine.low %v888_v40, %v898_v51  ;;  %v1070_v63 = vrot.slane %v1068_v48, 4  ;;  %v1073_v0 = vrot.slane %v1071_v49, 5  ;;  %v1079_v1 = vrot.slane %v1077_v50, 5  ;;  %721 = vst [vmem:[#allocation2 + $0x88] sm:$0xf] %v511_v53  ;;  %v7182_v3 = vld [vmem:[%s10137_s1 + $0x88] sm:$0xff]   ;;  %6761 = vmatpush3.bf16.msra.mxu1 %v7177_v38 }
  0x4f   : > { %724 = vst [vmem:[#allocation2 + $0x8c] sm:$0x1] %v723_v54  ;;  %v1083_v59 = vrot.slane %v1081_v31, 4  ;;  %v1089_v61 = vrot.slane %v1087_v52, 5  ;;  %v766_v4 = vld [vmem:[#allocation2 + $0x24] sm:$0xf]  ;;  %6762 = vmatprep.subr.bf16.mxu1 %v7179_v60  ;;  %6811 = vmatpush3.bf16.msra.mxu0 %v7180_v39 }
  0x50   : > { %v909_v5 = vshll.u32 %v7598_v2, 16  ;;  %v913_v9 = vshrl.u32 %v7598_v2, 16  ;;  %6724 = vmatprep.mubr.bf16.mxu0 %v5951_v62  ;;  %v1074_v10 = vor.u32 %v1073_v0, %v1070_v63  ;;  %v7605_v11 = vld [vmem:[#allocation2 + $0x2c] sm:$0x1]  ;;  %v900_v6 = vshrl.u32 %v766_v4, 16  ;;  %6812 = vmatprep.subr.bf16.mxu0 %v7182_v3 }
  0x51   : > { %v903_v12 = vshll.u32 %v766_v4, 16  ;;  %v286_v13 = vsel %vm7388_vm8, 0, %v285_v57  ;;  %v1084_v15 = vor.u32 %v1083_v59, %v1079_v1  ;;  %v919_v17 = vshll.u32 %v7605_v11, 16  ;;  %v7181_v18 = vld [vmem:[%s10137_s1 + $0x8] sm:$0xff]   ;;  %v7632_v48 = vld [vmem:[%s7362_s25 + $0x58] sm:$0xf] }
  0x52   : > { %v911_v14 = vrot.slane %v909_v5, 5  ;;  %v915_v16 = vrot.slane %v913_v9, 4  ;;  %287 = vst [vmem:[#allocation2 + $0x38] sm:$0x1] %v286_v13  ;;  %v1075_v19 = vrot.slane %v1074_v10, 4  ;;  %v902_v20 = vrot.slane %v900_v6, 4  ;;  %6763 = vmatpush3.bf16.msra.mxu1 %v7179_v60 }
  0x53   : > { %v905_v23 = vrot.slane %v903_v12, 5  ;;  %v782_v25 = vld [vmem:[#allocation2 + $0x84] sm:$0xf]  ;;  %v7613_v26 = vrot.slane %v378_v34, 7  ;;  %v1085_v27 = vrot.slane %v1084_v15, 4  ;;  %v921_v55 = vrot.slane %v919_v17, 5  ;;  %6764 = vmatprep.subr.bf16.mxu1 %v7181_v18  ;;  %6813 = vmatpush3.bf16.msra.mxu0 %v7182_v3 }
  0x54   : > { %v916_v8 = vor.u32 %v915_v16, %v911_v14  ;;  %v1092_v28 = vshrl.u32 %v782_v25, 16  ;;  %v1080_v32 = vsel %vm7380_vm6, %v1075_v19, %v1079_v1  ;;  %v1095_v35 = vshll.u32 %v782_v25, 16  ;;  %v7627_v34 = vld [vmem:[%s10137_s1] sm:$0xff]   ;;  %v669_v52 = vld [vmem:[#allocation2 + $0x30] sm:$0xf]  ;;  %6814 = vmatprep.subr.bf16.mxu0 %v7184_v29 }
  0x55   : > { %v906_v33 = vor.u32 %v905_v23, %v902_v20  ;;  %v381_v37 = vshll.u32 %v7571_v22, 16  ;;  %v1090_v38 = vsel %vm7380_vm6, %v1085_v27, %v1089_v61  ;;  %v783_v40 = vld [vmem:[#allocation2 + $0x88] sm:$0xf]  ;;  %v7637_v22 = vld [vmem:[%s10137_s1 + $0x138] sm:$0xff]   ;;  %v259_v53 = vld [vmem:[#allocation2 + $0x90] sm:$0x1] }
  0x56   : > { %v917_v39 = vrot.slane %v916_v8, 4  ;;  %v819_v41 = vld [vmem:[#allocation2 + $0x8c] sm:$0x1]  ;;  %v1094_v42 = vrot.slane %v1092_v28, 4  ;;  %v5959_v43 = vcombine.low %v1080_v32, %v1090_v38  ;;  %v1097_v45 = vrot.slane %v1095_v35, 5  ;;  %6765 = vmatpush3.bf16.msra.mxu1 %v7181_v18 }
  0x57   : > { %v907_v44 = vrot.slane %v906_v33, 4  ;;  %v1101_v47 = vshll.u32 %v783_v40, 16  ;;  %v1105_v50 = vshrl.u32 %v783_v40, 16  ;;  %v1111_v31 = vshll.u32 %v819_v41, 16  ;;  %v206_v63 = vld [vmem:[%s7362_s25 + $0x5c] sm:$0xf]  ;;  %6766 = vmatprep.subr.bf16.mxu1 %v7627_v34  ;;  %6815 = vmatpush3.bf16.msra.mxu0 %v7184_v29 }
  0x58   : > { %v922_v49 = vsel %vm7380_vm6, %v917_v39, %v921_v55  ;;  %v383_v51 = vor.u32 %v381_v37, %v7613_v26  ;;  %6740 = vmatprep.mubr.bf16.mxu1 %v5959_v43  ;;  %v1098_v57 = vor.u32 %v1097_v45, %v1094_v42  ;;  %v384_v62 = vrot.slane %v7613_v26, 4  ;;  %v309_v0 = vld [vmem:[#allocation2 + $0x98] sm:$0x1]  ;;  %v7648_v4 = vld [vmem:[%s7362_s25 + $0x20] sm:$0xf]  ;;  %6896 = vmatprep.subr.bf16.mxu0 %v7637_v22 }
  0x59   : > { %v912_v54 = vsel %vm7380_vm6, %v907_v44, %v911_v14  ;;  %v1103_v60 = vrot.slane %v1101_v47, 5  ;;  %v1107_v3 = vrot.slane %v1105_v50, 4  ;;  %v1113_v59 = vrot.slane %v1111_v31, 5  ;;  %v238_v5 = vld [vmem:[#allocation2 + $0x3c] sm:$0x1] }
  0x5a   : > { %v5952_v1 = vcombine.low %v912_v54, %v922_v49  ;;  %v386_v61 = vshrl.u32 %v7621_v36, 16  ;;  %v288_v9 = vld [vmem:[#allocation2 + $0x44] sm:$0x1]  ;;  %v1099_v10 = vrot.slane %v1098_v57, 4  ;;  %v389_v6 = vshll.u32 %v7621_v36, 16  ;;  %v7187_v14 = vld [vmem:[%s10137_s1 + $0xf8] sm:$0xff]   ;;  %6767 = vmatpush3.bf16.msra.mxu1 %v7627_v34 }
  0x5b   : > { %v670_v12 = vsel %vm7417_vm11, %v383_v51, %v669_v52  ;;  %v673_v13 = vld [vmem:[#allocation2 + $0x38] sm:$0x1]  ;;  %v260_v15 = vsel %vm7374_vm5, 0, %v259_v53  ;;  %v1108_v16 = vor.u32 %v1107_v3, %v1103_v60  ;;  %v310_v18 = vsel %vm7388_vm8, 0, %v309_v0  ;;  %v192_v27 = vld [vmem:[%s7362_s25 + $0x24] sm:$0xf]  ;;  %6848 = vmatprep.subr.bf16.mxu1 %v7187_v14 }
  0x5c   : > { %6725 = vmatmul.mubr.bf16.gmra.mxu0 %v5952_v1  ;;  %v388_v17 = vrot.slane %v386_v61, 7  ;;  %671 = vst [vmem:[#allocation2 + $0x30] sm:$0xf] %v670_v12  ;;  %261 = vst [vmem:[#allocation2 + $0x90] sm:$0x1] %v260_v15  ;;  %v514_v19 = vshrl.u32 %v7632_v48, 16  ;;  %v1104_v20 = vsel %vm7380_vm6, %v1099_v10, %v1103_v60 }
  0x5d   : > { %311 = vst [vmem:[#allocation2 + $0x98] sm:$0x1] %v310_v18  ;;  %v517_v23 = vshll.u32 %v7632_v48, 16  ;;  %v522_v25 = vshrl.u32 %v206_v63, 16  ;;  %v525_v26 = vshll.u32 %v206_v63, 16  ;;  %v1109_v8 = vrot.slane %v1108_v16, 4 }
  0x5e   : > { %v391_v55 = vor.u32 %v389_v6, %v388_v17  ;;  %v393_v28 = vrot.slane %v388_v17, 4  ;;  %v516_v29 = vrot.slane %v514_v19, 7  ;;  %v262_v32 = vld [vmem:[#allocation2 + $0x9c] sm:$0x1]  ;;  %v312_v33 = vld [vmem:[#allocation2 + $0xa4] sm:$0x1] }
  0x5f   : > { %v524_v35 = vrot.slane %v522_v25, 7  ;;  %v239_v36 = vsel %vm7374_vm5, 0, %v238_v5  ;;  %v289_v37 = vsel %vm7388_vm8, 0, %v288_v9  ;;  %v395_v38 = vshrl.u32 %v7648_v4, 16  ;;  %v207_v47 = vld [vmem:[%s7362_s25 + $0x60] sm:$0xf] }
  0x60   : > { %v1114_v39 = vsel %vm7380_vm6, %v1109_v8, %v1113_v59  ;;  %v392_v40 = vsel %vm7403_vm10, %v384_v62, %v391_v55  ;;  %v674_v34 = vsel %vm7374_vm5, %v393_v28, %v673_v13  ;;  %v519_v41 = vor.u32 %v517_v23, %v516_v29  ;;  %240 = vst [vmem:[#allocation2 + $0x3c] sm:$0x1] %v239_v36  ;;  %v208_v51 = vld [vmem:[%s7362_s25 + $0x64] sm:$0xf]  ;;  %v7285_v7 = vld [vmem:[#allocation2 + $0x20] sm:$0x1] }
  0x61   : > { %290 = vst [vmem:[#allocation2 + $0x44] sm:$0x1] %v289_v37  ;;  %v5960_v42 = vcombine.low %v1104_v20, %v1114_v39  ;;  %672 = vst [vmem:[#allocation2 + $0x34] sm:$0xf] %v392_v40  ;;  %v520_v43 = vrot.slane %v516_v29, 4  ;;  %v527_v44 = vor.u32 %v525_v26, %v524_v35  ;;  %v529_v45 = vrot.slane %v524_v35, 4 }
  0x62   : > { %675 = vst [vmem:[#allocation2 + $0x38] sm:$0x1] %v674_v34  ;;  %v397_v48 = vrot.slane %v395_v38, 7  ;;  %v398_v49 = vshll.u32 %v7648_v4, 16  ;;  %v403_v50 = vshrl.u32 %v192_v27, 16  ;;  %v406_v31 = vshll.u32 %v192_v27, 16 }
  0x63   : > { %6741 = vmatmul.mubr.bf16.gmra.mxu1 %v5960_v42  ;;  %v7682_v52 = vld [vmem:[#allocation2 + $0x30] sm:$0xf]  ;;  %v528_v53 = vsel %vm7403_vm10, %v520_v43, %v527_v44  ;;  %v263_v57 = vsel %vm7374_vm5, 0, %v262_v32  ;;  %v313_v60 = vsel %vm7388_vm8, 0, %v312_v33  ;;  %v531_v5 = vshrl.u32 %v207_v47, 16 }
  0x64   : > { %v725_v54 = vld [vmem:[#allocation2 + $0x90] sm:$0xf]  ;;  %v924_v62 = vshrl.u32 %v7682_v52, 16  ;;  %v927_v63 = vshll.u32 %v7682_v52, 16  ;;  %728 = vst [vmem:[#allocation2 + $0x94] sm:$0xf] %v528_v53  ;;  %v400_v3 = vor.u32 %v398_v49, %v397_v48 }
  0x65   : > { %v726_v0 = vsel %vm7417_vm11, %v519_v41, %v725_v54  ;;  %v729_v1 = vld [vmem:[#allocation2 + $0x98] sm:$0x1]  ;;  %264 = vst [vmem:[#allocation2 + $0x9c] sm:$0x1] %v263_v57  ;;  %314 = vst [vmem:[#allocation2 + $0xa4] sm:$0x1] %v313_v60 }
  0x66   : > { %727 = vst [vmem:[#allocation2 + $0x90] sm:$0xf] %v726_v0  ;;  %v730_v59 = vsel %vm7374_vm5, %v529_v45, %v729_v1  ;;  %v401_v61 = vrot.slane %v397_v48, 4  ;;  %v405_v4 = vrot.slane %v403_v50, 7  ;;  %v926_v9 = vrot.slane %v924_v62, 4 }
  0x67   : > { %v929_v10 = vrot.slane %v927_v63, 5  ;;  %731 = vst [vmem:[#allocation2 + $0x98] sm:$0x1] %v730_v59  ;;  %v534_v6 = vshll.u32 %v207_v47, 16  ;;  %v539_v12 = vshrl.u32 %v208_v51, 16  ;;  %v533_v17 = vrot.slane %v531_v5, 7 }
  0x68   : > { %v408_v13 = vor.u32 %v406_v31, %v405_v4  ;;  %v410_v15 = vrot.slane %v405_v4, 4  ;;  %v676_v14 = vld [vmem:[#allocation2 + $0x3c] sm:$0xf]  ;;  %v680_v16 = vld [vmem:[#allocation2 + $0x44] sm:$0x1]  ;;  %v542_v26 = vshll.u32 %v208_v51, 16 }
  0x69   : > { %v7696_v18 = vld [vmem:[#allocation2 + $0x34] sm:$0xf]  ;;  %v7698_v19 = vld [vmem:[#allocation2 + $0x38] sm:$0x1]  ;;  %v930_v20 = vor.u32 %v929_v10, %v926_v9  ;;  %v677_v23 = vsel %vm7417_vm11, %v400_v3, %v676_v14  ;;  %v541_v25 = vrot.slane %v539_v12, 7  ;;  %v536_v35 = vor.u32 %v534_v6, %v533_v17 }
  0x6a   : > { %v933_v27 = vshll.u32 %v7696_v18, 16  ;;  %v937_v8 = vshrl.u32 %v7696_v18, 16  ;;  %v943_v55 = vshll.u32 %v7698_v19, 16  ;;  %v409_v28 = vsel %vm7403_vm10, %v401_v61, %v408_v13  ;;  %678 = vst [vmem:[#allocation2 + $0x3c] sm:$0xf] %v677_v23 }
  0x6b   : > { %v241_v29 = vld [vmem:[#allocation2 + $0x48] sm:$0x1]  ;;  %v931_v32 = vrot.slane %v930_v20, 4  ;;  %679 = vst [vmem:[#allocation2 + $0x40] sm:$0xf] %v409_v28  ;;  %v681_v33 = vsel %vm7374_vm5, %v410_v15, %v680_v16  ;;  %v537_v36 = vrot.slane %v533_v17, 4  ;;  %v544_v34 = vor.u32 %v542_v26, %v541_v25 }
  0x6c   : > { %v935_v37 = vrot.slane %v933_v27, 5  ;;  %v939_v38 = vrot.slane %v937_v8, 4  ;;  %v945_v39 = vrot.slane %v943_v55, 5  ;;  %v7709_v40 = vld [vmem:[#allocation2 + $0x94] sm:$0xf]  ;;  %v546_v45 = vrot.slane %v541_v25, 4 }
  0x6d   : > { %682 = vst [vmem:[#allocation2 + $0x44] sm:$0x1] %v681_v33  ;;  %v291_v41 = vld [vmem:[#allocation2 + $0x50] sm:$0x1]  ;;  %v1125_v43 = vshll.u32 %v7709_v40, 16  ;;  %v1129_v44 = vshrl.u32 %v7709_v40, 16  ;;  %v545_v62 = vsel %vm7403_vm10, %v537_v36, %v544_v34 }
  0x6e   : > { %v7711_v42 = vld [vmem:[#allocation2 + $0x90] sm:$0xf]  ;;  %v242_v47 = vsel %vm7374_vm5, 0, %v241_v29  ;;  %v936_v48 = vsel %vm7380_vm6, %v931_v32, %v935_v37  ;;  %v940_v49 = vor.u32 %v939_v38, %v935_v37  ;;  %v7719_v50 = vld [vmem:[#allocation2 + $0x98] sm:$0x1]  ;;  %v292_v10 = vsel %vm7388_vm8, 0, %v291_v41 }
  0x6f   : > { %v1116_v31 = vshrl.u32 %v7711_v42, 16  ;;  %v1119_v51 = vshll.u32 %v7711_v42, 16  ;;  %v732_v53 = vld [vmem:[#allocation2 + $0x9c] sm:$0xf]  ;;  %243 = vst [vmem:[#allocation2 + $0x48] sm:$0x1] %v242_v47 }
  0x70   : > { %v1127_v54 = vrot.slane %v1125_v43, 5  ;;  %v1131_v57 = vrot.slane %v1129_v44, 4  ;;  %v1135_v60 = vshll.u32 %v7719_v50, 16  ;;  %v736_v63 = vld [vmem:[#allocation2 + $0xa4] sm:$0x1]  ;;  %v941_v0 = vrot.slane %v940_v49, 4 }
  0x71   : > { %v1118_v1 = vrot.slane %v1116_v31, 4  ;;  %v1121_v3 = vrot.slane %v1119_v51, 5  ;;  %v733_v59 = vsel %vm7417_vm11, %v536_v35, %v732_v53  ;;  %735 = vst [vmem:[#allocation2 + $0xa0] sm:$0xf] %v545_v62  ;;  %v7728_v5 = vld [vmem:[#allocation2 + $0x3c] sm:$0xf]  ;;  %v737_v9 = vsel %vm7374_vm5, %v546_v45, %v736_v63 }
  0x72   : > { %v1132_v61 = vor.u32 %v1131_v57, %v1127_v54  ;;  %v1137_v4 = vrot.slane %v1135_v60, 5  ;;  %734 = vst [vmem:[#allocation2 + $0x9c] sm:$0xf] %v733_v59  ;;  %v946_v6 = vsel %vm7380_vm6, %v941_v0, %v945_v39  ;;  %v7736_v13 = vld [vmem:[#allocation2 + $0x40] sm:$0xf]  ;;  %v948_v15 = vshrl.u32 %v7728_v5, 16 }
  0x73   : > { %v1122_v12 = vor.u32 %v1121_v3, %v1118_v1  ;;  %v951_v14 = vshll.u32 %v7728_v5, 16  ;;  %738 = vst [vmem:[#allocation2 + $0xa4] sm:$0x1] %v737_v9  ;;  %v193_v16 = vld [vmem:[%s7362_s25 + $0x28] sm:$0xf]  ;;  %v5953_v17 = vcombine.low %v936_v48, %v946_v6  ;;  %v957_v25 = vshll.u32 %v7736_v13, 16 }
  0x74   : > { %293 = vst [vmem:[#allocation2 + $0x50] sm:$0x1] %v292_v10  ;;  %v1133_v20 = vrot.slane %v1132_v61, 4  ;;  %v7741_v23 = vld [vmem:[#allocation2 + $0x44] sm:$0x1]  ;;  %v961_v26 = vshrl.u32 %v7736_v13, 16 }
  0x75   : > { %v1123_v27 = vrot.slane %v1122_v12, 4  ;;  %v950_v8 = vrot.slane %v948_v15, 4  ;;  %v953_v55 = vrot.slane %v951_v14, 5  ;;  %v967_v28 = vshll.u32 %v7741_v23, 16  ;;  %v194_v29 = vld [vmem:[%s7362_s25 + $0x2c] sm:$0xf]  ;;  %6728 = vmatprep.mubr.bf16.mxu0 %v5953_v17 }
  0x76   : > { %v1138_v32 = vsel %vm7380_vm6, %v1133_v20, %v1137_v4  ;;  %v959_v33 = vrot.slane %v957_v25, 5  ;;  %v963_v35 = vrot.slane %v961_v26, 4  ;;  %v412_v36 = vshrl.u32 %v193_v16, 16  ;;  %v315_v57 = vld [vmem:[#allocation2 + $0xb0] sm:$0x1] }
  0x77   : > { %v1128_v37 = vsel %vm7380_vm6, %v1123_v27, %v1127_v54  ;;  %v954_v38 = vor.u32 %v953_v55, %v950_v8  ;;  %v969_v39 = vrot.slane %v967_v28, 5  ;;  %v415_v34 = vshll.u32 %v193_v16, 16  ;;  %v265_v54 = vld [vmem:[#allocation2 + $0xa8] sm:$0x1]  ;;  %v210_v6 = vld [vmem:[%s7362_s25 + $0x6c] sm:$0xf] }
  0x78   : > { %v5961_v41 = vcombine.low %v1128_v37, %v1138_v32  ;;  %v964_v43 = vor.u32 %v963_v35, %v959_v33  ;;  %v7751_v44 = vld [vmem:[#allocation2 + $0xa0] sm:$0xf]  ;;  %v414_v45 = vrot.slane %v412_v36, 7  ;;  %v420_v47 = vshrl.u32 %v194_v29, 16  ;;  %v209_v3 = vld [vmem:[%s7362_s25 + $0x68] sm:$0xf] }
  0x79   : > { %10183 = vst [vmem:[#allocation7_spill] sm:$0xff] %v7751_v44  ;;  %v955_v48 = vrot.slane %v954_v38, 4  ;;  %v7753_v49 = vld [vmem:[#allocation2 + $0x9c] sm:$0xf]  ;;  %v1149_v31 = vshll.u32 %v7751_v44, 16  ;;  %v1153_v51 = vshrl.u32 %v7751_v44, 16 }
  0x7a   : > { %v423_v53 = vshll.u32 %v194_v29, 16  ;;  %6744 = vmatprep.mubr.bf16.mxu1 %v5961_v41  ;;  %v965_v60 = vrot.slane %v964_v43, 4  ;;  %v7757_v62 = vld [vmem:[#allocation2 + $0xa4] sm:$0x1]  ;;  %v1140_v63 = vshrl.u32 %v7753_v49, 16  ;;  %v1143_v0 = vshll.u32 %v7753_v49, 16 }
  0x7b   : > { %v417_v1 = vor.u32 %v415_v34, %v414_v45  ;;  %v960_v59 = vsel %vm7380_vm6, %v955_v48, %v959_v33  ;;  %v1151_v61 = vrot.slane %v1149_v31, 5  ;;  %v1155_v4 = vrot.slane %v1153_v51, 4  ;;  %v683_v10 = vld [vmem:[#allocation2 + $0x48] sm:$0xf]  ;;  %v687_v17 = vld [vmem:[#allocation2 + $0x50] sm:$0x1] }
  0x7c   : > { %v1159_v9 = vshll.u32 %v7757_v62, 16  ;;  %v970_v12 = vsel %vm7380_vm6, %v965_v60, %v969_v39  ;;  %v1142_v15 = vrot.slane %v1140_v63, 4  ;;  %v1145_v14 = vrot.slane %v1143_v0, 5  ;;  %v244_v8 = vld [vmem:[#allocation2 + $0x54] sm:$0x1] }
  0x7d   : > { %v418_v16 = vrot.slane %v414_v45, 4  ;;  %v5954_v20 = vcombine.low %v960_v59, %v970_v12  ;;  %v1156_v25 = vor.u32 %v1155_v4, %v1151_v61  ;;  %v422_v27 = vrot.slane %v420_v47, 7  ;;  %v294_v55 = vld [vmem:[#allocation2 + $0x5c] sm:$0x1]  ;;  %v195_v35 = vld [vmem:[%s7362_s25 + $0x30] sm:$0xf] }
  0x7e   : > { %v1161_v26 = vrot.slane %v1159_v9, 5  ;;  %v1146_v28 = vor.u32 %v1145_v14, %v1142_v15  ;;  %v684_v29 = vsel %vm7417_vm11, %v417_v1, %v683_v10  ;;  %v266_v32 = vsel %vm7374_vm5, 0, %v265_v54  ;;  %v196_v34 = vld [vmem:[%s7362_s25 + $0x34] sm:$0xf]  ;;  %v318_v1 = vld [vmem:[#allocation2 + $0xbc] sm:$0x1] }
  0x7f   : > { %v316_v33 = vsel %vm7388_vm8, 0, %v315_v57  ;;  %6729 = vmatmul.mubr.bf16.gmra.mxu0 %v5954_v20  ;;  %v1157_v36 = vrot.slane %v1156_v25, 4  ;;  %v425_v37 = vor.u32 %v423_v53, %v422_v27  ;;  %v427_v38 = vrot.slane %v422_v27, 4  ;;  %685 = vst [vmem:[#allocation2 + $0x48] sm:$0xf] %v684_v29 }
  0x80   : > { %267 = vst [vmem:[#allocation2 + $0xa8] sm:$0x1] %v266_v32  ;;  %317 = vst [vmem:[#allocation2 + $0xb0] sm:$0x1] %v316_v33  ;;  %v548_v39 = vshrl.u32 %v209_v3, 16  ;;  %v1147_v41 = vrot.slane %v1146_v28, 4 }
  0x81   : > { %v551_v43 = vshll.u32 %v209_v3, 16  ;;  %v556_v45 = vshrl.u32 %v210_v6, 16  ;;  %v559_v47 = vshll.u32 %v210_v6, 16  ;;  %v268_v48 = vld [vmem:[#allocation2 + $0xb4] sm:$0x1]  ;;  %v1162_v31 = vsel %vm7380_vm6, %v1157_v36, %v1161_v26 }
  0x82   : > { %v426_v51 = vsel %vm7403_vm10, %v418_v16, %v425_v37  ;;  %v688_v53 = vsel %vm7374_vm5, %v427_v38, %v687_v17  ;;  %v550_v54 = vrot.slane %v548_v39, 7  ;;  %v1152_v57 = vsel %vm7380_vm6, %v1147_v41, %v1151_v61  ;;  %v7789_v10 = vld [vmem:[%s7362_s25 + $0x70] sm:$0xf] }
  0x83   : > { %686 = vst [vmem:[#allocation2 + $0x4c] sm:$0xf] %v426_v51  ;;  %689 = vst [vmem:[#allocation2 + $0x50] sm:$0x1] %v688_v53  ;;  %v558_v60 = vrot.slane %v556_v45, 7  ;;  %v245_v63 = vsel %vm7374_vm5, 0, %v244_v8  ;;  %v5962_v3 = vcombine.low %v1152_v57, %v1162_v31 }
  0x84   : > { %v295_v0 = vsel %vm7388_vm8, 0, %v294_v55  ;;  %v553_v59 = vor.u32 %v551_v43, %v550_v54  ;;  %v554_v4 = vrot.slane %v550_v54, 4  ;;  %246 = vst [vmem:[#allocation2 + $0x54] sm:$0x1] %v245_v63  ;;  %v429_v9 = vshrl.u32 %v195_v35, 16 }
  0x85   : > { %296 = vst [vmem:[#allocation2 + $0x5c] sm:$0x1] %v295_v0  ;;  %v561_v6 = vor.u32 %v559_v47, %v558_v60  ;;  %v563_v61 = vrot.slane %v558_v60, 4  ;;  %v432_v12 = vshll.u32 %v195_v35, 16  ;;  %v437_v15 = vshrl.u32 %v196_v34, 16  ;;  %6745 = vmatmul.mubr.bf16.gmra.mxu1 %v5962_v3 }
  0x86   : > { %v431_v14 = vrot.slane %v429_v9, 7  ;;  %v440_v16 = vshll.u32 %v196_v34, 16  ;;  %v269_v17 = vsel %vm7374_vm5, 0, %v268_v48  ;;  %v319_v20 = vsel %vm7388_vm8, 0, %v318_v1  ;;  %v7795_v25 = vld [vmem:[#allocation2 + $0x48] sm:$0xf] }
  0x87   : > { %v562_v26 = vsel %vm7403_vm10, %v554_v4, %v561_v6  ;;  %v739_v27 = vld [vmem:[#allocation2 + $0xa8] sm:$0xf]  ;;  %v743_v8 = vld [vmem:[#allocation2 + $0xb0] sm:$0x1]  ;;  %270 = vst [vmem:[#allocation2 + $0xb4] sm:$0x1] %v269_v17 }
  0x88   : > { %320 = vst [vmem:[#allocation2 + $0xbc] sm:$0x1] %v319_v20  ;;  %v972_v29 = vshrl.u32 %v7795_v25, 16  ;;  %v975_v32 = vshll.u32 %v7795_v25, 16  ;;  %v740_v33 = vsel %vm7417_vm11, %v553_v59, %v739_v27  ;;  %742 = vst [vmem:[#allocation2 + $0xac] sm:$0xf] %v562_v26  ;;  %v744_v35 = vsel %vm7374_vm5, %v563_v61, %v743_v8 }
  0x89   : > { %741 = vst [vmem:[#allocation2 + $0xa8] sm:$0xf] %v740_v33  ;;  %745 = vst [vmem:[#allocation2 + $0xb0] sm:$0x1] %v744_v35  ;;  %v434_v36 = vor.u32 %v432_v12, %v431_v14  ;;  %v435_v37 = vrot.slane %v431_v14, 4  ;;  %v439_v38 = vrot.slane %v437_v15, 7 }
  0x8a   : > { %v565_v39 = vshrl.u32 %v7789_v10, 16  ;;  %v7810_v34 = vld [vmem:[#allocation2 + $0x4c] sm:$0xf]  ;;  %v7812_v41 = vld [vmem:[#allocation2 + $0x50] sm:$0x1]  ;;  %v974_v43 = vrot.slane %v972_v29, 4 }
  0x8b   : > { %v977_v45 = vrot.slane %v975_v32, 5  ;;  %v212_v47 = vld [vmem:[%s7362_s25 + $0x74] sm:$0xf]  ;;  %v981_v48 = vshll.u32 %v7810_v34, 16  ;;  %v985_v31 = vshrl.u32 %v7810_v34, 16  ;;  %v991_v51 = vshll.u32 %v7812_v41, 16 }
  0x8c   : > { %v442_v53 = vor.u32 %v440_v16, %v439_v38  ;;  %v690_v54 = vld [vmem:[#allocation2 + $0x54] sm:$0xf]  ;;  %v444_v60 = vrot.slane %v439_v38, 4  ;;  %v694_v0 = vld [vmem:[#allocation2 + $0x5c] sm:$0x1]  ;;  %v567_v1 = vrot.slane %v565_v39, 7 }
  0x8d   : > { %v978_v57 = vor.u32 %v977_v45, %v974_v43  ;;  %v691_v63 = vsel %vm7417_vm11, %v434_v36, %v690_v54  ;;  %v983_v3 = vrot.slane %v981_v48, 5  ;;  %v987_v59 = vrot.slane %v985_v31, 4 }
  0x8e   : > { %v993_v4 = vrot.slane %v991_v51, 5  ;;  %v443_v9 = vsel %vm7403_vm10, %v435_v37, %v442_v53  ;;  %692 = vst [vmem:[#allocation2 + $0x54] sm:$0xf] %v691_v63  ;;  %v695_v61 = vsel %vm7374_vm5, %v444_v60, %v694_v0  ;;  %v568_v12 = vshll.u32 %v7789_v10, 16  ;;  %v746_v26 = vld [vmem:[#allocation2 + $0xb4] sm:$0xf] }
  0x8f   : > { %v979_v6 = vrot.slane %v978_v57, 4  ;;  %693 = vst [vmem:[#allocation2 + $0x58] sm:$0xf] %v443_v9  ;;  %v571_v15 = vrot.slane %v567_v1, 4  ;;  %v988_v14 = vor.u32 %v987_v59, %v983_v3  ;;  %v7825_v16 = vld [vmem:[#allocation2 + $0xac] sm:$0xf] }
  0x90   : > { %10184 = vst [vmem:[#allocation8_spill] sm:$0xff] %v7825_v16  ;;  %696 = vst [vmem:[#allocation2 + $0x5c] sm:$0x1] %v695_v61  ;;  %v573_v17 = vshrl.u32 %v212_v47, 16  ;;  %v576_v20 = vshll.u32 %v212_v47, 16  ;;  %v1173_v32 = vshll.u32 %v7825_v16, 16  ;;  %v570_v10 = vor.u32 %v568_v12, %v567_v1 }
  0x91   : > { %v984_v27 = vsel %vm7380_vm6, %v979_v6, %v983_v3  ;;  %v7829_v8 = vld [vmem:[#allocation2 + $0xa8] sm:$0xf]  ;;  %v7831_v29 = vld [vmem:[#allocation2 + $0xb0] sm:$0x1]  ;;  %v1177_v33 = vshrl.u32 %v7825_v16, 16  ;;  %v989_v35 = vrot.slane %v988_v14, 4 }
  0x92   : > { %10185 = vst [vmem:[#allocation9_spill] sm:$0xff] %v7829_v8  ;;  %v1164_v36 = vshrl.u32 %v7829_v8, 16  ;;  %v1167_v37 = vshll.u32 %v7829_v8, 16  ;;  %v1183_v38 = vshll.u32 %v7831_v29, 16  ;;  %v1175_v39 = vrot.slane %v1173_v32, 5 }
  0x93   : > { %v1179_v43 = vrot.slane %v1177_v33, 4  ;;  %v575_v45 = vrot.slane %v573_v17, 7  ;;  %v747_v47 = vsel %vm7417_vm11, %v570_v10, %v746_v26  ;;  %v994_v48 = vsel %vm7380_vm6, %v989_v35, %v993_v4  ;;  %v750_v1 = vld [vmem:[#allocation2 + $0xbc] sm:$0x1]  ;;  %v1806_v61 = vld [vmem:[#allocation2] sm:$0xe] }
  0x94   : > { %v1166_v31 = vrot.slane %v1164_v36, 4  ;;  %v1169_v51 = vrot.slane %v1167_v37, 5  ;;  %v1185_v53 = vrot.slane %v1183_v38, 5  ;;  %748 = vst [vmem:[#allocation2 + $0xb4] sm:$0xf] %v747_v47  ;;  %v5955_v54 = vcombine.low %v984_v27, %v994_v48 }
  0x95   : > { %v1180_v57 = vor.u32 %v1179_v43, %v1175_v39  ;;  %v7842_v60 = vld [vmem:[#allocation2 + $0x54] sm:$0xf]  ;;  %v578_v63 = vor.u32 %v576_v20, %v575_v45  ;;  %v580_v0 = vrot.slane %v575_v45, 4  ;;  %vm1854_vm12 = vcmask 1042432   ;;  %v8199_v8 = vld [vmem:[#allocation2 + $0x38] sm:$0x1] }
  0x96   : > { %v1170_v3 = vor.u32 %v1169_v51, %v1166_v31  ;;  %v7844_v59 = vld [vmem:[#allocation2 + $0x58] sm:$0xf]  ;;  %v996_v9 = vshrl.u32 %v7842_v60, 16  ;;  %v999_v6 = vshll.u32 %v7842_v60, 16  ;;  %6732 = vmatprep.mubr.bf16.mxu0 %v5955_v54  ;;  %vm1855_vm13 = vcmask 1046532  }
  0x97   : > { %v1181_v4 = vrot.slane %v1180_v57, 4  ;;  %v7848_v12 = vld [vmem:[#allocation2 + $0x5c] sm:$0x1]  ;;  %v1005_v14 = vshll.u32 %v7844_v59, 16  ;;  %v1009_v17 = vshrl.u32 %v7844_v59, 16  ;;  %v579_v20 = vsel %vm7403_vm10, %v571_v15, %v578_v63  ;;  %vm7864_vm14 = vmor %vm1854_vm12, %vm1855_vm13 }
  0x98   : > { %v1171_v26 = vrot.slane %v1170_v3, 4  ;;  %v998_v27 = vrot.slane %v996_v9, 4  ;;  %v1001_v32 = vrot.slane %v999_v6, 5  ;;  %v1015_v33 = vshll.u32 %v7848_v12, 16  ;;  %749 = vst [vmem:[#allocation2 + $0xb8] sm:$0xf] %v579_v20 }
  0x99   : > { %v1186_v10 = vsel %vm7380_vm6, %v1181_v4, %v1185_v53  ;;  %v1007_v35 = vrot.slane %v1005_v14, 5  ;;  %v1011_v36 = vrot.slane %v1009_v17, 4  ;;  %v751_v37 = vsel %vm7374_vm5, %v580_v0, %v750_v1  ;;  %v1807_v15 = vld [vmem:[#allocation2 + $0xc] sm:$0xe]  ;;  %v7868_v54 = vld [vmem:[#allocation2 + $0x4] sm:$0xf] }
  0x9a   : > { %v1176_v38 = vsel %vm7380_vm6, %v1171_v26, %v1175_v39  ;;  %v1002_v43 = vor.u32 %v1001_v32, %v998_v27  ;;  %v1017_v45 = vrot.slane %v1015_v33, 5  ;;  %752 = vst [vmem:[#allocation2 + $0xbc] sm:$0x1] %v751_v37  ;;  %v5997_v53 = vrot.slane %v1806_v61, 9  ;;  %v1808_v39 = vld [vmem:[#allocation2 + $0x18] sm:$0xe] }
  0x9b   : > { %v5963_v47 = vcombine.low %v1176_v38, %v1186_v10  ;;  %v1012_v48 = vor.u32 %v1011_v36, %v1007_v35  ;;  %v7861_v31 = vld [vmem:[#allocation2 + $0xb4] sm:$0xf]  ;;  %v1859_v57 = vrot.slane %v7868_v54, 5  ;;  %v5998_v14 = vrot.slane %v1807_v15, 9  ;;  %v7873_v17 = vld [vmem:[#allocation2 + $0x10] sm:$0xf] }
  0x9c   : > { %10186 = vst [vmem:[#allocation10_spill] sm:$0xff] %v7861_v31  ;;  %v7282_v63 = vld [vmem:[#allocation2 + $0x14] sm:$0x1]  ;;  %v1003_v1 = vrot.slane %v1002_v43, 4  ;;  %v1188_v3 = vshrl.u32 %v7861_v31, 16  ;;  %v1191_v9 = vshll.u32 %v7861_v31, 16 }
  0x9d   : > { %v1869_v0 = vrot.slane %v7282_v63, 5  ;;  %6748 = vmatprep.mubr.bf16.mxu1 %v5963_v47  ;;  %v1013_v6 = vrot.slane %v1012_v48, 4  ;;  %v1861_v4 = vrot.slane %v1859_v57, 4  ;;  %v1866_v61 = vrot.slane %v7873_v17, 5  ;;  %v1809_v48 = vld [vmem:[#allocation2 + $0x24] sm:$0xe] }
  0x9e   : > { %v1008_v20 = vsel %vm7380_vm6, %v1003_v1, %v1007_v35  ;;  %v1190_v26 = vrot.slane %v1188_v3, 4  ;;  %v1193_v27 = vrot.slane %v1191_v9, 5  ;;  %v1860_v32 = vsel %vm7864_vm14, %v5997_v53, %v1859_v57  ;;  %v1810_v3 = vld [vmem:[#allocation2 + $0x30] sm:$0xe] }
  0x9f   : > { %v1018_v33 = vsel %vm7380_vm6, %v1013_v6, %v1017_v45  ;;  %v7882_v10 = vld [vmem:[#allocation2 + $0xb8] sm:$0xf]  ;;  %v1863_v36 = vsel %vm7864_vm14, %v1861_v4, %v1862_v56  ;;  %v1868_v37 = vrot.slane %v1866_v61, 4  ;;  %v5999_v38 = vrot.slane %v1808_v39, 9  ;;  %v7892_v45 = vld [vmem:[#allocation2 + $0x1c] sm:$0xf] }
  0xa0   : > { %10189 = vst [vmem:[#allocation11_spill] sm:$0xff] %v7882_v10  ;;  %v5956_v43 = vcombine.low %v1008_v20, %v1018_v33  ;;  %v1194_v15 = vor.u32 %v1193_v27, %v1190_v26  ;;  %v1197_v35 = vshll.u32 %v7882_v10, 16  ;;  %v1201_v47 = vshrl.u32 %v7882_v10, 16  ;;  %v7286_v33 = vld [vmem:[#allocation2] sm:$0xf] }
  0xa1   : > { %v7890_v53 = vld [vmem:[#allocation2 + $0xbc] sm:$0x1]  ;;  %v6029_v57 = vcombine.low %v1860_v32, %v1863_v36  ;;  %v1873_v63 = vrot.slane %v7892_v45, 5  ;;  %v1876_v1 = vrot.slane %v7285_v7, 5  ;;  %v1867_v4 = vsel %vm7864_vm14, %v5998_v14, %v1866_v61  ;;  %v1811_v61 = vld [vmem:[#allocation2 + $0x3c] sm:$0xe] }
  0xa2   : > { %6733 = vmatmul.mubr.bf16.gmra.mxu0 %v5956_v43  ;;  %v1195_v56 = vrot.slane %v1194_v15, 4  ;;  %v1199_v39 = vrot.slane %v1197_v35, 5  ;;  %v1203_v9 = vrot.slane %v1201_v47, 4  ;;  %v1207_v6 = vshll.u32 %v7890_v53, 16 }
  0xa3   : > { %6816 = vmatprep.mubr.bf16.mxu0 %v6029_v57  ;;  %v1870_v20 = vsel %vm7864_vm14, %v1868_v37, %v1869_v0  ;;  %v1875_v26 = vrot.slane %v1873_v63, 4  ;;  %v5973_v36 = vcombine.low %v7286_v33, %v7868_v54  ;;  %v1880_v43 = vrot.slane %v7598_v2, 5 }
  0xa4   : > { %v1204_v27 = vor.u32 %v1203_v9, %v1199_v39  ;;  %v1209_v32 = vrot.slane %v1207_v6, 5  ;;  %v1874_v15 = vsel %vm7864_vm14, %v5999_v38, %v1873_v63  ;;  %v6000_v47 = vrot.slane %v1809_v48, 9  ;;  %v7911_v38 = vld [vmem:[#allocation2 + $0x68] sm:$0x1] }
  0xa5   : > { %v1877_v35 = vsel %vm7864_vm14, %v1875_v26, %v1876_v1  ;;  %v1887_v14 = vrot.slane %v7696_v18, 5  ;;  %v1200_v0 = vsel %vm7380_vm6, %v1195_v56, %v1199_v39  ;;  %v6030_v57 = vcombine.low %v1867_v4, %v1870_v20  ;;  %v7192_v56 = vld [vmem:[%s10137_s1 + $0x130] sm:$0xff]   ;;  %v1812_v4 = vld [vmem:[#allocation2 + $0x48] sm:$0xe] }
  0xa6   : > { %v1205_v37 = vrot.slane %v1204_v27, 4  ;;  %v6001_v7 = vrot.slane %v1810_v3, 9  ;;  %v1882_v9 = vrot.slane %v1880_v43, 4  ;;  %v1883_v54 = vrot.slane %v7605_v11, 5 }
  0xa7   : > { %v1889_v2 = vrot.slane %v1887_v14, 4  ;;  %v1890_v6 = vrot.slane %v7698_v19, 5  ;;  %v6031_v1 = vcombine.low %v1874_v15, %v1877_v35  ;;  %v1894_v3 = vrot.slane %v7736_v13, 5  ;;  %v1813_v15 = vld [vmem:[#allocation2 + $0x54] sm:$0xe] }
  0xa8   : > { %v1210_v48 = vsel %vm7380_vm6, %v1205_v37, %v1209_v32  ;;  %v1881_v11 = vsel %vm7864_vm14, %v6000_v47, %v1880_v43  ;;  %v1888_v19 = vsel %vm7864_vm14, %v6001_v7, %v1887_v14  ;;  %v6002_v20 = vrot.slane %v1811_v61, 9  ;;  %v7934_v43 = vld [vmem:[%s10137_s1 + $0x128] sm:$0xff]   ;;  %v7940_v7 = vld [vmem:[#allocation2 + $0x60] sm:$0xe] }
  0xa9   : > { %v5964_v39 = vcombine.low %v1200_v0, %v1210_v48  ;;  %v1901_v26 = vrot.slane %v7810_v34, 5  ;;  %v1884_v27 = vsel %vm7864_vm14, %v1882_v9, %v1883_v54  ;;  %v1891_v32 = vsel %vm7864_vm14, %v1889_v2, %v1890_v6  ;;  %v7288_v0 = vld [vmem:[#allocation2 + $0xc] sm:$0xf]  ;;  %v7945_v48 = vld [vmem:[#allocation2 + $0x28] sm:$0xf] }
  0xaa   : > { %6817 = vmatmul.mubr.bf16.vlgmr.msra.gmra.mxu0 %v6030_v57  ;;  %v1897_v33 = vrot.slane %v7741_v23, 5  ;;  %v1908_v35 = vrot.slane %v7844_v59, 5  ;;  %v1896_v47 = vrot.slane %v1894_v3, 4  ;;  %v1904_v61 = vrot.slane %v7812_v41, 5  ;;  %v7289_v57 = vld [vmem:[#allocation2 + $0x18] sm:$0xf] }
  0xab   : > { %6749 = vmatmul.mubr.bf16.gmra.mxu1 %v5964_v39  ;;  %6897 = vmatpush3.bf16.msra.mxu0 %v7637_v22  ;;  %v6003_v22 = vrot.slane %v1812_v4, 9  ;;  %v1903_v14 = vrot.slane %v1901_v26, 4  ;;  %v5974_v37 = vcombine.low %v7288_v0, %v7873_v17  ;;  %v5975_v23 = vcombine.low %v7289_v57, %v7892_v45  ;;  %v7942_v9 = vld [vmem:[#allocation2 + $0x6c] sm:$0xe]  ;;  %v7955_v39 = vld [vmem:[#allocation2 + $0x64] sm:$0xf] }
  0xac   : > { %6768 = vmatprep.mubr.bf16.mxu1 %v5973_v36  ;;  %6820 = vmatprep.mubr.bf16.mxu0 %v6031_v1  ;;  %v6032_v54 = vcombine.low %v1881_v11, %v1884_v27  ;;  %v6004_v2 = vrot.slane %v1813_v15, 9  ;;  %v1910_v36 = vrot.slane %v1908_v35, 4  ;;  %v1911_v6 = vrot.slane %v7848_v12, 5  ;;  %v7947_v1 = vld [vmem:[#allocation2 + $0x24] sm:$0xf] }
  0xad   : > { %6898 = vmatprep.subr.bf16.mxu0 %v7192_v56  ;;  %v6033_v17 = vcombine.low %v1888_v19, %v1891_v32  ;;  %v7953_v45 = vsel %vm7864_vm14, %v6002_v20, %v1894_v3  ;;  %v1915_v4 = vrot.slane %v7955_v39, 5  ;;  %v7960_v12 = vsel %vm7864_vm14, %v1896_v47, %v1897_v33  ;;  %v7971_v3 = vld [vmem:[#allocation2 + $0x70] sm:$0xf]  ;;  %v7200_v27 = vld [vmem:[%s10137_s1 + $0x120] sm:$0xff]   ;;  %v7984_v33 = vld [vmem:[#allocation2 + $0x6c] sm:$0xf] }
  0xae   : > { %v7965_v11 = vsel %vm7864_vm14, %v6003_v22, %v1901_v26  ;;  %v1922_v19 = vrot.slane %v7971_v3, 5  ;;  %v7191_v20 = vld [vmem:[%s10137_s1 + $0xf0] sm:$0xff]   ;;  %v7980_v32 = vld [vmem:[#allocation2 + $0x60] sm:$0xf]  ;;  %v7988_v47 = vld [vmem:[#allocation2 + $0x78] sm:$0xf]  ;;  %v8004_v15 = vsel %vm7864_vm14, %v6004_v2, %v1908_v35  ;;  %v8008_v28 = vsel %vm7864_vm14, %v1910_v36, %v1911_v6 }
  0xaf   : > { %6899 = vmatpush3.bf16.msra.mxu0 %v7192_v56  ;;  %v7969_v56 = vsel %vm7864_vm14, %v1903_v14, %v1904_v61  ;;  %v7990_v22 = vld [vmem:[#allocation2 + $0x7c] sm:$0xf]  ;;  %v7994_v61 = vld [vmem:[#allocation2 + $0x78] sm:$0xe]  ;;  %v7996_v0 = vld [vmem:[#allocation2 + $0x84] sm:$0xf]  ;;  %v6034_v63 = vcombine.low %v7953_v45, %v7960_v12 }
  0xb0   : > { %6900 = vmatprep.subr.bf16.mxu0 %v7934_v43  ;;  %v7998_v57 = vld [vmem:[#allocation2 + $0x88] sm:$0xf]  ;;  %v6005_v14 = vrot.slane %v7940_v7, 9  ;;  %v6006_v55 = vrot.slane %v7942_v9, 9  ;;  %v1819_v41 = vld [vmem:[#allocation2 + $0x9c] sm:$0xe]  ;;  %v6035_v35 = vcombine.low %v7965_v11, %v7969_v56 }
  0xb1   : > { %v1917_v2 = vrot.slane %v1915_v4, 4  ;;  %v8019_v36 = vld [vmem:[#allocation2 + $0x84] sm:$0xe]  ;;  %v1924_v9 = vrot.slane %v1922_v19, 4  ;;  %v7301_v6 = vld [vmem:[#allocation2 + $0x74] sm:$0x1] }
  0xb2   : > { %6821 = vmatmul.mubr.bf16.gmra.mxu0 %v6032_v54  ;;  %v7195_v54 = vld [vmem:[%s10137_s1 + $0xe8] sm:$0xff]   ;;  %v7204_v45 = vld [vmem:[%s10137_s1 + $0x118] sm:$0xff]   ;;  %v6007_v12 = vrot.slane %v7994_v61, 9  ;;  %v1929_v11 = vrot.slane %v7990_v22, 5  ;;  %v6010_v26 = vrot.slane %v1819_v41, 9  ;;  %v8038_v58 = vsel %vm7864_vm14, %v6005_v14, %v1915_v4 }
  0xb3   : > { %6769 = vmatmul.mubr.bf16.vlgmr.msra.gmra.mxu1 %v5974_v37  ;;  %6824 = vmatprep.mubr.bf16.mxu0 %v6033_v17  ;;  %v7300_v37 = vld [vmem:[%s10137_s1 + $0xf8] sm:$0xff]   ;;  %v1925_v17 = vrot.slane %v7301_v6, 5  ;;  %v1820_v56 = vld [vmem:[#allocation2 + $0xa8] sm:$0xe]  ;;  %v8042_v61 = vsel %vm7864_vm14, %v6006_v55, %v1922_v19  ;;  %v1936_v46 = vrot.slane %v7998_v57, 5  ;;  %v10190_v7 = vrot.slane %v7911_v38, 5 }
  0xb4   : > { %6849 = vmatpush3.bf16.msra.mxu1 %v7300_v37  ;;  %6772 = vmatprep.mubr.bf16.mxu1 %v5975_v23  ;;  %v7302_v37 = vld [vmem:[#allocation2 + $0x80] sm:$0x1]  ;;  %v1950_v41 = vrot.slane %v7751_v44, 5  ;;  %v1953_v6 = vrot.slane %v7757_v62, 5  ;;  %v7303_v55 = vld [vmem:[#allocation2 + $0x8c] sm:$0x1] }
  0xb5   : > { %6850 = vmatprep.subr.bf16.mxu1 %v7191_v20  ;;  %6901 = vmatpush3.bf16.msra.mxu0 %v7934_v43  ;;  %v1932_v23 = vrot.slane %v7302_v37, 5  ;;  %v6008_v43 = vrot.slane %v8019_v36, 9  ;;  %v8050_v37 = vsel %vm7864_vm14, %v1917_v2, %v10190_v7  ;;  %v1939_v19 = vrot.slane %v7303_v55, 5  ;;  %v2677_v38 = vld [vmem:[#allocation2 + $0xc] sm:$0xf]  ;;  %v7199_v2 = vld [vmem:[%s10137_s1 + $0xe0] sm:$0xff]  }
  0xb6   : > { %6902 = vmatprep.subr.bf16.mxu0 %v7200_v27  ;;  %v6011_v14 = vrot.slane %v1820_v56, 9  ;;  %v1957_v36 = vrot.slane %v7825_v16, 5  ;;  %v1960_v30 = vrot.slane %v7831_v29, 5  ;;  %v1931_v7 = vrot.slane %v1929_v11, 4  ;;  %v1818_v62 = vld [vmem:[#allocation2 + $0x90] sm:$0xe] }
  0xb7   : > { %v8063_v4 = vsel %vm7864_vm14, %v6010_v26, %v1950_v41  ;;  %v1938_v29 = vrot.slane %v1936_v46, 4  ;;  %v7208_v55 = vld [vmem:[%s10137_s1 + $0x110] sm:$0xff]   ;;  %v1943_v21 = vrot.slane %v7709_v40, 5  ;;  %v10191_v26 = vcombine.low %v7947_v1, %v7945_v48  ;;  %v8201_v44 = vld [vmem:[#allocation2 + $0x40] sm:$0xf] }
  0xb8   : > { %6851 = vmatpush3.bf16.msra.mxu1 %v7191_v20  ;;  %v1952_v20 = vrot.slane %v1950_v41, 4  ;;  %v1959_v16 = vrot.slane %v1957_v36, 4  ;;  %v2726_v56 = vshrl.u32 %v2677_v38, 16  ;;  %v2729_v31 = vshll.u32 %v2677_v38, 16 }
  0xb9   : > { %6852 = vmatprep.subr.bf16.mxu1 %v7195_v54  ;;  %6903 = vmatpush3.bf16.msra.mxu0 %v7200_v27  ;;  %v8073_v27 = vsel %vm7864_vm14, %v6011_v14, %v1957_v36  ;;  %v10192_v14 = vcombine.low %v7682_v52, %v7696_v18  ;;  %v8091_v48 = vsel %vm7864_vm14, %v6007_v12, %v1929_v11  ;;  %v6009_v1 = vrot.slane %v1818_v62, 9  ;;  %v7203_v52 = vld [vmem:[%s10137_s1 + $0xd8] sm:$0xff]   ;;  %v8117_v11 = vld [vmem:[#allocation2 + $0x14] sm:$0x1]  ;;  %v2686_v62 = vld [vmem:[#allocation2 + $0x30] sm:$0xf] }
  0xba   : > { %6825 = vmatmul.mubr.bf16.gmra.mxu0 %v6034_v63  ;;  %6904 = vmatprep.subr.bf16.mxu0 %v7204_v45  ;;  %v8080_v63 = vsel %vm7864_vm14, %v1924_v9, %v1925_v17  ;;  %v8084_v41 = vsel %vm7864_vm14, %v1952_v20, %v1953_v6  ;;  %v8097_v9 = vsel %vm7864_vm14, %v1959_v16, %v1960_v30  ;;  %v8099_v17 = vld [vmem:[#allocation2 + $0x10] sm:$0xf]  ;;  %v1946_v12 = vrot.slane %v7719_v50, 5  ;;  %v8115_v16 = vld [vmem:[#allocation2 + $0xb4] sm:$0xe] }
  0xbb   : > { %6773 = vmatmul.mubr.bf16.gmra.mxu1 %v10191_v26  ;;  %6828 = vmatprep.mubr.bf16.mxu0 %v6035_v35  ;;  %10193 = vst [vmem:[#allocation12_spill] sm:$0xff] %v8099_v17  ;;  %v8106_v18 = vsel %vm7864_vm14, %v1931_v7, %v1932_v23  ;;  %10194 = vst [vmem:[#allocation13_spill] sm:$0xff] %v8117_v11  ;;  %v2680_v6 = vld [vmem:[#allocation2 + $0x18] sm:$0xf]  ;;  %v1945_v23 = vrot.slane %v1943_v21, 4  ;;  %v2731_v50 = vrot.slane %v2729_v31, 5 }
  0xbc   : > { %6776 = vmatprep.mubr.bf16.mxu1 %v10192_v14  ;;  %6853 = vmatpush3.bf16.msra.mxu1 %v7195_v54  ;;  %v8110_v54 = vsel %vm7864_vm14, %v6008_v43, %v1936_v46  ;;  %v7212_v46 = vld [vmem:[%s10137_s1 + $0x108] sm:$0xff]   ;;  %v2728_v43 = vrot.slane %v2726_v56, 4  ;;  %v8126_v36 = vld [vmem:[#allocation2 + $0x1c] sm:$0xf]  ;;  %v5979_v38 = vcombine.low %v7795_v25, %v7810_v34  ;;  %v7207_v20 = vld [vmem:[%s10137_s1 + $0xd0] sm:$0xff]   ;;  %v8143_v25 = vsel %vm7864_vm14, %v6009_v1, %v1943_v21 }
  0xbd   : > { %6854 = vmatprep.subr.bf16.mxu1 %v7199_v2  ;;  %6905 = vmatpush3.bf16.msra.mxu0 %v7204_v45  ;;  %v8121_v45 = vsel %vm7864_vm14, %v1938_v29, %v1939_v19  ;;  %10195 = vst [vmem:[#allocation14_spill] sm:$0xff] %v8126_v36  ;;  %v6037_v19 = vcombine.low %v8038_v58, %v8050_v37  ;;  %v2683_v56 = vld [vmem:[#allocation2 + $0x24] sm:$0xf]  ;;  %v1964_v34 = vrot.slane %v7882_v10, 5  ;;  %v2735_v58 = vshll.u32 %v8099_v17, 16 }
  0xbe   : > { %6906 = vmatprep.subr.bf16.mxu0 %v7208_v55  ;;  %v8147_v37 = vld [vmem:[#allocation2 + $0x28] sm:$0xf]  ;;  %v2739_v26 = vshrl.u32 %v8099_v17, 16  ;;  %v2745_v21 = vshll.u32 %v8117_v11, 16  ;;  %v2750_v14 = vshrl.u32 %v2680_v6, 16  ;;  %v10197_v1 = vcombine.low %v8004_v15, %v8008_v28  ;;  %v7215_v11 = vld [vmem:[%s10137_s1 + $0xc0] sm:$0xff]  }
  0xbf   : > { %10196 = vst [vmem:[#allocation15_spill] sm:$0xff] %v8147_v37  ;;  %v8161_v30 = vsel %vm7864_vm14, %v1945_v23, %v1946_v12  ;;  %v2732_v35 = vor.u32 %v2731_v50, %v2728_v43  ;;  %v2682_v29 = vld [vmem:[#allocation2 + $0x20] sm:$0x1]  ;;  %v2753_v31 = vshll.u32 %v2680_v6, 16  ;;  %v10198_v7 = vcombine.low %v7728_v5, %v7736_v13  ;;  %v7211_v28 = vld [vmem:[%s10137_s1 + $0xc8] sm:$0xff]   ;;  %v8180_v13 = vld [vmem:[%s10137_s1 + $0x1b8] sm:$0xff]  }
  0xc0   : > { %6855 = vmatpush3.bf16.msra.mxu1 %v7199_v2  ;;  %v7216_v2 = vld [vmem:[%s10137_s1 + $0x100] sm:$0xff]   ;;  %v2759_v15 = vshll.u32 %v8126_v36, 16  ;;  %v2763_v12 = vshrl.u32 %v8126_v36, 16  ;;  %v2774_v23 = vshrl.u32 %v2683_v56, 16  ;;  %v1967_v6 = vrot.slane %v7890_v53, 5 }
  0xc1   : > { %6856 = vmatprep.subr.bf16.mxu1 %v7203_v52  ;;  %6907 = vmatpush3.bf16.msra.mxu0 %v7208_v55  ;;  %v6012_v55 = vrot.slane %v8115_v16, 9  ;;  %v8172_v16 = vrot.slane %v1964_v34, 4  ;;  %v8175_v5 = vrot.slane %v2735_v58, 5  ;;  %v2783_v43 = vshll.u32 %v8147_v37, 16  ;;  %v8183_v50 = vld [vmem:[#allocation2 + $0x34] sm:$0xf] }
  0xc2   : > { %6829 = vmatmul.mubr.bf16.gmra.mxu0 %v10197_v1  ;;  %6908 = vmatprep.subr.bf16.mxu0 %v7212_v46  ;;  %v2777_v1 = vshll.u32 %v2683_v56, 16  ;;  %v8188_v53 = vrot.slane %v2732_v35, 4  ;;  %v2755_v56 = vrot.slane %v2753_v31, 5  ;;  %v2769_v58 = vshll.u32 %v2682_v29, 16 }
  0xc3   : > { %6777 = vmatmul.mubr.bf16.gmra.mxu1 %v10198_v7  ;;  %6832 = vmatprep.mubr.bf16.mxu0 %v6037_v19  ;;  %v2741_v7 = vrot.slane %v2739_v26, 4  ;;  %v2787_v19 = vshrl.u32 %v8147_v37, 16  ;;  %v2798_v36 = vshrl.u32 %v2686_v62, 16  ;;  %v8193_v17 = vrot.slane %v2759_v15, 5 }
  0xc4   : > { %6780 = vmatprep.mubr.bf16.mxu1 %v5979_v38  ;;  %6857 = vmatpush3.bf16.msra.mxu1 %v7203_v52  ;;  %v8185_v38 = vrot.slane %v2745_v21, 5  ;;  %v2752_v52 = vrot.slane %v2750_v14, 4  ;;  %v2765_v10 = vrot.slane %v2763_v12, 4  ;;  %v2776_v26 = vrot.slane %v2774_v23, 4  ;;  %v2689_v14 = vld [vmem:[#allocation2 + $0x3c] sm:$0xf] }
  0xc5   : > { %6858 = vmatprep.subr.bf16.mxu1 %v7207_v20  ;;  %6909 = vmatpush3.bf16.msra.mxu0 %v7212_v46  ;;  %v8195_v46 = vld [vmem:[#allocation2 + $0x2c] sm:$0x1]  ;;  %v2779_v21 = vrot.slane %v2777_v1, 5  ;;  %v8197_v37 = vrot.slane %v2783_v43, 5  ;;  %v2789_v35 = vrot.slane %v2787_v19, 4  ;;  %v2800_v31 = vrot.slane %v2798_v36, 4 }
  0xc6   : > { %6910 = vmatprep.subr.bf16.mxu0 %v7216_v2  ;;  %v2801_v29 = vshll.u32 %v2686_v62, 16  ;;  %v6041_v15 = vcombine.low %v8143_v25, %v8161_v30  ;;  %v8207_v12 = vsel %vm7864_vm14, %v6012_v55, %v1964_v34  ;;  %v2811_v23 = vshrl.u32 %v8183_v50, 16 }
  0xc7   : > { %v10199_v1 = vcombine.low %v8042_v61, %v8080_v63  ;;  %v2742_v36 = vor.u32 %v2741_v7, %v8175_v5  ;;  %v2756_v62 = vor.u32 %v2755_v56, %v2752_v52  ;;  %v8215_v43 = vrot.slane %v2769_v58, 5  ;;  %v2692_v56 = vld [vmem:[#allocation2 + $0x48] sm:$0xf] }
  0xc8   : > { %6859 = vmatpush3.bf16.msra.mxu1 %v7207_v20  ;;  %v2807_v20 = vshll.u32 %v8183_v50, 16  ;;  %v2803_v30 = vrot.slane %v2801_v29, 5  ;;  %v10200_v25 = vcombine.low %v7842_v60, %v7844_v59  ;;  %v10201_v34 = vcombine.low %v8091_v48, %v8106_v18 }
  0xc9   : > { %6860 = vmatprep.subr.bf16.mxu1 %v7211_v28  ;;  %6911 = vmatpush3.bf16.msra.mxu0 %v7216_v2  ;;  %v2766_v2 = vor.u32 %v2765_v10, %v8193_v17  ;;  %v2813_v63 = vrot.slane %v2811_v23, 4  ;;  %v2822_v55 = vshrl.u32 %v2689_v14, 16  ;;  %v10202_v7 = vcombine.low %v7980_v32, %v7955_v39  ;;  %v8235_v10 = vld [vmem:[%s10137_s1 + $0x178] sm:$0xff]  }
  0xca   : > { %6833 = vmatmul.mubr.bf16.gmra.mxu0 %v10199_v1  ;;  %6992 = vmatprep.subr.bf16.mxu0 %v8180_v13  ;;  %v8225_v61 = vrot.slane %v2807_v20, 5  ;;  %v2780_v52 = vor.u32 %v2779_v21, %v2776_v26  ;;  %v2790_v19 = vor.u32 %v2789_v35, %v8197_v37  ;;  %v2793_v60 = vshll.u32 %v8195_v46, 16  ;;  %v8252_v35 = vld [vmem:[#allocation2 + $0x4c] sm:$0xf] }
  0xcb   : > { %6781 = vmatmul.mubr.bf16.gmra.mxu1 %v10200_v25  ;;  %6836 = vmatprep.mubr.bf16.mxu0 %v10201_v34  ;;  %v2825_v59 = vshll.u32 %v2689_v14, 16  ;;  %v2804_v48 = vor.u32 %v2803_v30, %v2800_v31  ;;  %v2817_v18 = vshll.u32 %v8199_v8, 16  ;;  %v2831_v39 = vshll.u32 %v8201_v44, 16  ;;  %v8250_v14 = vld [vmem:[#allocation2 + $0x44] sm:$0x1] }
  0xcc   : > { %6784 = vmatprep.mubr.bf16.mxu1 %v10202_v7  ;;  %6861 = vmatpush3.bf16.msra.mxu1 %v7211_v28  ;;  %v2835_v32 = vshrl.u32 %v8201_v44, 16  ;;  %v8243_v28 = vsel %vm7864_vm14, %v8172_v16, %v1967_v6  ;;  %v8245_v58 = vrot.slane %v2742_v36, 4  ;;  %v8247_v26 = vrot.slane %v2756_v62, 4  ;;  %v8262_v36 = vld [vmem:[#allocation2 + $0x50] sm:$0x1] }
  0xcd   : > { %6862 = vmatprep.subr.bf16.mxu1 %v7215_v11  ;;  %v2814_v21 = vor.u32 %v2813_v63, %v8225_v61  ;;  %v8254_v31 = vrot.slane %v2766_v2, 4  ;;  %v2824_v29 = vrot.slane %v2822_v55, 4  ;;  %v2827_v20 = vrot.slane %v2825_v59, 5  ;;  %v2695_v30 = vld [vmem:[#allocation2 + $0x54] sm:$0xf] }
  0xce   : > { %v2846_v23 = vshrl.u32 %v2692_v56, 16  ;;  %v8256_v1 = vrot.slane %v2780_v52, 4  ;;  %v8258_v16 = vrot.slane %v2790_v19, 4  ;;  %v8260_v6 = vrot.slane %v2793_v60, 5 }
  0xcf   : > { %v2849_v62 = vshll.u32 %v2692_v56, 16  ;;  %v8265_v25 = vrot.slane %v2804_v48, 4  ;;  %v8267_v34 = vrot.slane %v2817_v18, 5  ;;  %v8269_v2 = vrot.slane %v2831_v39, 5 }
  0xd0   : > { %6863 = vmatpush3.bf16.msra.mxu1 %v7215_v11  ;;  %v2837_v63 = vrot.slane %v2835_v32, 4  ;;  %v8271_v11 = vld [vmem:[#allocation2 + $0x58] sm:$0xf]  ;;  %v10203_v55 = vcombine.low %v8110_v54, %v8121_v45  ;;  %v8276_v7 = vrot.slane %v2814_v21, 4  ;;  %v2848_v52 = vrot.slane %v2846_v23, 4 }
  0xd1   : > { %6944 = vmatprep.subr.bf16.mxu1 %v8235_v10  ;;  %v2851_v19 = vrot.slane %v2849_v62, 5  ;;  %v2855_v60 = vshll.u32 %v8252_v35, 16  ;;  %v10204_v59 = vcombine.low %v7984_v33, %v7971_v3  ;;  %v6044_v56 = vcombine.low %v8207_v12, %v8243_v28  ;;  %v2698_v45 = vld [vmem:[#allocation2 + $0x60] sm:$0xf] }
  0xd2   : > { %6837 = vmatmul.mubr.bf16.gmra.mxu0 %v10203_v55  ;;  %v2828_v48 = vor.u32 %v2827_v20, %v2824_v29  ;;  %v2841_v18 = vshll.u32 %v8250_v14, 16  ;;  %v2859_v54 = vshrl.u32 %v8252_v35, 16  ;;  %v10205_v39 = vcombine.low %v7988_v47, %v7990_v22  ;;  %v8305_v22 = vld [vmem:[#allocation2 + $0x64] sm:$0xf] }
  0xd3   : > { %6785 = vmatmul.mubr.bf16.gmra.mxu1 %v10204_v59  ;;  %6840 = vmatprep.mubr.bf16.mxu0 %v6041_v15  ;;  %v2738_v3 = vsel %vm7380_vm6, %v8188_v53, %v8175_v5  ;;  %v2748_v33 = vsel %vm7380_vm6, %v8245_v58, %v8185_v38  ;;  %v2762_v15 = vsel %vm7380_vm6, %v8247_v26, %v8193_v17  ;;  %v2865_v5 = vshll.u32 %v8262_v36, 16 }
  0xd4   : > { %6788 = vmatprep.mubr.bf16.mxu1 %v10205_v39  ;;  %v2772_v47 = vsel %vm7380_vm6, %v8254_v31, %v8215_v43  ;;  %v2838_v32 = vor.u32 %v2837_v63, %v8269_v2  ;;  %v2870_v53 = vshrl.u32 %v2695_v30, 16  ;;  %v2873_v21 = vshll.u32 %v2695_v30, 16  ;;  %v8325_v30 = vld [vmem:[#allocation2 + $0x5c] sm:$0x1] }
  0xd5   : > { %v2852_v29 = vor.u32 %v2851_v19, %v2848_v52  ;;  %v8309_v38 = vrot.slane %v2855_v60, 5  ;;  %v2861_v58 = vrot.slane %v2859_v54, 4  ;;  %v2879_v20 = vshll.u32 %v8271_v11, 16  ;;  %v2701_v52 = vld [vmem:[#allocation2 + $0x6c] sm:$0xf] }
  0xd6   : > { %v8312_v17 = vrot.slane %v2828_v48, 4  ;;  %v8314_v26 = vrot.slane %v2841_v18, 5  ;;  %v2883_v43 = vshrl.u32 %v8271_v11, 16  ;;  %v2894_v31 = vshrl.u32 %v2698_v45, 16  ;;  %v8340_v18 = vld [vmem:[#allocation2 + $0x68] sm:$0x1] }
  0xd7   : > { %v2786_v23 = vsel %vm7380_vm6, %v8256_v1, %v8197_v37  ;;  %v2796_v62 = vsel %vm7380_vm6, %v8258_v16, %v8260_v6  ;;  %v2897_v63 = vshll.u32 %v2698_v45, 16  ;;  %v2903_v55 = vshll.u32 %v8305_v22, 16  ;;  %10207 = vst [vmem:[#allocation16_spill] sm:$0xff] %v8340_v18 }
  0xd8   : > { %v8328_v19 = vrot.slane %v2838_v32, 4  ;;  %v8330_v60 = vrot.slane %v2865_v5, 5  ;;  %v2872_v59 = vrot.slane %v2870_v53, 4  ;;  %v2875_v48 = vrot.slane %v2873_v21, 5  ;;  %v8349_v5 = vld [vmem:[#allocation2 + $0x70] sm:$0xf] }
  0xd9   : > { %v10206_v37 = vcombine.low %v8063_v4, %v8084_v41  ;;  %v8335_v1 = vrot.slane %v2852_v29, 4  ;;  %v2862_v16 = vor.u32 %v2861_v58, %v8309_v38  ;;  %v8338_v6 = vrot.slane %v2879_v20, 5  ;;  %10210 = vst [vmem:[#allocation17_spill] sm:$0xff] %v8349_v5 }
  0xda   : > { %v2907_v54 = vshrl.u32 %v8305_v22, 16  ;;  %v10208_v45 = vcombine.low %v7996_v0, %v7998_v57  ;;  %v10209_v39 = vcombine.low %v8073_v27, %v8097_v9  ;;  %v2885_v4 = vrot.slane %v2883_v43, 4  ;;  %v8361_v43 = vld [vmem:[#allocation2 + $0x74] sm:$0x1] }
  0xdb   : > { %6841 = vmatmul.mubr.bf16.gmra.mxu0 %v10206_v37  ;;  %v2896_v41 = vrot.slane %v2894_v31, 4  ;;  %v2899_v32 = vrot.slane %v2897_v63, 5  ;;  %v2918_v53 = vshrl.u32 %v2701_v52, 16  ;;  %v10211_v21 = vcombine.low %v7711_v42, %v7709_v40  ;;  %10212 = vst [vmem:[#allocation18_spill] sm:$0xff] %v8361_v43 }
  0xdc   : > { %6789 = vmatmul.mubr.bf16.gmra.mxu1 %v10208_v45  ;;  %6844 = vmatprep.mubr.bf16.mxu0 %v10209_v39  ;;  %v6109_v29 = vcombine.low %v2738_v3, %v2748_v33  ;;  %v8354_v58 = vcombine.low %v2762_v15, %v2772_v47  ;;  %v8356_v20 = vrot.slane %v2903_v55, 5  ;;  %v2909_v0 = vrot.slane %v2907_v54, 4  ;;  %v2704_v47 = vld [vmem:[#allocation2 + $0x78] sm:$0xf]  ;;  %v2707_v54 = vld [vmem:[#allocation2 + $0x84] sm:$0xf] }
  0xdd   : > { %6792 = vmatprep.mubr.bf16.mxu1 %v10211_v21  ;;  %v8358_v57 = vcombine.low %v2786_v23, %v2796_v62  ;;  %v2876_v27 = vor.u32 %v2875_v48, %v2872_v59  ;;  %v2889_v9 = vshll.u32 %v8325_v30, 16  ;;  %v2921_v31 = vshll.u32 %v2701_v52, 16 }
  0xde   : > { %v2863_v63 = vrot.slane %v2862_v16, 4  ;;  %v2920_v37 = vrot.slane %v2918_v53, 4  ;;  %v2927_v45 = vshll.u32 %v8349_v5, 16  ;;  %v2931_v40 = vshrl.u32 %v8349_v5, 16  ;;  %v8387_v16 = vld [vmem:[#allocation2 + $0x7c] sm:$0xf] }
  0xdf   : > { %v2810_v42 = vsel %vm7380_vm6, %v8265_v25, %v8225_v61  ;;  %v2886_v3 = vor.u32 %v2885_v4, %v8338_v6  ;;  %v2913_v33 = vshll.u32 %v8340_v18, 16  ;;  %v2923_v15 = vrot.slane %v2921_v31, 5  ;;  %10213 = vst [vmem:[#allocation19_spill] sm:$0xff] %v8387_v16  ;;  %v10216_v4 = vld [vmem:[#allocation9_spill] sm:$0xff] }
  0xe0   : > { %v2820_v23 = vsel %vm7380_vm6, %v8276_v7, %v8267_v34  ;;  %v2834_v62 = vsel %vm7380_vm6, %v8312_v17, %v8269_v2  ;;  %v2900_v55 = vor.u32 %v2899_v32, %v2896_v41  ;;  %v2910_v52 = vor.u32 %v2909_v0, %v8356_v20  ;;  %v10217_v41 = vld [vmem:[#allocation8_spill] sm:$0xff]  ;;  %v7217_v31 = vld [vmem:[#allocation2 + $0xc] sm:$0xff]  }
  0xe1   : > { %v2844_v61 = vsel %vm7380_vm6, %v8328_v19, %v8314_v26  ;;  %v8384_v25 = vrot.slane %v2927_v45, 5  ;;  %v2933_v59 = vrot.slane %v2931_v40, 4  ;;  %v2937_v48 = vshll.u32 %v8361_v43, 16  ;;  %v10214_v26 = vld [vmem:[#allocation7_spill] sm:$0xff]  ;;  %v8423_v0 = vld [vmem:[#allocation2 + $0x80] sm:$0x1] }
  0xe2   : > { %v8392_v34 = vrot.slane %v2876_v27, 4  ;;  %v8394_v2 = vrot.slane %v2889_v9, 5  ;;  %v2924_v7 = vor.u32 %v2923_v15, %v2920_v37  ;;  %v2942_v17 = vshrl.u32 %v2704_v47, 16  ;;  %10220 = vst [vmem:[#allocation9_spill] sm:$0xff] %v8423_v0 }
  0xe3   : > { %6845 = vmatmul.mubr.bf16.gmra.mxu0 %v6044_v56  ;;  %v10215_v19 = vcombine.low %v7753_v49, %v10214_v26  ;;  %v2858_v39 = vsel %vm7380_vm6, %v8335_v1, %v8309_v38  ;;  %v2868_v12 = vsel %vm7380_vm6, %v2863_v63, %v8330_v60  ;;  %v8406_v28 = vrot.slane %v2886_v3, 4  ;;  %v8418_v38 = vld [vmem:[#allocation2 + $0x88] sm:$0xf]  ;;  %v2710_v3 = vld [vmem:[#allocation2 + $0x90] sm:$0xf] }
  0xe4   : > { %6912 = vmatprep.mubr.bf16.mxu0 %v6109_v29  ;;  %v8408_v56 = vrot.slane %v2913_v33, 5  ;;  %v10218_v32 = vcombine.low %v10216_v4, %v10217_v41  ;;  %v8413_v49 = vrot.slane %v2900_v55, 4  ;;  %v8415_v53 = vrot.slane %v2910_v52, 4  ;;  %10219 = vst [vmem:[#allocation7_spill] sm:$0xff] %v8418_v38  ;;  %v7224_v33 = vld [vmem:[%s10137_s1 + $0x1b0] sm:$0xff]  }
  0xe5   : > { %6793 = vmatmul.mubr.bf16.gmra.mxu1 %v10215_v19  ;;  %v2945_v21 = vshll.u32 %v2704_v47, 16  ;;  %v2951_v29 = vshll.u32 %v8387_v16, 16  ;;  %v2934_v1 = vor.u32 %v2933_v59, %v8384_v25  ;;  %v8421_v60 = vrot.slane %v2937_v48, 5  ;;  %v8449_v59 = vld [vmem:[#allocation2 + $0x8c] sm:$0x1] }
  0xe6   : > { %6796 = vmatprep.mubr.bf16.mxu1 %v10218_v32  ;;  %v2955_v27 = vshrl.u32 %v8387_v16, 16  ;;  %v2966_v9 = vshrl.u32 %v2707_v54, 16  ;;  %v8426_v63 = vcombine.low %v2810_v42, %v2820_v23  ;;  %v8428_v37 = vcombine.low %v2834_v62, %v2844_v61  ;;  %v8444_v62 = vld [vmem:[#allocation2 + $0x94] sm:$0xf]  ;;  %10222 = vst [vmem:[#allocation20_spill] sm:$0xff] %v8449_v59  ;;  %v7221_v16 = vld [vmem:[#allocation2 + $0x24] sm:$0xff]  }
  0xe7   : > { %v8430_v45 = vrot.slane %v2924_v7, 4  ;;  %v8432_v40 = vrot.slane %v2942_v17, 4  ;;  %v8437_v15 = vcombine.low %v2858_v39, %v2868_v12  ;;  %v2969_v42 = vshll.u32 %v2707_v54, 16  ;;  %10221 = vst [vmem:[#allocation8_spill] sm:$0xff] %v8444_v62  ;;  %v8458_v54 = vld [vmem:[%s10137_s1 + $0x1a8] sm:$0xff]   ;;  %v10223_v32 = vld [vmem:[#allocation10_spill] sm:$0xff] }
  0xe8   : > { %v2975_v23 = vshll.u32 %v8418_v38, 16  ;;  %v2947_v55 = vrot.slane %v2945_v21, 5  ;;  %v8446_v52 = vrot.slane %v2951_v29, 5  ;;  %v2961_v61 = vshll.u32 %v8423_v0, 16  ;;  %v8483_v12 = vld [vmem:[#allocation2 + $0xa0] sm:$0xf] }
  0xe9   : > { %v2979_v48 = vshrl.u32 %v8418_v38, 16  ;;  %v8452_v7 = vrot.slane %v2934_v1, 4  ;;  %v2957_v17 = vrot.slane %v2955_v27, 4  ;;  %v2968_v26 = vrot.slane %v2966_v9, 4  ;;  %10226 = vst [vmem:[#allocation10_spill] sm:$0xff] %v8483_v12 }
  0xea   : > { %v2990_v19 = vshrl.u32 %v2710_v3, 16  ;;  %v2993_v4 = vshll.u32 %v2710_v3, 16  ;;  %v2999_v41 = vshll.u32 %v8444_v62, 16  ;;  %v2971_v27 = vrot.slane %v2969_v42, 5  ;;  %v2713_v3 = vld [vmem:[#allocation2 + $0x9c] sm:$0xf] }
  0xeb   : > { %6913 = vmatmul.mubr.bf16.vlgmr.msra.gmra.mxu0 %v8354_v58  ;;  %v10224_v58 = vld [vmem:[#allocation11_spill] sm:$0xff]  ;;  %v8481_v9 = vrot.slane %v2975_v23, 5  ;;  %v3003_v29 = vshrl.u32 %v8444_v62, 16  ;;  %v2985_v47 = vshll.u32 %v8449_v59, 16  ;;  %v3014_v42 = vshrl.u32 %v2713_v3, 16 }
  0xec   : > { %v10225_v21 = vcombine.low %v10223_v32, %v10224_v58  ;;  %6993 = vmatpush3.bf16.msra.mxu0 %v8180_v13  ;;  %6916 = vmatprep.mubr.bf16.mxu0 %v8358_v57  ;;  %v2981_v13 = vrot.slane %v2979_v48, 4  ;;  %v8486_v32 = vld [vmem:[#allocation2 + $0x98] sm:$0x1]  ;;  %v2992_v58 = vrot.slane %v2990_v19, 4  ;;  %v8490_v1 = vrot.slane %v2999_v41, 5 }
  0xed   : > { %10227 = vst [vmem:[#allocation11_spill] sm:$0xff] %v8486_v32  ;;  %6994 = vmatprep.subr.bf16.mxu0 %v7224_v33  ;;  %v3017_v23 = vshll.u32 %v2713_v3, 16  ;;  %v2948_v39 = vor.u32 %v2947_v55, %v8432_v40  ;;  %v3005_v38 = vrot.slane %v3003_v29, 4  ;;  %v8494_v57 = vld [vmem:[#allocation2 + $0xa4] sm:$0x1]  ;;  %v3023_v48 = vshll.u32 %v8483_v12, 16 }
  0xee   : > { %6797 = vmatmul.mubr.bf16.gmra.mxu1 %v10225_v21  ;;  %v2995_v21 = vrot.slane %v2993_v4, 5  ;;  %10228 = vst [vmem:[#allocation21_spill] sm:$0xff] %v8494_v57  ;;  %v7218_v19 = vld [vmem:[#allocation2 + $0x18] sm:$0xff]   ;;  %v2972_v4 = vor.u32 %v2971_v27, %v2968_v26  ;;  %v3016_v62 = vrot.slane %v3014_v42, 4  ;;  %v3027_v59 = vshrl.u32 %v8483_v12, 16  ;;  %v7232_v26 = vld [vmem:[%s10137_s1 + $0x1a0] sm:$0xff]  }
  0xef   : > { %6864 = vmatprep.mubr.bf16.mxu1 %v7217_v31  ;;  %v2958_v31 = vor.u32 %v2957_v17, %v8446_v52  ;;  %v3019_v0 = vrot.slane %v3017_v23, 5  ;;  %v2716_v41 = vld [vmem:[#allocation2 + $0xa8] sm:$0xf]  ;;  %v8499_v3 = vrot.slane %v2961_v61, 5  ;;  %v2982_v40 = vor.u32 %v2981_v13, %v8481_v9  ;;  %v8503_v29 = vld [vmem:[#allocation2 + $0xac] sm:$0xf] }
  0xf0   : > { %6995 = vmatpush3.bf16.msra.mxu0 %v7224_v33  ;;  %v2996_v55 = vor.u32 %v2995_v21, %v2992_v58  ;;  %v3009_v17 = vshll.u32 %v8486_v32, 16  ;;  %10229 = vst [vmem:[#allocation22_spill] sm:$0xff] %v8503_v29  ;;  %v7223_v33 = vld [vmem:[%s10137_s1 + $0x170] sm:$0xff]   ;;  %v3006_v27 = vor.u32 %v3005_v38, %v8490_v1  ;;  %v8512_v61 = vrot.slane %v3023_v48, 5  ;;  %v8524_v38 = vld [vmem:[%s10137_s1 + $0x168] sm:$0xff]  }
  0xf1   : > { %6996 = vmatprep.subr.bf16.mxu0 %v8458_v54  ;;  %v3020_v42 = vor.u32 %v3019_v0, %v3016_v62  ;;  %v3029_v23 = vrot.slane %v3027_v59, 4  ;;  %v8515_v13 = vrot.slane %v2948_v39, 4  ;;  %v8517_v58 = vrot.slane %v2958_v31, 4  ;;  %v8535_v39 = vld [vmem:[%s10137_s1 + $0x198] sm:$0xff]   ;;  %v7226_v32 = vld [vmem:[#allocation2 + $0x48] sm:$0xff]  }
  0xf2   : > { %v3033_v21 = vshll.u32 %v8494_v57, 16  ;;  %v3038_v12 = vshrl.u32 %v2716_v41, 16  ;;  %v8526_v0 = vrot.slane %v2972_v4, 4  ;;  %v8528_v62 = vrot.slane %v2985_v47, 5 }
  0xf3   : > { %6917 = vmatmul.mubr.bf16.gmra.mxu0 %v8426_v63  ;;  %v3041_v63 = vshll.u32 %v2716_v41, 16  ;;  %v3047_v59 = vshll.u32 %v8503_v29, 16  ;;  %v8539_v31 = vrot.slane %v2996_v55, 4  ;;  %v8541_v48 = vrot.slane %v3009_v17, 5 }
  0xf4   : > { %6920 = vmatprep.mubr.bf16.mxu0 %v8428_v37  ;;  %v8537_v37 = vrot.slane %v2982_v40, 4  ;;  %v3051_v47 = vshrl.u32 %v8503_v29, 16  ;;  %6997 = vmatpush3.bf16.msra.mxu0 %v8458_v54  ;;  %v8551_v4 = vrot.slane %v3020_v42, 4  ;;  %v3030_v41 = vor.u32 %v3029_v23, %v8512_v61  ;;  %v7225_v40 = vld [vmem:[#allocation2 + $0x3c] sm:$0xff]  }
  0xf5   : > { %v10230_v55 = vsel %vm7380_vm6, %v8406_v28, %v8394_v2  ;;  %v10231_v54 = vsel %vm7380_vm6, %v8392_v34, %v8338_v6  ;;  %6998 = vmatprep.subr.bf16.mxu0 %v7232_v26  ;;  %v8576_v2 = vrot.slane %v3033_v21, 5  ;;  %v8578_v28 = vrot.slane %v3038_v12, 4  ;;  %v2719_v6 = vld [vmem:[#allocation2 + $0xb4] sm:$0xf]  ;;  %v8580_v34 = vld [vmem:[#allocation2 + $0xb8] sm:$0xf] }
  0xf6   : > { %6865 = vmatmul.mubr.bf16.vlgmr.msra.gmra.mxu1 %v7218_v19  ;;  %v7222_v19 = vld [vmem:[#allocation2 + $0x30] sm:$0xff]   ;;  %v6115_v17 = vcombine.low %v10231_v54, %v10230_v55  ;;  %10234 = vst [vmem:[#allocation23_spill] sm:$0xff] %v8580_v34  ;;  %v3062_v42 = vshrl.u32 %v2719_v6, 16  ;;  %v3065_v23 = vshll.u32 %v2719_v6, 16  ;;  %v10236_v12 = vsel %vm7380_vm6, %v8430_v45, %v8384_v25  ;;  %v213_v54 = vld [vmem:[%s7362_s25 + $0x78] sm:$0xf] }
  0xf7   : > { %6945 = vmatpush3.bf16.msra.mxu1 %v8235_v10  ;;  %6868 = vmatprep.mubr.bf16.mxu1 %v7221_v16  ;;  %v2940_v10 = vsel %vm7380_vm6, %v8452_v7, %v8421_v60  ;;  %v8549_v16 = vrot.slane %v3006_v27, 4  ;;  %v10232_v60 = vsel %vm7380_vm6, %v8415_v53, %v8408_v56  ;;  %v10233_v7 = vsel %vm7380_vm6, %v8413_v49, %v8356_v20  ;;  %v8585_v56 = vld [vmem:[%s10137_s1 + $0x160] sm:$0xff]   ;;  %v8587_v53 = vld [vmem:[#allocation2 + $0xb0] sm:$0x1] }
  0xf8   : > { %6946 = vmatprep.subr.bf16.mxu1 %v7223_v33  ;;  %v8574_v27 = vcombine.low %v10233_v7, %v10232_v60  ;;  %10235 = vst [vmem:[#allocation24_spill] sm:$0xff] %v8587_v53  ;;  %v8589_v20 = vrot.slane %v3041_v63, 5  ;;  %v8591_v49 = vrot.slane %v3047_v59, 5  ;;  %v8598_v21 = vcombine.low %v10236_v12, %v2940_v10  ;;  %v7240_v63 = vld [vmem:[%s10137_s1 + $0x190] sm:$0xff]   ;;  %v214_v60 = vld [vmem:[%s7362_s25 + $0x7c] sm:$0xf]  ;;  %6999 = vmatpush3.bf16.msra.mxu0 %v7232_v26 }
  0xf9   : > { %v8607_v59 = vrot.slane %v3051_v47, 4  ;;  %v8613_v25 = vrot.slane %v3030_v41, 4  ;;  %v3064_v45 = vrot.slane %v3062_v42, 4  ;;  %v3067_v10 = vrot.slane %v3065_v23, 5  ;;  %v271_v6 = vld [vmem:[#allocation2 + $0xc0] sm:$0x1]  ;;  %7000 = vmatprep.subr.bf16.mxu0 %v8535_v39 }
  0xfa   : > { %v3075_v7 = vshrl.u32 %v8580_v34, 16  ;;  %v3057_v47 = vshll.u32 %v8587_v53, 16  ;;  %v8619_v12 = vld [vmem:[#allocation2 + $0xbc] sm:$0x1]  ;;  %v272_v26 = vsel %vm7374_vm5, 0, %v271_v6  ;;  %v10238_v41 = vld [vmem:[#allocation12_spill] sm:$0xff]  ;;  %v3044_v23 = vor.u32 %v8589_v20, %v8578_v28 }
  0xfb   : > { %6947 = vmatpush3.bf16.msra.mxu1 %v7223_v33  ;;  %v3071_v33 = vshll.u32 %v8580_v34, 16  ;;  %6921 = vmatmul.mubr.bf16.gmra.mxu0 %v8437_v15  ;;  %v3497_v57 = vrot.slane %v10238_v41, 5  ;;  %v7235_v42 = vld [vmem:[%s10137_s1 + $0x158] sm:$0xff]   ;;  %273 = vst [vmem:[#allocation2 + $0xc0] sm:$0x1] %v272_v26  ;;  %v582_v34 = vshrl.u32 %v213_v54, 16  ;;  %v3068_v28 = vor.u32 %v3067_v10, %v3064_v45 }
  0xfc   : > { %6948 = vmatprep.subr.bf16.mxu1 %v8524_v38  ;;  %6924 = vmatprep.mubr.bf16.mxu0 %v6115_v17  ;;  %v321_v6 = vld [vmem:[#allocation2 + $0xc8] sm:$0x1]  ;;  %v585_v41 = vshll.u32 %v213_v54, 16  ;;  %v590_v15 = vshrl.u32 %v214_v60, 16  ;;  %v593_v53 = vshll.u32 %v214_v60, 16  ;;  %v7239_v45 = vld [vmem:[%s10137_s1 + $0x150] sm:$0xff]  }
  0xfd   : > { %v8621_v55 = vrot.slane %v3071_v33, 5  ;;  %v3077_v33 = vrot.slane %v3075_v7, 4  ;;  %v7244_v17 = vld [vmem:[%s10137_s1 + $0x188] sm:$0xff]   ;;  %7001 = vmatpush3.bf16.msra.mxu0 %v8535_v39  ;;  %v584_v20 = vrot.slane %v582_v34, 7  ;;  %v7229_v7 = vld [vmem:[#allocation2 + $0x54] sm:$0xff]   ;;  %v322_v43 = vsel %vm7388_vm8, 0, %v321_v6 }
  0xfe   : > { %6869 = vmatmul.mubr.bf16.gmra.mxu1 %v7222_v19  ;;  %v3054_v19 = vor.u32 %v8607_v59, %v8591_v49  ;;  %7002 = vmatprep.subr.bf16.mxu0 %v7240_v63  ;;  %v592_v59 = vrot.slane %v590_v15, 7  ;;  %v3431_v54 = vld [vmem:[#allocation2 + $0xc] sm:$0xe]  ;;  %v3499_v5 = vrot.slane %v3497_v57, 4  ;;  %v2978_v39 = vsel %vm7380_vm6, %v8526_v0, %v8481_v9  ;;  %323 = vst [vmem:[#allocation2 + $0xc8] sm:$0x1] %v322_v43 }
  0xff   : > { %6872 = vmatprep.mubr.bf16.mxu1 %v7225_v40  ;;  %6949 = vmatpush3.bf16.msra.mxu1 %v8524_v38  ;;  %v3078_v40 = vor.u32 %v3077_v33, %v8621_v55  ;;  %v3081_v38 = vshll.u32 %v8619_v12, 16  ;;  %v10240_v60 = vld [vmem:[#allocation13_spill] sm:$0xff]  ;;  %v8655_v34 = vrot.slane %v3057_v47, 5  ;;  %v587_v10 = vor.u32 %v585_v41, %v584_v20  ;;  %v7248_v26 = vld [vmem:[%s10137_s1 + $0x180] sm:$0xff]   ;;  %v8667_v0 = vld [vmem:[#allocation2 + $0x18] sm:$0xe] }
 0x100   : > { %6950 = vmatprep.subr.bf16.mxu1 %v8585_v56  ;;  %v3500_v18 = vrot.slane %v10240_v60, 5  ;;  %v588_v15 = vrot.slane %v584_v20, 4  ;;  %v8658_v33 = vrot.slane %v3044_v23, 4  ;;  %v595_v6 = vor.u32 %v593_v53, %v592_v59 }
 0x101   : > { %v6133_v60 = vrot.slane %v3431_v54, 9  ;;  %7003 = vmatpush3.bf16.msra.mxu0 %v7240_v63  ;;  %v8669_v47 = vrot.slane %v3054_v19, 4  ;;  %v8671_v43 = vrot.slane %v3068_v28, 4  ;;  %v8675_v53 = vrot.slane %v3081_v38, 5 }
 0x102   : > { %v8665_v9 = vsel %vm7864_vm14, %v3499_v5, %v3500_v18  ;;  %v2988_v18 = vsel %vm7380_vm6, %v8537_v37, %v8528_v62  ;;  %7004 = vmatprep.subr.bf16.mxu0 %v7244_v17  ;;  %v596_v23 = vsel %vm7403_vm10, %v588_v15, %v595_v6  ;;  %v753_v63 = vld [vmem:[#allocation2 + $0xc0] sm:$0xf]  ;;  %v597_v41 = vrot.slane %v592_v59, 4  ;;  %v3434_v6 = vld [vmem:[#allocation2 + $0x30] sm:$0xe] }
 0x103   : > { %6951 = vmatpush3.bf16.msra.mxu1 %v8585_v56  ;;  %v8673_v56 = vrot.slane %v3078_v40, 4  ;;  %6925 = vmatmul.mubr.bf16.gmra.mxu0 %v8574_v27  ;;  %v8686_v19 = vsel %vm7864_vm14, %v6133_v60, %v3497_v57  ;;  %v7243_v27 = vld [vmem:[%s10137_s1 + $0x148] sm:$0xff]   ;;  %v754_v62 = vsel %vm7417_vm11, %v587_v10, %v753_v63  ;;  %756 = vst [vmem:[#allocation2 + $0xc4] sm:$0xf] %v596_v23  ;;  %v6134_v40 = vrot.slane %v8667_v0, 9  ;;  %v7230_v59 = vld [vmem:[#allocation2 + $0x60] sm:$0xff]  }
 0x104   : > { %6952 = vmatprep.subr.bf16.mxu1 %v7235_v42  ;;  %6928 = vmatprep.mubr.bf16.mxu0 %v8598_v21  ;;  %v6165_v37 = vcombine.low %v8686_v19, %v8665_v9  ;;  %755 = vst [vmem:[#allocation2 + $0xc0] sm:$0xf] %v754_v62  ;;  %v3433_v57 = vld [vmem:[#allocation2 + $0x24] sm:$0xe]  ;;  %v10243_v21 = vld [vmem:[#allocation15_spill] sm:$0xff]  ;;  %v3514_v20 = vrot.slane %v8195_v46, 5  ;;  %v10244_v54 = vsel %vm7380_vm6, %v8517_v58, %v8499_v3 }
 0x105   : > { %v3511_v38 = vrot.slane %v10243_v21, 5  ;;  %v6119_v10 = vcombine.low %v2978_v39, %v2988_v18  ;;  %7005 = vmatpush3.bf16.msra.mxu0 %v7244_v17  ;;  %v6135_v15 = vrot.slane %v3433_v57, 9  ;;  %v3518_v60 = vrot.slane %v8183_v50, 5  ;;  %v7233_v46 = vld [vmem:[#allocation2 + $0x6c] sm:$0xff]   ;;  %v757_v5 = vld [vmem:[#allocation2 + $0xc8] sm:$0x1] }
 0x106   : > { %6873 = vmatmul.mubr.bf16.gmra.mxu1 %v7226_v32  ;;  %v8700_v32 = vld [vmem:[%s10137_s1 + $0x238] sm:$0xff]   ;;  %7006 = vmatprep.subr.bf16.mxu0 %v7248_v26  ;;  %v10246_v23 = vld [vmem:[#allocation14_spill] sm:$0xff]  ;;  %v6136_v3 = vrot.slane %v3434_v6, 9  ;;  %v3521_v58 = vrot.slane %v8199_v8, 5  ;;  %v3525_v39 = vrot.slane %v8201_v44, 5  ;;  %v3002_v18 = vsel %vm7380_vm6, %v8539_v31, %v8490_v1 }
 0x107   : > { %6876 = vmatprep.mubr.bf16.mxu1 %v7229_v7  ;;  %6953 = vmatpush3.bf16.msra.mxu1 %v7235_v42  ;;  %v10245_v42 = vsel %vm7380_vm6, %v8515_v13, %v8446_v52  ;;  %v3504_v63 = vrot.slane %v10246_v23, 5  ;;  %v3513_v28 = vrot.slane %v3511_v38, 4  ;;  %v758_v52 = vsel %vm7374_vm5, %v597_v41, %v757_v5  ;;  %v7247_v13 = vld [vmem:[%s10137_s1 + $0x140] sm:$0xff]   ;;  %v3435_v31 = vld [vmem:[#allocation2 + $0x3c] sm:$0xe] }
 0x108   : > { %v6118_v7 = vcombine.low %v10245_v42, %v10244_v54  ;;  %6954 = vmatprep.subr.bf16.mxu1 %v7239_v45  ;;  %v8724_v17 = vsel %vm7864_vm14, %v6135_v15, %v3511_v38  ;;  %v3520_v50 = vrot.slane %v3518_v60, 4  ;;  %v3012_v8 = vsel %vm7380_vm6, %v8549_v16, %v8541_v48  ;;  %759 = vst [vmem:[#allocation2 + $0xc8] sm:$0x1] %v758_v52  ;;  %v3436_v6 = vld [vmem:[#allocation2 + $0x48] sm:$0xe]  ;;  %v7254_v19 = vld [vmem:[#allocation2 + $0x3c] sm:$0xff]  }
 0x109   : > { %v8737_v29 = vsel %vm7864_vm14, %v3513_v28, %v3514_v20  ;;  %v8741_v41 = vsel %vm7864_vm14, %v6136_v3, %v3518_v60  ;;  %7007 = vmatpush3.bf16.msra.mxu0 %v7248_v26  ;;  %v3527_v48 = vrot.slane %v3525_v39, 4  ;;  %v3528_v16 = vrot.slane %v8250_v14, 5  ;;  %v4316_v9 = vld [vmem:[#allocation2 + $0x18] sm:$0xf]  ;;  %v4319_v0 = vld [vmem:[#allocation2 + $0x24] sm:$0xf] }
 0x10a   : > { %v6167_v44 = vcombine.low %v8724_v17, %v8737_v29  ;;  %v8747_v1 = vsel %vm7864_vm14, %v3520_v50, %v3521_v58  ;;  %v8754_v62 = vld [vmem:[#allocation2 + $0xc4] sm:$0xf]  ;;  %7088 = vmatprep.subr.bf16.mxu0 %v8700_v32  ;;  %v6137_v57 = vrot.slane %v3435_v31, 9  ;;  %v3532_v21 = vrot.slane %v8252_v35, 5  ;;  %v7268_v17 = vld [vmem:[%s10137_s1 + $0x218] sm:$0xff]  }
 0x10b   : > { %6955 = vmatpush3.bf16.msra.mxu1 %v7239_v45  ;;  %6929 = vmatmul.mubr.bf16.gmra.mxu0 %v6118_v7  ;;  %v3026_v45 = vsel %vm7380_vm6, %v8551_v4, %v8512_v61  ;;  %v6168_v26 = vcombine.low %v8741_v41, %v8747_v1  ;;  %v3036_v14 = vsel %vm7380_vm6, %v8613_v25, %v8576_v2  ;;  %v2722_v38 = vld [vmem:[#allocation2 + $0xc0] sm:$0xf]  ;;  %v3095_v61 = vshll.u32 %v8754_v62, 16  ;;  %v8776_v2 = vld [vmem:[%s10137_s1 + $0x1f8] sm:$0xff]  }
 0x10c   : > { %6956 = vmatprep.subr.bf16.mxu1 %v7243_v27  ;;  %6932 = vmatprep.mubr.bf16.mxu0 %v6119_v10  ;;  %v8765_v4 = vld [vmem:[#allocation2 + $0x20] sm:$0x1]  ;;  %v8770_v54 = vsel %vm7864_vm14, %v3527_v48, %v3528_v16  ;;  %v3086_v35 = vshrl.u32 %v2722_v38, 16  ;;  %v3099_v42 = vshrl.u32 %v8754_v62, 16  ;;  %v8780_v25 = vsel %vm7864_vm14, %v6137_v57, %v3525_v39  ;;  %v7234_v7 = vld [vmem:[#allocation2 + $0x78] sm:$0xff]  }
 0x10d   : > { %v3507_v20 = vrot.slane %v8765_v4, 5  ;;  %v6120_v10 = vcombine.low %v3002_v18, %v3012_v8  ;;  %v8782_v15 = vrot.slane %v3095_v61, 5  ;;  %v3534_v60 = vrot.slane %v3532_v21, 4  ;;  %v7237_v18 = vld [vmem:[#allocation2 + $0x84] sm:$0xff]   ;;  %v7267_v41 = vld [vmem:[%s10137_s1 + $0x1d8] sm:$0xff]  }
 0x10e   : > { %6877 = vmatmul.mubr.bf16.gmra.mxu1 %v7230_v59  ;;  %v3089_v59 = vshll.u32 %v2722_v38, 16  ;;  %v3101_v28 = vrot.slane %v3099_v42, 4  ;;  %v6138_v3 = vrot.slane %v3436_v6, 9  ;;  %v6121_v58 = vcombine.low %v3026_v45, %v3036_v14  ;;  %v10247_v42 = vld [vmem:[#allocation16_spill] sm:$0xff] }
 0x10f   : > { %6880 = vmatprep.mubr.bf16.mxu1 %v7233_v46  ;;  %6957 = vmatpush3.bf16.msra.mxu1 %v7243_v27  ;;  %v6169_v27 = vcombine.low %v8780_v25, %v8770_v54  ;;  %v3088_v46 = vrot.slane %v3086_v35, 4  ;;  %v8786_v52 = vld [vmem:[#allocation2 + $0xc8] sm:$0x1]  ;;  %v3535_v50 = vrot.slane %v8262_v36, 5  ;;  %v3539_v39 = vrot.slane %v8271_v11, 5 }
 0x110   : > { %6958 = vmatprep.subr.bf16.mxu1 %v7247_v13  ;;  %v3091_v5 = vrot.slane %v3089_v59, 5  ;;  %v3102_v31 = vor.u32 %v3101_v28, %v8782_v15  ;;  %v3105_v48 = vshll.u32 %v8786_v52, 16  ;;  %v8794_v16 = vsel %vm7864_vm14, %v6138_v3, %v3532_v21  ;;  %v3438_v59 = vld [vmem:[#allocation2 + $0x60] sm:$0xe]  ;;  %v7276_v54 = vld [vmem:[%s10137_s1 + $0x208] sm:$0xff]  }
 0x111   : > { %v3050_v45 = vsel %vm7380_vm6, %v8658_v33, %v8591_v49  ;;  %v3060_v36 = vsel %vm7380_vm6, %v8669_v47, %v8655_v34  ;;  %v8807_v11 = vsel %vm7864_vm14, %v3534_v60, %v3535_v50  ;;  %v8811_v14 = vrot.slane %v3504_v63, 4  ;;  %v7238_v60 = vld [vmem:[#allocation2 + $0x90] sm:$0xff]   ;;  %v3439_v50 = vld [vmem:[#allocation2 + $0x6c] sm:$0xe]  ;;  %v9062_v25 = vld [vmem:[#allocation2 + $0x40] sm:$0xf] }
 0x112   : > { %v3092_v8 = vor.u32 %v3091_v5, %v3088_v46  ;;  %v3103_v21 = vrot.slane %v3102_v31, 4  ;;  %v3541_v33 = vrot.slane %v3539_v39, 4  ;;  %v3542_v47 = vrot.slane %v8325_v30, 5 }
 0x113   : > { %6959 = vmatpush3.bf16.msra.mxu1 %v7247_v13  ;;  %v3437_v13 = vld [vmem:[#allocation2 + $0x54] sm:$0xe]  ;;  %6933 = vmatmul.mubr.bf16.gmra.mxu0 %v6120_v10  ;;  %v3546_v38 = vrot.slane %v8305_v22, 5  ;;  %v3074_v61 = vsel %vm7380_vm6, %v8671_v43, %v8621_v55  ;;  %v3084_v35 = vsel %vm7380_vm6, %v8673_v56, %v8675_v53  ;;  %v10248_v10 = vld [vmem:[#allocation17_spill] sm:$0xff]  ;;  %v3107_v30 = vrot.slane %v3105_v48, 5  ;;  %v7241_v43 = vld [vmem:[#allocation2 + $0x9c] sm:$0xff]  }
 0x114   : > { %7040 = vmatprep.subr.bf16.mxu1 %v8776_v2  ;;  %v3093_v57 = vrot.slane %v3092_v8, 4  ;;  %6936 = vmatprep.mubr.bf16.mxu0 %v6121_v58  ;;  %v6139_v34 = vrot.slane %v3437_v13, 9  ;;  %v3553_v6 = vrot.slane %v10248_v10, 5  ;;  %v8833_v46 = vsel %vm7864_vm14, %v3541_v33, %v3542_v47  ;;  %v10250_v8 = vld [vmem:[#allocation19_spill] sm:$0xff]  ;;  %v10253_v10 = vld [vmem:[#allocation20_spill] sm:$0xff] }
 0x115   : > { %v6140_v55 = vrot.slane %v3438_v59, 9  ;;  %v6122_v5 = vcombine.low %v3050_v45, %v3060_v36  ;;  %v3548_v53 = vrot.slane %v3546_v38, 4  ;;  %v6123_v3 = vcombine.low %v3074_v61, %v3084_v35  ;;  %v10251_v36 = vld [vmem:[#allocation9_spill] sm:$0xff]  ;;  %v3440_v47 = vld [vmem:[#allocation2 + $0x78] sm:$0xe] }
 0x116   : > { %6881 = vmatmul.mubr.bf16.gmra.mxu1 %v7234_v7  ;;  %v3549_v7 = vrot.slane %v10247_v42, 5  ;;  %v8829_v22 = vsel %vm7864_vm14, %v6139_v34, %v3539_v39  ;;  %v3555_v28 = vrot.slane %v3553_v6, 4  ;;  %v10249_v39 = vld [vmem:[#allocation18_spill] sm:$0xff]  ;;  %v3560_v31 = vrot.slane %v10250_v8, 5  ;;  %v10252_v61 = vld [vmem:[#allocation7_spill] sm:$0xff]  ;;  %v7263_v34 = vld [vmem:[%s10137_s1 + $0x1e0] sm:$0xff]  }
 0x117   : > { %6884 = vmatprep.mubr.bf16.mxu1 %v7237_v18  ;;  %v8839_v58 = vsel %vm7864_vm14, %v6140_v55, %v3546_v38  ;;  %v3556_v18 = vrot.slane %v10249_v39, 5  ;;  %v6141_v45 = vrot.slane %v3439_v50, 9  ;;  %v3563_v13 = vrot.slane %v10251_v36, 5  ;;  %v10254_v50 = vld [vmem:[#allocation8_spill] sm:$0xff]  ;;  %v7249_v39 = vld [vmem:[#allocation2 + $0x18] sm:$0xff]  }
 0x118   : > { %v8845_v48 = vsel %vm7864_vm14, %v3548_v53, %v3549_v7  ;;  %v3562_v38 = vrot.slane %v3560_v31, 4  ;;  %v3567_v35 = vrot.slane %v10252_v61, 5  ;;  %v3098_v59 = vsel %vm7380_vm6, %v3093_v57, %v8782_v15  ;;  %v3441_v57 = vld [vmem:[#allocation2 + $0x84] sm:$0xe]  ;;  %v10255_v8 = vld [vmem:[#allocation11_spill] sm:$0xff] }
 0x119   : > { %v8852_v33 = vsel %vm7864_vm14, %v3555_v28, %v3556_v18  ;;  %v8860_v42 = vsel %vm7864_vm14, %v6141_v45, %v3553_v6  ;;  %v6142_v7 = vrot.slane %v3440_v47, 9  ;;  %v3570_v55 = vrot.slane %v10253_v10, 5  ;;  %v3442_v18 = vld [vmem:[#allocation2 + $0x90] sm:$0xe]  ;;  %v3443_v10 = vld [vmem:[#allocation2 + $0x9c] sm:$0xe] }
 0x11a   : > { %v3108_v53 = vsel %vm7380_vm6, %v3103_v21, %v3107_v30  ;;  %v3569_v6 = vrot.slane %v3567_v35, 4  ;;  %v6143_v30 = vrot.slane %v3441_v57, 9  ;;  %v3577_v45 = vrot.slane %v10255_v8, 5  ;;  %v10258_v8 = vld [vmem:[#allocation22_spill] sm:$0xff]  ;;  %v10260_v21 = vld [vmem:[#allocation23_spill] sm:$0xff] }
 0x11b   : > { %6937 = vmatmul.mubr.bf16.gmra.mxu0 %v6122_v5  ;;  %v8869_v5 = vsel %vm7864_vm14, %v3562_v38, %v3563_v13  ;;  %v8873_v15 = vsel %vm7864_vm14, %v6142_v7, %v3560_v31  ;;  %v6124_v36 = vcombine.low %v3098_v59, %v3108_v53  ;;  %v6144_v31 = vrot.slane %v3442_v18, 9  ;;  %v7245_v38 = vld [vmem:[#allocation2 + $0xb4] sm:$0xff]   ;;  %v3444_v18 = vld [vmem:[#allocation2 + $0xa8] sm:$0xe] }
 0x11c   : > { %6940 = vmatprep.mubr.bf16.mxu0 %v6123_v3  ;;  %v7242_v3 = vld [vmem:[#allocation2 + $0xa8] sm:$0xff]   ;;  %v8885_v47 = vsel %vm7864_vm14, %v6143_v30, %v3567_v35  ;;  %v6145_v35 = vrot.slane %v3443_v10, 9  ;;  %v3588_v61 = vrot.slane %v10258_v8, 5  ;;  %v3595_v28 = vrot.slane %v10260_v21, 5 }
 0x11d   : > { %v3598_v10 = vrot.slane %v8619_v12, 5  ;;  %v4368_v4 = vshll.u32 %v4316_v9, 16 }
 0x11e   : > { %6885 = vmatmul.mubr.bf16.gmra.mxu1 %v7238_v60  ;;  %v3574_v60 = vrot.slane %v10254_v50, 5  ;;  %v3597_v8 = vrot.slane %v3595_v28, 4 }
 0x11f   : > { %6888 = vmatprep.mubr.bf16.mxu1 %v7241_v43  ;;  %v8881_v43 = vsel %vm7864_vm14, %v3569_v6, %v3570_v55  ;;  %v10256_v55 = vld [vmem:[#allocation10_spill] sm:$0xff]  ;;  %v10257_v6 = vld [vmem:[#allocation21_spill] sm:$0xff] }
 0x120   : > { %v3576_v13 = vrot.slane %v3574_v60, 4  ;;  %v8891_v7 = vsel %vm7864_vm14, %v6144_v31, %v3574_v60  ;;  %v3581_v53 = vrot.slane %v10256_v55, 5  ;;  %v3584_v50 = vrot.slane %v10257_v6, 5  ;;  %v10259_v60 = vld [vmem:[#allocation24_spill] sm:$0xff] }
 0x121   : > { %v3591_v31 = vrot.slane %v10259_v60, 5  ;;  %v7250_v55 = vld [vmem:[#allocation2 + $0x24] sm:$0xff]   ;;  %v3590_v6 = vrot.slane %v3588_v61, 4  ;;  %v3446_v60 = vld [vmem:[#allocation2 + $0xc0] sm:$0xe] }
 0x122   : > { %v8895_v59 = vsel %vm7864_vm14, %v3576_v13, %v3577_v45  ;;  %v3583_v30 = vrot.slane %v3581_v53, 4  ;;  %v8906_v45 = vsel %vm7864_vm14, %v6145_v35, %v3581_v53  ;;  %v6146_v13 = vrot.slane %v3444_v18, 9  ;;  %v7253_v53 = vld [vmem:[#allocation2 + $0x30] sm:$0xff]  }
 0x123   : > { %6941 = vmatmul.mubr.bf16.gmra.mxu0 %v6124_v36  ;;  %v8921_v12 = vsel %vm7864_vm14, %v3590_v6, %v3591_v31  ;;  %v8925_v35 = vsel %vm7864_vm14, %v3597_v8, %v3598_v10  ;;  %v7256_v18 = vld [vmem:[%s10137_s1 + $0x230] sm:$0xff]   ;;  %v6148_v6 = vrot.slane %v3446_v60, 9  ;;  %v8980_v60 = vpop.f32.mrf.mxu0 }
 0x124   : > { %7008 = vmatprep.mubr.bf16.mxu0 %v7249_v39  ;;  %v8911_v36 = vsel %vm7864_vm14, %v3583_v30, %v3584_v50  ;;  %v3445_v39 = vld [vmem:[#allocation2 + $0xb4] sm:$0xe]  ;;  %v3602_v50 = vrot.slane %v8754_v62, 5  ;;  %v7246_v30 = vld [vmem:[#allocation2 + $0xc0] sm:$0xff]   ;;  %10261 = vst [vmem:[#allocation3_spill] sm:$0xff] %v8980_v60 }
 0x125   : > { %v5075_v60 = vld [vmem:[#allocation2 + $0x54] sm:$0xe] }
 0x126   : > { %6889 = vmatmul.mubr.bf16.gmra.mxu1 %v7242_v3  ;;  %v8917_v3 = vsel %vm7864_vm14, %v6146_v13, %v3588_v61  ;;  %v3605_v13 = vrot.slane %v8786_v52, 5  ;;  %v3604_v10 = vrot.slane %v3602_v50, 4  ;;  %v8942_v8 = vsel %vm7864_vm14, %v6148_v6, %v3602_v50  ;;  %v7258_v52 = vld [vmem:[#allocation2 + $0x54] sm:$0xff]   ;;  %v7261_v61 = vld [vmem:[#allocation2 + $0x60] sm:$0xff]  }
 0x127   : > { %6892 = vmatprep.mubr.bf16.mxu1 %v7245_v38  ;;  %v6147_v38 = vrot.slane %v3445_v39, 9  ;;  %v4389_v50 = vshrl.u32 %v4319_v0, 16 }
 0x128   : > { %v8946_v39 = vsel %vm7864_vm14, %v3604_v10, %v3605_v13  ;;  %v4370_v10 = vrot.slane %v4368_v4, 5  ;;  %v4322_v4 = vld [vmem:[#allocation2 + $0x30] sm:$0xf] }
 0x129   : > { %v8936_v31 = vsel %vm7864_vm14, %v6147_v38, %v3595_v28  ;;  %v3505_v28 = vsel %vm7864_vm14, %v6134_v40, %v3504_v63  ;;  %v7257_v40 = vld [vmem:[#allocation2 + $0x48] sm:$0xff]   ;;  %v4365_v63 = vshrl.u32 %v4316_v9, 16  ;;  %v4416_v57 = vshll.u32 %v4322_v4, 16 }
 0x12a   : > { %v8970_v38 = vld [vmem:[#allocation2 + $0x28] sm:$0xf] }
 0x12b   : > { %7009 = vmatmul.mubr.bf16.vlgmr.msra.gmra.mxu0 %v7250_v55  ;;  %v7260_v55 = vld [vmem:[%s10137_s1 + $0x228] sm:$0xff]   ;;  %v4367_v6 = vrot.slane %v4365_v63, 4  ;;  %v4402_v9 = vshrl.u32 %v8970_v38, 16 }
 0x12c   : > { %7089 = vmatpush3.bf16.msra.mxu0 %v8700_v32  ;;  %v3508_v32 = vsel %vm7864_vm14, %v8811_v14, %v3507_v20  ;;  %7012 = vmatprep.mubr.bf16.mxu0 %v7253_v53  ;;  %v7255_v20 = vld [vmem:[%s10137_s1 + $0x1f0] sm:$0xff]  }
 0x12d   : > { %7090 = vmatprep.subr.bf16.mxu0 %v7256_v18  ;;  %v6166_v23 = vcombine.low %v3505_v28, %v3508_v32  ;;  %v5070_v28 = vld [vmem:[#allocation2 + $0x18] sm:$0xe]  ;;  %v4398_v32 = vshll.u32 %v8970_v38, 16  ;;  %v4371_v21 = vor.u32 %v4370_v10, %v4367_v6 }
 0x12e   : > { %6893 = vmatmul.mubr.bf16.gmra.mxu1 %v7246_v30  ;;  %v4392_v30 = vshll.u32 %v4319_v0, 16  ;;  %v6269_v29 = vrot.slane %v5070_v28, 9 }
 0x12f   : > { %6960 = vmatprep.mubr.bf16.mxu1 %v6165_v37  ;;  %v8968_v37 = vld [vmem:[#allocation2 + $0x1c] sm:$0xf] }
 0x130   : > { %7091 = vmatpush3.bf16.msra.mxu0 %v7256_v18  ;;  %v4374_v14 = vshll.u32 %v8968_v37, 16  ;;  %v4378_v53 = vshrl.u32 %v8968_v37, 16  ;;  %v7264_v18 = vld [vmem:[%s10137_s1 + $0x220] sm:$0xff]   ;;  %v5136_v13 = vrot.slane %v8968_v37, 5  ;;  %v4394_v63 = vrot.slane %v4392_v30, 5 }
 0x131   : > { %7092 = vmatprep.subr.bf16.mxu0 %v7260_v55  ;;  %v4318_v37 = vld [vmem:[#allocation2 + $0x20] sm:$0x1]  ;;  %v4413_v30 = vshrl.u32 %v4322_v4, 16 }
 0x132   : > { %v8992_v0 = vrot.slane %v4374_v14, 5  ;;  %v5139_v62 = vrot.slane %v4318_v37, 5  ;;  %v9001_v14 = vrot.slane %v4398_v32, 5  ;;  %v4384_v56 = vshll.u32 %v4318_v37, 16  ;;  %v5071_v37 = vld [vmem:[#allocation2 + $0x24] sm:$0xe] }
 0x133   : > { %7013 = vmatmul.mubr.bf16.gmra.mxu0 %v7254_v19  ;;  %v7259_v19 = vld [vmem:[%s10137_s1 + $0x1e8] sm:$0xff]   ;;  %v9016_v32 = vsel %vm7864_vm14, %v6269_v29, %v5136_v13  ;;  %v4415_v1 = vrot.slane %v4413_v30, 4  ;;  %v6270_v29 = vrot.slane %v5071_v37, 9 }
 0x134   : > { %7016 = vmatprep.mubr.bf16.mxu0 %v7257_v40  ;;  %7093 = vmatpush3.bf16.msra.mxu0 %v7260_v55  ;;  %v4391_v40 = vrot.slane %v4389_v50, 4  ;;  %v8999_v55 = vld [vmem:[#allocation2 + $0x2c] sm:$0x1]  ;;  %v9003_v50 = vld [vmem:[#allocation2 + $0x34] sm:$0xf] }
 0x135   : > { %7094 = vmatprep.subr.bf16.mxu0 %v7264_v18 }
 0x136   : > { %6961 = vmatmul.mubr.bf16.vlgmr.msra.gmra.mxu1 %v6166_v23  ;;  %v4380_v23 = vrot.slane %v4378_v53, 4  ;;  %v4404_v53 = vrot.slane %v4402_v9, 4  ;;  %v4395_v6 = vor.u32 %v4394_v63, %v4391_v40  ;;  %v9029_v40 = vrot.slane %v4371_v21, 4 }
 0x137   : > { %7041 = vmatpush3.bf16.msra.mxu1 %v8776_v2  ;;  %6964 = vmatprep.mubr.bf16.mxu1 %v6167_v44  ;;  %v8994_v2 = vpop.f32.mrf.mxu0  ;;  %v5138_v44 = vrot.slane %v5136_v13, 4  ;;  %v4422_v63 = vshll.u32 %v9003_v50, 16 }
 0x138   : > { %7042 = vmatprep.subr.bf16.mxu1 %v7255_v20  ;;  %10262 = vst [vmem:[#allocation12_spill] sm:$0xff] %v8994_v2  ;;  %7095 = vmatpush3.bf16.msra.mxu0 %v7264_v18  ;;  %v4381_v28 = vor.u32 %v4380_v23, %v8992_v0  ;;  %v4408_v18 = vshll.u32 %v8999_v55, 16  ;;  %v9027_v23 = vpop.f32.mrf.mxu1  ;;  %v4405_v13 = vor.u32 %v4404_v53, %v9001_v14  ;;  %v9040_v4 = vrot.slane %v4395_v6, 4 }
 0x139   : > { %7096 = vmatprep.subr.bf16.mxu0 %v7268_v17  ;;  %v9009_v10 = vpop.f32.mrf.mxu0  ;;  %v9020_v9 = vsel %vm7864_vm14, %v5138_v44, %v5139_v62  ;;  %10264 = vst [vmem:[#allocation13_spill] sm:$0xff] %v9027_v23  ;;  %v4426_v62 = vshrl.u32 %v9003_v50, 16  ;;  %v4325_v44 = vld [vmem:[#allocation2 + $0x3c] sm:$0xf]  ;;  %v9060_v37 = vrot.slane %v4422_v63, 5 }
 0x13a   : > { %10263 = vst [vmem:[#allocation4_spill] sm:$0xff] %v9009_v10  ;;  %v4382_v21 = vrot.slane %v4381_v28, 4  ;;  %v9054_v30 = vpop.f32.mrf.mxu1  ;;  %v4377_v28 = vsel %vm7380_vm6, %v9029_v40, %v8992_v0  ;;  %v4406_v6 = vrot.slane %v4405_v13, 4  ;;  %v5072_v23 = vld [vmem:[#allocation2 + $0x30] sm:$0xe]  ;;  %v4440_v10 = vshll.u32 %v4325_v44, 16 }
 0x13b   : > { %7043 = vmatpush3.bf16.msra.mxu1 %v7255_v20  ;;  %7017 = vmatmul.mubr.bf16.gmra.mxu0 %v7258_v52  ;;  %v7272_v20 = vld [vmem:[%s10137_s1 + $0x210] sm:$0xff]   ;;  %v5143_v52 = vrot.slane %v8970_v38, 5  ;;  %v9042_v53 = vpop.f32.mrf.mxu0  ;;  %10266 = vst [vmem:[#allocation6_spill] sm:$0xff] %v9054_v30  ;;  %v4428_v49 = vrot.slane %v4426_v62, 4  ;;  %v4450_v62 = vshrl.u32 %v9062_v25, 16 }
 0x13c   : > { %7044 = vmatprep.subr.bf16.mxu1 %v7259_v19  ;;  %7020 = vmatprep.mubr.bf16.mxu0 %v7261_v61  ;;  %v7262_v38 = vld [vmem:[#allocation2 + $0x6c] sm:$0xff]   ;;  %v4386_v61 = vrot.slane %v4384_v56, 5  ;;  %10265 = vst [vmem:[#allocation5_spill] sm:$0xff] %v9042_v53  ;;  %v9052_v56 = vld [vmem:[#allocation2 + $0x38] sm:$0x1]  ;;  %v4437_v53 = vshrl.u32 %v4325_v44, 16  ;;  %v10270_v44 = vcombine.low %v8829_v22, %v8833_v46 }
 0x13d   : > { %7097 = vmatpush3.bf16.msra.mxu0 %v7268_v17  ;;  %v7265_v17 = vld [vmem:[#allocation2 + $0x78] sm:$0xff]   ;;  %v7271_v30 = vld [vmem:[%s10137_s1 + $0x1d0] sm:$0xff]   ;;  %v9076_v40 = vsel %vm7864_vm14, %v6270_v29, %v5143_v52  ;;  %v4432_v63 = vshll.u32 %v9052_v56, 16  ;;  %v9100_v29 = vld [vmem:[#allocation2 + $0x4c] sm:$0xf] }
 0x13e   : > { %6965 = vmatmul.mubr.bf16.gmra.mxu1 %v6168_v26  ;;  %v4418_v26 = vrot.slane %v4416_v57, 5  ;;  %7098 = vmatprep.subr.bf16.mxu0 %v7272_v20  ;;  %v5145_v57 = vrot.slane %v5143_v52, 4  ;;  %v4387_v0 = vsel %vm7380_vm6, %v4382_v21, %v4386_v61  ;;  %v4328_v52 = vld [vmem:[#allocation2 + $0x48] sm:$0xf]  ;;  %v4429_v21 = vor.u32 %v4428_v49, %v9060_v37  ;;  %v9114_v22 = vld [vmem:[#allocation2 + $0x44] sm:$0x1] }
 0x13f   : > { %6968 = vmatprep.mubr.bf16.mxu1 %v6169_v27  ;;  %7045 = vmatpush3.bf16.msra.mxu1 %v7259_v19  ;;  %v9049_v27 = vrot.slane %v4408_v18, 5  ;;  %v5146_v19 = vrot.slane %v8999_v55, 5  ;;  %v5150_v55 = vrot.slane %v9003_v50, 5  ;;  %v9078_v50 = vpop.f32.mrf.mxu0  ;;  %v6271_v61 = vrot.slane %v5072_v23, 9  ;;  %v7275_v49 = vld [vmem:[%s10137_s1 + $0x1c8] sm:$0xff]  }
 0x140   : > { %7046 = vmatprep.subr.bf16.mxu1 %v7263_v34  ;;  %v4419_v18 = vor.u32 %v4418_v26, %v4415_v1  ;;  %10267 = vst [vmem:[#allocation15_spill] sm:$0xff] %v9078_v50  ;;  %v9093_v1 = vpop.f32.mrf.mxu1  ;;  %v9110_v23 = vcombine.low %v4377_v28, %v4387_v0  ;;  %v4461_v46 = vshrl.u32 %v4328_v52, 16  ;;  %v7269_v0 = vld [vmem:[#allocation2 + $0x90] sm:$0xff]   ;;  %v10276_v50 = vcombine.low %v8839_v58, %v8845_v48 }
 0x141   : > { %7099 = vmatpush3.bf16.msra.mxu0 %v7272_v20  ;;  %v7280_v20 = vld [vmem:[%s10137_s1 + $0x200] sm:$0xff]   ;;  %v9085_v13 = vsel %vm7864_vm14, %v5145_v57, %v5146_v19  ;;  %10269 = vst [vmem:[#allocation14_spill] sm:$0xff] %v9093_v1  ;;  %v4411_v26 = vsel %vm7380_vm6, %v4406_v6, %v9049_v27  ;;  %v4439_v57 = vrot.slane %v4437_v53, 4  ;;  %v4442_v19 = vrot.slane %v4440_v10, 5 }
 0x142   : > { %7100 = vmatprep.subr.bf16.mxu0 %v7276_v54  ;;  %10271 = vst [vmem:[#allocation16_spill] sm:$0xff] %v9110_v23  ;;  %v4452_v53 = vrot.slane %v4450_v62, 4  ;;  %v4470_v6 = vshll.u32 %v9100_v29, 16  ;;  %v9122_v28 = vpop.f32.mrf.mxu1  ;;  %v9128_v27 = vrot.slane %v4432_v63, 5  ;;  %v9143_v63 = vld [vmem:[#allocation2 + $0x58] sm:$0xf] }
 0x143   : > { %7047 = vmatpush3.bf16.msra.mxu1 %v7263_v34  ;;  %v4401_v34 = vsel %vm7380_vm6, %v9040_v4, %v9001_v14  ;;  %7021 = vmatmul.mubr.bf16.gmra.mxu0 %v7262_v38  ;;  %v4446_v14 = vshll.u32 %v9062_v25, 16  ;;  %v10268_v38 = vcombine.low %v8794_v16, %v8807_v11  ;;  %v5153_v4 = vrot.slane %v9052_v56, 5  ;;  %v9116_v56 = vpop.f32.mrf.mxu0  ;;  %10273 = vst [vmem:[#allocation18_spill] sm:$0xff] %v9122_v28 }
 0x144   : > { %7048 = vmatprep.subr.bf16.mxu1 %v7267_v41  ;;  %7024 = vmatprep.mubr.bf16.mxu0 %v7265_v17  ;;  %v9105_v16 = vrot.slane %v4419_v18, 4  ;;  %v5152_v11 = vrot.slane %v5150_v55, 4  ;;  %v7266_v17 = vld [vmem:[#allocation2 + $0x84] sm:$0xff]   ;;  %10272 = vst [vmem:[#allocation17_spill] sm:$0xff] %v9116_v56  ;;  %v4474_v18 = vshrl.u32 %v9100_v29, 16 }
 0x145   : > { %7101 = vmatpush3.bf16.msra.mxu0 %v7276_v54  ;;  %v9118_v10 = vrot.slane %v4446_v14, 5  ;;  %v4331_v54 = vld [vmem:[#allocation2 + $0x54] sm:$0xf]  ;;  %v5073_v14 = vld [vmem:[#allocation2 + $0x3c] sm:$0xe]  ;;  %v9148_v62 = vpop.f32.mrf.mxu0 }
 0x146   : > { %6969 = vmatmul.mubr.bf16.gmra.mxu1 %v10268_v38  ;;  %7102 = vmatprep.subr.bf16.mxu0 %v7280_v20  ;;  %v9124_v38 = vcombine.low %v4401_v34, %v4411_v26  ;;  %v9140_v28 = vsel %vm7864_vm14, %v5152_v11, %v5153_v4  ;;  %v4443_v34 = vor.u32 %v4442_v19, %v4439_v57  ;;  %v4456_v26 = vshll.u32 %v9114_v22, 16  ;;  %v9151_v57 = vld [vmem:[#allocation2 + $0x50] sm:$0x1] }
 0x147   : > { %6972 = vmatprep.mubr.bf16.mxu1 %v10270_v44  ;;  %7049 = vmatpush3.bf16.msra.mxu1 %v7267_v41  ;;  %v4464_v41 = vshll.u32 %v4328_v52, 16  ;;  %v9126_v44 = vrot.slane %v4429_v21, 4  ;;  %v9132_v52 = vsel %vm7864_vm14, %v6271_v61, %v5150_v55  ;;  %v7279_v55 = vld [vmem:[%s10137_s1 + $0x1c0] sm:$0xff]   ;;  %v4485_v61 = vshrl.u32 %v4331_v54, 16  ;;  %10275 = vst [vmem:[#allocation9_spill] sm:$0xff] %v9148_v62 }
 0x148   : > { %7050 = vmatprep.subr.bf16.mxu1 %v7271_v30  ;;  %10274 = vst [vmem:[#allocation19_spill] sm:$0xff] %v9124_v38  ;;  %v4488_v1 = vshll.u32 %v4331_v54, 16  ;;  %v4453_v4 = vor.u32 %v4452_v53, %v9118_v10  ;;  %v6272_v11 = vrot.slane %v5073_v14, 9  ;;  %v9153_v19 = vrot.slane %v4470_v6, 5  ;;  %v4334_v54 = vld [vmem:[#allocation2 + $0x60] sm:$0xf] }
 0x149   : > { %7103 = vmatpush3.bf16.msra.mxu0 %v7280_v20  ;;  %v4466_v21 = vrot.slane %v4464_v41, 5  ;;  %v4476_v56 = vrot.slane %v4474_v18, 4  ;;  %v9158_v20 = vpop.f32.mrf.mxu1  ;;  %v4494_v41 = vshll.u32 %v9143_v63, 16  ;;  %v4498_v53 = vshrl.u32 %v9143_v63, 16  ;;  %v7270_v62 = vld [vmem:[#allocation2 + $0x9c] sm:$0xff]  }
 0x14a   : > { %10277 = vst [vmem:[#allocation7_spill] sm:$0xff] %v9158_v20  ;;  %v10278_v6 = vcombine.low %v8860_v42, %v8852_v33  ;;  %v9171_v58 = vrot.slane %v4443_v34, 4  ;;  %v9173_v48 = vrot.slane %v4456_v26, 5  ;;  %v5160_v18 = vrot.slane %v9114_v22, 5  ;;  %v9178_v33 = vpop.f32.mrf.mxu0  ;;  %v7273_v42 = vld [vmem:[#allocation2 + $0xa8] sm:$0xff]  }
 0x14b   : > { %7051 = vmatpush3.bf16.msra.mxu1 %v7271_v30  ;;  %v4463_v30 = vrot.slane %v4461_v46, 4  ;;  %7025 = vmatmul.mubr.bf16.gmra.mxu0 %v7266_v17  ;;  %v4480_v14 = vshll.u32 %v9151_v57, 16  ;;  %v5074_v46 = vld [vmem:[#allocation2 + $0x48] sm:$0xe]  ;;  %v4487_v17 = vrot.slane %v4485_v61, 4  ;;  %v4490_v20 = vrot.slane %v4488_v1, 5  ;;  %v9186_v26 = vpop.f32.mrf.mxu1 }
 0x14c   : > { %7052 = vmatprep.subr.bf16.mxu1 %v7275_v49  ;;  %7028 = vmatprep.mubr.bf16.mxu0 %v7269_v0  ;;  %10279 = vst [vmem:[#allocation20_spill] sm:$0xff] %v9178_v33  ;;  %v5164_v22 = vrot.slane %v9100_v29, 5  ;;  %10280 = vst [vmem:[#allocation8_spill] sm:$0xff] %v9186_v26  ;;  %v9190_v61 = vld [vmem:[#allocation2 + $0x64] sm:$0xf]  ;;  %v4509_v1 = vshrl.u32 %v4334_v54, 16  ;;  %v9198_v38 = vpop.f32.mrf.mxu0 }
 0x14d   : > { %v4467_v0 = vor.u32 %v4466_v21, %v4463_v30  ;;  %v9188_v30 = vrot.slane %v4494_v41, 5  ;;  %v4500_v21 = vrot.slane %v4498_v53, 4  ;;  %v6273_v33 = vrot.slane %v5074_v46, 9 }
 0x14e   : > { %6973 = vmatmul.mubr.bf16.gmra.mxu1 %v10276_v50  ;;  %v5157_v50 = vrot.slane %v9062_v25, 5  ;;  %v4477_v25 = vor.u32 %v4476_v56, %v9153_v19  ;;  %v4333_v56 = vld [vmem:[#allocation2 + $0x5c] sm:$0x1]  ;;  %v5171_v29 = vrot.slane %v9143_v63, 5  ;;  %v4482_v26 = vrot.slane %v4480_v14, 5  ;;  %v9205_v63 = vpop.f32.mrf.mxu1 }
 0x14f   : > { %6976 = vmatprep.mubr.bf16.mxu1 %v10278_v6  ;;  %7053 = vmatpush3.bf16.msra.mxu1 %v7275_v49  ;;  %v4454_v49 = vrot.slane %v4453_v4, 4  ;;  %v4512_v6 = vshll.u32 %v4334_v54, 16  ;;  %v4449_v4 = vsel %vm7380_vm6, %v9171_v58, %v9118_v10  ;;  %v4468_v2 = vrot.slane %v4467_v0, 4  ;;  %10282 = vst [vmem:[#allocation11_spill] sm:$0xff] %v9205_v63 }
 0x150   : > { %7054 = vmatprep.subr.bf16.mxu1 %v7279_v55  ;;  %v9182_v34 = vsel %vm7864_vm14, %v6272_v11, %v5157_v50  ;;  %v5159_v11 = vrot.slane %v5157_v50, 4  ;;  %v5167_v41 = vrot.slane %v9151_v57, 5  ;;  %v4491_v53 = vor.u32 %v4490_v20, %v4487_v17 }
 0x151   : > { %v5166_v54 = vrot.slane %v5164_v22, 4  ;;  %v4518_v23 = vshll.u32 %v9190_v61, 16  ;;  %v4522_v10 = vshrl.u32 %v9190_v61, 16  ;;  %v10281_v46 = vcombine.low %v8873_v15, %v8869_v5 }
 0x152   : > { %v4501_v57 = vor.u32 %v4500_v21, %v9188_v30  ;;  %v4504_v20 = vshll.u32 %v4333_v56, 16  ;;  %v4511_v17 = vrot.slane %v4509_v1, 4  ;;  %v10283_v58 = vcombine.low %v8885_v47, %v8881_v43  ;;  %v9227_v47 = vld [vmem:[#allocation2 + $0x68] sm:$0x1] }
 0x153   : > { %7055 = vmatpush3.bf16.msra.mxu1 %v7279_v55  ;;  %7029 = vmatmul.mubr.bf16.gmra.mxu0 %v7270_v62  ;;  %v4478_v55 = vrot.slane %v4477_v25, 4  ;;  %v4514_v62 = vrot.slane %v4512_v6, 5  ;;  %v4459_v50 = vsel %vm7380_vm6, %v4454_v49, %v9173_v48  ;;  %v6274_v0 = vrot.slane %v5075_v60, 9  ;;  %v7274_v48 = vld [vmem:[#allocation2 + $0xb4] sm:$0xff]   ;;  %v9229_v60 = vpop.f32.mrf.mxu0 }
 0x154   : > { %7032 = vmatprep.mubr.bf16.mxu0 %v7273_v42  ;;  %v5173_v14 = vrot.slane %v5171_v29, 4  ;;  %v5174_v5 = vrot.slane %v4333_v56, 5  ;;  %v9216_v15 = vsel %vm7864_vm14, %v5159_v11, %v5160_v18  ;;  %v4473_v42 = vsel %vm7380_vm6, %v4468_v2, %v9153_v19  ;;  %v9239_v19 = vpop.f32.mrf.mxu1  ;;  %v4337_v56 = vld [vmem:[#allocation2 + $0x6c] sm:$0xf] }
 0x155   : > { %v9223_v25 = vsel %vm7864_vm14, %v6273_v33, %v5164_v22  ;;  %v9225_v43 = vrot.slane %v4491_v53, 4  ;;  %v4483_v49 = vsel %vm7380_vm6, %v4478_v55, %v4482_v26  ;;  %v9235_v18 = vsel %vm7864_vm14, %v5166_v54, %v5167_v41  ;;  %10284 = vst [vmem:[#allocation10_spill] sm:$0xff] %v9239_v19  ;;  %v7277_v33 = vld [vmem:[#allocation2 + $0xc0] sm:$0xff]   ;;  %v9278_v54 = vld [vmem:[#allocation2 + $0x70] sm:$0xf] }
 0x156   : > { %6977 = vmatmul.mubr.bf16.gmra.mxu1 %v10281_v46  ;;  %v9237_v21 = vrot.slane %v4518_v23, 5  ;;  %v4524_v2 = vrot.slane %v4522_v10, 4  ;;  %v10285_v22 = vsel %vm7380_vm6, %v9126_v44, %v9128_v27  ;;  %v10286_v26 = vsel %vm7380_vm6, %v9105_v16, %v9060_v37  ;;  %v5076_v16 = vld [vmem:[#allocation2 + $0x60] sm:$0xe]  ;;  %v4340_v10 = vld [vmem:[#allocation2 + $0x78] sm:$0xf]  ;;  %v9280_v46 = vpop.f32.mrf.mxu0 }
 0x157   : > { %6980 = vmatprep.mubr.bf16.mxu1 %v10283_v58  ;;  %v9251_v1 = vcombine.low %v10286_v26, %v10285_v22  ;;  %v9253_v6 = vrot.slane %v4501_v57, 4  ;;  %v9255_v23 = vrot.slane %v4504_v20, 5  ;;  %v4515_v11 = vor.u32 %v4514_v62, %v4511_v17  ;;  %v9284_v58 = vld [vmem:[#allocation2 + $0x7c] sm:$0xf] }
 0x158   : > { %v9257_v41 = vcombine.low %v4449_v4, %v4459_v50  ;;  %v9261_v53 = vsel %vm7864_vm14, %v6274_v0, %v5171_v29  ;;  %v9265_v27 = vsel %vm7864_vm14, %v5173_v14, %v5174_v5  ;;  %v4528_v37 = vshll.u32 %v9227_v47, 16  ;;  %v9289_v0 = vpop.f32.mrf.mxu1  ;;  %v9318_v5 = vld [vmem:[#allocation2 + $0x74] sm:$0x1] }
 0x159   : > { %v9270_v55 = vcombine.low %v4473_v42, %v4483_v49  ;;  %v4525_v57 = vor.u32 %v4524_v2, %v9237_v21  ;;  %v5178_v20 = vrot.slane %v9190_v61, 5  ;;  %v4533_v17 = vshrl.u32 %v4337_v56, 16  ;;  %10288 = vst [vmem:[#allocation21_spill] sm:$0xff] %v9289_v0 }
 0x15a   : > { %v4536_v62 = vshll.u32 %v4337_v56, 16  ;;  %v10287_v50 = vcombine.low %v8891_v7, %v8895_v59  ;;  %v4507_v14 = vsel %vm7380_vm6, %v9253_v6, %v9255_v23  ;;  %v4516_v61 = vrot.slane %v4515_v11, 4  ;;  %v9305_v11 = vld [vmem:[#allocation2 + $0x88] sm:$0xf]  ;;  %v9307_v56 = vpop.f32.mrf.mxu0 }
 0x15b   : > { %7033 = vmatmul.mubr.bf16.gmra.mxu0 %v7274_v48  ;;  %v6275_v42 = vrot.slane %v5076_v16, 9  ;;  %v10289_v48 = vcombine.low %v8906_v45, %v8911_v36  ;;  %v4530_v49 = vrot.slane %v4528_v37, 5  ;;  %v5181_v7 = vrot.slane %v9227_v47, 5  ;;  %v7278_v45 = vld [vmem:[#allocation2 + $0xcc] sm:$0xff]  }
 0x15c   : > { %7036 = vmatprep.mubr.bf16.mxu0 %v7277_v33  ;;  %v4542_v59 = vshll.u32 %v9278_v54, 16  ;;  %v4546_v2 = vshrl.u32 %v9278_v54, 16  ;;  %v4343_v33 = vld [vmem:[#allocation2 + $0x84] sm:$0xf]  ;;  %v4557_v22 = vshrl.u32 %v4340_v10, 16  ;;  %v4560_v26 = vshll.u32 %v4340_v10, 16 }
 0x15d   : > { %v4566_v6 = vshll.u32 %v9284_v58, 16  ;;  %v4570_v23 = vshrl.u32 %v9284_v58, 16  ;;  %v4526_v36 = vrot.slane %v4525_v57, 4  ;;  %v5180_v37 = vrot.slane %v5178_v20, 4 }
 0x15e   : > { %6981 = vmatmul.mubr.bf16.gmra.mxu1 %v10287_v50  ;;  %v4535_v16 = vrot.slane %v4533_v17, 4  ;;  %v4538_v47 = vrot.slane %v4536_v62, 5  ;;  %v9309_v50 = vpop.f32.mrf.mxu1  ;;  %v9316_v10 = vsel %vm7864_vm14, %v6275_v42, %v5178_v20  ;;  %v4581_v4 = vshrl.u32 %v4343_v33, 16 }
 0x15f   : > { %6984 = vmatprep.mubr.bf16.mxu1 %v10289_v48  ;;  %10290 = vst [vmem:[#allocation22_spill] sm:$0xff] %v9309_v50  ;;  %v4521_v48 = vsel %vm7380_vm6, %v4516_v61, %v9237_v21  ;;  %v4584_v44 = vshll.u32 %v4343_v33, 16  ;;  %v9320_v29 = vrot.slane %v4542_v59, 5  ;;  %v4548_v57 = vrot.slane %v4546_v2, 4  ;;  %v5077_v50 = vld [vmem:[#allocation2 + $0x6c] sm:$0xe] }
 0x160   : > { %v4590_v17 = vshll.u32 %v9305_v11, 16  ;;  %v4594_v62 = vshrl.u32 %v9305_v11, 16  ;;  %v4559_v0 = vrot.slane %v4557_v22, 4  ;;  %v4562_v19 = vrot.slane %v4560_v26, 5  ;;  %v9335_v33 = vld [vmem:[#allocation2 + $0x80] sm:$0x1]  ;;  %v9340_v26 = vpop.f32.mrf.mxu1 }
 0x161   : > { %v9324_v63 = vrot.slane %v4566_v6, 5  ;;  %v4572_v21 = vrot.slane %v4570_v23, 4  ;;  %v4531_v20 = vsel %vm7380_vm6, %v4526_v36, %v4530_v49  ;;  %v9332_v42 = vsel %vm7864_vm14, %v5180_v37, %v5181_v7  ;;  %10292 = vst [vmem:[#allocation24_spill] sm:$0xff] %v9340_v26 }
 0x162   : > { %v9326_v61 = vpop.f32.mrf.mxu0  ;;  %v4539_v59 = vor.u32 %v4538_v47, %v4535_v16  ;;  %v4552_v2 = vshll.u32 %v9318_v5, 16  ;;  %v10291_v22 = vcombine.low %v8917_v3, %v8921_v12  ;;  %v10293_v6 = vcombine.low %v9016_v32, %v9020_v9 }
 0x163   : > { %7037 = vmatmul.mubr.bf16.gmra.mxu0 %v7278_v45  ;;  %v4583_v49 = vrot.slane %v4581_v4, 4  ;;  %v4586_v23 = vrot.slane %v4584_v44, 5  ;;  %v9345_v45 = vrot.slane %v4590_v17, 5  ;;  %v4596_v7 = vrot.slane %v4594_v62, 4  ;;  %v9361_v4 = vld [vmem:[#allocation2 + $0x8c] sm:$0x1] }
 0x164   : > { %7104 = vmatprep.mubr.bf16.mxu0 %v10293_v6  ;;  %v10294_v36 = vcombine.low %v8936_v31, %v8925_v35  ;;  %v9350_v37 = vpop.f32.mrf.mxu0  ;;  %v10295_v3 = vsel %vm7380_vm6, %v9225_v43, %v9188_v30  ;;  %v4549_v32 = vor.u32 %v4548_v57, %v9320_v29  ;;  %v6276_v9 = vrot.slane %v5077_v50, 9  ;;  %v5078_v50 = vld [vmem:[#allocation2 + $0x78] sm:$0xe]  ;;  %v9375_v57 = vpop.f32.mrf.mxu1  ;;  %v4346_v6 = vld [vmem:[#allocation2 + $0x90] sm:$0xf] }
 0x165   : > { %v9357_v12 = vcombine.low %v10295_v3, %v4507_v14  ;;  %v5185_v44 = vrot.slane %v9278_v54, 5  ;;  %v4563_v31 = vor.u32 %v4562_v19, %v4559_v0  ;;  %v4573_v16 = vor.u32 %v4572_v21, %v9324_v63  ;;  %10296 = vst [vmem:[#allocation23_spill] sm:$0xff] %v9375_v57  ;;  %v5079_v21 = vld [vmem:[#allocation2 + $0x84] sm:$0xe] }
 0x166   : > { %6985 = vmatmul.mubr.bf16.gmra.mxu1 %v10291_v22  ;;  %v4576_v47 = vshll.u32 %v9335_v33, 16  ;;  %v9367_v17 = vpop.f32.mrf.mxu0  ;;  %v9369_v30 = vcombine.low %v4521_v48, %v4531_v20  ;;  %v9371_v43 = vrot.slane %v4552_v2, 5  ;;  %v5188_v14 = vrot.slane %v9318_v5, 5 }
 0x167   : > { %6988 = vmatprep.mubr.bf16.mxu1 %v10294_v36  ;;  %v5192_v54 = vrot.slane %v9284_v58, 5  ;;  %v4540_v62 = vrot.slane %v4539_v59, 4  ;;  %v4587_v22 = vor.u32 %v4586_v23, %v4583_v49  ;;  %v4597_v19 = vor.u32 %v4596_v7, %v9345_v45 }
 0x168   : > { %v4600_v0 = vshll.u32 %v9361_v4, 16  ;;  %v9379_v36 = vpop.f32.mrf.mxu0  ;;  %v4550_v48 = vrot.slane %v4549_v32, 4  ;;  %v9383_v20 = vsel %vm7864_vm14, %v6276_v9, %v5185_v44  ;;  %v5187_v5 = vrot.slane %v5185_v44, 4 }
 0x169   : > { %10297 = vst [vmem:[#allocation25_spill] sm:$0xff] %v9379_v36  ;;  %v5199_v58 = vrot.slane %v9305_v11, 5  ;;  %v4564_v2 = vrot.slane %v4563_v31, 4  ;;  %v4574_v3 = vrot.slane %v4573_v16, 4  ;;  %v4578_v59 = vrot.slane %v4576_v47, 5 }
 0x16a   : > { %v6277_v49 = vrot.slane %v5078_v50, 9  ;;  %v9386_v23 = vpop.f32.mrf.mxu0  ;;  %v10298_v7 = vcombine.low %v9076_v40, %v9085_v13  ;;  %v5194_v35 = vrot.slane %v5192_v54, 4  ;;  %v5195_v32 = vrot.slane %v9335_v33, 5  ;;  %v9400_v40 = vld [vmem:[#allocation2 + $0x94] sm:$0xf]  ;;  %v10302_v50 = vld [vmem:[#allocation16_spill] sm:$0xff] }
 0x16b   : > { %v6278_v57 = vrot.slane %v5079_v21, 9  ;;  %v4605_v26 = vshrl.u32 %v4346_v6, 16  ;;  %v9392_v9 = vpop.f32.mrf.mxu1  ;;  %v10300_v11 = vcombine.low %v8942_v8, %v8946_v39  ;;  %v10301_v44 = vcombine.low %v9132_v52, %v9140_v28 }
 0x16c   : > { %7105 = vmatmul.mubr.bf16.vlgmr.msra.gmra.mxu0 %v10298_v7  ;;  %10299 = vst [vmem:[#allocation26_spill] sm:$0xff] %v9392_v9  ;;  %v4588_v31 = vrot.slane %v4587_v22, 4  ;;  %v4598_v16 = vrot.slane %v4597_v19, 4  ;;  %v4602_v47 = vrot.slane %v4600_v0, 5  ;;  %v4608_v13 = vshll.u32 %v4346_v6, 16  ;;  %v9403_v33 = vpop.f32.mrf.mxu0 }
 0x16d   : > { %7108 = vmatprep.mubr.bf16.mxu0 %v10301_v44  ;;  %v4545_v21 = vsel %vm7380_vm6, %v4540_v62, %v9320_v29  ;;  %v9410_v8 = vsel %vm7864_vm14, %v5187_v5, %v5188_v14  ;;  %v5201_v39 = vrot.slane %v5199_v58, 4  ;;  %v5202_v28 = vrot.slane %v9361_v4, 5  ;;  %v9413_v52 = vpop.f32.mrf.mxu1  ;;  %v9427_v62 = vld [vmem:[#allocation2 + $0x98] sm:$0x1]  ;;  %v4349_v4 = vld [vmem:[#allocation2 + $0x9c] sm:$0xf] }
 0x16e   : > { %6989 = vmatmul.mubr.bf16.gmra.mxu1 %v10300_v11  ;;  %10303 = vst [vmem:[#allocation16_spill] sm:$0xff] %v9413_v52  ;;  %v4555_v22 = vsel %vm7380_vm6, %v4550_v48, %v9371_v43  ;;  %v4569_v19 = vsel %vm7380_vm6, %v4564_v2, %v9324_v63  ;;  %v4579_v29 = vsel %vm7380_vm6, %v4574_v3, %v4578_v59  ;;  %v9429_v0 = vpop.f32.mrf.mxu0  ;;  %v4607_v63 = vrot.slane %v4605_v26, 4  ;;  %v9440_v5 = vld [vmem:[#allocation2 + $0xa0] sm:$0xf]  ;;  %v10307_v44 = vld [vmem:[#allocation19_spill] sm:$0xff] }
 0x16f   : > { %7056 = vmatprep.mubr.bf16.mxu1 %v10302_v50  ;;  %v9425_v14 = vsel %vm7864_vm14, %v6277_v49, %v5192_v54  ;;  %v9433_v6 = vsel %vm7864_vm14, %v5194_v35, %v5195_v32  ;;  %v9437_v43 = vsel %vm7864_vm14, %v6278_v57, %v5199_v58  ;;  %v4614_v48 = vshll.u32 %v9400_v40, 16  ;;  %v9442_v54 = vpop.f32.mrf.mxu1  ;;  %v9450_v49 = vld [vmem:[#allocation2 + $0x90] sm:$0xe]  ;;  %v5081_v9 = vld [vmem:[#allocation2 + $0x9c] sm:$0xe] }
 0x170   : > { %10304 = vst [vmem:[#allocation27_spill] sm:$0xff] %v9442_v54  ;;  %v4593_v2 = vsel %vm7380_vm6, %v4588_v31, %v9345_v45  ;;  %v4603_v3 = vsel %vm7380_vm6, %v4598_v16, %v4602_v47  ;;  %v4610_v35 = vrot.slane %v4608_v13, 5  ;;  %v4618_v59 = vshrl.u32 %v9400_v40, 16  ;;  %v9452_v57 = vpop.f32.mrf.mxu0 }
 0x171   : > { %v9456_v26 = vsel %vm7864_vm14, %v5201_v39, %v5202_v28  ;;  %v4624_v58 = vshll.u32 %v9427_v62, 16  ;;  %v4629_v7 = vshrl.u32 %v4349_v4, 16  ;;  %v4632_v32 = vshll.u32 %v4349_v4, 16  ;;  %v9459_v11 = vpop.f32.mrf.mxu1 }
 0x172   : > { %10305 = vst [vmem:[#allocation28_spill] sm:$0xff] %v9459_v11  ;;  %v9461_v45 = vcombine.low %v4545_v21, %v4555_v22  ;;  %v4638_v31 = vshll.u32 %v9440_v5, 16  ;;  %v4642_v16 = vshrl.u32 %v9440_v5, 16  ;;  %v9467_v47 = vpop.f32.mrf.mxu0  ;;  %v10306_v13 = vcombine.low %v9182_v34, %v9216_v15  ;;  %v4352_v22 = vld [vmem:[#allocation2 + $0xa8] sm:$0xf] }
 0x173   : > { %v9472_v50 = vcombine.low %v4569_v19, %v4579_v29  ;;  %v9476_v21 = vrot.slane %v4614_v48, 5  ;;  %v6279_v28 = vrot.slane %v9450_v49, 9  ;;  %v6770_v4 = vpop.f32.mrf.mxu1  ;;  %v10308_v11 = vcombine.low %v9223_v25, %v9235_v18  ;;  %v9487_v29 = vld [vmem:[#allocation2 + $0xac] sm:$0xf]  ;;  %v10310_v48 = vld [vmem:[#allocation3_spill] sm:$0xff] }
 0x174   : > { %7109 = vmatmul.mubr.bf16.gmra.mxu0 %v10306_v13  ;;  %v9483_v54 = vcombine.low %v4593_v2, %v4603_v3  ;;  %v4611_v15 = vor.u32 %v4610_v35, %v4607_v63  ;;  %v4620_v19 = vrot.slane %v4618_v59, 4  ;;  %v1688_v13 = vadd.f32 %v6770_v4, %v10310_v48  ;;  %v9491_v49 = vpop.f32.mrf.mxu0  ;;  %v9495_v2 = vld [vmem:[#allocation2 + $0xa4] sm:$0x1] }
 0x175   : > { %7112 = vmatprep.mubr.bf16.mxu0 %v10308_v11  ;;  %v4631_v39 = vrot.slane %v4629_v7, 4  ;;  %v4634_v25 = vrot.slane %v4632_v32, 5  ;;  %v1679_v18 = vpop.f32.mrf.mxu1  ;;  %v9497_v3 = vrot.slane %v4638_v31, 5  ;;  %v4644_v11 = vrot.slane %v4642_v16, 4  ;;  %v10312_v4 = vld [vmem:[#allocation12_spill] sm:$0xff] }
 0x176   : > { %7057 = vmatmul.mubr.bf16.vlgmr.msra.gmra.mxu1 %v10307_v44  ;;  %10309 = vst [vmem:[#allocation19_spill] sm:$0xff] %v9483_v54  ;;  %v9493_v44 = vrot.slane %v4624_v58, 5  ;;  %v4653_v63 = vshrl.u32 %v4352_v22, 16  ;;  %v4656_v35 = vshll.u32 %v4352_v22, 16  ;;  %v9500_v59 = vadd.f32 %v9386_v23, %v1688_v13  ;;  %v10314_v13 = vld [vmem:[#allocation4_spill] sm:$0xff] }
 0x177   : > { %7060 = vmatprep.mubr.bf16.mxu1 %v9251_v1  ;;  %v1680_v48 = vadd.f32 %v1679_v18, %v10312_v4  ;;  %v9503_v1 = vpop.f32.mrf.mxu0  ;;  %v4662_v58 = vshll.u32 %v9487_v29, 16  ;;  %v4666_v7 = vshrl.u32 %v9487_v29, 16  ;;  %v6771_v32 = vpop.f32.mrf.mxu1  ;;  %v9507_v34 = vrot.slane %v4611_v15, 4 }
 0x178   : > { %10311 = vst [vmem:[#allocation3_spill] sm:$0xff] %v9500_v59  ;;  %v4621_v31 = vor.u32 %v4620_v19, %v9476_v21  ;;  %v5206_v16 = vrot.slane %v9400_v40, 5  ;;  %v5209_v22 = vrot.slane %v9427_v62, 5  ;;  %v1691_v18 = vadd.f32 %v6771_v32, %v10314_v13 }
 0x179   : > { %v9513_v23 = vadd.f32 %v9403_v33, %v1680_v48  ;;  %v9516_v4 = vpop.f32.mrf.mxu0  ;;  %v4635_v59 = vor.u32 %v4634_v25, %v4631_v39  ;;  %v4648_v52 = vshll.u32 %v9495_v2, 16  ;;  %v1682_v54 = vpop.f32.mrf.mxu1  ;;  %v4645_v15 = vor.u32 %v4644_v11, %v9497_v3  ;;  %v10315_v33 = vld [vmem:[#allocation5_spill] sm:$0xff]  ;;  %v9530_v25 = vld [vmem:[#allocation2 + $0xb0] sm:$0x1] }
 0x17a   : > { %v5213_v19 = vrot.slane %v9440_v5, 5  ;;  %v4655_v36 = vrot.slane %v4653_v63, 4  ;;  %v4658_v40 = vrot.slane %v4656_v35, 5  ;;  %v9522_v62 = vadd.f32 %v9429_v0, %v1691_v18  ;;  %v10318_v35 = vld [vmem:[#allocation15_spill] sm:$0xff] }
 0x17b   : > { %10313 = vst [vmem:[#allocation12_spill] sm:$0xff] %v9513_v23  ;;  %v1683_v48 = vadd.f32 %v1682_v54, %v10315_v33  ;;  %v9525_v23 = vpop.f32.mrf.mxu0  ;;  %v10316_v39 = vcombine.low %v9261_v53, %v9265_v27  ;;  %v9532_v32 = vrot.slane %v4662_v58, 5  ;;  %v4668_v11 = vrot.slane %v4666_v7, 4  ;;  %v6774_v13 = vpop.f32.mrf.mxu1 }
 0x17c   : > { %v10317_v0 = vcombine.low %v9316_v10, %v9332_v42  ;;  %v4622_v5 = vrot.slane %v4621_v31, 4  ;;  %v9540_v54 = vsel %vm7864_vm14, %v6279_v28, %v5206_v16  ;;  %v5208_v63 = vrot.slane %v5206_v16, 4 }
 0x17d   : > { %7113 = vmatmul.mubr.bf16.gmra.mxu0 %v10316_v39  ;;  %v6280_v53 = vrot.slane %v5081_v9, 9  ;;  %v9543_v27 = vadd.f32 %v9452_v57, %v1683_v48  ;;  %v1704_v58 = vadd.f32 %v6774_v13, %v10318_v35  ;;  %v9547_v7 = vpop.f32.mrf.mxu0  ;;  %v4650_v18 = vrot.slane %v4648_v52, 5  ;;  %v1695_v10 = vpop.f32.mrf.mxu1  ;;  %v10319_v57 = vld [vmem:[#allocation17_spill] sm:$0xff]  ;;  %v9589_v35 = vld [vmem:[#allocation2 + $0xb8] sm:$0xf] }
 0x17e   : > { %7061 = vmatmul.mubr.bf16.gmra.mxu1 %v9257_v41  ;;  %7116 = vmatprep.mubr.bf16.mxu0 %v10317_v0  ;;  %v4636_v41 = vrot.slane %v4635_v59, 4  ;;  %v4646_v42 = vrot.slane %v4645_v15, 4  ;;  %v5215_v31 = vrot.slane %v5213_v19, 4  ;;  %v5216_v33 = vrot.slane %v9495_v2, 5  ;;  %v5082_v13 = vld [vmem:[#allocation2 + $0xa8] sm:$0xe] }
 0x17f   : > { %7064 = vmatprep.mubr.bf16.mxu1 %v9270_v55  ;;  %v4672_v28 = vshll.u32 %v9530_v25, 16  ;;  %v9552_v9 = vadd.f32 %v9467_v47, %v1704_v58  ;;  %v1696_v16 = vadd.f32 %v1695_v10, %v10319_v57  ;;  %v9555_v48 = vpop.f32.mrf.mxu0  ;;  %v4659_v39 = vor.u32 %v4658_v40, %v4655_v36  ;;  %v6775_v59 = vpop.f32.mrf.mxu1  ;;  %v10320_v40 = vld [vmem:[#allocation9_spill] sm:$0xff] }
 0x180   : > { %v4669_v55 = vor.u32 %v4668_v11, %v9532_v32  ;;  %v4617_v52 = vsel %vm7380_vm6, %v9507_v34, %v9476_v21  ;;  %v4627_v2 = vsel %vm7380_vm6, %v4622_v5, %v9493_v44  ;;  %v9567_v47 = vsel %vm7864_vm14, %v5208_v63, %v5209_v22  ;;  %v4355_v44 = vld [vmem:[#allocation2 + $0xb4] sm:$0xf] }
 0x181   : > { %v5220_v15 = vrot.slane %v9487_v29, 5  ;;  %v9571_v36 = vadd.f32 %v9491_v49, %v1696_v16  ;;  %v1707_v11 = vadd.f32 %v6775_v59, %v10320_v40  ;;  %v9574_v0 = vpop.f32.mrf.mxu0  ;;  %v4641_v21 = vsel %vm7380_vm6, %v4636_v41, %v9497_v3  ;;  %v1698_v22 = vpop.f32.mrf.mxu1  ;;  %v10321_v3 = vld [vmem:[#allocation20_spill] sm:$0xff] }
 0x182   : > { %v9581_v34 = vsel %vm7864_vm14, %v6280_v53, %v5213_v19  ;;  %v4651_v29 = vsel %vm7380_vm6, %v4646_v42, %v4650_v18  ;;  %v9587_v49 = vsel %vm7864_vm14, %v5215_v31, %v5216_v33  ;;  %v4674_v5 = vrot.slane %v4672_v28, 5 }
 0x183   : > { %v6281_v63 = vrot.slane %v5082_v13, 9  ;;  %v9592_v58 = vadd.f32 %v9503_v1, %v1707_v11  ;;  %v1699_v41 = vadd.f32 %v1698_v22, %v10321_v3  ;;  %v9595_v19 = vpop.f32.mrf.mxu0  ;;  %v10322_v53 = vcombine.low %v9383_v20, %v9410_v8  ;;  %v6778_v42 = vpop.f32.mrf.mxu1  ;;  %v9641_v11 = vld [vmem:[#allocation2 + $0xc4] sm:$0xf]  ;;  %v9649_v22 = vld [vmem:[#allocation2 + $0xbc] sm:$0x1] }
 0x184   : > { %v4660_v18 = vrot.slane %v4659_v39, 4  ;;  %v4670_v10 = vrot.slane %v4669_v55, 4  ;;  %v10323_v31 = vcombine.low %v9425_v14, %v9433_v6  ;;  %v5222_v33 = vrot.slane %v5220_v15, 4  ;;  %v5083_v3 = vld [vmem:[#allocation2 + $0xb4] sm:$0xe] }
 0x185   : > { %7117 = vmatmul.mubr.bf16.gmra.mxu0 %v10322_v53  ;;  %v5223_v1 = vrot.slane %v9530_v25, 5  ;;  %v4677_v28 = vshrl.u32 %v4355_v44, 16  ;;  %v4680_v57 = vshll.u32 %v4355_v44, 16  ;;  %v9606_v16 = vadd.f32 %v9516_v4, %v1699_v41  ;;  %v9610_v8 = vpop.f32.mrf.mxu0  ;;  %v1711_v14 = vpop.f32.mrf.mxu1 }
 0x186   : > { %7065 = vmatmul.mubr.bf16.gmra.mxu1 %v9357_v12  ;;  %7120 = vmatprep.mubr.bf16.mxu0 %v10323_v31  ;;  %v1720_v20 = vadd.f32 %v6778_v42, %v9198_v38  ;;  %v4686_v12 = vshll.u32 %v9589_v35, 16  ;;  %v4690_v39 = vshrl.u32 %v9589_v35, 16  ;;  %v9614_v6 = vcombine.low %v4617_v52, %v4627_v2 }
 0x187   : > { %7068 = vmatprep.mubr.bf16.mxu1 %v9369_v30  ;;  %v6311_v25 = vcombine.low %v9540_v54, %v9567_v47  ;;  %v9618_v55 = vcombine.low %v4641_v21, %v4651_v29  ;;  %v6312_v4 = vcombine.low %v9581_v34, %v9587_v49  ;;  %v1712_v30 = vadd.f32 %v1711_v14, %v9229_v60  ;;  %v9626_v13 = vpop.f32.mrf.mxu0  ;;  %v4358_v54 = vld [vmem:[#allocation2 + $0xc0] sm:$0xf]  ;;  %v6779_v2 = vpop.f32.mrf.mxu1  ;;  %v10327_v49 = vld [vmem:[#allocation13_spill] sm:$0xff] }
 0x188   : > { %v9623_v38 = vadd.f32 %v9525_v23, %v1720_v20  ;;  %v4665_v59 = vsel %vm7380_vm6, %v4660_v18, %v9532_v32  ;;  %v4675_v52 = vsel %vm7380_vm6, %v4670_v10, %v4674_v5  ;;  %v9635_v47 = vsel %vm7864_vm14, %v6281_v63, %v5220_v15 }
 0x189   : > { %v9639_v23 = vsel %vm7864_vm14, %v5222_v33, %v5223_v1  ;;  %v4679_v60 = vrot.slane %v4677_v28, 4  ;;  %v4682_v40 = vrot.slane %v4680_v57, 5  ;;  %v9644_v21 = vadd.f32 %v9547_v7, %v1712_v30  ;;  %v9647_v44 = vpop.f32.mrf.mxu0  ;;  %v1714_v5 = vpop.f32.mrf.mxu1 }
 0x18a   : > { %v1723_v32 = vadd.f32 %v6779_v2, %v9280_v46  ;;  %v9651_v29 = vrot.slane %v4686_v12, 5  ;;  %v4692_v15 = vrot.slane %v4690_v39, 4  ;;  %v9653_v63 = vcombine.low %v4665_v59, %v4675_v52  ;;  %v5084_v12 = vld [vmem:[#allocation2 + $0xc0] sm:$0xe] }
 0x18b   : > { %v5227_v41 = vrot.slane %v9589_v35, 5  ;;  %v4701_v53 = vshrl.u32 %v4358_v54, 16  ;;  %v4704_v18 = vshll.u32 %v4358_v54, 16  ;;  %v1715_v46 = vadd.f32 %v1714_v5, %v9307_v56  ;;  %v9660_v10 = vpop.f32.mrf.mxu0  ;;  %v6782_v1 = vpop.f32.mrf.mxu1 }
 0x18c   : > { %v9657_v7 = vadd.f32 %v9555_v48, %v1723_v32  ;;  %v10324_v42 = vcombine.low %v9437_v43, %v9456_v26  ;;  %v4710_v31 = vshll.u32 %v9641_v11, 16  ;;  %v4714_v33 = vshrl.u32 %v9641_v11, 16 }
 0x18d   : > { %v6313_v48 = vcombine.low %v9635_v47, %v9639_v23  ;;  %v4683_v35 = vor.u32 %v4682_v40, %v4679_v60  ;;  %v4696_v56 = vshll.u32 %v9649_v22, 16  ;;  %v5234_v28 = vrot.slane %v9641_v11, 5  ;;  %v9677_v26 = vpop.f32.mrf.mxu0  ;;  %v1727_v39 = vpop.f32.mrf.mxu1  ;;  %v4361_v47 = vld [vmem:[#allocation2 + $0xcc] sm:$0xf] }
 0x18e   : > { %7121 = vmatmul.mubr.bf16.gmra.mxu0 %v10324_v42  ;;  %7069 = vmatmul.mubr.bf16.gmra.mxu1 %v9461_v45  ;;  %v9673_v57 = vadd.f32 %v9574_v0, %v1715_v46  ;;  %v1736_v43 = vadd.f32 %v6782_v1, %v9326_v61  ;;  %v4693_v45 = vor.u32 %v4692_v15, %v9651_v29  ;;  %v6282_v20 = vrot.slane %v5083_v3, 9  ;;  %v4362_v42 = vld [vmem:[#allocation2 + $0xd0] sm:$0xf] }
 0x18f   : > { %7124 = vmatprep.mubr.bf16.mxu0 %v6311_v25  ;;  %7072 = vmatprep.mubr.bf16.mxu1 %v9472_v50  ;;  %v5229_v14 = vrot.slane %v5227_v41, 4  ;;  %v5230_v25 = vrot.slane %v9649_v22, 5  ;;  %v4703_v30 = vrot.slane %v4701_v53, 4  ;;  %v4706_v59 = vrot.slane %v4704_v18, 5  ;;  %v9685_v61 = vpop.f32.mrf.mxu0  ;;  %v4360_v50 = vld [vmem:[#allocation2 + $0xc8] sm:$0x1]  ;;  %v6783_v23 = vpop.f32.mrf.mxu1 }
 0x190   : > { %v9682_v52 = vadd.f32 %v9595_v19, %v1736_v43  ;;  %v1728_v0 = vadd.f32 %v1727_v39, %v9350_v37  ;;  %v9687_v54 = vrot.slane %v4710_v31, 5  ;;  %v4716_v2 = vrot.slane %v4714_v33, 4  ;;  %v10326_v43 = vld [vmem:[#allocation19_spill] sm:$0xff] }
 0x191   : > { %v9689_v60 = vrot.slane %v4683_v35, 4  ;;  %v6283_v40 = vrot.slane %v5084_v12, 9  ;;  %v5236_v11 = vrot.slane %v5234_v28, 4  ;;  %v5237_v32 = vrot.slane %v4360_v50, 5  ;;  %v9695_v15 = vpop.f32.mrf.mxu0  ;;  %v1730_v3 = vpop.f32.mrf.mxu1 }
 0x192   : > { %v9692_v22 = vadd.f32 %v9610_v8, %v1728_v0  ;;  %v1739_v19 = vadd.f32 %v6783_v23, %v9367_v17  ;;  %v9697_v37 = vrot.slane %v4696_v56, 5  ;;  %v5228_v5 = vsel %vm7864_vm14, %v6282_v20, %v5227_v41  ;;  %v10325_v8 = vld [vmem:[#allocation25_spill] sm:$0xff] }
 0x193   : > { %v9701_v53 = vrot.slane %v4693_v45, 4  ;;  %v4707_v18 = vor.u32 %v4706_v59, %v4703_v30  ;;  %v4720_v46 = vshll.u32 %v4360_v50, 16  ;;  %v4725_v31 = vshrl.u32 %v4361_v47, 16  ;;  %v6838_v17 = vpop.f32.mrf.mxu0  ;;  %v6786_v56 = vpop.f32.mrf.mxu1  ;;  %v5085_v30 = vld [vmem:[#allocation2 + $0xcc] sm:$0xe] }
 0x194   : > { %v9704_v33 = vadd.f32 %v9626_v13, %v1739_v19  ;;  %v1731_v1 = vadd.f32 %v1730_v3, %v10325_v8  ;;  %v5231_v41 = vsel %vm7864_vm14, %v5229_v14, %v5230_v25  ;;  %v4717_v35 = vor.u32 %v4716_v2, %v9687_v54 }
 0x195   : > { %v5235_v13 = vsel %vm7864_vm14, %v6283_v40, %v5234_v28  ;;  %v5238_v45 = vsel %vm7864_vm14, %v5236_v11, %v5237_v32  ;;  %v4728_v20 = vshll.u32 %v4361_v47, 16  ;;  %v5241_v12 = vrot.slane %v4362_v42, 5  ;;  %v2212_v39 = vpop.f32.mrf.mxu0  ;;  %v10328_v47 = vld [vmem:[#allocation6_spill] sm:$0xff] }
 0x196   : > { %7125 = vmatmul.mubr.bf16.gmra.mxu0 %v6312_v4  ;;  %7073 = vmatmul.mubr.bf16.gmra.mxu1 %v10326_v43  ;;  %v9719_v34 = vadd.f32 %v9647_v44, %v1731_v1  ;;  %v1752_v4 = vadd.f32 %v6786_v56, %v10327_v49  ;;  %v4734_v14 = vshll.u32 %v4362_v42, 16  ;;  %v4738_v25 = vshrl.u32 %v4362_v42, 16  ;;  %v4363_v32 = vld [vmem:[#allocation2 + $0xd4] sm:$0x1] }
 0x197   : > { %7128 = vmatprep.mubr.bf16.mxu0 %v6313_v48  ;;  %7076 = vmatprep.mubr.bf16.mxu1 %v9614_v6  ;;  %v1743_v48 = vpop.f32.mrf.mxu1  ;;  %v6314_v59 = vcombine.low %v5228_v5, %v5231_v41  ;;  %v4708_v0 = vrot.slane %v4707_v18, 4  ;;  %v4722_v28 = vrot.slane %v4720_v46, 5  ;;  %v4727_v50 = vrot.slane %v4725_v31, 4  ;;  %v6839_v44 = vpop.f32.mrf.mxu0  ;;  %v10329_v5 = vld [vmem:[#allocation14_spill] sm:$0xff] }
 0x198   : > { %v9724_v2 = vadd.f32 %v9660_v10, %v1752_v4  ;;  %v1744_v23 = vadd.f32 %v1743_v48, %v10328_v47  ;;  %v4718_v40 = vrot.slane %v4717_v35, 4  ;;  %v6315_v11 = vcombine.low %v5235_v13, %v5238_v45  ;;  %v10330_v43 = vld [vmem:[#allocation18_spill] sm:$0xff] }
 0x199   : > { %v6787_v19 = vpop.f32.mrf.mxu1  ;;  %v4730_v6 = vrot.slane %v4728_v20, 5  ;;  %v6284_v3 = vrot.slane %v5085_v30, 9  ;;  %v5243_v8 = vrot.slane %v5241_v12, 4  ;;  %v5244_v42 = vrot.slane %v4363_v32, 5  ;;  %v2215_v46 = vpop.f32.mrf.mxu0 }
 0x19a   : > { %v9728_v1 = vadd.f32 %v9677_v26, %v1744_v23  ;;  %v1755_v18 = vadd.f32 %v6787_v19, %v10329_v5  ;;  %v4736_v31 = vrot.slane %v4734_v14, 5  ;;  %v4740_v10 = vrot.slane %v4738_v25, 4 }
 0x19b   : > { %v1746_v41 = vpop.f32.mrf.mxu1  ;;  %v4689_v35 = vsel %vm7380_vm6, %v9689_v60, %v9651_v29  ;;  %v6842_v45 = vpop.f32.mrf.mxu0  ;;  %v4699_v26 = vsel %vm7380_vm6, %v9701_v53, %v9697_v37  ;;  %v4713_v20 = vsel %vm7380_vm6, %v4708_v0, %v9687_v54  ;;  %v4723_v29 = vsel %vm7380_vm6, %v4718_v40, %v4722_v28  ;;  %v10331_v53 = vld [vmem:[#allocation7_spill] sm:$0xff] }
 0x19c   : > { %v9736_v56 = vadd.f32 %v9685_v61, %v1755_v18  ;;  %v1747_v13 = vadd.f32 %v1746_v41, %v10330_v43  ;;  %v4744_v61 = vshll.u32 %v4363_v32, 16  ;;  %v5242_v60 = vsel %vm7864_vm14, %v6284_v3, %v5241_v12 }
 0x19d   : > { %v6790_v49 = vpop.f32.mrf.mxu1  ;;  %v5245_v4 = vsel %vm7864_vm14, %v5243_v8, %v5244_v42  ;;  %v2228_v54 = vpop.f32.mrf.mxu0  ;;  %v4741_v25 = vor.u32 %v4740_v10, %v4736_v31  ;;  %v6258_v51 = vcombine.low %v4689_v35, %v4699_v26  ;;  %v6259_v23 = vcombine.low %v4713_v20, %v4723_v29  ;;  %v10335_v10 = vld [vmem:[#allocation21_spill] sm:$0xff]  ;;  %v10336_v26 = vld [vmem:[#allocation22_spill] sm:$0xff] }
 0x19e   : > { %7129 = vmatmul.mubr.bf16.gmra.mxu0 %v6314_v59  ;;  %7077 = vmatmul.mubr.bf16.gmra.mxu1 %v9618_v55  ;;  %v9754_v37 = vadd.f32 %v9695_v15, %v1747_v13  ;;  %v1768_v14 = vadd.f32 %v6790_v49, %v10331_v53  ;;  %v4731_v55 = vor.u32 %v4730_v6, %v4727_v50  ;;  %v10332_v59 = vld [vmem:[#allocation8_spill] sm:$0xff]  ;;  %v4746_v40 = vrot.slane %v4744_v61, 5 }
 0x19f   : > { %7132 = vmatprep.mubr.bf16.mxu0 %v6315_v11  ;;  %7080 = vmatprep.mubr.bf16.mxu1 %v9653_v63  ;;  %v1759_v30 = vpop.f32.mrf.mxu1  ;;  %v6843_v28 = vpop.f32.mrf.mxu0  ;;  %v6316_v12 = vcombine.low %v5242_v60, %v5245_v4  ;;  %v10333_v11 = vld [vmem:[#allocation11_spill] sm:$0xff]  ;;  %v4742_v3 = vrot.slane %v4741_v25, 4  ;;  %v10337_v60 = vld [vmem:[#allocation24_spill] sm:$0xff] }
 0x1a0   : > { %v9758_v48 = vadd.f32 %v6838_v17, %v1768_v14  ;;  %v1760_v0 = vadd.f32 %v1759_v30, %v10332_v59  ;;  %v4732_v63 = vrot.slane %v4731_v55, 4  ;;  %v10334_v17 = vld [vmem:[#allocation10_spill] sm:$0xff] }
 0x1a1   : > { %v6791_v47 = vpop.f32.mrf.mxu1  ;;  %v2231_v19 = vpop.f32.mrf.mxu0  ;;  %v4747_v35 = vsel %vm7380_vm6, %v4742_v3, %v4746_v40  ;;  %v10339_v59 = vld [vmem:[#allocation26_spill] sm:$0xff] }
 0x1a2   : > { %v9761_v15 = vadd.f32 %v2212_v39, %v1760_v0  ;;  %v1771_v32 = vadd.f32 %v6791_v47, %v10333_v11  ;;  %v4737_v39 = vsel %vm7380_vm6, %v4732_v63, %v4736_v31  ;;  %v10338_v31 = vld [vmem:[#allocation23_spill] sm:$0xff] }
 0x1a3   : > { %v1762_v50 = vpop.f32.mrf.mxu1  ;;  %v6846_v42 = vpop.f32.mrf.mxu0  ;;  %v6260_v61 = vcombine.low %v4737_v39, %v4747_v35 }
 0x1a4   : > { %v9764_v6 = vadd.f32 %v6839_v44, %v1771_v32  ;;  %v1763_v8 = vadd.f32 %v1762_v50, %v10334_v17 }
 0x1a5   : > { %v6794_v5 = vpop.f32.mrf.mxu1  ;;  %v2244_v43 = vpop.f32.mrf.mxu0 }
 0x1a6   : > { %7133 = vmatmul.mubr.bf16.gmra.mxu0 %v6316_v12  ;;  %7081 = vmatmul.mubr.bf16.gmra.mxu1 %v6258_v51  ;;  %v9767_v18 = vadd.f32 %v2215_v46, %v1763_v8  ;;  %v1784_v41 = vadd.f32 %v6794_v5, %v10335_v10 }
 0x1a7   : > { %7084 = vmatprep.mubr.bf16.mxu1 %v6259_v23  ;;  %v1775_v44 = vpop.f32.mrf.mxu1  ;;  %v6847_v49 = vpop.f32.mrf.mxu0 }
 0x1a8   : > { %v9774_v13 = vadd.f32 %v6842_v45, %v1784_v41  ;;  %v1776_v20 = vadd.f32 %v1775_v44, %v10336_v26 }
 0x1a9   : > { %v6795_v29 = vpop.f32.mrf.mxu1  ;;  %v2247_v53 = vpop.f32.mrf.mxu0 }
 0x1aa   : > { %v9777_v46 = vadd.f32 %v2228_v54, %v1776_v20  ;;  %v1787_v4 = vadd.f32 %v6795_v29, %v10337_v60  ;;  %v10340_v54 = vld [vmem:[#allocation16_spill] sm:$0xff] }
 0x1ab   : > { %v1778_v14 = vpop.f32.mrf.mxu1  ;;  %v6914_v25 = vpop.f32.mrf.mxu0 }
 0x1ac   : > { %v9780_v55 = vadd.f32 %v6843_v28, %v1787_v4  ;;  %v1779_v24 = vadd.f32 %v1778_v14, %v10338_v31  ;;  %v10341_v28 = vld [vmem:[#allocation27_spill] sm:$0xff] }
 0x1ad   : > { %v3272_v12 = vpop.f32.mrf.mxu0 }
 0x1ae   : > { %v6798_v30 = vpop.f32.mrf.mxu1  ;;  %7085 = vmatmul.mubr.bf16.gmra.mxu1 %v6260_v61  ;;  %v9783_v45 = vadd.f32 %v2231_v19, %v1779_v24  ;;  %v10342_v19 = vld [vmem:[#allocation28_spill] sm:$0xff] }
 0x1af   : > { %v1800_v0 = vadd.f32 %v6798_v30, %v10339_v59  ;;  %v6915_v40 = vpop.f32.mrf.mxu0 }
 0x1b0   : > { %v1791_v47 = vpop.f32.mrf.mxu1 }
 0x1b1   : > { %v9786_v51 = vadd.f32 %v6846_v42, %v1800_v0  ;;  %v1792_v23 = vadd.f32 %v1791_v47, %v10340_v54  ;;  %v3275_v3 = vpop.f32.mrf.mxu0  ;;  %v10343_v42 = vld [vmem:[#allocation3_spill] sm:$0xff] }
 0x1b2   : > { %v6799_v11 = vpop.f32.mrf.mxu1 }
 0x1b3   : > { %v9789_v32 = vadd.f32 %v2244_v43, %v1792_v23  ;;  %v1803_v63 = vadd.f32 %v6799_v11, %v10341_v28  ;;  %v6918_v5 = vpop.f32.mrf.mxu0  ;;  %v10344_v43 = vld [vmem:[#allocation12_spill] sm:$0xff] }
 0x1b4   : > { %v1794_v50 = vpop.f32.mrf.mxu1 }
 0x1b5   : > { %v9792_v17 = vadd.f32 %v6847_v49, %v1803_v63  ;;  %v1795_v8 = vadd.f32 %v1794_v50, %v10342_v19  ;;  %v3288_v35 = vpop.f32.mrf.mxu0 }
 0x1b6   : > { %v6866_v10 = vpop.f32.mrf.mxu1 }
 0x1b7   : > { %v9795_v41 = vadd.f32 %v2247_v53, %v1795_v8  ;;  %v2647_v39 = vadd.f32 %v6866_v10, %v10343_v42  ;;  %v6919_v29 = vpop.f32.mrf.mxu0 }
 0x1b8   : > { %v2518_v44 = vpop.f32.mrf.mxu1 }
 0x1b9   : > { %v9798_v26 = vadd.f32 %v6914_v25, %v2647_v39  ;;  %v2645_v20 = vadd.f32 %v2518_v44, %v10344_v43  ;;  %v3291_v4 = vpop.f32.mrf.mxu0 }
 0x1ba   : > { %v6867_v61 = vpop.f32.mrf.mxu1 }
 0x1bb   : > { %v9801_v60 = vadd.f32 %v3272_v12, %v2645_v20  ;;  %v2648_v49 = vadd.f32 %v6867_v61, %v9522_v62  ;;  %v6922_v24 = vpop.f32.mrf.mxu0 }
 0x1bc   : > { %v2521_v14 = vpop.f32.mrf.mxu1 }
 0x1bd   : > { %v9804_v31 = vadd.f32 %v6915_v40, %v2648_v49  ;;  %v2646_v53 = vadd.f32 %v2521_v14, %v9543_v27  ;;  %v3304_v0 = vpop.f32.mrf.mxu0 }
 0x1be   : > { %v6870_v30 = vpop.f32.mrf.mxu1 }
 0x1bf   : > { %v9807_v59 = vadd.f32 %v3275_v3, %v2646_v53  ;;  %v2651_v25 = vadd.f32 %v6870_v30, %v9552_v9  ;;  %v6923_v23 = vpop.f32.mrf.mxu0 }
 0x1c0   : > { %v2534_v47 = vpop.f32.mrf.mxu1 }
 0x1c1   : > { %v9810_v54 = vadd.f32 %v6918_v5, %v2651_v25  ;;  %v2649_v12 = vadd.f32 %v2534_v47, %v9571_v36  ;;  %v3307_v28 = vpop.f32.mrf.mxu0 }
 0x1c2   : > { %v6871_v62 = vpop.f32.mrf.mxu1 }
 0x1c3   : > { %v9813_v11 = vadd.f32 %v3288_v35, %v2649_v12  ;;  %v2652_v40 = vadd.f32 %v6871_v62, %v9592_v58  ;;  %v6926_v50 = vpop.f32.mrf.mxu0 }
 0x1c4   : > { %v2537_v27 = vpop.f32.mrf.mxu1 }
 0x1c5   : > { %v9816_v63 = vadd.f32 %v6919_v29, %v2652_v40  ;;  %v2650_v3 = vadd.f32 %v2537_v27, %v9606_v16  ;;  %v3320_v5 = vpop.f32.mrf.mxu0 }
 0x1c6   : > { %v6874_v9 = vpop.f32.mrf.mxu1 }
 0x1c7   : > { %v9819_v19 = vadd.f32 %v3291_v4, %v2650_v3  ;;  %v2655_v8 = vadd.f32 %v6874_v9, %v9623_v38  ;;  %v6927_v39 = vpop.f32.mrf.mxu0 }
 0x1c8   : > { %v2550_v36 = vpop.f32.mrf.mxu1 }
 0x1c9   : > { %v9822_v10 = vadd.f32 %v6922_v24, %v2655_v8  ;;  %v2653_v42 = vadd.f32 %v2550_v36, %v9644_v21  ;;  %v3323_v43 = vpop.f32.mrf.mxu0 }
 0x1ca   : > { %v6875_v58 = vpop.f32.mrf.mxu1 }
 0x1cb   : > { %v9825_v35 = vadd.f32 %v3304_v0, %v2653_v42  ;;  %v2656_v44 = vadd.f32 %v6875_v58, %v9657_v7  ;;  %v6930_v61 = vpop.f32.mrf.mxu0 }
 0x1cc   : > { %v2553_v16 = vpop.f32.mrf.mxu1 }
 0x1cd   : > { %v9828_v20 = vadd.f32 %v6923_v23, %v2656_v44  ;;  %v2654_v29 = vadd.f32 %v2553_v16, %v9673_v57  ;;  %v3336_v14 = vpop.f32.mrf.mxu0 }
 0x1ce   : > { %v6878_v38 = vpop.f32.mrf.mxu1 }
 0x1cf   : > { %v9831_v49 = vadd.f32 %v3307_v28, %v2654_v29  ;;  %v2659_v4 = vadd.f32 %v6878_v38, %v9682_v52  ;;  %v6931_v30 = vpop.f32.mrf.mxu0 }
 0x1d0   : > { %v2566_v21 = vpop.f32.mrf.mxu1 }
 0x1d1   : > { %v9834_v53 = vadd.f32 %v6926_v50, %v2659_v4  ;;  %v2657_v24 = vadd.f32 %v2566_v21, %v9692_v22  ;;  %v3339_v47 = vpop.f32.mrf.mxu0 }
 0x1d2   : > { %v6879_v7 = vpop.f32.mrf.mxu1 }
 0x1d3   : > { %v9837_v25 = vadd.f32 %v3320_v5, %v2657_v24  ;;  %v2660_v0 = vadd.f32 %v6879_v7, %v9704_v33  ;;  %v6934_v62 = vpop.f32.mrf.mxu0 }
 0x1d4   : > { %v2569_v57 = vpop.f32.mrf.mxu1 }
 0x1d5   : > { %v9840_v12 = vadd.f32 %v6927_v39, %v2660_v0  ;;  %v2658_v23 = vadd.f32 %v2569_v57, %v9719_v34  ;;  %v3352_v27 = vpop.f32.mrf.mxu0 }
 0x1d6   : > { %v6882_v52 = vpop.f32.mrf.mxu1 }
 0x1d7   : > { %v9843_v40 = vadd.f32 %v3323_v43, %v2658_v23  ;;  %v2663_v28 = vadd.f32 %v6882_v52, %v9724_v2  ;;  %v6935_v9 = vpop.f32.mrf.mxu0 }
 0x1d8   : > { %v2582_v22 = vpop.f32.mrf.mxu1 }
 0x1d9   : > { %v9846_v3 = vadd.f32 %v6930_v61, %v2663_v28  ;;  %v2661_v50 = vadd.f32 %v2582_v22, %v9728_v1  ;;  %v3355_v36 = vpop.f32.mrf.mxu0 }
 0x1da   : > { %v6883_v33 = vpop.f32.mrf.mxu1 }
 0x1db   : > { %v9849_v8 = vadd.f32 %v3336_v14, %v2661_v50  ;;  %v2664_v5 = vadd.f32 %v6883_v33, %v9736_v56  ;;  %v6938_v58 = vpop.f32.mrf.mxu0 }
 0x1dc   : > { %v2585_v34 = vpop.f32.mrf.mxu1 }
 0x1dd   : > { %v9852_v42 = vadd.f32 %v6931_v30, %v2664_v5  ;;  %v2662_v39 = vadd.f32 %v2585_v34, %v9754_v37  ;;  %v3368_v16 = vpop.f32.mrf.mxu0 }
 0x1de   : > { %v6886_v2 = vpop.f32.mrf.mxu1 }
 0x1df   : > { %v9855_v44 = vadd.f32 %v3339_v47, %v2662_v39  ;;  %v2667_v43 = vadd.f32 %v6886_v2, %v9758_v48  ;;  %v6939_v38 = vpop.f32.mrf.mxu0 }
 0x1e0   : > { %v2598_v1 = vpop.f32.mrf.mxu1 }
 0x1e1   : > { %v9858_v29 = vadd.f32 %v6934_v62, %v2667_v43  ;;  %v2665_v61 = vadd.f32 %v2598_v1, %v9761_v15  ;;  %v3371_v21 = vpop.f32.mrf.mxu0 }
 0x1e2   : > { %v6887_v56 = vpop.f32.mrf.mxu1 }
 0x1e3   : > { %v9861_v4 = vadd.f32 %v3352_v27, %v2665_v61  ;;  %v2668_v14 = vadd.f32 %v6887_v56, %v9764_v6  ;;  %v6942_v7 = vpop.f32.mrf.mxu0 }
 0x1e4   : > { %v2601_v37 = vpop.f32.mrf.mxu1 }
 0x1e5   : > { %10345 = vst [vmem:[#allocation4_spill] sm:$0xff] %v9861_v4  ;;  %v9864_v24 = vadd.f32 %v6935_v9, %v2668_v14  ;;  %v2666_v30 = vadd.f32 %v2601_v37, %v9767_v18  ;;  %v3384_v57 = vpop.f32.mrf.mxu0 }
 0x1e6   : > { %v6890_v48 = vpop.f32.mrf.mxu1 }
 0x1e7   : > { %10346 = vst [vmem:[#allocation5_spill] sm:$0xff] %v9864_v24  ;;  %v9867_v0 = vadd.f32 %v3355_v36, %v2666_v30  ;;  %v2671_v47 = vadd.f32 %v6890_v48, %v9774_v13  ;;  %v6943_v52 = vpop.f32.mrf.mxu0 }
 0x1e8   : > { %v2614_v15 = vpop.f32.mrf.mxu1 }
 0x1e9   : > { %10347 = vst [vmem:[#allocation15_spill] sm:$0xff] %v9867_v0  ;;  %v9870_v23 = vadd.f32 %v6938_v58, %v2671_v47  ;;  %v2669_v62 = vadd.f32 %v2614_v15, %v9777_v46  ;;  %v3387_v22 = vpop.f32.mrf.mxu0 }
 0x1ea   : > { %v6891_v6 = vpop.f32.mrf.mxu1 }
 0x1eb   : > { %v9873_v28 = vadd.f32 %v3368_v16, %v2669_v62  ;;  %v2672_v27 = vadd.f32 %v6891_v6, %v9780_v55  ;;  %v7010_v33 = vpop.f32.mrf.mxu0 }
 0x1ec   : > { %v2617_v18 = vpop.f32.mrf.mxu1 }
 0x1ed   : > { %10348 = vst [vmem:[#allocation17_spill] sm:$0xff] %v9873_v28  ;;  %v9876_v50 = vadd.f32 %v6939_v38, %v2672_v27  ;;  %v2670_v9 = vadd.f32 %v2617_v18, %v9783_v45  ;;  %v4157_v34 = vpop.f32.mrf.mxu0 }
 0x1ee   : > { %v6894_v13 = vpop.f32.mrf.mxu1 }
 0x1ef   : > { %10349 = vst [vmem:[#allocation9_spill] sm:$0xff] %v9876_v50  ;;  %v9879_v5 = vadd.f32 %v3371_v21, %v2670_v9  ;;  %v2675_v36 = vadd.f32 %v6894_v13, %v9786_v51  ;;  %v9885_v2 = vpop.f32.mrf.mxu0 }
 0x1f0   : > { %v2630_v46 = vpop.f32.mrf.mxu1 }
 0x1f1   : > { %10350 = vst [vmem:[#allocation20_spill] sm:$0xff] %v9879_v5  ;;  %v9882_v39 = vadd.f32 %v6942_v7, %v2675_v36  ;;  %v2673_v58 = vadd.f32 %v2630_v46, %v9789_v32  ;;  %v9890_v45 = vpop.f32.mrf.mxu0 }
 0x1f2   : > { %v6895_v55 = vpop.f32.mrf.mxu1 }
 0x1f3   : > { %v9887_v43 = vadd.f32 %v3384_v57, %v2673_v58  ;;  %v2676_v16 = vadd.f32 %v6895_v55, %v9792_v17  ;;  %v7014_v38 = vpop.f32.mrf.mxu0 }
 0x1f4   : > { %v2633_v1 = vpop.f32.mrf.mxu1 }
 0x1f5   : > { %10351 = vst [vmem:[#allocation25_spill] sm:$0xff] %v9887_v43  ;;  %v9892_v61 = vadd.f32 %v6943_v52, %v2676_v16  ;;  %v2674_v51 = vadd.f32 %v2633_v1, %v9795_v41  ;;  %v9898_v21 = vpop.f32.mrf.mxu0 }
 0x1f6   : > { %v6962_v56 = vpop.f32.mrf.mxu1 }
 0x1f7   : > { %10352 = vst [vmem:[#allocation19_spill] sm:$0xff] %v9892_v61  ;;  %v9895_v14 = vadd.f32 %v3387_v22, %v2674_v51  ;;  %v3899_v32 = vadd.f32 %v6962_v56, %v9798_v26  ;;  %v9903_v7 = vpop.f32.mrf.mxu0 }
 0x1f8   : > { %v3770_v37 = vpop.f32.mrf.mxu1 }
 0x1f9   : > { %10353 = vst [vmem:[#allocation13_spill] sm:$0xff] %v9895_v14  ;;  %v9900_v30 = vadd.f32 %v7010_v33, %v3899_v32  ;;  %v3897_v17 = vadd.f32 %v3770_v37, %v9801_v60  ;;  %v9909_v41 = vpop.f32.mrf.mxu0 }
 0x1fa   : > { %v9905_v48 = vpop.f32.mrf.mxu1 }
 0x1fb   : > { %v9907_v47 = vadd.f32 %v4157_v34, %v3897_v17  ;;  %v7018_v15 = vpop.f32.mrf.mxu0 }
 0x1fc   : > { %v9911_v57 = vpop.f32.mrf.mxu1 }
 0x1fd   : > { %v9914_v52 = vpop.f32.mrf.mxu0 }
 0x1fe   : > { %v6966_v62 = vpop.f32.mrf.mxu1 }
 0x1ff   : > { %v3903_v26 = vadd.f32 %v6966_v62, %v9810_v54  ;;  %v9920_v60 = vpop.f32.mrf.mxu0 }
 0x200   : > { %v9916_v6 = vpop.f32.mrf.mxu1 }
 0x201   : > { %v9918_v27 = vadd.f32 %v7014_v38, %v3903_v26  ;;  %v9924_v18 = vpop.f32.mrf.mxu0 }
 0x202   : > { %v9922_v22 = vpop.f32.mrf.mxu1 }
 0x203   : > { %v7022_v33 = vpop.f32.mrf.mxu0 }
 0x204   : > { %v9926_v9 = vpop.f32.mrf.mxu1 }
 0x205   : > { %v9929_v34 = vpop.f32.mrf.mxu0 }
 0x206   : > { %v6970_v13 = vpop.f32.mrf.mxu1 }
 0x207   : > { %v3907_v36 = vadd.f32 %v6970_v13, %v9822_v10  ;;  %v9935_v58 = vpop.f32.mrf.mxu0 }
 0x208   : > { %v9931_v54 = vpop.f32.mrf.mxu1 }
 0x209   : > { %v9933_v46 = vadd.f32 %v7018_v15, %v3907_v36  ;;  %v9939_v16 = vpop.f32.mrf.mxu0 }
 0x20a   : > { %v9937_v55 = vpop.f32.mrf.mxu1 }
 0x20b   : > { %v7026_v51 = vpop.f32.mrf.mxu0 }
 0x20c   : > { %v9941_v1 = vpop.f32.mrf.mxu1 }
 0x20d   : > { %v9944_v32 = vpop.f32.mrf.mxu0 }
 0x20e   : > { %v6974_v38 = vpop.f32.mrf.mxu1 }
 0x20f   : > { %v3911_v56 = vadd.f32 %v6974_v38, %v9834_v53  ;;  %v9950_v17 = vpop.f32.mrf.mxu0 }
 0x210   : > { %v9946_v10 = vpop.f32.mrf.mxu1 }
 0x211   : > { %v9948_v37 = vadd.f32 %v7022_v33, %v3911_v56  ;;  %v9954_v62 = vpop.f32.mrf.mxu0 }
 0x212   : > { %v9952_v15 = vpop.f32.mrf.mxu1  ;;  %10354 = vst [vmem:[#allocation6_spill] sm:$0xff] %v9954_v62 }
 0x213   : > { %v7030_v13 = vpop.f32.mrf.mxu0 }
 0x214   : > { %v9956_v26 = vpop.f32.mrf.mxu1 }
 0x215   : > { %v9959_v61 = vpop.f32.mrf.mxu0 }
 0x216   : > { %v6978_v36 = vpop.f32.mrf.mxu1  ;;  %10355 = vst [vmem:[#allocation14_spill] sm:$0xff] %v9959_v61 }
 0x217   : > { %v3915_v14 = vadd.f32 %v6978_v36, %v9846_v3  ;;  %v9965_v33 = vpop.f32.mrf.mxu0 }
 0x218   : > { %v9961_v53 = vpop.f32.mrf.mxu1  ;;  %10357 = vst [vmem:[#allocation7_spill] sm:$0xff] %v9965_v33 }
 0x219   : > { %v9963_v38 = vadd.f32 %v7026_v51, %v3915_v14  ;;  %v9969_v43 = vpop.f32.mrf.mxu0 }
 0x21a   : > { %v9967_v56 = vpop.f32.mrf.mxu1  ;;  %10358 = vst [vmem:[#allocation8_spill] sm:$0xff] %v9969_v43 }
 0x21b   : > { %10356 = vst [vmem:[#allocation18_spill] sm:$0xff] %v9963_v38  ;;  %v7034_v50 = vpop.f32.mrf.mxu0 }
 0x21c   : > { %v9971_v5 = vpop.f32.mrf.mxu1 }
 0x21d   : > { %v9974_v24 = vpop.f32.mrf.mxu0 }
 0x21e   : > { %v6982_v28 = vpop.f32.mrf.mxu1  ;;  %10359 = vst [vmem:[#allocation11_spill] sm:$0xff] %v9974_v24 }
 0x21f   : > { %v3919_v0 = vadd.f32 %v6982_v28, %v9858_v29  ;;  %v9980_v14 = vpop.f32.mrf.mxu0 }
 0x220   : > { %v9976_v3 = vpop.f32.mrf.mxu1  ;;  %10362 = vst [vmem:[#allocation22_spill] sm:$0xff] %v9980_v14 }
 0x221   : > { %10360 = vst [vmem:[#allocation10_spill] sm:$0xff] %v9976_v3  ;;  %v9978_v36 = vadd.f32 %v7030_v13, %v3919_v0  ;;  %v9984_v33 = vpop.f32.mrf.mxu0 }
 0x222   : > { %v9982_v51 = vpop.f32.mrf.mxu1  ;;  %10364 = vst [vmem:[#allocation23_spill] sm:$0xff] %v9984_v33 }
 0x223   : > { %10361 = vst [vmem:[#allocation21_spill] sm:$0xff] %v9978_v36  ;;  %10363 = vst [vmem:[#allocation24_spill] sm:$0xff] %v9982_v51  ;;  %v7038_v43 = vpop.f32.mrf.mxu0 }
 0x224   : > { %v9986_v61 = vpop.f32.mrf.mxu1 }
 0x225   : > { %10365 = vst [vmem:[#allocation26_spill] sm:$0xff] %v9986_v61  ;;  %v9989_v38 = vpop.f32.mrf.mxu0 }
 0x226   : > { %v6986_v4 = vpop.f32.mrf.mxu1  ;;  %10366 = vst [vmem:[#allocation16_spill] sm:$0xff] %v9989_v38 }
 0x227   : > { %v3923_v62 = vadd.f32 %v6986_v4, %v9870_v23  ;;  %v9995_v0 = vpop.f32.mrf.mxu0 }
 0x228   : > { %v9991_v29 = vpop.f32.mrf.mxu1  ;;  %10369 = vst [vmem:[#allocation3_spill] sm:$0xff] %v9995_v0 }
 0x229   : > { %10367 = vst [vmem:[#allocation27_spill] sm:$0xff] %v9991_v29  ;;  %v9993_v28 = vadd.f32 %v7034_v50, %v3923_v62  ;;  %v9999_v14 = vpop.f32.mrf.mxu0 }
 0x22a   : > { %v9997_v13 = vpop.f32.mrf.mxu1  ;;  %10371 = vst [vmem:[#allocation29_spill] sm:$0xff] %v9999_v14  ;;  %v3900_v14 = vadd.f32 %v9905_v48, %v9804_v31  ;;  %v3901_v48 = vadd.f32 %v9916_v6, %v9813_v11 }
 0x22b   : > { %10368 = vst [vmem:[#allocation28_spill] sm:$0xff] %v9993_v28  ;;  %10370 = vst [vmem:[#allocation12_spill] sm:$0xff] %v9997_v13  ;;  %v3898_v13 = vadd.f32 %v9911_v57, %v9807_v59  ;;  %v3904_v59 = vadd.f32 %v9922_v22, %v9816_v63 }
 0x22c   : > { %v10001_v24 = vpop.f32.mrf.mxu1  ;;  %v7106_v33 = vpop.f32.mrf.mxu0  ;;  %v4288_v22 = vadd.f32 %v9898_v21, %v3901_v48  ;;  %v3908_v48 = vadd.f32 %v9937_v55, %v9828_v20 }
 0x22d   : > { %10372 = vst [vmem:[#allocation30_spill] sm:$0xff] %v10001_v24 }
 0x22e   : > { %v6990_v36 = vpop.f32.mrf.mxu1  ;;  %v5409_v51 = vpop.f32.mrf.mxu0 }
 0x22f   : > { %v3927_v61 = vadd.f32 %v6990_v36, %v9882_v39 }
 0x230   : > { %v10004_v4 = vpop.f32.mrf.mxu1  ;;  %v7107_v38 = vpop.f32.mrf.mxu0 }
 0x231   : > { %10373 = vst [vmem:[#allocation31_spill] sm:$0xff] %v10004_v4  ;;  %v10006_v23 = vadd.f32 %v7038_v43, %v3927_v61  ;;  %v4287_v4 = vadd.f32 %v9885_v2, %v3900_v14 }
 0x232   : > { %v10008_v50 = vpop.f32.mrf.mxu1  ;;  %v5412_v62 = vpop.f32.mrf.mxu0 }
 0x233   : > { %10374 = vst [vmem:[#allocation32_spill] sm:$0xff] %v10006_v23  ;;  %10375 = vst [vmem:[#allocation33_spill] sm:$0xff] %v10008_v50 }
 0x234   : > { %v10010_v0 = vpop.f32.mrf.mxu1  ;;  %v7110_v28 = vpop.f32.mrf.mxu0 }
 0x235   : > { %10376 = vst [vmem:[#allocation34_spill] sm:$0xff] %v10010_v0  ;;  %v4285_v0 = vadd.f32 %v9890_v45, %v3898_v13 }
 0x236   : > { %v7058_v24 = vpop.f32.mrf.mxu1  ;;  %v5425_v39 = vpop.f32.mrf.mxu0 }
 0x237   : > { %v5040_v43 = vadd.f32 %v7058_v24, %v9900_v30 }
 0x238   : > { %v4911_v36 = vpop.f32.mrf.mxu1  ;;  %v7111_v23 = vpop.f32.mrf.mxu0 }
 0x239   : > { %v5038_v61 = vadd.f32 %v4911_v36, %v9907_v47  ;;  %v5538_v3 = vadd.f32 %v7106_v33, %v5040_v43  ;;  %v3902_v47 = vadd.f32 %v9926_v9, %v9819_v19 }
 0x23a   : > { %v7059_v50 = vpop.f32.mrf.mxu1  ;;  %v5428_v31 = vpop.f32.mrf.mxu0 }
 0x23b   : > { %v5041_v29 = vadd.f32 %v7059_v50, %v4287_v4  ;;  %v5536_v2 = vadd.f32 %v5409_v51, %v5038_v61  ;;  %v4289_v4 = vadd.f32 %v9909_v41, %v3902_v47  ;;  %v3905_v50 = vadd.f32 %v9931_v54, %v9825_v35 }
 0x23c   : > { %v4914_v57 = vpop.f32.mrf.mxu1  ;;  %v5767_v43 = vmul.f32 %v5538_v3, %v5538_v3 }
 0x23d   : > { %v5539_v14 = vadd.f32 %v7107_v38, %v5041_v29  ;;  %v5039_v24 = vadd.f32 %v4914_v57, %v4285_v0  ;;  %v10024_v30 = vpop.f32.mrf.mxu0  ;;  %v4291_v38 = vadd.f32 %v9903_v7, %v3904_v59  ;;  %v5765_v19 = vmul.f32 %v5536_v2, %v5536_v2 }
 0x23e   : > { %v7062_v11 = vpop.f32.mrf.mxu1 }
 0x23f   : > { %v6401_v45 = vpack.c.bf16 %v5539_v14, %v5538_v3  ;;  %v5537_v63 = vadd.f32 %v5412_v62, %v5039_v24  ;;  %v5441_v6 = vpop.f32.mrf.mxu0  ;;  %v5044_v33 = vadd.f32 %v7062_v11, %v9918_v27  ;;  %v5768_v59 = vmul.f32 %v5539_v14, %v5539_v14 }
 0x240   : > { %v4927_v51 = vpop.f32.mrf.mxu1 }
 0x241   : > { %6473 = vst [vmem:[%s10033_s26 + $0x8] sm:$0xff] %v6401_v45   ;;  %v6396_v9 = vpack.c.bf16 %v5537_v63, %v5536_v2  ;;  %v5728_v29 = vadd.f32 %v5537_v63, %v5536_v2  ;;  %v5766_v0 = vmul.f32 %v5537_v63, %v5537_v63  ;;  %v7115_v13 = vpop.f32.mrf.mxu0  ;;  %v5042_v62 = vadd.f32 %v4927_v51, %v4288_v22 }
 0x242   : > { %v7063_v36 = vpop.f32.mrf.mxu1  ;;  %v5542_v57 = vadd.f32 %v7110_v28, %v5044_v33  ;;  %v4292_v45 = vadd.f32 %v9914_v52, %v3905_v50 }
 0x243   : > { %6397 = vst [vmem:[%s10033_s26] sm:$0xff] %v6396_v9   ;;  %v5729_v21 = vadd.f32 %v5728_v29, %v5538_v3  ;;  %v5797_v7 = vadd.f32 %v5766_v0, %v5765_v19  ;;  %v5045_v61 = vadd.f32 %v7063_v36, %v4291_v38  ;;  %v5444_v27 = vpop.f32.mrf.mxu0  ;;  %v5540_v2 = vadd.f32 %v5425_v39, %v5042_v62 }
 0x244   : > { %v4930_v24 = vpop.f32.mrf.mxu1  ;;  %v3906_v3 = vadd.f32 %v9941_v1, %v9831_v49  ;;  %v5771_v62 = vmul.f32 %v5542_v57, %v5542_v57 }
 0x245   : > { %v5798_v11 = vadd.f32 %v5797_v7, %v5767_v43  ;;  %v5730_v41 = vadd.f32 %v5729_v21, %v5539_v14  ;;  %v5543_v47 = vadd.f32 %v7111_v23, %v5045_v61  ;;  %v5043_v35 = vadd.f32 %v4930_v24, %v4289_v4  ;;  %v10045_v54 = vpop.f32.mrf.mxu0 }
 0x246   : > { %v7066_v63 = vpop.f32.mrf.mxu1  ;;  %v5769_v38 = vmul.f32 %v5540_v2, %v5540_v2  ;;  %v4295_v14 = vadd.f32 %v9920_v60, %v3908_v48  ;;  %v4293_v0 = vadd.f32 %v9924_v18, %v3906_v3  ;;  %v3909_v4 = vadd.f32 %v9946_v10, %v9837_v25 }
 0x247   : > { %v5731_v22 = vadd.f32 %v5730_v41, %v5540_v2  ;;  %v5799_v20 = vadd.f32 %v5798_v11, %v5768_v59  ;;  %v6411_v55 = vpack.c.bf16 %v5543_v47, %v5542_v57  ;;  %v5457_v28 = vpop.f32.mrf.mxu0  ;;  %v5541_v39 = vadd.f32 %v5428_v31, %v5043_v35 }
 0x248   : > { %v4943_v33 = vpop.f32.mrf.mxu1  ;;  %v5048_v51 = vadd.f32 %v7066_v63, %v9933_v46  ;;  %v3912_v31 = vadd.f32 %v9952_v15, %v9840_v12  ;;  %v5772_v59 = vmul.f32 %v5543_v47, %v5543_v47  ;;  %v4296_v12 = vadd.f32 %v9929_v34, %v3909_v4 }
 0x249   : > { %v5800_v23 = vadd.f32 %v5799_v20, %v5769_v38  ;;  %6475 = vst [vmem:[%s10033_s26 + $0x18] sm:$0xff] %v6411_v55   ;;  %v5046_v19 = vadd.f32 %v4943_v33, %v4292_v45  ;;  %v7119_v52 = vpop.f32.mrf.mxu0  ;;  %v6406_v9 = vpack.c.bf16 %v5541_v39, %v5540_v2  ;;  %v5732_v29 = vadd.f32 %v5731_v22, %v5541_v39 }
 0x24a   : > { %v5770_v49 = vmul.f32 %v5541_v39, %v5541_v39  ;;  %v7067_v1 = vpop.f32.mrf.mxu1  ;;  %v5546_v7 = vadd.f32 %v10024_v30, %v5048_v51  ;;  %v3910_v15 = vadd.f32 %v9956_v26, %v9843_v40  ;;  %v4299_v11 = vadd.f32 %v9935_v58, %v3912_v31 }
 0x24b   : > { %v5049_v60 = vadd.f32 %v7067_v1, %v4295_v14  ;;  %v5460_v50 = vpop.f32.mrf.mxu0  ;;  %6474 = vst [vmem:[%s10033_s26 + $0x10] sm:$0xff] %v6406_v9   ;;  %v5733_v36 = vadd.f32 %v5732_v29, %v5542_v57  ;;  %v5544_v43 = vadd.f32 %v5441_v6, %v5046_v19  ;;  %v3913_v58 = vadd.f32 %v9961_v53, %v9849_v8 }
 0x24c   : > { %v5801_v46 = vadd.f32 %v5800_v23, %v5770_v49  ;;  %v4946_v21 = vpop.f32.mrf.mxu1  ;;  %v4297_v26 = vadd.f32 %v9939_v16, %v3910_v15  ;;  %v5775_v39 = vmul.f32 %v5546_v7, %v5546_v7 }
 0x24d   : > { %v5547_v61 = vadd.f32 %v7115_v13, %v5049_v60  ;;  %v5047_v48 = vadd.f32 %v4946_v21, %v4293_v0  ;;  %v5734_v10 = vadd.f32 %v5733_v36, %v5543_v47  ;;  %v5773_v13 = vmul.f32 %v5544_v43, %v5544_v43 }
 0x24e   : > { %v10060_v18 = vpop.f32.mrf.mxu0  ;;  %v5802_v25 = vadd.f32 %v5801_v46, %v5771_v62  ;;  %v7070_v2 = vpop.f32.mrf.mxu1  ;;  %v10377_v46 = vld [vmem:[#allocation18_spill] sm:$0xff] }
 0x24f   : > { %v6421_v57 = vpack.c.bf16 %v5547_v61, %v5546_v7  ;;  %v5545_v24 = vadd.f32 %v5444_v27, %v5047_v48  ;;  %v5735_v30 = vadd.f32 %v5734_v10, %v5544_v43  ;;  %v5052_v47 = vadd.f32 %v7070_v2, %v9948_v37  ;;  %v10379_v48 = vld [vmem:[#allocation4_spill] sm:$0xff] }
 0x250   : > { %v5473_v6 = vpop.f32.mrf.mxu0  ;;  %v5803_v41 = vadd.f32 %v5802_v25, %v5772_v59  ;;  %v4959_v35 = vpop.f32.mrf.mxu1  ;;  %v3916_v27 = vadd.f32 %v9967_v56, %v9852_v42  ;;  %v5776_v29 = vmul.f32 %v5547_v61, %v5547_v61  ;;  %v4300_v42 = vadd.f32 %v9944_v32, %v3913_v58  ;;  %v10380_v59 = vld [vmem:[#allocation10_spill] sm:$0xff]  ;;  %v10381_v25 = vld [vmem:[#allocation5_spill] sm:$0xff]  ;;  %v10382_v10 = vld [vmem:[#allocation24_spill] sm:$0xff] }
 0x251   : > { %6477 = vst [vmem:[%s10033_s26 + $0x28] sm:$0xff] %v6421_v57   ;;  %v6416_v45 = vpack.c.bf16 %v5545_v24, %v5544_v43  ;;  %v5774_v3 = vmul.f32 %v5545_v24, %v5545_v24  ;;  %v5050_v63 = vadd.f32 %v4959_v35, %v4296_v12  ;;  %v5736_v38 = vadd.f32 %v5735_v30, %v5545_v24  ;;  %v10384_v58 = vld [vmem:[#allocation15_spill] sm:$0xff] }
 0x252   : > { %v7123_v34 = vpop.f32.mrf.mxu0  ;;  %v5804_v22 = vadd.f32 %v5803_v41, %v5773_v13  ;;  %v7071_v40 = vpop.f32.mrf.mxu1  ;;  %v5550_v51 = vadd.f32 %v10045_v54, %v5052_v47  ;;  %v3914_v56 = vadd.f32 %v9971_v5, %v9855_v44  ;;  %v4303_v4 = vadd.f32 %v9950_v17, %v3916_v27  ;;  %v10378_v5 = vld [vmem:[#allocation6_spill] sm:$0xff] }
 0x253   : > { %6476 = vst [vmem:[%s10033_s26 + $0x20] sm:$0xff] %v6416_v45   ;;  %v5053_v20 = vadd.f32 %v7071_v40, %v4299_v11  ;;  %v5737_v33 = vadd.f32 %v5736_v38, %v5546_v7  ;;  %v5548_v37 = vadd.f32 %v5457_v28, %v5050_v63  ;;  %v3917_v17 = vadd.f32 %v10380_v59, %v10379_v48  ;;  %v10383_v40 = vld [vmem:[#allocation14_spill] sm:$0xff] }
 0x254   : > { %v5476_v55 = vpop.f32.mrf.mxu0  ;;  %v5805_v14 = vadd.f32 %v5804_v22, %v5774_v3  ;;  %v4962_v23 = vpop.f32.mrf.mxu1  ;;  %v3920_v2 = vadd.f32 %v10382_v10, %v10381_v25  ;;  %v5779_v57 = vmul.f32 %v5550_v51, %v5550_v51  ;;  %v10385_v27 = vld [vmem:[#allocation26_spill] sm:$0xff] }
 0x255   : > { %v5551_v19 = vadd.f32 %v7119_v52, %v5053_v20  ;;  %v5051_v9 = vadd.f32 %v4962_v23, %v4297_v26  ;;  %v5738_v53 = vadd.f32 %v5737_v33, %v5547_v61  ;;  %v5777_v52 = vmul.f32 %v5548_v37, %v5548_v37 }
 0x256   : > { %v10075_v16 = vpop.f32.mrf.mxu0  ;;  %v5806_v8 = vadd.f32 %v5805_v14, %v5775_v39  ;;  %v7074_v49 = vpop.f32.mrf.mxu1  ;;  %v4304_v26 = vadd.f32 %v10383_v40, %v3917_v17  ;;  %v3918_v20 = vadd.f32 %v10385_v27, %v10384_v58  ;;  %v10386_v14 = vld [vmem:[#allocation7_spill] sm:$0xff] }
 0x257   : > { %v6431_v1 = vpack.c.bf16 %v5551_v19, %v5550_v51  ;;  %v5549_v0 = vadd.f32 %v5460_v50, %v5051_v9  ;;  %v5739_v54 = vadd.f32 %v5738_v53, %v5548_v37  ;;  %v5056_v43 = vadd.f32 %v7074_v49, %v10377_v46 }
 0x258   : > { %v5489_v28 = vpop.f32.mrf.mxu0  ;;  %v5807_v31 = vadd.f32 %v5806_v8, %v5776_v29  ;;  %v4975_v60 = vpop.f32.mrf.mxu1  ;;  %v4301_v50 = vadd.f32 %v10378_v5, %v3914_v56  ;;  %v5780_v47 = vmul.f32 %v5551_v19, %v5551_v19 }
 0x259   : > { %6479 = vst [vmem:[%s10033_s26 + $0x38] sm:$0xff] %v6431_v1   ;;  %v6426_v62 = vpack.c.bf16 %v5549_v0, %v5548_v37  ;;  %v5778_v36 = vmul.f32 %v5549_v0, %v5549_v0  ;;  %v5054_v21 = vadd.f32 %v4975_v60, %v4300_v42  ;;  %v5740_v61 = vadd.f32 %v5739_v54, %v5549_v0  ;;  %v10388_v0 = vld [vmem:[#allocation8_spill] sm:$0xff]  ;;  %v10390_v54 = vld [vmem:[#allocation27_spill] sm:$0xff] }
 0x25a   : > { %v7127_v32 = vpop.f32.mrf.mxu0  ;;  %v5808_v7 = vadd.f32 %v5807_v31, %v5777_v52  ;;  %v7075_v44 = vpop.f32.mrf.mxu1  ;;  %v5554_v41 = vadd.f32 %v10060_v18, %v5056_v43  ;;  %v4307_v37 = vadd.f32 %v10386_v14, %v3920_v2  ;;  %v10391_v31 = vld [vmem:[#allocation9_spill] sm:$0xff]  ;;  %v10392_v60 = vld [vmem:[#allocation12_spill] sm:$0xff]  ;;  %v10393_v2 = vld [vmem:[#allocation11_spill] sm:$0xff] }
 0x25b   : > { %6478 = vst [vmem:[%s10033_s26 + $0x30] sm:$0xff] %v6426_v62   ;;  %v5057_v12 = vadd.f32 %v7075_v44, %v4303_v4  ;;  %v5741_v24 = vadd.f32 %v5740_v61, %v5550_v51  ;;  %v5552_v30 = vadd.f32 %v5473_v6, %v5054_v21  ;;  %v10389_v4 = vld [vmem:[#allocation17_spill] sm:$0xff]  ;;  %v3924_v62 = vadd.f32 %v10392_v60, %v10391_v31  ;;  %v10400_v14 = vld [vmem:[#allocation31_spill] sm:$0xff]  ;;  %v10403_v31 = vld [vmem:[#allocation16_spill] sm:$0xff] }
 0x25c   : > { %v5492_v15 = vpop.f32.mrf.mxu0  ;;  %v5809_v11 = vadd.f32 %v5808_v7, %v5778_v36  ;;  %v4978_v13 = vpop.f32.mrf.mxu1  ;;  %v3921_v52 = vadd.f32 %v10390_v54, %v10389_v4  ;;  %v5783_v46 = vmul.f32 %v5554_v41, %v5554_v41 }
 0x25d   : > { %v5555_v35 = vadd.f32 %v7123_v34, %v5057_v12  ;;  %v5055_v45 = vadd.f32 %v4978_v13, %v4301_v50  ;;  %v5742_v22 = vadd.f32 %v5741_v24, %v5551_v19  ;;  %v5781_v34 = vmul.f32 %v5552_v30, %v5552_v30  ;;  %v10387_v19 = vld [vmem:[#allocation21_spill] sm:$0xff]  ;;  %v10395_v24 = vld [vmem:[#allocation30_spill] sm:$0xff] }
 0x25e   : > { %v10090_v3 = vpop.f32.mrf.mxu0  ;;  %v5810_v63 = vadd.f32 %v5809_v11, %v5779_v57  ;;  %v7078_v38 = vpop.f32.mrf.mxu1  ;;  %v4308_v12 = vadd.f32 %v10393_v2, %v3921_v52  ;;  %v10394_v57 = vld [vmem:[#allocation20_spill] sm:$0xff] }
 0x25f   : > { %v6441_v39 = vpack.c.bf16 %v5555_v35, %v5554_v41  ;;  %v5553_v33 = vadd.f32 %v5476_v55, %v5055_v45  ;;  %v5743_v18 = vadd.f32 %v5742_v22, %v5552_v30  ;;  %v5060_v8 = vadd.f32 %v7078_v38, %v10387_v19 }
 0x260   : > { %v5505_v6 = vpop.f32.mrf.mxu0  ;;  %v5811_v23 = vadd.f32 %v5810_v63, %v5780_v47  ;;  %v4991_v51 = vpop.f32.mrf.mxu1  ;;  %v4305_v55 = vadd.f32 %v10388_v0, %v3918_v20  ;;  %v5784_v48 = vmul.f32 %v5555_v35, %v5555_v35  ;;  %v3922_v11 = vadd.f32 %v10395_v24, %v10394_v57  ;;  %v10408_v24 = vld [vmem:[#allocation29_spill] sm:$0xff] }
 0x261   : > { %6481 = vst [vmem:[%s10033_s26 + $0x48] sm:$0xff] %v6441_v39   ;;  %v6436_v9 = vpack.c.bf16 %v5553_v33, %v5552_v30  ;;  %v5782_v29 = vmul.f32 %v5553_v33, %v5553_v33  ;;  %v5058_v53 = vadd.f32 %v4991_v51, %v4304_v26  ;;  %v5744_v42 = vadd.f32 %v5743_v18, %v5553_v33  ;;  %v10398_v39 = vld [vmem:[#allocation23_spill] sm:$0xff] }
 0x262   : > { %v5812_v49 = vadd.f32 %v5811_v23, %v5781_v34  ;;  %v7079_v56 = vpop.f32.mrf.mxu1  ;;  %v7131_v1 = vpop.f32.mrf.mxu0  ;;  %v5558_v44 = vadd.f32 %v10075_v16, %v5060_v8  ;;  %v4309_v33 = vadd.f32 %v10398_v39, %v3922_v11  ;;  %v10401_v18 = vld [vmem:[#allocation19_spill] sm:$0xff]  ;;  %v10402_v34 = vld [vmem:[#allocation33_spill] sm:$0xff] }
 0x263   : > { %6480 = vst [vmem:[%s10033_s26 + $0x40] sm:$0xff] %v6436_v9   ;;  %v5061_v36 = vadd.f32 %v7079_v56, %v4307_v37  ;;  %v5745_v43 = vadd.f32 %v5744_v42, %v5554_v41  ;;  %v5556_v7 = vadd.f32 %v5489_v28, %v5058_v53  ;;  %v10396_v41 = vld [vmem:[#allocation22_spill] sm:$0xff]  ;;  %v3928_v23 = vadd.f32 %v10402_v34, %v10401_v18 }
 0x264   : > { %v5813_v21 = vadd.f32 %v5812_v49, %v5782_v29  ;;  %v4994_v61 = vpop.f32.mrf.mxu1  ;;  %v5508_v10 = vpop.f32.mrf.mxu0  ;;  %v4311_v28 = vadd.f32 %v10396_v41, %v3924_v62  ;;  %v5787_v9 = vmul.f32 %v5558_v44, %v5558_v44  ;;  %v10404_v62 = vld [vmem:[#allocation13_spill] sm:$0xff] }
 0x265   : > { %v5559_v5 = vadd.f32 %v7127_v32, %v5061_v36  ;;  %v5059_v50 = vadd.f32 %v4994_v61, %v4305_v55  ;;  %v5746_v17 = vadd.f32 %v5745_v43, %v5555_v35  ;;  %v5785_v16 = vmul.f32 %v5556_v7, %v5556_v7  ;;  %v10397_v35 = vld [vmem:[#allocation28_spill] sm:$0xff]  ;;  %v10405_v36 = vld [vmem:[#allocation34_spill] sm:$0xff] }
 0x266   : > { %v5814_v59 = vadd.f32 %v5813_v21, %v5783_v46  ;;  %v7082_v25 = vpop.f32.mrf.mxu1  ;;  %v7134_v20 = vpop.f32.mrf.mxu0  ;;  %v3926_v46 = vadd.f32 %v10405_v36, %v10404_v62 }
 0x267   : > { %v6451_v30 = vpack.c.bf16 %v5559_v5, %v5558_v44  ;;  %v5557_v13 = vadd.f32 %v5492_v15, %v5059_v50  ;;  %v5747_v45 = vadd.f32 %v5746_v17, %v5556_v7  ;;  %v5064_v38 = vadd.f32 %v7082_v25, %v10397_v35  ;;  %v10399_v15 = vld [vmem:[#allocation25_spill] sm:$0xff] }
 0x268   : > { %v5815_v32 = vadd.f32 %v5814_v59, %v5784_v48  ;;  %v5007_v47 = vpop.f32.mrf.mxu1  ;;  %v3925_v37 = vadd.f32 %v10400_v14, %v10399_v15  ;;  %v5788_v0 = vmul.f32 %v5559_v5, %v5559_v5  ;;  %v5521_v52 = vpop.f32.mrf.mxu0  ;;  %v4313_v11 = vadd.f32 %v10408_v24, %v3926_v46 }
 0x269   : > { %6483 = vst [vmem:[%s10033_s26 + $0x58] sm:$0xff] %v6451_v30   ;;  %v6446_v63 = vpack.c.bf16 %v5557_v13, %v5556_v7  ;;  %v5786_v22 = vmul.f32 %v5557_v13, %v5557_v13  ;;  %v5062_v40 = vadd.f32 %v5007_v47, %v4308_v12  ;;  %v5748_v58 = vadd.f32 %v5747_v45, %v5557_v13  ;;  %v10406_v7 = vld [vmem:[#allocation3_spill] sm:$0xff] }
 0x26a   : > { %v5816_v26 = vadd.f32 %v5815_v32, %v5785_v16  ;;  %v7083_v27 = vpop.f32.mrf.mxu1  ;;  %v5562_v49 = vadd.f32 %v10090_v3, %v5064_v38  ;;  %v4312_v60 = vadd.f32 %v10403_v31, %v3925_v37  ;;  %v7135_v57 = vpop.f32.mrf.mxu0 }
 0x26b   : > { %6482 = vst [vmem:[%s10033_s26 + $0x50] sm:$0xff] %v6446_v63   ;;  %v5065_v51 = vadd.f32 %v7083_v27, %v4311_v28  ;;  %v5749_v29 = vadd.f32 %v5748_v58, %v5558_v44  ;;  %v5560_v8 = vadd.f32 %v5505_v6, %v5062_v40  ;;  %v4315_v6 = vadd.f32 %v10406_v7, %v3928_v23 }
 0x26c   : > { %v5817_v19 = vadd.f32 %v5816_v26, %v5786_v22  ;;  %v5010_v53 = vpop.f32.mrf.mxu1  ;;  %v5791_v30 = vmul.f32 %v5562_v49, %v5562_v49  ;;  %v5524_v38 = vpop.f32.mrf.mxu0 }
 0x26d   : > { %v5563_v42 = vadd.f32 %v7131_v1, %v5065_v51  ;;  %v5063_v56 = vadd.f32 %v5010_v53, %v4309_v33  ;;  %v5750_v4 = vadd.f32 %v5749_v29, %v5559_v5  ;;  %v5789_v3 = vmul.f32 %v5560_v8, %v5560_v8  ;;  %v10407_v5 = vld [vmem:[#allocation32_spill] sm:$0xff] }
 0x26e   : > { %v5818_v55 = vadd.f32 %v5817_v19, %v5787_v9  ;;  %v7086_v54 = vpop.f32.mrf.mxu1 }
 0x26f   : > { %v6461_v43 = vpack.c.bf16 %v5563_v42, %v5562_v49  ;;  %v5561_v21 = vadd.f32 %v5508_v10, %v5063_v56  ;;  %v5751_v61 = vadd.f32 %v5750_v4, %v5560_v8  ;;  %v5068_v59 = vadd.f32 %v7086_v54, %v10407_v5 }
 0x270   : > { %v5819_v1 = vadd.f32 %v5818_v55, %v5788_v0  ;;  %v5023_v44 = vpop.f32.mrf.mxu1  ;;  %v5792_v63 = vmul.f32 %v5563_v42, %v5563_v42 }
 0x271   : > { %6485 = vst [vmem:[%s10033_s26 + $0x68] sm:$0xff] %v6461_v43   ;;  %v6456_v50 = vpack.c.bf16 %v5561_v21, %v5560_v8  ;;  %v5790_v48 = vmul.f32 %v5561_v21, %v5561_v21  ;;  %v5066_v17 = vadd.f32 %v5023_v44, %v4312_v60  ;;  %v5752_v2 = vadd.f32 %v5751_v61, %v5561_v21 }
 0x272   : > { %v5820_v25 = vadd.f32 %v5819_v1, %v5789_v3  ;;  %v7087_v12 = vpop.f32.mrf.mxu1  ;;  %v5566_v16 = vadd.f32 %v7134_v20, %v5068_v59 }
 0x273   : > { %6484 = vst [vmem:[%s10033_s26 + $0x60] sm:$0xff] %v6456_v50   ;;  %v5069_v10 = vadd.f32 %v7087_v12, %v4315_v6  ;;  %v5753_v13 = vadd.f32 %v5752_v2, %v5562_v49  ;;  %v5564_v28 = vadd.f32 %v5521_v52, %v5066_v17 }
 0x274   : > { %v5821_v41 = vadd.f32 %v5820_v25, %v5790_v48  ;;  %v5026_v45 = vpop.f32.mrf.mxu1  ;;  %v5795_v18 = vmul.f32 %v5566_v16, %v5566_v16 }
 0x275   : > { %v5567_v32 = vadd.f32 %v7135_v57, %v5069_v10  ;;  %v5067_v47 = vadd.f32 %v5026_v45, %v4313_v11  ;;  %v5754_v35 = vadd.f32 %v5753_v13, %v5563_v42  ;;  %v5793_v27 = vmul.f32 %v5564_v28, %v5564_v28 }
 0x276   : > { %v5822_v22 = vadd.f32 %v5821_v41, %v5791_v30 }
 0x277   : > { %v6471_v40 = vpack.c.bf16 %v5567_v32, %v5566_v16  ;;  %v5565_v26 = vadd.f32 %v5524_v38, %v5067_v47  ;;  %v5755_v58 = vadd.f32 %v5754_v35, %v5564_v28  ;;  %v5796_v23 = vmul.f32 %v5567_v32, %v5567_v32 }
 0x278   : > { %v5823_v39 = vadd.f32 %v5822_v22, %v5792_v63 }
 0x279   : > { %6487 = vst [vmem:[%s10033_s26 + $0x78] sm:$0xff] %v6471_v40   ;;  %v6466_v33 = vpack.c.bf16 %v5565_v26, %v5564_v28  ;;  %v5794_v15 = vmul.f32 %v5565_v26, %v5565_v26  ;;  %v5756_v37 = vadd.f32 %v5755_v58, %v5565_v26 }
 0x27a   : > { %v5824_v14 = vadd.f32 %v5823_v39, %v5793_v27 }
 0x27b   : > { %6486 = vst [vmem:[%s10033_s26 + $0x70] sm:$0xff] %v6466_v33   ;;  %v5757_v20 = vadd.f32 %v5756_v37, %v5566_v16 }
 0x27c   : > { %v5825_v34 = vadd.f32 %v5824_v14, %v5794_v15 }
 0x27d   : > { %v5758_v51 = vadd.f32 %v5757_v20, %v5567_v32 }
 0x27e   : > { %v5826_v9 = vadd.f32 %v5825_v34, %v5795_v18 }
 0x27f   : > { %v5759_v29 = vrot.slane %v5758_v51, 4 }
 0x280   : > { %v5827_v19 = vadd.f32 %v5826_v9, %v5796_v23 }
 0x281   : > { %v5760_v8 = vadd.f32 %v5759_v29, %v5758_v51 }
 0x282   : > { %v5828_v53 = vrot.slane %v5827_v19, 4 }
 0x283   : > { %v5761_v49 = vrot.slane %v5760_v8, 2 }
 0x284   : > { %v5829_v42 = vadd.f32 %v5828_v53, %v5827_v19 }
 0x285   : > { %v5762_v56 = vadd.f32 %v5761_v49, %v5760_v8 }
 0x286   : > { %v5830_v0 = vrot.slane %v5829_v42, 2 }
 0x287   : > { %v5763_v55 = vrot.slane %v5762_v56, 1 }
 0x288   : > { %v5831_v4 = vadd.f32 %v5830_v0, %v5829_v42 }
 0x289   : > { %v5764_v52 = vadd.f32 %v5763_v55, %v5762_v56 }
 0x28a   : > { %v5832_v54 = vrot.slane %v5831_v4, 1 }
 0x28c   : > { %v5833_v31 = vadd.f32 %v5832_v54, %v5831_v4 }
 0x28e   : > { %v5835_v60 = vsel %vm223_vm0, %v5764_v52, %v5833_v31 }
 0x28f   : > { %5836 = vst [vmem:[%s181_s28] sm:$0x3] %v5835_v60 }
 0x290 PF: > { %s14_s12 = sadd.s32 1, %s7311_s12  }
 0x291   : > { %p11_p4 = scmp.ge.s32.totalorder %s14_s12, 4  }
 0x293   :  { %13 = sbr.rel (!%p11_p4) target bundleno = 1 (0x1), region = 81 }

</bundles_post_ra>
